<compile_context>
chip_gen: v7x
topology: tpu7x:2x2x1
jax: 0.10.0
libtpu: 0.0.40
codegen_flags: <defaults>
</compile_context>

<pallas_src>
import functools

import jax
import jax.numpy as jnp
from jax import lax
from jax.experimental import pallas as pl
from jax.experimental.pallas import tpu as pltpu

LANE = 128


def _round_up(x, m):
    return (x + m - 1) // m * m


def _pad_axis(x, target, axis):
    pad = target - x.shape[axis]
    if pad <= 0:
        return x
    widths = [(0, 0)] * x.ndim
    widths[axis] = (0, pad)
    return jnp.pad(x, widths)


# ----------------------------------------------------------------------------
# Kernel 1: K-tiled fused matmul -> BN(scale,bias) -> SiLU
# ----------------------------------------------------------------------------
def _mm_bn_silu_kernel(x_ref, w_ref, s_ref, b_ref, o_ref, acc_ref):
    k = pl.program_id(2)

    @pl.when(k == 0)
    def _():
        acc_ref[...] = jnp.zeros_like(acc_ref)

    acc_ref[...] += jnp.dot(x_ref[...], w_ref[...],
                            preferred_element_type=jnp.float32)

    @pl.when(k == pl.num_programs(2) - 1)
    def _():
        y = acc_ref[...] * s_ref[...] + b_ref[...]
        o_ref[...] = (y * jax.nn.sigmoid(y)).astype(o_ref.dtype)


def fused_conv1x1(x2d, w, scale, bias, *, tm, out_dtype=jnp.bfloat16):
    """silu((x2d[:, :K] @ w) * scale + bias).

    x2d: (Mp, Kx) bf16 with Kx >= K = w.shape[0]; only the first K columns are
    read (lets callers pass a wider activation, e.g. the [x_1|x_2] buffer).
    """
    Mp, Kx = x2d.shape
    K, Np = w.shape
    assert Mp % tm == 0 and K % LANE == 0 and Np % LANE == 0 and Kx >= K
    tn = 256 if Np % 256 == 0 else LANE
    tk = 512 if K % 512 == 0 else (256 if K % 256 == 0 else LANE)
    gm, gn, gk = Mp // tm, Np // tn, K // tk

    s2 = scale.reshape(1, Np).astype(jnp.float32)
    b2 = bias.reshape(1, Np).astype(jnp.float32)

    cost = pl.CostEstimate(
        flops=2 * Mp * K * Np,
        transcendentals=Mp * Np,
        bytes_accessed=(Mp * K + K * Np + Mp * Np) * 2 + 2 * Np * 4)

    return pl.pallas_call(
        _mm_bn_silu_kernel,
        out_shape=jax.ShapeDtypeStruct((Mp, Np), out_dtype),
        grid_spec=pltpu.PrefetchScalarGridSpec(
            num_scalar_prefetch=0,
            grid=(gm, gn, gk),
            in_specs=[
                pl.BlockSpec((tm, tk), lambda i, j, k: (i, k)),
                pl.BlockSpec((tk, tn), lambda i, j, k: (k, j)),
                pl.BlockSpec((1, tn), lambda i, j, k: (0, j)),
                pl.BlockSpec((1, tn), lambda i, j, k: (0, j)),
            ],
            out_specs=pl.BlockSpec((tm, tn), lambda i, j, k: (i, j)),
            scratch_shapes=[pltpu.VMEM((tm, tn), jnp.float32)],
        ),
        compiler_params=pltpu.CompilerParams(
            dimension_semantics=("parallel", "parallel", "arbitrary")),
        cost_estimate=cost,
    )(x2d, w, s2, b2)


# ----------------------------------------------------------------------------
# Kernel 2: conv3 -- two-operand fused matmul (no HBM concat of x_1, x_2)
# ----------------------------------------------------------------------------
def _mm2_bn_silu_kernel(x1_ref, x2_ref, w1_ref, w2_ref, s_ref, b_ref, o_ref):
    y = jnp.dot(x1_ref[...], w1_ref[...], preferred_element_type=jnp.float32)
    y = y + jnp.dot(x2_ref[...], w2_ref[...], preferred_element_type=jnp.float32)
    y = y * s_ref[...] + b_ref[...]
    o_ref[...] = (y * jax.nn.sigmoid(y)).astype(o_ref.dtype)


def fused_conv1x1_dual(x1, c1blk, x2, c2blk, w1, w2, scale, bias, *, tm,
                       out_dtype=jnp.float32):
    """silu((x1_cols @ w1 + x2_cols @ w2) * scale + bias).

    x1/x2 may be wider than Kh columns; the Kh-wide column block at block index
    c1blk/c2blk (block width Kh) is read in place -- no slicing/copy in HBM.
    """
    Mp = x1.shape[0]
    Kh, Np = w1.shape
    assert x2.shape[0] == Mp and w2.shape == (Kh, Np) and Mp % tm == 0
    tn = 256 if Np % 256 == 0 else LANE
    gm, gn = Mp // tm, Np // tn
    s2 = scale.reshape(1, Np).astype(jnp.float32)
    b2 = bias.reshape(1, Np).astype(jnp.float32)

    cost = pl.CostEstimate(
        flops=2 * Mp * (2 * Kh) * Np,
        transcendentals=Mp * Np,
        bytes_accessed=(2 * Mp * Kh + 2 * Kh * Np) * 2 + Mp * Np * 4)

    return pl.pallas_call(
        _mm2_bn_silu_kernel,
        out_shape=jax.ShapeDtypeStruct((Mp, Np), out_dtype),
        grid_spec=pltpu.PrefetchScalarGridSpec(
            num_scalar_prefetch=0,
            grid=(gm, gn),
            in_specs=[
                pl.BlockSpec((tm, Kh), lambda i, j: (i, c1blk)),
                pl.BlockSpec((tm, Kh), lambda i, j: (i, c2blk)),
                pl.BlockSpec((Kh, tn), lambda i, j: (0, j)),
                pl.BlockSpec((Kh, tn), lambda i, j: (0, j)),
                pl.BlockSpec((1, tn), lambda i, j: (0, j)),
                pl.BlockSpec((1, tn), lambda i, j: (0, j)),
            ],
            out_specs=pl.BlockSpec((tm, tn), lambda i, j: (i, j)),
        ),
        compiler_params=pltpu.CompilerParams(
            dimension_semantics=("parallel", "parallel")),
        cost_estimate=cost,
    )(x1, x2, w1, w2, s2, b2)


# ----------------------------------------------------------------------------
# Kernel 3: 3x3 "same" conv as 9 shifted matmuls + BN + SiLU + residual
# (no im2col -- the halo-padded image is loaded into VMEM once per grid step)
# ----------------------------------------------------------------------------
def _conv3x3_bn_silu_res_kernel(xp_ref, w_ref, s_ref, b_ref, r_ref, o_ref,
                                acc_ref):
    H = xp_ref.shape[1] - 2
    W = xp_ref.shape[2] - 2
    Cin = xp_ref.shape[3]
    HW, _ = o_ref.shape

    acc_ref[...] = jnp.zeros_like(acc_ref)
    for kh in range(3):
        for kw in range(3):
            tap = xp_ref[0, kh:kh + H, kw:kw + W, :].reshape(HW, Cin)
            acc_ref[...] += jnp.dot(tap, w_ref[kh * 3 + kw],
                                    preferred_element_type=jnp.float32)
    y = acc_ref[...] * s_ref[...] + b_ref[...]
    o_ref[...] = (y * jax.nn.sigmoid(y)
                  + r_ref[...].astype(jnp.float32)).astype(o_ref.dtype)


def fused_conv3x3(y_mat, M, N, H, W, w9, scale, bias, res_src, res_colblk, *,
                  out_rows, out_dtype=jnp.bfloat16):
    """3x3 stride-1 conv + BN + SiLU + residual, one image per grid step.

    y_mat:   (Mp, Cin) bf16; only the first M = N*H*W rows are valid pixels.
    w9:      (9, Cin, Cout) bf16 taps, row order (kh, kw).
    res_src: residual source; the Cout-wide column block `res_colblk` is read.
    Returns (out_rows, Cout) bf16 (rows beyond N*H*W are never written).
    """
    Cin = y_mat.shape[1]
    Cout = w9.shape[2]
    HW = H * W
    # Spatial halo padding (one cheap pass in XLA; ~1.1x, not the 9x im2col blowup).
    xp = jnp.pad(y_mat[:M].reshape(N, H, W, Cin),
                 ((0, 0), (1, 1), (1, 1), (0, 0)))
    s2 = scale.reshape(1, Cout).astype(jnp.float32)
    b2 = bias.reshape(1, Cout).astype(jnp.float32)

    cost = pl.CostEstimate(
        flops=2 * M * 9 * Cin * Cout,
        transcendentals=M * Cout,
        bytes_accessed=(N * (H + 2) * (W + 2) * Cin + 9 * Cin * Cout
                        + 2 * M * Cout) * 2)

    return pl.pallas_call(
        _conv3x3_bn_silu_res_kernel,
        out_shape=jax.ShapeDtypeStruct((out_rows, Cout), out_dtype),
        grid_spec=pltpu.PrefetchScalarGridSpec(
            num_scalar_prefetch=0,
            grid=(N,),
            in_specs=[
                pl.BlockSpec((1, H + 2, W + 2, Cin), lambda n: (n, 0, 0, 0)),
                pl.BlockSpec((9, Cin, Cout), lambda n: (0, 0, 0)),
                pl.BlockSpec((1, Cout), lambda n: (0, 0)),
                pl.BlockSpec((1, Cout), lambda n: (0, 0)),
                pl.BlockSpec((HW, Cout), lambda n: (n, res_colblk)),
            ],
            out_specs=pl.BlockSpec((HW, Cout), lambda n: (n, 0)),
            scratch_shapes=[pltpu.VMEM((HW, Cout), jnp.float32)],
        ),
        compiler_params=pltpu.CompilerParams(
            dimension_semantics=("parallel",)),
        cost_estimate=cost,
    )(xp, w9, s2, b2, res_src)


# ----------------------------------------------------------------------------
# Parameter construction (logical sizes, f32; BN folded into scale/bias)
# ----------------------------------------------------------------------------
def fold_bn(gamma, beta, mean, var, eps=1e-5):
    scale = gamma / jnp.sqrt(var + eps)
    return scale, beta - mean * scale


def make_conv_params(key, w_shape, c_out):
    kw_, kg, kb, km, kv = jax.random.split(key, 5)
    w = jax.random.normal(kw_, w_shape, jnp.float32) * 0.1
    gamma = jax.random.uniform(kg, (c_out,), jnp.float32, 0.8, 1.2)
    beta = jax.random.normal(kb, (c_out,), jnp.float32) * 0.1
    mean = jax.random.normal(km, (c_out,), jnp.float32) * 0.1
    var = jax.random.uniform(kv, (c_out,), jnp.float32, 0.5, 1.5)
    s, b = fold_bn(gamma, beta, mean, var)
    return {"w": w, "s": s, "b": b}


def make_csp_params(key, in_channels, out_channels, n=1, expansion=0.5):
    hidden = int(out_channels * expansion)
    keys = jax.random.split(key, 3 + 2 * n)
    params = {
        "hidden": hidden,
        "conv1": make_conv_params(keys[0], (in_channels, hidden), hidden),
        "conv2": make_conv_params(keys[1], (in_channels, hidden), hidden),
        "conv3": make_conv_params(keys[2], (2 * hidden, out_channels), out_channels),
        "bottlenecks": [],
    }
    for i in range(n):
        b1 = make_conv_params(keys[3 + 2 * i], (hidden, hidden), hidden)        # 1x1
        b2 = make_conv_params(keys[4 + 2 * i], (3, 3, hidden, hidden), hidden)  # 3x3 HWIO
        params["bottlenecks"].append({"c1": b1, "c2": b2})
    return params


def prepare_kernel_params(p, in_channels, out_channels):
    """Zero-pad channels to multiples of 128, cast weights to bf16, pre-split W3."""
    hid = p["hidden"]
    c_p = _round_up(in_channels, LANE)
    hid_p = _round_up(hid, LANE)
    out_p = _round_up(out_channels, LANE)

    def padw(w, r, c):
        return jnp.pad(w, ((0, r - w.shape[0]), (0, c - w.shape[1]))).astype(jnp.bfloat16)

    def padv(v, n):
        return jnp.pad(v, (0, n - v.shape[0])).astype(jnp.float32)

    p1, p2, p3 = p["conv1"], p["conv2"], p["conv3"]
    kp = {
        "hid_p": hid_p, "c_p": c_p, "out_p": out_p, "out_channels": out_channels,
        # conv1 & conv2 fused: x @ [W1 | W2]
        "w12": jnp.concatenate([padw(p1["w"], c_p, hid_p),
                                padw(p2["w"], c_p, hid_p)], axis=1),
        "s12": jnp.concatenate([padv(p1["s"], hid_p), padv(p2["s"], hid_p)]),
        "b12": jnp.concatenate([padv(p1["b"], hid_p), padv(p2["b"], hid_p)]),
        # conv3 split by input halves (so no concat of x_1/x_2 is ever needed)
        "w3a": padw(p3["w"][:hid], hid_p, out_p),
        "w3b": padw(p3["w"][hid:], hid_p, out_p),
        "s3": padv(p3["s"], out_p),
        "b3": padv(p3["b"], out_p),
        "bottlenecks": [],
    }
    for blk in p["bottlenecks"]:
        w2 = blk["c2"]["w"]  # (3, 3, hid, hid)
        w2p = jnp.pad(w2, ((0, 0), (0, 0), (0, hid_p - hid), (0, hid_p - hid)))
        kp["bottlenecks"].append({
            "w1": padw(blk["c1"]["w"], hid_p, hid_p),
            "s1": padv(blk["c1"]["s"], hid_p),
            "b1": padv(blk["c1"]["b"], hid_p),
            "w9": w2p.reshape(9, hid_p, hid_p).astype(jnp.bfloat16),
            "s2": padv(blk["c2"]["s"], hid_p),
            "b2": padv(blk["c2"]["b"], hid_p),
        })
    return kp


# ----------------------------------------------------------------------------
# CSPLayer forward (all conv/BN/SiLU/residual hot paths run in Pallas kernels)
# ----------------------------------------------------------------------------
def csp_layer_forward(x_nhwc, params):
    kp = params
    N, H, W, _ = x_nhwc.shape
    hid_p, c_p, out_ch = kp["hid_p"], kp["c_p"], kp["out_channels"]

    M = N * H * W
    tm = 256 if M >= 256 else _round_up(M, 8)
    Mp = _round_up(M, tm)

    xf = _pad_axis(x_nhwc, c_p, axis=3).reshape(M, c_p)
    xf = _pad_axis(xf, Mp, axis=0).astype(jnp.bfloat16)

    # conv1 + conv2 in one kernel; halves land in their final "concat" slots.
    y12 = fused_conv1x1(xf, kp["w12"], kp["s12"], kp["b12"], tm=tm)

    # Bottleneck chain: 1x1 (reads x_1 = left half of y12 in place) then fused
    # 3x3 + BN + SiLU + residual (9 shifted matmuls, no im2col).
    x1_src = y12                       # x_1 lives in the first hid_p columns
    for blk in kp["bottlenecks"]:
        y = fused_conv1x1(x1_src, blk["w1"], blk["s1"], blk["b1"], tm=tm)
        x1_src = fused_conv3x3(y, M, N, H, W, blk["w9"], blk["s2"], blk["b2"],
                               res_src=x1_src, res_colblk=0, out_rows=Mp)

    # conv3: silu((x_1 @ W3_top + x_2 @ W3_bot) * s + b) -- x_2 read from y12.
    out = fused_conv1x1_dual(x1_src, 0, y12, 1, kp["w3a"], kp["w3b"],
                             kp["s3"], kp["b3"], tm=tm, out_dtype=jnp.float32)
    return out[:M, :out_ch].reshape(N, H, W, out_ch)


# ----------------------------------------------------------------------------
# Pure-JAX f32 reference (lax.conv) for correctness checking
# ----------------------------------------------------------------------------
def _ref_conv_bn_silu(x, w_hwio, scale, bias):
    y = lax.conv_general_dilated(x, w_hwio, (1, 1), "SAME",
                                 dimension_numbers=("NHWC", "HWIO", "NHWC"))
    y = y * scale + bias
    return y * jax.nn.sigmoid(y)


def ref_csp_layer(x, params):
    C = x.shape[-1]
    hid = params["hidden"]
    p1, p2, p3 = params["conv1"], params["conv2"], params["conv3"]
    x_1 = _ref_conv_bn_silu(x, p1["w"].reshape(1, 1, C, hid), p1["s"], p1["b"])
    x_2 = _ref_conv_bn_silu(x, p2["w"].reshape(1, 1, C, hid), p2["s"], p2["b"])
    for blk in params["bottlenecks"]:
        y = _ref_conv_bn_silu(x_1, blk["c1"]["w"].reshape(1, 1, hid, hid),
                              blk["c1"]["s"], blk["c1"]["b"])
        x_1 = _ref_conv_bn_silu(y, blk["c2"]["w"], blk["c2"]["s"], blk["c2"]["b"]) + x_1
    xcat = jnp.concatenate([x_1, x_2], axis=-1)
    return _ref_conv_bn_silu(xcat, p3["w"].reshape(1, 1, 2 * hid, -1),
                             p3["s"], p3["b"])


# ----------------------------------------------------------------------------
if __name__ == "__main__":
    key = jax.random.PRNGKey(0)
    k_x, k_p = jax.random.split(key)

    # CSPLayer(in_channels=4, out_channels=4, n=1, shortcut=True, expansion=0.5)
    N, C, H, W = 2, 4, 16, 16
    out_channels, n_blocks = 4, 1

    x_nchw = jax.random.normal(k_x, (N, C, H, W), jnp.float32)
    x_nhwc = jnp.transpose(x_nchw, (0, 2, 3, 1))  # kernel layout: NHWC

    params = make_csp_params(k_p, C, out_channels, n=n_blocks, expansion=0.5)
    kparams = prepare_kernel_params(params, C, out_channels)

    fwd = jax.jit(functools.partial(csp_layer_forward, params=kparams))
    out = jax.block_until_ready(fwd(x_nhwc))

    ref = jax.block_until_ready(ref_csp_layer(x_nhwc, params))
    assert out.shape == (N, H, W, out_channels), out.shape
    max_err = float(jnp.max(jnp.abs(out - ref)))
    # bf16 activations/weights with f32 accumulation -> loosened tolerance.
    assert jnp.allclose(out, ref, atol=3e-2, rtol=3e-2), max_err

    print("KERNEL_OK")
</pallas_src>

<mosaic_0001>
module attributes {stable_mosaic.version = 11 : i64} {
  func.func @_mm_bn_silu_kernel(%arg0: i32, %arg1: i32, %arg2: i32, %arg3: memref<256x128xbf16, #tpu.memory_space<vmem>>, %arg4: memref<128x128xbf16, #tpu.memory_space<vmem>>, %arg5: memref<1x128xf32, #tpu.memory_space<vmem>>, %arg6: memref<1x128xf32, #tpu.memory_space<vmem>>, %arg7: memref<256x128xbf16, #tpu.memory_space<vmem>>, %arg8: memref<256x128xf32, #tpu.memory_space<vmem>>) attributes {dimension_semantics = [#tpu.dimension_semantics<parallel>, #tpu.dimension_semantics<parallel>, #tpu.dimension_semantics<arbitrary>], iteration_bounds = array<i64: 2, 1, 1>, scalar_prefetch = 0 : i64, scratch_operands = 1 : i64, tpu.core_type = #tpu.core_type<tc>, window_params = [{transform_indices = @transform_0, window_bounds = array<i64: 256, 128>}, {transform_indices = @transform_1, window_bounds = array<i64: 128, 128>}, {transform_indices = @transform_2, window_bounds = array<i64: 1, 128>}, {transform_indices = @transform_3, window_bounds = array<i64: 1, 128>}, {transform_indices = @transform_4, window_bounds = array<i64: 256, 128>}]} {
    %c0_i32 = arith.constant 0 : i32
    %0 = arith.cmpi eq, %arg2, %c0_i32 : i32
    %1 = arith.extui %0 : i1 to i32
    %c0_i32_0 = arith.constant 0 : i32
    %2 = arith.cmpi ne, %1, %c0_i32_0 : i32
    scf.if %2 {
      %cst_10 = arith.constant 0.000000e+00 : f32
      %12 = vector.broadcast %cst_10 : f32 to vector<256x128xf32>
      %c0_11 = arith.constant 0 : index
      %c0_12 = arith.constant 0 : index
      %13 = vector.load %arg8[%c0_11, %c0_12] : memref<256x128xf32, #tpu.memory_space<vmem>>, vector<256x128xf32>
      tpu.vector_store %arg8[%c0_11, %c0_12], %12 {strides = array<i32>} : memref<256x128xf32, #tpu.memory_space<vmem>>, vector<256x128xf32>,
    } else {
    }
    %c0 = arith.constant 0 : index
    %c0_1 = arith.constant 0 : index
    %3 = vector.load %arg8[%c0, %c0_1] : memref<256x128xf32, #tpu.memory_space<vmem>>, vector<256x128xf32>
    %c0_2 = arith.constant 0 : index
    %c0_3 = arith.constant 0 : index
    %4 = vector.load %arg3[%c0_2, %c0_3] : memref<256x128xbf16, #tpu.memory_space<vmem>>, vector<256x128xbf16>
    %c0_4 = arith.constant 0 : index
    %c0_5 = arith.constant 0 : index
    %5 = vector.load %arg4[%c0_4, %c0_5] : memref<128x128xbf16, #tpu.memory_space<vmem>>, vector<128x128xbf16>
    %cst = arith.constant dense<0.000000e+00> : vector<256x128xf32>
    %6 = tpu.matmul %4, %5, %cst {dimension_numbers = #tpu.dot_dimension_numbers<[1], [0], [0], [1], [0, 0, 1, 1], [], []>} : vector<256x128xbf16>, vector<128x128xbf16>, vector<256x128xf32> -> vector<256x128xf32>
    %7 = arith.addf %3, %6 : vector<256x128xf32>
    %c0_6 = arith.constant 0 : index
    %c0_7 = arith.constant 0 : index
    %8 = vector.load %arg8[%c0_6, %c0_7] : memref<256x128xf32, #tpu.memory_space<vmem>>, vector<256x128xf32>
    tpu.vector_store %arg8[%c0_6, %c0_7], %7 {strides = array<i32>} : memref<256x128xf32, #tpu.memory_space<vmem>>, vector<256x128xf32>,
    %c0_i32_8 = arith.constant 0 : i32
    %9 = arith.cmpi eq, %arg2, %c0_i32_8 : i32
    %10 = arith.extui %9 : i1 to i32
    %c0_i32_9 = arith.constant 0 : i32
    %11 = arith.cmpi ne, %10, %c0_i32_9 : i32
    scf.if %11 {
      %c0_10 = arith.constant 0 : index
      %c0_11 = arith.constant 0 : index
      %12 = vector.load %arg8[%c0_10, %c0_11] : memref<256x128xf32, #tpu.memory_space<vmem>>, vector<256x128xf32>
      %c0_12 = arith.constant 0 : index
      %c0_13 = arith.constant 0 : index
      %13 = vector.load %arg5[%c0_12, %c0_13] : memref<1x128xf32, #tpu.memory_space<vmem>>, vector<1x128xf32>
      %14 = vector.broadcast %13 : vector<1x128xf32> to vector<256x128xf32>
      %15 = arith.mulf %12, %14 : vector<256x128xf32>
      %c0_14 = arith.constant 0 : index
      %c0_15 = arith.constant 0 : index
      %16 = vector.load %arg6[%c0_14, %c0_15] : memref<1x128xf32, #tpu.memory_space<vmem>>, vector<1x128xf32>
      %17 = vector.broadcast %16 : vector<1x128xf32> to vector<256x128xf32>
      %18 = arith.addf %15, %17 : vector<256x128xf32>
      %19 = arith.negf %18 : vector<256x128xf32>
      %20 = math.exp %19 : vector<256x128xf32>
      %cst_16 = arith.constant 1.000000e+00 : f32
      %21 = vector.broadcast %cst_16 : f32 to vector<256x128xf32>
      %22 = arith.addf %21, %20 : vector<256x128xf32>
      %23 = arith.divf %21, %22 : vector<256x128xf32>
      %24 = arith.mulf %18, %23 : vector<256x128xf32>
      %25 = arith.truncf %24 : vector<256x128xf32> to vector<256x128xbf16>
      %c0_17 = arith.constant 0 : index
      %c0_18 = arith.constant 0 : index
      %26 = vector.load %arg7[%c0_17, %c0_18] : memref<256x128xbf16, #tpu.memory_space<vmem>>, vector<256x128xbf16>
      tpu.vector_store %arg7[%c0_17, %c0_18], %25 {strides = array<i32>} : memref<256x128xbf16, #tpu.memory_space<vmem>>, vector<256x128xbf16>,
    } else {
    }
    return
  }
  func.func @transform_0(%arg0: i32, %arg1: i32, %arg2: i32) -> (i32, i32) {
    %c0_i32 = arith.constant 0 : i32
    return %arg0, %arg2 : i32, i32
  }
  func.func @transform_1(%arg0: i32, %arg1: i32, %arg2: i32) -> (i32, i32) {
    %c0_i32 = arith.constant 0 : i32
    return %arg2, %arg1 : i32, i32
  }
  func.func @transform_2(%arg0: i32, %arg1: i32, %arg2: i32) -> (i32, i32) {
    %c0_i32 = arith.constant 0 : i32
    %c0_i32_0 = arith.constant 0 : i32
    return %c0_i32, %arg1 : i32, i32
  }
  func.func @transform_3(%arg0: i32, %arg1: i32, %arg2: i32) -> (i32, i32) {
    %c0_i32 = arith.constant 0 : i32
    %c0_i32_0 = arith.constant 0 : i32
    return %c0_i32, %arg1 : i32, i32
  }
  func.func @transform_4(%arg0: i32, %arg1: i32, %arg2: i32) -> (i32, i32) {
    %c0_i32 = arith.constant 0 : i32
    return %arg0, %arg1 : i32, i32
  }
}

module attributes {stable_mosaic.version = 11 : i64} {
  func.func @_conv3x3_bn_silu_res_kernel(%arg0: i32, %arg1: memref<1x18x18x128xbf16, #tpu.memory_space<vmem>>, %arg2: memref<9x128x128xbf16, #tpu.memory_space<vmem>>, %arg3: memref<1x128xf32, #tpu.memory_space<vmem>>, %arg4: memref<1x128xf32, #tpu.memory_space<vmem>>, %arg5: memref<256x128xbf16, #tpu.memory_space<vmem>>, %arg6: memref<256x128xbf16, #tpu.memory_space<vmem>>, %arg7: memref<256x128xf32, #tpu.memory_space<vmem>>) attributes {dimension_semantics = [#tpu.dimension_semantics<parallel>], iteration_bounds = array<i64: 2>, scalar_prefetch = 0 : i64, scratch_operands = 1 : i64, tpu.core_type = #tpu.core_type<tc>, window_params = [{transform_indices = @transform_0, window_bounds = array<i64: 1, 18, 18, 128>}, {pipeline_mode = #tpu.pipeline_mode<synchronous>, transform_indices = @transform_1, window_bounds = array<i64: 9, 128, 128>}, {pipeline_mode = #tpu.pipeline_mode<synchronous>, transform_indices = @transform_2, window_bounds = array<i64: 1, 128>}, {pipeline_mode = #tpu.pipeline_mode<synchronous>, transform_indices = @transform_3, window_bounds = array<i64: 1, 128>}, {transform_indices = @transform_4, window_bounds = array<i64: 256, 128>}, {transform_indices = @transform_5, window_bounds = array<i64: 256, 128>}]} {
    %cst = arith.constant 0.000000e+00 : f32
    %0 = vector.broadcast %cst : f32 to vector<256x128xf32>
    %c0 = arith.constant 0 : index
    %c0_0 = arith.constant 0 : index
    %1 = vector.load %arg7[%c0, %c0_0] : memref<256x128xf32, #tpu.memory_space<vmem>>, vector<256x128xf32>
    tpu.vector_store %arg7[%c0, %c0_0], %0 {strides = array<i32>} : memref<256x128xf32, #tpu.memory_space<vmem>>, vector<256x128xf32>,
    %c0_1 = arith.constant 0 : index
    %c0_2 = arith.constant 0 : index
    %c0_3 = arith.constant 0 : index
    %c0_4 = arith.constant 0 : index
    %2 = vector.load %arg1[%c0_1, %c0_2, %c0_3, %c0_4] : memref<1x18x18x128xbf16, #tpu.memory_space<vmem>>, vector<1x16x16x128xbf16>
    %3 = vector.shape_cast %2 : vector<1x16x16x128xbf16> to vector<16x16x128xbf16>
    %4 = vector.shape_cast %3 : vector<16x16x128xbf16> to vector<256x128xbf16>
    %c0_5 = arith.constant 0 : index
    %c0_6 = arith.constant 0 : index
    %5 = vector.load %arg7[%c0_5, %c0_6] : memref<256x128xf32, #tpu.memory_space<vmem>>, vector<256x128xf32>
    %c0_7 = arith.constant 0 : index
    %c0_8 = arith.constant 0 : index
    %c0_9 = arith.constant 0 : index
    %6 = vector.load %arg2[%c0_7, %c0_8, %c0_9] : memref<9x128x128xbf16, #tpu.memory_space<vmem>>, vector<1x128x128xbf16>
    %7 = vector.shape_cast %6 : vector<1x128x128xbf16> to vector<128x128xbf16>
    %cst_10 = arith.constant dense<0.000000e+00> : vector<256x128xf32>
    %8 = tpu.matmul %4, %7, %cst_10 {dimension_numbers = #tpu.dot_dimension_numbers<[1], [0], [0], [1], [0, 0, 1, 1], [], []>} : vector<256x128xbf16>, vector<128x128xbf16>, vector<256x128xf32> -> vector<256x128xf32>
    %9 = arith.addf %5, %8 : vector<256x128xf32>
    %c0_11 = arith.constant 0 : index
    %c0_12 = arith.constant 0 : index
    %10 = vector.load %arg7[%c0_11, %c0_12] : memref<256x128xf32, #tpu.memory_space<vmem>>, vector<256x128xf32>
    tpu.vector_store %arg7[%c0_11, %c0_12], %9 {strides = array<i32>} : memref<256x128xf32, #tpu.memory_space<vmem>>, vector<256x128xf32>,
    %c0_13 = arith.constant 0 : index
    %c0_14 = arith.constant 0 : index
    %c1 = arith.constant 1 : index
    %c0_15 = arith.constant 0 : index
    %11 = vector.load %arg1[%c0_13, %c0_14, %c1, %c0_15] : memref<1x18x18x128xbf16, #tpu.memory_space<vmem>>, vector<1x16x16x128xbf16>
    %12 = vector.shape_cast %11 : vector<1x16x16x128xbf16> to vector<16x16x128xbf16>
    %13 = vector.shape_cast %12 : vector<16x16x128xbf16> to vector<256x128xbf16>
    %c0_16 = arith.constant 0 : index
    %c0_17 = arith.constant 0 : index
    %14 = vector.load %arg7[%c0_16, %c0_17] : memref<256x128xf32, #tpu.memory_space<vmem>>, vector<256x128xf32>
    %c1_18 = arith.constant 1 : index
    %c0_19 = arith.constant 0 : index
    %c0_20 = arith.constant 0 : index
    %15 = vector.load %arg2[%c1_18, %c0_19, %c0_20] : memref<9x128x128xbf16, #tpu.memory_space<vmem>>, vector<1x128x128xbf16>
    %16 = vector.shape_cast %15 : vector<1x128x128xbf16> to vector<128x128xbf16>
    %cst_21 = arith.constant dense<0.000000e+00> : vector<256x128xf32>
    %17 = tpu.matmul %13, %16, %cst_21 {dimension_numbers = #tpu.dot_dimension_numbers<[1], [0], [0], [1], [0, 0, 1, 1], [], []>} : vector<256x128xbf16>, vector<128x128xbf16>, vector<256x128xf32> -> vector<256x128xf32>
    %18 = arith.addf %14, %17 : vector<256x128xf32>
    %c0_22 = arith.constant 0 : index
    %c0_23 = arith.constant 0 : index
    %19 = vector.load %arg7[%c0_22, %c0_23] : memref<256x128xf32, #tpu.memory_space<vmem>>, vector<256x128xf32>
    tpu.vector_store %arg7[%c0_22, %c0_23], %18 {strides = array<i32>} : memref<256x128xf32, #tpu.memory_space<vmem>>, vector<256x128xf32>,
    %c0_24 = arith.constant 0 : index
    %c0_25 = arith.constant 0 : index
    %c2 = arith.constant 2 : index
    %c0_26 = arith.constant 0 : index
    %20 = vector.load %arg1[%c0_24, %c0_25, %c2, %c0_26] : memref<1x18x18x128xbf16, #tpu.memory_space<vmem>>, vector<1x16x16x128xbf16>
    %21 = vector.shape_cast %20 : vector<1x16x16x128xbf16> to vector<16x16x128xbf16>
    %22 = vector.shape_cast %21 : vector<16x16x128xbf16> to vector<256x128xbf16>
    %c0_27 = arith.constant 0 : index
    %c0_28 = arith.constant 0 : index
    %23 = vector.load %arg7[%c0_27, %c0_28] : memref<256x128xf32, #tpu.memory_space<vmem>>, vector<256x128xf32>
    %c2_29 = arith.constant 2 : index
    %c0_30 = arith.constant 0 : index
    %c0_31 = arith.constant 0 : index
    %24 = vector.load %arg2[%c2_29, %c0_30, %c0_31] : memref<9x128x128xbf16, #tpu.memory_space<vmem>>, vector<1x128x128xbf16>
    %25 = vector.shape_cast %24 : vector<1x128x128xbf16> to vector<128x128xbf16>
    %cst_32 = arith.constant dense<0.000000e+00> : vector<256x128xf32>
    %26 = tpu.matmul %22, %25, %cst_32 {dimension_numbers = #tpu.dot_dimension_numbers<[1], [0], [0], [1], [0, 0, 1, 1], [], []>} : vector<256x128xbf16>, vector<128x128xbf16>, vector<256x128xf32> -> vector<256x128xf32>
    %27 = arith.addf %23, %26 : vector<256x128xf32>
    %c0_33 = arith.constant 0 : index
    %c0_34 = arith.constant 0 : index
    %28 = vector.load %arg7[%c0_33, %c0_34] : memref<256x128xf32, #tpu.memory_space<vmem>>, vector<256x128xf32>
    tpu.vector_store %arg7[%c0_33, %c0_34], %27 {strides = array<i32>} : memref<256x128xf32, #tpu.memory_space<vmem>>, vector<256x128xf32>,
    %c0_35 = arith.constant 0 : index
    %c1_36 = arith.constant 1 : index
    %c0_37 = arith.constant 0 : index
    %c0_38 = arith.constant 0 : index
    %29 = vector.load %arg1[%c0_35, %c1_36, %c0_37, %c0_38] : memref<1x18x18x128xbf16, #tpu.memory_space<vmem>>, vector<1x16x16x128xbf16>
    %30 = vector.shape_cast %29 : vector<1x16x16x128xbf16> to vector<16x16x128xbf16>
    %31 = vector.shape_cast %30 : vector<16x16x128xbf16> to vector<256x128xbf16>
    %c0_39 = arith.constant 0 : index
    %c0_40 = arith.constant 0 : index
    %32 = vector.load %arg7[%c0_39, %c0_40] : memref<256x128xf32, #tpu.memory_space<vmem>>, vector<256x128xf32>
    %c3 = arith.constant 3 : index
    %c0_41 = arith.constant 0 : index
    %c0_42 = arith.constant 0 : index
    %33 = vector.load %arg2[%c3, %c0_41, %c0_42] : memref<9x128x128xbf16, #tpu.memory_space<vmem>>, vector<1x128x128xbf16>
    %34 = vector.shape_cast %33 : vector<1x128x128xbf16> to vector<128x128xbf16>
    %cst_43 = arith.constant dense<0.000000e+00> : vector<256x128xf32>
    %35 = tpu.matmul %31, %34, %cst_43 {dimension_numbers = #tpu.dot_dimension_numbers<[1], [0], [0], [1], [0, 0, 1, 1], [], []>} : vector<256x128xbf16>, vector<128x128xbf16>, vector<256x128xf32> -> vector<256x128xf32>
    %36 = arith.addf %32, %35 : vector<256x128xf32>
    %c0_44 = arith.constant 0 : index
    %c0_45 = arith.constant 0 : index
    %37 = vector.load %arg7[%c0_44, %c0_45] : memref<256x128xf32, #tpu.memory_space<vmem>>, vector<256x128xf32>
    tpu.vector_store %arg7[%c0_44, %c0_45], %36 {strides = array<i32>} : memref<256x128xf32, #tpu.memory_space<vmem>>, vector<256x128xf32>,
    %c0_46 = arith.constant 0 : index
    %c1_47 = arith.constant 1 : index
    %c1_48 = arith.constant 1 : index
    %c0_49 = arith.constant 0 : index
    %38 = vector.load %arg1[%c0_46, %c1_47, %c1_48, %c0_49] : memref<1x18x18x128xbf16, #tpu.memory_space<vmem>>, vector<1x16x16x128xbf16>
    %39 = vector.shape_cast %38 : vector<1x16x16x128xbf16> to vector<16x16x128xbf16>
    %40 = vector.shape_cast %39 : vector<16x16x128xbf16> to vector<256x128xbf16>
    %c0_50 = arith.constant 0 : index
    %c0_51 = arith.constant 0 : index
    %41 = vector.load %arg7[%c0_50, %c0_51] : memref<256x128xf32, #tpu.memory_space<vmem>>, vector<256x128xf32>
    %c4 = arith.constant 4 : index
    %c0_52 = arith.constant 0 : index
    %c0_53 = arith.constant 0 : index
    %42 = vector.load %arg2[%c4, %c0_52, %c0_53] : memref<9x128x128xbf16, #tpu.memory_space<vmem>>, vector<1x128x128xbf16>
    %43 = vector.shape_cast %42 : vector<1x128x128xbf16> to vector<128x128xbf16>
    %cst_54 = arith.constant dense<0.000000e+00> : vector<256x128xf32>
    %44 = tpu.matmul %40, %43, %cst_54 {dimension_numbers = #tpu.dot_dimension_numbers<[1], [0], [0], [1], [0, 0, 1, 1], [], []>} : vector<256x128xbf16>, vector<128x128xbf16>, vector<256x128xf32> -> vector<256x128xf32>
    %45 = arith.addf %41, %44 : vector<256x128xf32>
    %c0_55 = arith.constant 0 : index
    %c0_56 = arith.constant 0 : index
    %46 = vector.load %arg7[%c0_55, %c0_56] : memref<256x128xf32, #tpu.memory_space<vmem>>, vector<256x128xf32>
    tpu.vector_store %arg7[%c0_55, %c0_56], %45 {strides = array<i32>} : memref<256x128xf32, #tpu.memory_space<vmem>>, vector<256x128xf32>,
    %c0_57 = arith.constant 0 : index
    %c1_58 = arith.constant 1 : index
    %c2_59 = arith.constant 2 : index
    %c0_60 = arith.constant 0 : index
    %47 = vector.load %arg1[%c0_57, %c1_58, %c2_59, %c0_60] : memref<1x18x18x128xbf16, #tpu.memory_space<vmem>>, vector<1x16x16x128xbf16>
    %48 = vector.shape_cast %47 : vector<1x16x16x128xbf16> to vector<16x16x128xbf16>
    %49 = vector.shape_cast %48 : vector<16x16x128xbf16> to vector<256x128xbf16>
    %c0_61 = arith.constant 0 : index
    %c0_62 = arith.constant 0 : index
    %50 = vector.load %arg7[%c0_61, %c0_62] : memref<256x128xf32, #tpu.memory_space<vmem>>, vector<256x128xf32>
    %c5 = arith.constant 5 : index
    %c0_63 = arith.constant 0 : index
    %c0_64 = arith.constant 0 : index
    %51 = vector.load %arg2[%c5, %c0_63, %c0_64] : memref<9x128x128xbf16, #tpu.memory_space<vmem>>, vector<1x128x128xbf16>
    %52 = vector.shape_cast %51 : vector<1x128x128xbf16> to vector<128x128xbf16>
    %cst_65 = arith.constant dense<0.000000e+00> : vector<256x128xf32>
    %53 = tpu.matmul %49, %52, %cst_65 {dimension_numbers = #tpu.dot_dimension_numbers<[1], [0], [0], [1], [0, 0, 1, 1], [], []>} : vector<256x128xbf16>, vector<128x128xbf16>, vector<256x128xf32> -> vector<256x128xf32>
    %54 = arith.addf %50, %53 : vector<256x128xf32>
    %c0_66 = arith.constant 0 : index
    %c0_67 = arith.constant 0 : index
    %55 = vector.load %arg7[%c0_66, %c0_67] : memref<256x128xf32, #tpu.memory_space<vmem>>, vector<256x128xf32>
    tpu.vector_store %arg7[%c0_66, %c0_67], %54 {strides = array<i32>} : memref<256x128xf32, #tpu.memory_space<vmem>>, vector<256x128xf32>,
    %c0_68 = arith.constant 0 : index
    %c2_69 = arith.constant 2 : index
    %c0_70 = arith.constant 0 : index
    %c0_71 = arith.constant 0 : index
    %56 = vector.load %arg1[%c0_68, %c2_69, %c0_70, %c0_71] : memref<1x18x18x128xbf16, #tpu.memory_space<vmem>>, vector<1x16x16x128xbf16>
    %57 = vector.shape_cast %56 : vector<1x16x16x128xbf16> to vector<16x16x128xbf16>
    %58 = vector.shape_cast %57 : vector<16x16x128xbf16> to vector<256x128xbf16>
    %c0_72 = arith.constant 0 : index
    %c0_73 = arith.constant 0 : index
    %59 = vector.load %arg7[%c0_72, %c0_73] : memref<256x128xf32, #tpu.memory_space<vmem>>, vector<256x128xf32>
    %c6 = arith.constant 6 : index
    %c0_74 = arith.constant 0 : index
    %c0_75 = arith.constant 0 : index
    %60 = vector.load %arg2[%c6, %c0_74, %c0_75] : memref<9x128x128xbf16, #tpu.memory_space<vmem>>, vector<1x128x128xbf16>
    %61 = vector.shape_cast %60 : vector<1x128x128xbf16> to vector<128x128xbf16>
    %cst_76 = arith.constant dense<0.000000e+00> : vector<256x128xf32>
    %62 = tpu.matmul %58, %61, %cst_76 {dimension_numbers = #tpu.dot_dimension_numbers<[1], [0], [0], [1], [0, 0, 1, 1], [], []>} : vector<256x128xbf16>, vector<128x128xbf16>, vector<256x128xf32> -> vector<256x128xf32>
    %63 = arith.addf %59, %62 : vector<256x128xf32>
    %c0_77 = arith.constant 0 : index
    %c0_78 = arith.constant 0 : index
    %64 = vector.load %arg7[%c0_77, %c0_78] : memref<256x128xf32, #tpu.memory_space<vmem>>, vector<256x128xf32>
    tpu.vector_store %arg7[%c0_77, %c0_78], %63 {strides = array<i32>} : memref<256x128xf32, #tpu.memory_space<vmem>>, vector<256x128xf32>,
    %c0_79 = arith.constant 0 : index
    %c2_80 = arith.constant 2 : index
    %c1_81 = arith.constant 1 : index
    %c0_82 = arith.constant 0 : index
    %65 = vector.load %arg1[%c0_79, %c2_80, %c1_81, %c0_82] : memref<1x18x18x128xbf16, #tpu.memory_space<vmem>>, vector<1x16x16x128xbf16>
    %66 = vector.shape_cast %65 : vector<1x16x16x128xbf16> to vector<16x16x128xbf16>
    %67 = vector.shape_cast %66 : vector<16x16x128xbf16> to vector<256x128xbf16>
    %c0_83 = arith.constant 0 : index
    %c0_84 = arith.constant 0 : index
    %68 = vector.load %arg7[%c0_83, %c0_84] : memref<256x128xf32, #tpu.memory_space<vmem>>, vector<256x128xf32>
    %c7 = arith.constant 7 : index
    %c0_85 = arith.constant 0 : index
    %c0_86 = arith.constant 0 : index
    %69 = vector.load %arg2[%c7, %c0_85, %c0_86] : memref<9x128x128xbf16, #tpu.memory_space<vmem>>, vector<1x128x128xbf16>
    %70 = vector.shape_cast %69 : vector<1x128x128xbf16> to vector<128x128xbf16>
    %cst_87 = arith.constant dense<0.000000e+00> : vector<256x128xf32>
    %71 = tpu.matmul %67, %70, %cst_87 {dimension_numbers = #tpu.dot_dimension_numbers<[1], [0], [0], [1], [0, 0, 1, 1], [], []>} : vector<256x128xbf16>, vector<128x128xbf16>, vector<256x128xf32> -> vector<256x128xf32>
    %72 = arith.addf %68, %71 : vector<256x128xf32>
    %c0_88 = arith.constant 0 : index
    %c0_89 = arith.constant 0 : index
    %73 = vector.load %arg7[%c0_88, %c0_89] : memref<256x128xf32, #tpu.memory_space<vmem>>, vector<256x128xf32>
    tpu.vector_store %arg7[%c0_88, %c0_89], %72 {strides = array<i32>} : memref<256x128xf32, #tpu.memory_space<vmem>>, vector<256x128xf32>,
    %c0_90 = arith.constant 0 : index
    %c2_91 = arith.constant 2 : index
    %c2_92 = arith.constant 2 : index
    %c0_93 = arith.constant 0 : index
    %74 = vector.load %arg1[%c0_90, %c2_91, %c2_92, %c0_93] : memref<1x18x18x128xbf16, #tpu.memory_space<vmem>>, vector<1x16x16x128xbf16>
    %75 = vector.shape_cast %74 : vector<1x16x16x128xbf16> to vector<16x16x128xbf16>
    %76 = vector.shape_cast %75 : vector<16x16x128xbf16> to vector<256x128xbf16>
    %c0_94 = arith.constant 0 : index
    %c0_95 = arith.constant 0 : index
    %77 = vector.load %arg7[%c0_94, %c0_95] : memref<256x128xf32, #tpu.memory_space<vmem>>, vector<256x128xf32>
    %c8 = arith.constant 8 : index
    %c0_96 = arith.constant 0 : index
    %c0_97 = arith.constant 0 : index
    %78 = vector.load %arg2[%c8, %c0_96, %c0_97] : memref<9x128x128xbf16, #tpu.memory_space<vmem>>, vector<1x128x128xbf16>
    %79 = vector.shape_cast %78 : vector<1x128x128xbf16> to vector<128x128xbf16>
    %cst_98 = arith.constant dense<0.000000e+00> : vector<256x128xf32>
    %80 = tpu.matmul %76, %79, %cst_98 {dimension_numbers = #tpu.dot_dimension_numbers<[1], [0], [0], [1], [0, 0, 1, 1], [], []>} : vector<256x128xbf16>, vector<128x128xbf16>, vector<256x128xf32> -> vector<256x128xf32>
    %81 = arith.addf %77, %80 : vector<256x128xf32>
    %c0_99 = arith.constant 0 : index
    %c0_100 = arith.constant 0 : index
    %82 = vector.load %arg7[%c0_99, %c0_100] : memref<256x128xf32, #tpu.memory_space<vmem>>, vector<256x128xf32>
    tpu.vector_store %arg7[%c0_99, %c0_100], %81 {strides = array<i32>} : memref<256x128xf32, #tpu.memory_space<vmem>>, vector<256x128xf32>,
    %c0_101 = arith.constant 0 : index
    %c0_102 = arith.constant 0 : index
    %83 = vector.load %arg7[%c0_101, %c0_102] : memref<256x128xf32, #tpu.memory_space<vmem>>, vector<256x128xf32>
    %c0_103 = arith.constant 0 : index
    %c0_104 = arith.constant 0 : index
    %84 = vector.load %arg3[%c0_103, %c0_104] : memref<1x128xf32, #tpu.memory_space<vmem>>, vector<1x128xf32>
    %85 = vector.broadcast %84 : vector<1x128xf32> to vector<256x128xf32>
    %86 = arith.mulf %83, %85 : vector<256x128xf32>
    %c0_105 = arith.constant 0 : index
    %c0_106 = arith.constant 0 : index
    %87 = vector.load %arg4[%c0_105, %c0_106] : memref<1x128xf32, #tpu.memory_space<vmem>>, vector<1x128xf32>
    %88 = vector.broadcast %87 : vector<1x128xf32> to vector<256x128xf32>
    %89 = arith.addf %86, %88 : vector<256x128xf32>
    %90 = arith.negf %89 : vector<256x128xf32>
    %91 = math.exp %90 : vector<256x128xf32>
    %cst_107 = arith.constant 1.000000e+00 : f32
    %92 = vector.broadcast %cst_107 : f32 to vector<256x128xf32>
    %93 = arith.addf %92, %91 : vector<256x128xf32>
    %94 = arith.divf %92, %93 : vector<256x128xf32>
    %95 = arith.mulf %89, %94 : vector<256x128xf32>
    %c0_108 = arith.constant 0 : index
    %c0_109 = arith.constant 0 : index
    %96 = vector.load %arg5[%c0_108, %c0_109] : memref<256x128xbf16, #tpu.memory_space<vmem>>, vector<256x128xbf16>
    %97 = arith.extf %96 : vector<256x128xbf16> to vector<256x128xf32>
    %98 = arith.addf %95, %97 : vector<256x128xf32>
    %99 = arith.truncf %98 : vector<256x128xf32> to vector<256x128xbf16>
    %c0_110 = arith.constant 0 : index
    %c0_111 = arith.constant 0 : index
    %100 = vector.load %arg6[%c0_110, %c0_111] : memref<256x128xbf16, #tpu.memory_space<vmem>>, vector<256x128xbf16>
    tpu.vector_store %arg6[%c0_110, %c0_111], %99 {strides = array<i32>} : memref<256x128xbf16, #tpu.memory_space<vmem>>, vector<256x128xbf16>,
    return
  }
  func.func @transform_0(%arg0: i32) -> (i32, i32, i32, i32) {
    %c0_i32 = arith.constant 0 : i32
    %c0_i32_0 = arith.constant 0 : i32
    %c0_i32_1 = arith.constant 0 : i32
    %c0_i32_2 = arith.constant 0 : i32
    return %arg0, %c0_i32, %c0_i32_0, %c0_i32_1 : i32, i32, i32, i32
  }
  func.func @transform_1(%arg0: i32) -> (i32, i32, i32) {
    %c0_i32 = arith.constant 0 : i32
    %c0_i32_0 = arith.constant 0 : i32
    %c0_i32_1 = arith.constant 0 : i32
    %c0_i32_2 = arith.constant 0 : i32
    return %c0_i32, %c0_i32_0, %c0_i32_1 : i32, i32, i32
  }
  func.func @transform_2(%arg0: i32) -> (i32, i32) {
    %c0_i32 = arith.constant 0 : i32
    %c0_i32_0 = arith.constant 0 : i32
    %c0_i32_1 = arith.constant 0 : i32
    return %c0_i32, %c0_i32_0 : i32, i32
  }
  func.func @transform_3(%arg0: i32) -> (i32, i32) {
    %c0_i32 = arith.constant 0 : i32
    %c0_i32_0 = arith.constant 0 : i32
    %c0_i32_1 = arith.constant 0 : i32
    return %c0_i32, %c0_i32_0 : i32, i32
  }
  func.func @transform_4(%arg0: i32) -> (i32, i32) {
    %c0_i32 = arith.constant 0 : i32
    %c0_i32_0 = arith.constant 0 : i32
    return %arg0, %c0_i32 : i32, i32
  }
  func.func @transform_5(%arg0: i32) -> (i32, i32) {
    %c0_i32 = arith.constant 0 : i32
    %c0_i32_0 = arith.constant 0 : i32
    return %arg0, %c0_i32 : i32, i32
  }
}

module attributes {stable_mosaic.version = 11 : i64} {
  func.func @_mm_bn_silu_kernel(%arg0: i32, %arg1: i32, %arg2: i32, %arg3: memref<256x128xbf16, #tpu.memory_space<vmem>>, %arg4: memref<128x256xbf16, #tpu.memory_space<vmem>>, %arg5: memref<1x256xf32, #tpu.memory_space<vmem>>, %arg6: memref<1x256xf32, #tpu.memory_space<vmem>>, %arg7: memref<256x256xbf16, #tpu.memory_space<vmem>>, %arg8: memref<256x256xf32, #tpu.memory_space<vmem>>) attributes {dimension_semantics = [#tpu.dimension_semantics<parallel>, #tpu.dimension_semantics<parallel>, #tpu.dimension_semantics<arbitrary>], iteration_bounds = array<i64: 2, 1, 1>, scalar_prefetch = 0 : i64, scratch_operands = 1 : i64, tpu.core_type = #tpu.core_type<tc>, window_params = [{transform_indices = @transform_0, window_bounds = array<i64: 256, 128>}, {transform_indices = @transform_1, window_bounds = array<i64: 128, 256>}, {transform_indices = @transform_2, window_bounds = array<i64: 1, 256>}, {transform_indices = @transform_3, window_bounds = array<i64: 1, 256>}, {transform_indices = @transform_4, window_bounds = array<i64: 256, 256>}]} {
    %c0_i32 = arith.constant 0 : i32
    %0 = arith.cmpi eq, %arg2, %c0_i32 : i32
    %1 = arith.extui %0 : i1 to i32
    %c0_i32_0 = arith.constant 0 : i32
    %2 = arith.cmpi ne, %1, %c0_i32_0 : i32
    scf.if %2 {
      %cst_10 = arith.constant 0.000000e+00 : f32
      %12 = vector.broadcast %cst_10 : f32 to vector<256x256xf32>
      %c0_11 = arith.constant 0 : index
      %c0_12 = arith.constant 0 : index
      %13 = vector.load %arg8[%c0_11, %c0_12] : memref<256x256xf32, #tpu.memory_space<vmem>>, vector<256x256xf32>
      tpu.vector_store %arg8[%c0_11, %c0_12], %12 {strides = array<i32>} : memref<256x256xf32, #tpu.memory_space<vmem>>, vector<256x256xf32>,
    } else {
    }
    %c0 = arith.constant 0 : index
    %c0_1 = arith.constant 0 : index
    %3 = vector.load %arg8[%c0, %c0_1] : memref<256x256xf32, #tpu.memory_space<vmem>>, vector<256x256xf32>
    %c0_2 = arith.constant 0 : index
    %c0_3 = arith.constant 0 : index
    %4 = vector.load %arg3[%c0_2, %c0_3] : memref<256x128xbf16, #tpu.memory_space<vmem>>, vector<256x128xbf16>
    %c0_4 = arith.constant 0 : index
    %c0_5 = arith.constant 0 : index
    %5 = vector.load %arg4[%c0_4, %c0_5] : memref<128x256xbf16, #tpu.memory_space<vmem>>, vector<128x256xbf16>
    %cst = arith.constant dense<0.000000e+00> : vector<256x256xf32>
    %6 = tpu.matmul %4, %5, %cst {dimension_numbers = #tpu.dot_dimension_numbers<[1], [0], [0], [1], [0, 0, 1, 1], [], []>} : vector<256x128xbf16>, vector<128x256xbf16>, vector<256x256xf32> -> vector<256x256xf32>
    %7 = arith.addf %3, %6 : vector<256x256xf32>
    %c0_6 = arith.constant 0 : index
    %c0_7 = arith.constant 0 : index
    %8 = vector.load %arg8[%c0_6, %c0_7] : memref<256x256xf32, #tpu.memory_space<vmem>>, vector<256x256xf32>
    tpu.vector_store %arg8[%c0_6, %c0_7], %7 {strides = array<i32>} : memref<256x256xf32, #tpu.memory_space<vmem>>, vector<256x256xf32>,
    %c0_i32_8 = arith.constant 0 : i32
    %9 = arith.cmpi eq, %arg2, %c0_i32_8 : i32
    %10 = arith.extui %9 : i1 to i32
    %c0_i32_9 = arith.constant 0 : i32
    %11 = arith.cmpi ne, %10, %c0_i32_9 : i32
    scf.if %11 {
      %c0_10 = arith.constant 0 : index
      %c0_11 = arith.constant 0 : index
      %12 = vector.load %arg8[%c0_10, %c0_11] : memref<256x256xf32, #tpu.memory_space<vmem>>, vector<256x256xf32>
      %c0_12 = arith.constant 0 : index
      %c0_13 = arith.constant 0 : index
      %13 = vector.load %arg5[%c0_12, %c0_13] : memref<1x256xf32, #tpu.memory_space<vmem>>, vector<1x256xf32>
      %14 = vector.broadcast %13 : vector<1x256xf32> to vector<256x256xf32>
      %15 = arith.mulf %12, %14 : vector<256x256xf32>
      %c0_14 = arith.constant 0 : index
      %c0_15 = arith.constant 0 : index
      %16 = vector.load %arg6[%c0_14, %c0_15] : memref<1x256xf32, #tpu.memory_space<vmem>>, vector<1x256xf32>
      %17 = vector.broadcast %16 : vector<1x256xf32> to vector<256x256xf32>
      %18 = arith.addf %15, %17 : vector<256x256xf32>
      %19 = arith.negf %18 : vector<256x256xf32>
      %20 = math.exp %19 : vector<256x256xf32>
      %cst_16 = arith.constant 1.000000e+00 : f32
      %21 = vector.broadcast %cst_16 : f32 to vector<256x256xf32>
      %22 = arith.addf %21, %20 : vector<256x256xf32>
      %23 = arith.divf %21, %22 : vector<256x256xf32>
      %24 = arith.mulf %18, %23 : vector<256x256xf32>
      %25 = arith.truncf %24 : vector<256x256xf32> to vector<256x256xbf16>
      %c0_17 = arith.constant 0 : index
      %c0_18 = arith.constant 0 : index
      %26 = vector.load %arg7[%c0_17, %c0_18] : memref<256x256xbf16, #tpu.memory_space<vmem>>, vector<256x256xbf16>
      tpu.vector_store %arg7[%c0_17, %c0_18], %25 {strides = array<i32>} : memref<256x256xbf16, #tpu.memory_space<vmem>>, vector<256x256xbf16>,
    } else {
    }
    return
  }
  func.func @transform_0(%arg0: i32, %arg1: i32, %arg2: i32) -> (i32, i32) {
    %c0_i32 = arith.constant 0 : i32
    return %arg0, %arg2 : i32, i32
  }
  func.func @transform_1(%arg0: i32, %arg1: i32, %arg2: i32) -> (i32, i32) {
    %c0_i32 = arith.constant 0 : i32
    return %arg2, %arg1 : i32, i32
  }
  func.func @transform_2(%arg0: i32, %arg1: i32, %arg2: i32) -> (i32, i32) {
    %c0_i32 = arith.constant 0 : i32
    %c0_i32_0 = arith.constant 0 : i32
    return %c0_i32, %arg1 : i32, i32
  }
  func.func @transform_3(%arg0: i32, %arg1: i32, %arg2: i32) -> (i32, i32) {
    %c0_i32 = arith.constant 0 : i32
    %c0_i32_0 = arith.constant 0 : i32
    return %c0_i32, %arg1 : i32, i32
  }
  func.func @transform_4(%arg0: i32, %arg1: i32, %arg2: i32) -> (i32, i32) {
    %c0_i32 = arith.constant 0 : i32
    return %arg0, %arg1 : i32, i32
  }
}

module attributes {stable_mosaic.version = 11 : i64} {
  func.func @_mm2_bn_silu_kernel(%arg0: i32, %arg1: i32, %arg2: memref<256x128xbf16, #tpu.memory_space<vmem>>, %arg3: memref<256x128xbf16, #tpu.memory_space<vmem>>, %arg4: memref<128x128xbf16, #tpu.memory_space<vmem>>, %arg5: memref<128x128xbf16, #tpu.memory_space<vmem>>, %arg6: memref<1x128xf32, #tpu.memory_space<vmem>>, %arg7: memref<1x128xf32, #tpu.memory_space<vmem>>, %arg8: memref<256x128xf32, #tpu.memory_space<vmem>>) attributes {dimension_semantics = [#tpu.dimension_semantics<parallel>, #tpu.dimension_semantics<parallel>], iteration_bounds = array<i64: 2, 1>, scalar_prefetch = 0 : i64, scratch_operands = 0 : i64, tpu.core_type = #tpu.core_type<tc>, window_params = [{transform_indices = @transform_0, window_bounds = array<i64: 256, 128>}, {transform_indices = @transform_1, window_bounds = array<i64: 256, 128>}, {transform_indices = @transform_2, window_bounds = array<i64: 128, 128>}, {transform_indices = @transform_3, window_bounds = array<i64: 128, 128>}, {transform_indices = @transform_4, window_bounds = array<i64: 1, 128>}, {transform_indices = @transform_5, window_bounds = array<i64: 1, 128>}, {transform_indices = @transform_6, window_bounds = array<i64: 256, 128>}]} {
    %c0 = arith.constant 0 : index
    %c0_0 = arith.constant 0 : index
    %0 = vector.load %arg2[%c0, %c0_0] : memref<256x128xbf16, #tpu.memory_space<vmem>>, vector<256x128xbf16>
    %c0_1 = arith.constant 0 : index
    %c0_2 = arith.constant 0 : index
    %1 = vector.load %arg4[%c0_1, %c0_2] : memref<128x128xbf16, #tpu.memory_space<vmem>>, vector<128x128xbf16>
    %cst = arith.constant dense<0.000000e+00> : vector<256x128xf32>
    %2 = tpu.matmul %0, %1, %cst {dimension_numbers = #tpu.dot_dimension_numbers<[1], [0], [0], [1], [0, 0, 1, 1], [], []>} : vector<256x128xbf16>, vector<128x128xbf16>, vector<256x128xf32> -> vector<256x128xf32>
    %c0_3 = arith.constant 0 : index
    %c0_4 = arith.constant 0 : index
    %3 = vector.load %arg3[%c0_3, %c0_4] : memref<256x128xbf16, #tpu.memory_space<vmem>>, vector<256x128xbf16>
    %c0_5 = arith.constant 0 : index
    %c0_6 = arith.constant 0 : index
    %4 = vector.load %arg5[%c0_5, %c0_6] : memref<128x128xbf16, #tpu.memory_space<vmem>>, vector<128x128xbf16>
    %cst_7 = arith.constant dense<0.000000e+00> : vector<256x128xf32>
    %5 = tpu.matmul %3, %4, %cst_7 {dimension_numbers = #tpu.dot_dimension_numbers<[1], [0], [0], [1], [0, 0, 1, 1], [], []>} : vector<256x128xbf16>, vector<128x128xbf16>, vector<256x128xf32> -> vector<256x128xf32>
    %6 = arith.addf %2, %5 : vector<256x128xf32>
    %c0_8 = arith.constant 0 : index
    %c0_9 = arith.constant 0 : index
    %7 = vector.load %arg6[%c0_8, %c0_9] : memref<1x128xf32, #tpu.memory_space<vmem>>, vector<1x128xf32>
    %8 = vector.broadcast %7 : vector<1x128xf32> to vector<256x128xf32>
    %9 = arith.mulf %6, %8 : vector<256x128xf32>
    %c0_10 = arith.constant 0 : index
    %c0_11 = arith.constant 0 : index
    %10 = vector.load %arg7[%c0_10, %c0_11] : memref<1x128xf32, #tpu.memory_space<vmem>>, vector<1x128xf32>
    %11 = vector.broadcast %10 : vector<1x128xf32> to vector<256x128xf32>
    %12 = arith.addf %9, %11 : vector<256x128xf32>
    %13 = arith.negf %12 : vector<256x128xf32>
    %14 = math.exp %13 : vector<256x128xf32>
    %cst_12 = arith.constant 1.000000e+00 : f32
    %15 = vector.broadcast %cst_12 : f32 to vector<256x128xf32>
    %16 = arith.addf %15, %14 : vector<256x128xf32>
    %17 = arith.divf %15, %16 : vector<256x128xf32>
    %18 = arith.mulf %12, %17 : vector<256x128xf32>
    %c0_13 = arith.constant 0 : index
    %c0_14 = arith.constant 0 : index
    %19 = vector.load %arg8[%c0_13, %c0_14] : memref<256x128xf32, #tpu.memory_space<vmem>>, vector<256x128xf32>
    tpu.vector_store %arg8[%c0_13, %c0_14], %18 {strides = array<i32>} : memref<256x128xf32, #tpu.memory_space<vmem>>, vector<256x128xf32>,
    return
  }
  func.func @transform_0(%arg0: i32, %arg1: i32) -> (i32, i32) {
    %c0_i32 = arith.constant 0 : i32
    %c0_i32_0 = arith.constant 0 : i32
    return %arg0, %c0_i32 : i32, i32
  }
  func.func @transform_1(%arg0: i32, %arg1: i32) -> (i32, i32) {
    %c1_i32 = arith.constant 1 : i32
    %c0_i32 = arith.constant 0 : i32
    return %arg0, %c1_i32 : i32, i32
  }
  func.func @transform_2(%arg0: i32, %arg1: i32) -> (i32, i32) {
    %c0_i32 = arith.constant 0 : i32
    %c0_i32_0 = arith.constant 0 : i32
    return %c0_i32, %arg1 : i32, i32
  }
  func.func @transform_3(%arg0: i32, %arg1: i32) -> (i32, i32) {
    %c0_i32 = arith.constant 0 : i32
    %c0_i32_0 = arith.constant 0 : i32
    return %c0_i32, %arg1 : i32, i32
  }
  func.func @transform_4(%arg0: i32, %arg1: i32) -> (i32, i32) {
    %c0_i32 = arith.constant 0 : i32
    %c0_i32_0 = arith.constant 0 : i32
    return %c0_i32, %arg1 : i32, i32
  }
  func.func @transform_5(%arg0: i32, %arg1: i32) -> (i32, i32) {
    %c0_i32 = arith.constant 0 : i32
    %c0_i32_0 = arith.constant 0 : i32
    return %c0_i32, %arg1 : i32, i32
  }
  func.func @transform_6(%arg0: i32, %arg1: i32) -> (i32, i32) {
    %c0_i32 = arith.constant 0 : i32
    return %arg0, %arg1 : i32, i32
  }
}

</mosaic_0001>

<bundles_post_ra>
// kernel: csp_layer_forward.5
= control target key start
LH: loop header
LB: loop body
LE: loop exit
PB: predicated region body
PF: predicated region fallthrough
CT: control target
= control target key end

     0   :  { %s2150_s15 = smov 0   ;;  %s2152_s16 = smov 0   ;;  %s2588_s0 = inlined_call_operand.vmem [shape: bf16[512,256], index: 0, kind: input, shape index: {}]   ;;  %s2589_s1 = inlined_call_operand.vmem [shape: bf16[128,128], index: 1, kind: input, shape index: {}]   ;;  %s2590_s2 = inlined_call_operand.vmem [shape: f32[1,128], index: 2, kind: input, shape index: {}]   ;;  %s2591_s3 = inlined_call_operand.vmem [shape: f32[1,128], index: 3, kind: input, shape index: {}]   ;;  %s2592_s4 = inlined_call_operand.vmem [shape: bf16[512,128], index: 4, kind: output, shape index: {}]  }
   0x1   :  { %s2154_s17 = smov 0   ;;  %s2156_s18 = smov 0  }
   0x2   :  { %s2158_s19 = smov 0  }
   0x3 LB: > { %s33_s20 = sadd.s32 1, %s2119_s18  ;;  %p49_p1 = scmp.ne.s32.totalorder %s2111_s16, %s2107_s15  ;;  %s2123_s19 = sphi %s2158_s19, %s14_s19   ;;  %s2119_s18 = sphi %s2156_s18, %s2597_s18   ;;  %s2115_s17 = sphi %s2154_s17, %s2596_s17   ;;  %s2111_s16 = sphi %s2152_s16, %s2595_s16   ;;  %s2107_s15 = sphi %s2150_s15, %s2594_s15  }
   0x4   : > { %p35_p0 = scmp.ge.s32.totalorder %s33_s20, 2  ;;  %p50_p2 = scmp.eq.s32.totalorder %s2123_s19, 0 }
   0x5   : > { %s42_s22 = sadd.s32 1, %s2111_s16  ;;  %p1575_p5 = scmp.ge.s32.totalorder %s2123_s19, 2 }
   0x6   : > { %s2599_s20 = smov (%p35_p0, %s33_s20), 0  ;;  %p51_p3 = por %p50_p2, %p49_p1 }
   0x7   : > { %s37_s21 = ssub.s32 %s2119_s18, %s2599_s20  ;;  %207 = sbr.rel (%p1575_p5) target bundleno = 39 (0x27), region = 28 }
   0x8   : > { %p40_p4 = scmp.eq.s32.totalorder %s37_s21, 0 }
   0xa   : > { %s2185_s23 = scalar_select %p40_p4, %s2111_s16, %s42_s22  }
   0xe   : > { %210 = sbr.rel (!%p51_p3) target bundleno = 39 (0x27), region = 32  ;;  %s212_s24 = sand.u32 (%p51_p3), 1, %s2111_s16  }
   0xf   : > { %s1677_s25 = sshll.u32 (%p51_p3), %s2119_s18, 8  ;;  %s1576_s26 = sshll.u32 (%p51_p3), %s212_s24, 7 }
  0x10   : > { %s2193_s29 = scalar_lea.vmem (%p51_p3), %s2588_s0, %s1677_s25  ;;  %s2197_s30 = scalar_lea.vmem (%p51_p3), [#allocation3], %s1576_s26 }
  0x11   : > { %v235_v0 = vld [vmem:[%s2193_s29] sm:$0xf] (%p51_p3)  ;;  %v237_v1 = vld [vmem:[%s2193_s29 + $0x8] sm:$0xf] (%p51_p3)  ;;  %v239_v2 = vld [vmem:[%s2193_s29 + $0x10] sm:$0xf] (%p51_p3) }
  0x12   : > { %236 = vst [vmem:[%s2197_s30] sm:$0xf] (%p51_p3), %v235_v0  ;;  %238 = vst [vmem:[%s2197_s30 + $0x4] sm:$0xf] (%p51_p3), %v237_v1  ;;  %v241_v3 = vld [vmem:[%s2193_s29 + $0x18] sm:$0xf] (%p51_p3) }
  0x13   : > { %v243_v4 = vld [vmem:[%s2193_s29 + $0x20] sm:$0xf] (%p51_p3)  ;;  %240 = vst [vmem:[%s2197_s30 + $0x8] sm:$0xf] (%p51_p3), %v239_v2  ;;  %242 = vst [vmem:[%s2197_s30 + $0xc] sm:$0xf] (%p51_p3), %v241_v3 }
  0x14   : > { %244 = vst [vmem:[%s2197_s30 + $0x10] sm:$0xf] (%p51_p3), %v243_v4  ;;  %v245_v5 = vld [vmem:[%s2193_s29 + $0x28] sm:$0xf] (%p51_p3)  ;;  %v247_v6 = vld [vmem:[%s2193_s29 + $0x30] sm:$0xf] (%p51_p3) }
  0x15   : > { %v249_v7 = vld [vmem:[%s2193_s29 + $0x38] sm:$0xf]  ;;  %246 = vst [vmem:[%s2197_s30 + $0x14] sm:$0xf] %v245_v5  ;;  %248 = vst [vmem:[%s2197_s30 + $0x18] sm:$0xf] %v247_v6 }
  0x16   : > { %250 = vst [vmem:[%s2197_s30 + $0x1c] sm:$0xf] %v249_v7  ;;  %v251_v8 = vld [vmem:[%s2193_s29 + $0x40] sm:$0xf]  ;;  %v253_v9 = vld [vmem:[%s2193_s29 + $0x48] sm:$0xf] }
  0x17   : > { %v255_v10 = vld [vmem:[%s2193_s29 + $0x50] sm:$0xf]  ;;  %252 = vst [vmem:[%s2197_s30 + $0x20] sm:$0xf] %v251_v8  ;;  %254 = vst [vmem:[%s2197_s30 + $0x24] sm:$0xf] %v253_v9 }
  0x18   : > { %256 = vst [vmem:[%s2197_s30 + $0x28] sm:$0xf] %v255_v10  ;;  %v257_v11 = vld [vmem:[%s2193_s29 + $0x58] sm:$0xf]  ;;  %v259_v12 = vld [vmem:[%s2193_s29 + $0x60] sm:$0xf] }
  0x19   : > { %v261_v13 = vld [vmem:[%s2193_s29 + $0x68] sm:$0xf]  ;;  %258 = vst [vmem:[%s2197_s30 + $0x2c] sm:$0xf] %v257_v11  ;;  %260 = vst [vmem:[%s2197_s30 + $0x30] sm:$0xf] %v259_v12 }
  0x1a   : > { %262 = vst [vmem:[%s2197_s30 + $0x34] sm:$0xf] %v261_v13  ;;  %v263_v14 = vld [vmem:[%s2193_s29 + $0x70] sm:$0xf]  ;;  %v265_v15 = vld [vmem:[%s2193_s29 + $0x78] sm:$0xf] }
  0x1b   : > { %v267_v16 = vld [vmem:[%s2193_s29 + $0x80] sm:$0xf]  ;;  %264 = vst [vmem:[%s2197_s30 + $0x38] sm:$0xf] %v263_v14  ;;  %266 = vst [vmem:[%s2197_s30 + $0x3c] sm:$0xf] %v265_v15 }
  0x1c   : > { %268 = vst [vmem:[%s2197_s30 + $0x40] sm:$0xf] %v267_v16  ;;  %v269_v17 = vld [vmem:[%s2193_s29 + $0x88] sm:$0xf]  ;;  %v271_v18 = vld [vmem:[%s2193_s29 + $0x90] sm:$0xf] }
  0x1d   : > { %v273_v19 = vld [vmem:[%s2193_s29 + $0x98] sm:$0xf]  ;;  %270 = vst [vmem:[%s2197_s30 + $0x44] sm:$0xf] %v269_v17  ;;  %272 = vst [vmem:[%s2197_s30 + $0x48] sm:$0xf] %v271_v18 }
  0x1e   : > { %274 = vst [vmem:[%s2197_s30 + $0x4c] sm:$0xf] %v273_v19  ;;  %v275_v20 = vld [vmem:[%s2193_s29 + $0xa0] sm:$0xf]  ;;  %v277_v21 = vld [vmem:[%s2193_s29 + $0xa8] sm:$0xf] }
  0x1f   : > { %v279_v22 = vld [vmem:[%s2193_s29 + $0xb0] sm:$0xf]  ;;  %276 = vst [vmem:[%s2197_s30 + $0x50] sm:$0xf] %v275_v20  ;;  %278 = vst [vmem:[%s2197_s30 + $0x54] sm:$0xf] %v277_v21 }
  0x20   : > { %280 = vst [vmem:[%s2197_s30 + $0x58] sm:$0xf] %v279_v22  ;;  %v281_v23 = vld [vmem:[%s2193_s29 + $0xb8] sm:$0xf]  ;;  %v283_v24 = vld [vmem:[%s2193_s29 + $0xc0] sm:$0xf] }
  0x21   : > { %v285_v25 = vld [vmem:[%s2193_s29 + $0xc8] sm:$0xf]  ;;  %282 = vst [vmem:[%s2197_s30 + $0x5c] sm:$0xf] %v281_v23  ;;  %284 = vst [vmem:[%s2197_s30 + $0x60] sm:$0xf] %v283_v24 }
  0x22   : > { %286 = vst [vmem:[%s2197_s30 + $0x64] sm:$0xf] %v285_v25  ;;  %v287_v26 = vld [vmem:[%s2193_s29 + $0xd0] sm:$0xf]  ;;  %v289_v27 = vld [vmem:[%s2193_s29 + $0xd8] sm:$0xf] }
  0x23   : > { %v291_v28 = vld [vmem:[%s2193_s29 + $0xe0] sm:$0xf]  ;;  %288 = vst [vmem:[%s2197_s30 + $0x68] sm:$0xf] %v287_v26  ;;  %290 = vst [vmem:[%s2197_s30 + $0x6c] sm:$0xf] %v289_v27 }
  0x24   : > { %292 = vst [vmem:[%s2197_s30 + $0x70] sm:$0xf] %v291_v28  ;;  %v293_v29 = vld [vmem:[%s2193_s29 + $0xe8] sm:$0xf]  ;;  %v295_v30 = vld [vmem:[%s2193_s29 + $0xf0] sm:$0xf] }
  0x25   : > { %v297_v31 = vld [vmem:[%s2193_s29 + $0xf8] sm:$0xf]  ;;  %294 = vst [vmem:[%s2197_s30 + $0x74] sm:$0xf] %v293_v29  ;;  %296 = vst [vmem:[%s2197_s30 + $0x78] sm:$0xf] %v295_v30 }
  0x26   : > { %298 = vst [vmem:[%s2197_s30 + $0x7c] sm:$0xf] %v297_v31 }
  0x27 PF: > { %p1580_p6 = scmp.ge.s32.totalorder %s2123_s19, 1  ;;  %p384_p7 = scmp.lt.s32.totalorder %s2123_s19, 3 }
  0x29   : > { %p385_p8 = pnand %p1580_p6, %p384_p7 }
  0x2a   : > { %v1933_v32 = vld [vmem:[%s2589_s1] sm:$0xff] (!%p385_p8)   ;;  %s391_s7 = sand.u32 (!%p385_p8), 1, %s2107_s15   ;;  %v1934_v33 = vld [vmem:[%s2589_s1 + $0x8] sm:$0xff] (!%p385_p8)   ;;  %v1935_v34 = vld [vmem:[%s2589_s1 + $0x10] sm:$0xff] (!%p385_p8)   ;;  %s1582_s8 = sshll.u32 (!%p385_p8), %s2115_s17, 5 }
  0x2b   : > { %388 = sbr.rel (%p385_p8) target bundleno = 379 (0x17b), region = 73  ;;  %1829 = vmatprep.subr.bf16.mxu0 (!%p385_p8), %v1933_v32  ;;  %1877 = vmatprep.subr.bf16.mxu1 (!%p385_p8), %v1933_v32  ;;  %s1581_s10 = sshll.u32 (!%p385_p8), %s391_s7, 7  ;;  %v1936_v35 = vld [vmem:[%s2589_s1 + $0x18] sm:$0xff] (!%p385_p8)   ;;  %v1937_v38 = vld [vmem:[%s2589_s1 + $0x20] sm:$0xff] (!%p385_p8)   ;;  %v1938_v39 = vld [vmem:[%s2589_s1 + $0x28] sm:$0xff] (!%p385_p8)  }
  0x2c   : > { %1830 = vmatpush3.bf16.msra.mxu0 (!%p385_p8), %v1933_v32  ;;  %1885 = vmatpush3.bf16.msra.mxu1 (!%p385_p8), %v1933_v32  ;;  %s2276_s15 = scalar_lea.vmem (!%p385_p8), [#allocation3], %s1581_s10  ;;  %v1939_v40 = vld [vmem:[%s2589_s1 + $0x30] sm:$0xff] (!%p385_p8)   ;;  %v1940_v41 = vld [vmem:[%s2589_s1 + $0x38] sm:$0xff] (!%p385_p8)   ;;  %v2309_v56 = vld [vmem:[%s2590_s2] ss:$0 sm:$0xff] (!%p385_p8)  ;;  %p2401_p9 = scmp.lt.s32.totalorder (!%p385_p8), %s1582_s8, 63 }
  0x2d   : > { %1831 = vmatprep.subr.bf16.mxu0 (!%p385_p8), %v1934_v33  ;;  %1878 = vmatprep.subr.bf16.mxu1 (!%p385_p8), %v1934_v33  ;;  %v1941_v36 = vld [vmem:[%s2276_s15] sm:$0xff] (!%p385_p8)   ;;  %v1943_v42 = vld [vmem:[%s2276_s15 + $0x8] sm:$0xff] (!%p385_p8)   ;;  %v1945_v44 = vld [vmem:[%s2276_s15 + $0x10] sm:$0xff] (!%p385_p8)  }
  0x2e   : > { %v1942_v37 = vld [vmem:[%s2276_s15 + $0x40] sm:$0xff] (!%p385_p8)   ;;  %1845 = vmatprep.mubr.bf16.mxu0 (!%p385_p8), %v1941_v36  ;;  %v1944_v43 = vld [vmem:[%s2276_s15 + $0x48] sm:$0xff] (!%p385_p8)   ;;  %v1946_v45 = vld [vmem:[%s2276_s15 + $0x50] sm:$0xff] (!%p385_p8)  }
  0x2f   : > { %1861 = vmatprep.mubr.bf16.mxu1 (!%p385_p8), %v1942_v37  ;;  %v1947_v46 = vld [vmem:[%s2276_s15 + $0x18] sm:$0xff] (!%p385_p8)   ;;  %v1949_v48 = vld [vmem:[%s2276_s15 + $0x20] sm:$0xff] (!%p385_p8)   ;;  %v1951_v50 = vld [vmem:[%s2276_s15 + $0x28] sm:$0xff] (!%p385_p8)  }
  0x30   : > { %1832 = vmatpush3.bf16.msra.mxu0 (!%p385_p8), %v1934_v33  ;;  %1886 = vmatpush3.bf16.msra.mxu1 (!%p385_p8), %v1934_v33  ;;  %v1948_v47 = vld [vmem:[%s2276_s15 + $0x58] sm:$0xff] (!%p385_p8)   ;;  %v1950_v49 = vld [vmem:[%s2276_s15 + $0x60] sm:$0xff] (!%p385_p8)   ;;  %v1952_v51 = vld [vmem:[%s2276_s15 + $0x68] sm:$0xff] (!%p385_p8)  }
  0x31   : > { %1833 = vmatprep.subr.bf16.mxu0 (!%p385_p8), %v1935_v34  ;;  %1879 = vmatprep.subr.bf16.mxu1 (!%p385_p8), %v1935_v34  ;;  %v1953_v52 = vld [vmem:[%s2276_s15 + $0x30] sm:$0xff] (!%p385_p8)   ;;  %v1955_v54 = vld [vmem:[%s2276_s15 + $0x38] sm:$0xff] (!%p385_p8)   ;;  %v2314_v58 = vld [vmem:[%s2591_s3] ss:$0 sm:$0xff] (!%p385_p8) }
  0x32   : > { %v1954_v53 = vld [vmem:[%s2276_s15 + $0x70] sm:$0xff]   ;;  %v1956_v55 = vld [vmem:[%s2276_s15 + $0x78] sm:$0xff]   ;;  %s2601_s8 = smov (!%p2401_p9, %s1582_s8), 63 }
  0x33   : > { %s1583_s17 = sshll.u32 %s2601_s8, 2 }
  0x34   : > { %1834 = vmatpush3.bf16.msra.mxu0 %v1935_v34  ;;  %1887 = vmatpush3.bf16.msra.mxu1 %v1935_v34  ;;  %s2472_s12 = scalar_lea.vmem %s2592_s4, %s1583_s17 }
  0x35   : > { %1835 = vmatprep.subr.bf16.mxu0 %v1936_v35  ;;  %1880 = vmatprep.subr.bf16.mxu1 %v1936_v35 }
  0x38   : > { %1836 = vmatpush3.bf16.msra.mxu0 %v1936_v35  ;;  %1888 = vmatpush3.bf16.msra.mxu1 %v1936_v35 }
  0x39   : > { %1837 = vmatprep.subr.bf16.mxu0 %v1937_v38  ;;  %1881 = vmatprep.subr.bf16.mxu1 %v1937_v38 }
  0x3c   : > { %1838 = vmatpush3.bf16.msra.mxu0 %v1937_v38  ;;  %1889 = vmatpush3.bf16.msra.mxu1 %v1937_v38 }
  0x3d   : > { %1839 = vmatprep.subr.bf16.mxu0 %v1938_v39  ;;  %1882 = vmatprep.subr.bf16.mxu1 %v1938_v39 }
  0x40   : > { %1840 = vmatpush3.bf16.msra.mxu0 %v1938_v39  ;;  %1890 = vmatpush3.bf16.msra.mxu1 %v1938_v39 }
  0x41   : > { %1841 = vmatprep.subr.bf16.mxu0 %v1939_v40  ;;  %1883 = vmatprep.subr.bf16.mxu1 %v1939_v40 }
  0x44   : > { %1842 = vmatpush3.bf16.msra.mxu0 %v1939_v40  ;;  %1891 = vmatpush3.bf16.msra.mxu1 %v1939_v40 }
  0x45   : > { %1843 = vmatprep.subr.bf16.mxu0 %v1940_v41  ;;  %1884 = vmatprep.subr.bf16.mxu1 %v1940_v41 }
  0x48   : > { %1844 = vmatpush3.bf16.msra.mxu0 %v1940_v41  ;;  %1892 = vmatpush3.bf16.msra.mxu1 %v1940_v41 }
  0x4b   : > { %1846 = vmatmul.mubr.bf16.vlgmr.msra.gmra.mrb[0].mxu0 %v1943_v42  ;;  %1862 = vmatmul.mubr.bf16.vlgmr.msra.gmra.mrb[0].mxu1 %v1944_v43 }
  0x4c   : > { %1849 = vmatprep.mubr.bf16.mxu0 %v1945_v44  ;;  %1865 = vmatprep.mubr.bf16.mxu1 %v1946_v45 }
  0x53   : > { %1850 = vmatmul.mubr.bf16.gmra.mrb[4].mxu0 %v1947_v46  ;;  %1866 = vmatmul.mubr.bf16.gmra.mrb[4].mxu1 %v1948_v47 }
  0x54   : > { %1853 = vmatprep.mubr.bf16.mxu0 %v1949_v48  ;;  %1869 = vmatprep.mubr.bf16.mxu1 %v1950_v49 }
  0x5b   : > { %1854 = vmatmul.mubr.bf16.gmra.mrb[8].mxu0 %v1951_v50  ;;  %1870 = vmatmul.mubr.bf16.gmra.mrb[8].mxu1 %v1952_v51 }
  0x5c   : > { %1857 = vmatprep.mubr.bf16.mxu0 %v1953_v52  ;;  %1873 = vmatprep.mubr.bf16.mxu1 %v1954_v53 }
  0x63   : > { %1858 = vmatmul.mubr.bf16.gmra.mrb[12].mxu0 %v1955_v54  ;;  %1874 = vmatmul.mubr.bf16.gmra.mrb[12].mxu1 %v1956_v55 }
 0x11e   : > { %v1847_v57 = vpop.f32.mrb[0].mxu0  ;;  %v1863_v59 = vpop.f32.mrb[0].mxu1 }
 0x11f   : > { %v988_v60 = vmul.f32 %v1847_v57, %v2309_v56  ;;  %v1004_v61 = vmul.f32 %v1863_v59, %v2309_v56  ;;  %v753_v62 = vpop.f32.mrb[1].mxu0  ;;  %v817_v63 = vpop.f32.mrb[1].mxu1 }
 0x120   : > { %v986_v0 = vmul.f32 %v2309_v56, %v753_v62  ;;  %v1002_v1 = vmul.f32 %v2309_v56, %v817_v63  ;;  %v1848_v2 = vpop.f32.mrb[2].mxu0  ;;  %v1864_v3 = vpop.f32.mrb[2].mxu1 }
 0x121   : > { %v2321_v4 = vadd.f32 %v2314_v58, %v988_v60  ;;  %v2324_v5 = vadd.f32 %v2314_v58, %v1004_v61  ;;  %v989_v6 = vmul.f32 %v1848_v2, %v2309_v56  ;;  %v1005_v7 = vmul.f32 %v1864_v3, %v2309_v56  ;;  %v756_v8 = vpop.f32.mrb[3].mxu0  ;;  %v820_v9 = vpop.f32.mrb[3].mxu1 }
 0x122   : > { %v2329_v10 = vadd.f32 %v2314_v58, %v986_v0  ;;  %v2332_v11 = vadd.f32 %v2314_v58, %v1002_v1  ;;  %v987_v12 = vmul.f32 %v2309_v56, %v756_v8  ;;  %v1003_v13 = vmul.f32 %v2309_v56, %v820_v9 }
 0x123   : > { %v1612_v14 = vmul.f32 -1.442695, %v2321_v4  ;;  %v1628_v15 = vmul.f32 -1.442695, %v2324_v5  ;;  %v2339_v16 = vadd.f32 %v2314_v58, %v989_v6  ;;  %v2342_v17 = vadd.f32 %v2314_v58, %v1005_v7 }
 0x124   : > { %v1610_v18 = vmul.f32 -1.442695, %v2329_v10  ;;  %v1626_v19 = vmul.f32 -1.442695, %v2332_v11  ;;  %v2347_v20 = vadd.f32 %v2314_v58, %v987_v12  ;;  %v2350_v21 = vadd.f32 %v2314_v58, %v1003_v13 }
 0x125   : > { %1957 = vpow2.f32 %v1612_v14  ;;  %v1613_v22 = vmul.f32 -1.442695, %v2339_v16  ;;  %v1629_v23 = vmul.f32 -1.442695, %v2342_v17 }
 0x126   : > { %1959 = vpow2.f32 %v1628_v15  ;;  %v1851_v24 = vpop.f32.mrb[4].mxu0  ;;  %v1867_v25 = vpop.f32.mrb[4].mxu1  ;;  %v1611_v26 = vmul.f32 -1.442695, %v2347_v20  ;;  %v1627_v31 = vmul.f32 -1.442695, %v2350_v21 }
 0x127   : > { %1961 = vpow2.f32 %v1610_v18  ;;  %v992_v27 = vmul.f32 %v1851_v24, %v2309_v56  ;;  %v1008_v28 = vmul.f32 %v1867_v25, %v2309_v56  ;;  %v769_v29 = vpop.f32.mrb[5].mxu0  ;;  %v833_v30 = vpop.f32.mrb[5].mxu1 }
 0x128   : > { %1963 = vpow2.f32 %v1626_v19  ;;  %v990_v32 = vmul.f32 %v2309_v56, %v769_v29  ;;  %v1006_v33 = vmul.f32 %v2309_v56, %v833_v30  ;;  %v1852_v34 = vpop.f32.mrb[6].mxu0  ;;  %v1868_v35 = vpop.f32.mrb[6].mxu1 }
 0x129   : > { %1965 = vpow2.f32 %v1613_v22  ;;  %v2361_v36 = vadd.f32 %v2314_v58, %v992_v27  ;;  %v2364_v37 = vadd.f32 %v2314_v58, %v1008_v28  ;;  %v993_v38 = vmul.f32 %v1852_v34, %v2309_v56  ;;  %v772_v39 = vpop.f32.mrb[7].mxu0  ;;  %v836_v40 = vpop.f32.mrb[7].mxu1 }
 0x12a   : > { %1967 = vpow2.f32 %v1629_v23  ;;  %v2368_v41 = vadd.f32 %v2314_v58, %v990_v32  ;;  %v2371_v42 = vadd.f32 %v2314_v58, %v1006_v33  ;;  %v1009_v43 = vmul.f32 %v1868_v35, %v2309_v56 }
 0x12b   : > { %1969 = vpow2.f32 %v1611_v26  ;;  %v1616_v44 = vmul.f32 -1.442695, %v2361_v36  ;;  %v1632_v45 = vmul.f32 -1.442695, %v2364_v37  ;;  %v2377_v46 = vadd.f32 %v2314_v58, %v993_v38 }
 0x12c   : > { %1971 = vpow2.f32 %v1627_v31  ;;  %v1614_v47 = vmul.f32 -1.442695, %v2368_v41  ;;  %v1630_v48 = vmul.f32 -1.442695, %v2371_v42  ;;  %v2383_v53 = vadd.f32 %v2314_v58, %v1009_v43 }
 0x12d   : > { %1973 = vpow2.f32 %v1616_v44  ;;  %v1617_v49 = vmul.f32 -1.442695, %v2377_v46  ;;  %v991_v60 = vmul.f32 %v2309_v56, %v772_v39  ;;  %v1007_v61 = vmul.f32 %v2309_v56, %v836_v40 }
 0x12e   : > { %1975 = vpow2.f32 %v1632_v45  ;;  %v1855_v50 = vpop.f32.mrb[8].mxu0  ;;  %v1871_v51 = vpop.f32.mrb[8].mxu1  ;;  %v2389_v12 = vmul.f32 -1.442695, %v2383_v53 }
 0x12f   : > { %v1958_v52 = vpop.eup %1957  ;;  %1977 = vpow2.f32 %v1614_v47  ;;  %v785_v54 = vpop.f32.mrb[9].mxu0  ;;  %v2392_v15 = vadd.f32 %v2314_v58, %v991_v60  ;;  %v2395_v18 = vadd.f32 %v2314_v58, %v1007_v61  ;;  %v996_v23 = vmul.f32 %v1855_v50, %v2309_v56 }
 0x130   : > { %v849_v55 = vpop.f32.mrb[9].mxu1  ;;  %v1960_v57 = vpop.eup %1959  ;;  %v1155_v59 = vadd.f32 1.0, %v1958_v52  ;;  %1979 = vpow2.f32 %v1630_v48  ;;  %v1012_v24 = vmul.f32 %v1871_v51, %v2309_v56  ;;  %v994_v27 = vmul.f32 %v2309_v56, %v785_v54 }
 0x131   : > { %v1856_v62 = vpop.f32.mrb[10].mxu0  ;;  %v1872_v63 = vpop.f32.mrb[10].mxu1  ;;  %v1171_v1 = vadd.f32 1.0, %v1960_v57  ;;  %1981 = vpow2.f32 %v1617_v49  ;;  %v1010_v28 = vmul.f32 %v2309_v56, %v849_v55  ;;  %v1615_v43 = vmul.f32 -1.442695, %v2392_v15 }
 0x132   : > { %v1962_v0 = vpop.eup %1961  ;;  %v788_v2 = vpop.f32.mrb[11].mxu0  ;;  %1983 = vrcp.f32 %v1155_v59  ;;  %v997_v33 = vmul.f32 %v1856_v62, %v2309_v56  ;;  %v1013_v34 = vmul.f32 %v1872_v63, %v2309_v56  ;;  %v2420_v50 = vadd.f32 %v2314_v58, %v996_v23 }
 0x133   : > { %v1964_v3 = vpop.eup %1963  ;;  %v1153_v6 = vadd.f32 1.0, %v1962_v0  ;;  %v852_v7 = vpop.f32.mrb[11].mxu1  ;;  %1985 = vrcp.f32 %v1171_v1  ;;  %v995_v44 = vmul.f32 %v2309_v56, %v788_v2  ;;  %v2423_v51 = vadd.f32 %v2314_v58, %v1012_v24 }
 0x134   : > { %v1966_v8 = vpop.eup %1965  ;;  %v1169_v9 = vadd.f32 1.0, %v1964_v3  ;;  %v2436_v59 = vadd.f32 %v2314_v58, %v994_v27  ;;  %v2439_v60 = vadd.f32 %v2314_v58, %v1010_v28  ;;  %v2442_v63 = vadd.f32 %v2314_v58, %v997_v33 }
 0x135   : > { %v1968_v13 = vpop.eup %1967  ;;  %1987 = vrcp.f32 %v1153_v6  ;;  %v1156_v14 = vadd.f32 1.0, %v1966_v8  ;;  %v2445_v0 = vadd.f32 %v2314_v58, %v1013_v34  ;;  %v2448_v3 = vadd.f32 %v2314_v58, %v995_v44 }
 0x136   : > { %v1970_v19 = vpop.eup %1969  ;;  %1989 = vrcp.f32 %v1169_v9  ;;  %v1172_v22 = vadd.f32 1.0, %v1968_v13  ;;  %v1859_v29 = vpop.f32.mrb[12].mxu0  ;;  %v1011_v6 = vmul.f32 %v2309_v56, %v852_v7  ;;  %v1631_v9 = vmul.f32 -1.442695, %v2395_v18 }
 0x137   : > { %v1972_v25 = vpop.eup %1971  ;;  %1991 = vrcp.f32 %v1156_v14  ;;  %v1154_v26 = vadd.f32 1.0, %v1970_v19  ;;  %v1875_v30 = vpop.f32.mrb[12].mxu1  ;;  %v1620_v13 = vmul.f32 -1.442695, %v2420_v50  ;;  %v1636_v19 = vmul.f32 -1.442695, %v2423_v51 }
 0x138   : > { %v1974_v31 = vpop.eup %1973  ;;  %1993 = vrcp.f32 %v1172_v22  ;;  %v1170_v32 = vadd.f32 1.0, %v1972_v25  ;;  %v2409_v35 = vpop.f32.mrb[13].mxu0  ;;  %v1000_v22 = vmul.f32 %v1859_v29, %v2309_v56  ;;  %v1016_v23 = vmul.f32 %v1875_v30, %v2309_v56 }
 0x139   : > { %v2411_v38 = vpop.f32.mrb[13].mxu1  ;;  %v1976_v39 = vpop.eup %1975  ;;  %1995 = vrcp.f32 %v1154_v26  ;;  %v1159_v40 = vadd.f32 1.0, %v1974_v31  ;;  %v1618_v7 = vmul.f32 -1.442695, %v2436_v59  ;;  %v1634_v25 = vmul.f32 -1.442695, %v2439_v60 }
 0x13a   : > { %v2415_v45 = vpop.f32.mrb[14].mxu0  ;;  %v2417_v47 = vpop.f32.mrb[14].mxu1  ;;  %1997 = vrcp.f32 %v1170_v32  ;;  %v1175_v49 = vadd.f32 1.0, %v1976_v39  ;;  %v1621_v26 = vmul.f32 -1.442695, %v2442_v63  ;;  %v2464_v32 = vadd.f32 %v2314_v58, %v1011_v6 }
 0x13b   : > { %v1978_v48 = vpop.eup %1977  ;;  %v2425_v52 = vpop.f32.mrb[15].mxu0  ;;  %1999 = vrcp.f32 %v1159_v40  ;;  %v1637_v28 = vmul.f32 -1.442695, %v2445_v0  ;;  %v1619_v31 = vmul.f32 -1.442695, %v2448_v3  ;;  %v2476_v40 = vadd.f32 %v2314_v58, %v1000_v22 }
 0x13c   : > { %v2427_v54 = vpop.f32.mrb[15].mxu1  ;;  %v1980_v55 = vpop.eup %1979  ;;  %v1157_v57 = vadd.f32 1.0, %v1978_v48  ;;  %2001 = vrcp.f32 %v1175_v49 }
 0x13d   : > { %v1982_v61 = vpop.eup %1981  ;;  %v1173_v62 = vadd.f32 1.0, %v1980_v55 }
 0x13e   : > { %v1984_v1 = vpop.eup %1983  ;;  %2003 = vrcp.f32 %v1157_v57  ;;  %v1160_v2 = vadd.f32 1.0, %v1982_v61 }
 0x13f   : > { %v1986_v8 = vpop.eup %1985  ;;  %2005 = vrcp.f32 %v1173_v62  ;;  %v1251_v30 = vmul.f32 %v1984_v1, %v2321_v4  ;;  %v2479_v4 = vadd.f32 %v2314_v58, %v1016_v23  ;;  %v1624_v1 = vmul.f32 -1.442695, %v2476_v40 }
 0x140   : > { %v1988_v14 = vpop.eup %1987  ;;  %2007 = vrcp.f32 %v1160_v2 }
 0x141   : > { %v1990_v24 = vpop.eup %1989  ;;  %2009 = vpow2.f32 %v2389_v12  ;;  %v1267_v12 = vmul.f32 %v1986_v8, %v2324_v5 }
 0x142   : > { %v1992_v27 = vpop.eup %1991  ;;  %2011 = vpow2.f32 %v1615_v43  ;;  %v1265_v49 = vmul.f32 %v1990_v24, %v2332_v11 }
 0x143   : > { %v1994_v29 = vpop.eup %1993  ;;  %v1252_v33 = vmul.f32 %v1992_v27, %v2339_v16  ;;  %2013 = vpow2.f32 %v1631_v9  ;;  %v1249_v16 = vmul.f32 %v1988_v14, %v2329_v10  ;;  %v1635_v10 = vmul.f32 -1.442695, %v2464_v32 }
 0x144   : > { %v1996_v34 = vpop.eup %1995  ;;  %v1268_v39 = vmul.f32 %v1994_v29, %v2342_v17  ;;  %2015 = vpow2.f32 %v1620_v13 }
 0x145   : > { %v1998_v5 = vpop.eup %1997  ;;  %v1718_v43 = vpack.c.bf16 %v1252_v33, %v1251_v30  ;;  %v1250_v44 = vmul.f32 %v1996_v34, %v2347_v20  ;;  %2017 = vpow2.f32 %v1636_v19  ;;  %v1001_v30 = vmul.f32 %v2415_v45, %v2309_v56 }
 0x146   : > { %v2000_v48 = vpop.eup %1999  ;;  %v1758_v17 = vpack.c.bf16 %v1268_v39, %v1267_v12  ;;  %v1266_v55 = vmul.f32 %v1998_v5, %v2350_v21  ;;  %2019 = vpow2.f32 %v1618_v7  ;;  %v1640_v21 = vmul.f32 -1.442695, %v2479_v4 }
 0x147   : > { %v2485_v57 = vpop.eup %2001  ;;  %1790 = vst [vmem:[%s2472_s12 + $0x8] sm:$0xff] %v1718_v43   ;;  %v1713_v61 = vpack.c.bf16 %v1250_v44, %v1249_v16  ;;  %2021 = vpow2.f32 %v1634_v25  ;;  %v1255_v8 = vmul.f32 %v2000_v48, %v2361_v36  ;;  %v998_v36 = vmul.f32 %v2309_v56, %v2409_v35 }
 0x148   : > { %v2489_v62 = vpop.eup %2003  ;;  %1798 = vst [vmem:[%s2472_s12 + $0x48] sm:$0xff] %v1758_v17   ;;  %v1753_v20 = vpack.c.bf16 %v1266_v55, %v1265_v49  ;;  %2023 = vpow2.f32 %v1621_v26  ;;  %v1017_v34 = vmul.f32 %v2417_v47, %v2309_v56  ;;  %v1015_v44 = vmul.f32 %v2309_v56, %v2427_v54 }
 0x149   : > { %v2493_v11 = vpop.eup %2005  ;;  %1714 = vst [vmem:[%s2472_s12] sm:$0xff] %v1713_v61   ;;  %2025 = vpow2.f32 %v1637_v28  ;;  %v1014_v28 = vmul.f32 %v2309_v56, %v2411_v38  ;;  %v2510_v5 = vadd.f32 %v2314_v58, %v998_v36  ;;  %v999_v38 = vmul.f32 %v2309_v56, %v2425_v52 }
 0x14a   : > { %v2008_v2 = vpop.eup %2007  ;;  %1797 = vst [vmem:[%s2472_s12 + $0x40] sm:$0xff] %v1753_v20   ;;  %2027 = vpow2.f32 %v1619_v31  ;;  %v2520_v49 = vadd.f32 %v2314_v58, %v1001_v30  ;;  %v2523_v52 = vadd.f32 %v2314_v58, %v1017_v34 }
 0x14b   : > { %v2010_v6 = vpop.eup %2009  ;;  %v1256_v9 = vmul.f32 %v2008_v2, %v2377_v46  ;;  %2029 = vpow2.f32 %v1635_v10  ;;  %v2515_v45 = vadd.f32 %v2314_v58, %v1014_v28  ;;  %v1622_v10 = vmul.f32 -1.442695, %v2510_v5 }
 0x14c   : > { %v2012_v13 = vpop.eup %2011  ;;  %v1176_v14 = vadd.f32 1.0, %v2010_v6  ;;  %2031 = vpow2.f32 %v1624_v1  ;;  %v2527_v20 = vadd.f32 %v2314_v58, %v999_v38  ;;  %v2531_v1 = vadd.f32 %v2314_v58, %v1015_v44 }
 0x14d   : > { %v2014_v19 = vpop.eup %2013  ;;  %v1728_v22 = vpack.c.bf16 %v1256_v9, %v1255_v8  ;;  %v1158_v23 = vadd.f32 1.0, %v2012_v13  ;;  %2033 = vpow2.f32 %v1640_v21  ;;  %v1638_v54 = vmul.f32 -1.442695, %v2515_v45 }
 0x14e   : > { %v2016_v24 = vpop.eup %2015  ;;  %2035 = vrcp.f32 %v1176_v14  ;;  %v1174_v7 = vadd.f32 1.0, %v2014_v19  ;;  %v1271_v2 = vmul.f32 %v2485_v57, %v2364_v37  ;;  %v1625_v8 = vmul.f32 -1.442695, %v2520_v49 }
 0x14f   : > { %v2018_v25 = vpop.eup %2017  ;;  %1792 = vst [vmem:[%s2472_s12 + $0x18] sm:$0xff] %v1728_v22   ;;  %2037 = vrcp.f32 %v1158_v23  ;;  %v1163_v26 = vadd.f32 1.0, %v2016_v24  ;;  %v1253_v13 = vmul.f32 %v2489_v62, %v2368_v41  ;;  %v1269_v14 = vmul.f32 %v2493_v11, %v2371_v42 }
 0x150   : > { %v2020_v27 = vpop.eup %2019  ;;  %2039 = vrcp.f32 %v1174_v7  ;;  %v1179_v46 = vadd.f32 1.0, %v2018_v25  ;;  %v1641_v58 = vmul.f32 -1.442695, %v2523_v52  ;;  %v1639_v41 = vmul.f32 -1.442695, %v2531_v1 }
 0x151   : > { %v2022_v31 = vpop.eup %2021  ;;  %2041 = vrcp.f32 %v1163_v26  ;;  %v1161_v29 = vadd.f32 1.0, %v2020_v27 }
 0x152   : > { %v2024_v12 = vpop.eup %2023  ;;  %2043 = vrcp.f32 %v1179_v46  ;;  %v1177_v33 = vadd.f32 1.0, %v2022_v31 }
 0x153   : > { %v2026_v39 = vpop.eup %2025  ;;  %2045 = vrcp.f32 %v1161_v29  ;;  %v1164_v35 = vadd.f32 1.0, %v2024_v12 }
 0x154   : > { %v2028_v16 = vpop.eup %2027  ;;  %2047 = vrcp.f32 %v1177_v33  ;;  %v1180_v43 = vadd.f32 1.0, %v2026_v39 }
 0x155   : > { %v2030_v48 = vpop.eup %2029  ;;  %2049 = vrcp.f32 %v1164_v35  ;;  %v1162_v47 = vadd.f32 1.0, %v2028_v16 }
 0x156   : > { %v2032_v17 = vpop.eup %2031  ;;  %2051 = vrcp.f32 %v1180_v43  ;;  %v1178_v55 = vadd.f32 1.0, %v2030_v48 }
 0x157   : > { %v2034_v61 = vpop.eup %2033  ;;  %2053 = vrcp.f32 %v1162_v47  ;;  %v1167_v30 = vadd.f32 1.0, %v2032_v17 }
 0x158   : > { %v2036_v56 = vpop.eup %2035  ;;  %2055 = vrcp.f32 %v1178_v55  ;;  %v1183_v33 = vadd.f32 1.0, %v2034_v61 }
 0x159   : > { %v2038_v21 = vpop.eup %2037  ;;  %v1272_v6 = vmul.f32 %v2036_v56, %v2383_v53  ;;  %2057 = vpow2.f32 %v1622_v10  ;;  %v1623_v53 = vmul.f32 -1.442695, %v2527_v20 }
 0x15a   : > { %v2040_v9 = vpop.eup %2039  ;;  %v1254_v19 = vmul.f32 %v2038_v21, %v2392_v15  ;;  %2059 = vpow2.f32 %v1638_v54 }
 0x15b   : > { %v2042_v22 = vpop.eup %2041  ;;  %v1768_v23 = vpack.c.bf16 %v1272_v6, %v1271_v2  ;;  %v1270_v37 = vmul.f32 %v2040_v9, %v2395_v18  ;;  %2061 = vpow2.f32 %v1625_v8 }
 0x15c   : > { %v2044_v57 = vpop.eup %2043  ;;  %v1723_v24 = vpack.c.bf16 %v1254_v19, %v1253_v13  ;;  %2063 = vpow2.f32 %v1641_v58  ;;  %v1259_v18 = vmul.f32 %v2042_v22, %v2420_v50 }
 0x15d   : > { %v2046_v62 = vpop.eup %2045  ;;  %1800 = vst [vmem:[%s2472_s12 + $0x58] sm:$0xff] %v1768_v23   ;;  %v1763_v42 = vpack.c.bf16 %v1270_v37, %v1269_v14  ;;  %2065 = vpow2.f32 %v1623_v53  ;;  %v1275_v36 = vmul.f32 %v2044_v57, %v2423_v51 }
 0x15e   : > { %v2048_v15 = vpop.eup %2047  ;;  %1791 = vst [vmem:[%s2472_s12 + $0x10] sm:$0xff] %v1723_v24   ;;  %2067 = vpow2.f32 %v1639_v41  ;;  %v1257_v28 = vmul.f32 %v2046_v62, %v2436_v59 }
 0x15f   : > { %v2050_v11 = vpop.eup %2049  ;;  %1799 = vst [vmem:[%s2472_s12 + $0x50] sm:$0xff] %v1763_v42   ;;  %v1273_v50 = vmul.f32 %v2048_v15, %v2439_v60  ;;  %2069 = vrcp.f32 %v1167_v30 }
 0x160   : > { %v2052_v7 = vpop.eup %2051  ;;  %v1260_v25 = vmul.f32 %v2050_v11, %v2442_v63  ;;  %2071 = vrcp.f32 %v1183_v33 }
 0x161   : > { %v2054_v26 = vpop.eup %2053  ;;  %v1276_v27 = vmul.f32 %v2052_v7, %v2445_v0 }
 0x162   : > { %v2056_v46 = vpop.eup %2055  ;;  %v1738_v31 = vpack.c.bf16 %v1260_v25, %v1259_v18  ;;  %v1258_v29 = vmul.f32 %v2054_v26, %v2448_v3 }
 0x163   : > { %v1778_v12 = vpack.c.bf16 %v1276_v27, %v1275_v36  ;;  %v1274_v63 = vmul.f32 %v2056_v46, %v2464_v32  ;;  %v2058_v51 = vpop.eup %2057 }
 0x164   : > { %1794 = vst [vmem:[%s2472_s12 + $0x28] sm:$0xff] %v1738_v31   ;;  %v1733_v34 = vpack.c.bf16 %v1258_v29, %v1257_v28  ;;  %v2060_v39 = vpop.eup %2059  ;;  %v1165_v59 = vadd.f32 1.0, %v2058_v51 }
 0x165   : > { %1802 = vst [vmem:[%s2472_s12 + $0x68] sm:$0xff] %v1778_v12   ;;  %v1773_v0 = vpack.c.bf16 %v1274_v63, %v1273_v50  ;;  %v2062_v35 = vpop.eup %2061  ;;  %v1181_v3 = vadd.f32 1.0, %v2060_v39 }
 0x166   : > { %1793 = vst [vmem:[%s2472_s12 + $0x20] sm:$0xff] %v1733_v34   ;;  %v2064_v38 = vpop.eup %2063  ;;  %2073 = vrcp.f32 %v1165_v59  ;;  %v1168_v60 = vadd.f32 1.0, %v2062_v35 }
 0x167   : > { %1801 = vst [vmem:[%s2472_s12 + $0x60] sm:$0xff] %v1773_v0   ;;  %v2066_v16 = vpop.eup %2065  ;;  %2075 = vrcp.f32 %v1181_v3  ;;  %v1184_v32 = vadd.f32 1.0, %v2064_v38 }
 0x168   : > { %v2068_v43 = vpop.eup %2067  ;;  %2077 = vrcp.f32 %v1168_v60  ;;  %v1166_v44 = vadd.f32 1.0, %v2066_v16 }
 0x169   : > { %2079 = vrcp.f32 %v1184_v32  ;;  %v1182_v48 = vadd.f32 1.0, %v2068_v43  ;;  %v2070_v47 = vpop.eup %2069 }
 0x16a   : > { %2081 = vrcp.f32 %v1166_v44  ;;  %v2072_v17 = vpop.eup %2071  ;;  %v1263_v54 = vmul.f32 %v2070_v47, %v2476_v40 }
 0x16b   : > { %2083 = vrcp.f32 %v1182_v48  ;;  %v1279_v6 = vmul.f32 %v2072_v17, %v2479_v4 }
 0x170   : > { %v2074_v55 = vpop.eup %2073 }
 0x171   : > { %v2076_v61 = vpop.eup %2075  ;;  %v1261_v13 = vmul.f32 %v2074_v55, %v2510_v5 }
 0x172   : > { %v2078_v10 = vpop.eup %2077  ;;  %v1277_v58 = vmul.f32 %v2076_v61, %v2515_v45 }
 0x173   : > { %v2080_v56 = vpop.eup %2079  ;;  %v1264_v21 = vmul.f32 %v2078_v10, %v2520_v49 }
 0x174   : > { %v2082_v2 = vpop.eup %2081  ;;  %v1280_v8 = vmul.f32 %v2080_v56, %v2523_v52 }
 0x175   : > { %v2084_v9 = vpop.eup %2083  ;;  %v1748_v14 = vpack.c.bf16 %v1264_v21, %v1263_v54  ;;  %v1262_v19 = vmul.f32 %v2082_v2, %v2527_v20 }
 0x176   : > { %v1788_v22 = vpack.c.bf16 %v1280_v8, %v1279_v6  ;;  %v1278_v40 = vmul.f32 %v2084_v9, %v2531_v1 }
 0x177   : > { %1796 = vst [vmem:[%s2472_s12 + $0x38] sm:$0xff] %v1748_v14   ;;  %v1743_v23 = vpack.c.bf16 %v1262_v19, %v1261_v13 }
 0x178   : > { %1804 = vst [vmem:[%s2472_s12 + $0x78] sm:$0xff] %v1788_v22   ;;  %v1783_v49 = vpack.c.bf16 %v1278_v40, %v1277_v58 }
 0x179   : > { %1795 = vst [vmem:[%s2472_s12 + $0x30] sm:$0xff] %v1743_v23  }
 0x17a   : > { %1803 = vst [vmem:[%s2472_s12 + $0x70] sm:$0xff] %v1783_v49  }
 0x17b PF: > { %s14_s19 = sadd.s32 1, %s2123_s19   ;;  %s2594_s15 = smov %s2111_s16 }
 0x17c   : > { %p11_p10 = scmp.ge.s32.totalorder %s14_s19, 4   ;;  %s2595_s16 = smov %s2185_s23 }
 0x17d   : > { %s2596_s17 = smov %s2119_s18  ;;  %s2597_s18 = smov %s2599_s20 }
 0x17e   :  { %13 = sbr.rel (!%p11_p10) target bundleno = 3 (0x3), region = 129 }

// kernel: csp_layer_forward.7
= control target key start
LH: loop header
LB: loop body
LE: loop exit
PB: predicated region body
PF: predicated region fallthrough
CT: control target
= control target key end

     0   :  { %s2317_s21 = smov 0   ;;  %s2319_s22 = smov 0   ;;  %s2777_s0 = inlined_call_operand.vmem [shape: bf16[512,128], index: 0, kind: input, shape index: {}]   ;;  %s2778_s1 = inlined_call_operand.vmem [shape: bf16[512,256], index: 1, kind: input, shape index: {}]   ;;  %s2779_s2 = inlined_call_operand.vmem [shape: bf16[128,128], index: 2, kind: input, shape index: {}]   ;;  %s2780_s3 = inlined_call_operand.vmem [shape: bf16[128,128], index: 3, kind: input, shape index: {}]   ;;  %s2781_s4 = inlined_call_operand.vmem [shape: f32[1,128], index: 4, kind: input, shape index: {}]   ;;  %s2782_s5 = inlined_call_operand.vmem [shape: f32[1,128], index: 5, kind: input, shape index: {}]   ;;  %s2783_s6 = inlined_call_operand.vmem [shape: f32[512,128], index: 6, kind: output, shape index: {}]  }
   0x1   :  { %s2321_s23 = smov 0   ;;  %s2323_s24 = smov 0  }
   0x2   :  { %s2325_s25 = smov 0  }
   0x3 LB: > { %s28_s26 = sadd.s32 1, %s2276_s24  ;;  %p68_p1 = scmp.ne.s32.totalorder %s2268_s22, %s2264_s21  ;;  %s2280_s25 = sphi %s2325_s25, %s16_s25   ;;  %s2276_s24 = sphi %s2323_s24, %s2787_s24   ;;  %s2272_s23 = sphi %s2321_s23, %s2786_s23   ;;  %s2268_s22 = sphi %s2319_s22, %s2785_s22   ;;  %s2264_s21 = sphi %s2317_s21, %s2784_s21  }
   0x4   : > { %p30_p0 = scmp.ge.s32.totalorder %s28_s26, 2  ;;  %p69_p2 = scmp.eq.s32.totalorder %s2280_s25, 0 }
   0x5   : > { %s61_s28 = sadd.s32 1, %s2268_s22  ;;  %p1723_p5 = scmp.ge.s32.totalorder %s2280_s25, 2 }
   0x6   : > { %s2789_s26 = smov (%p30_p0, %s28_s26), 0  ;;  %p70_p3 = por %p69_p2, %p68_p1 }
   0x7   : > { %s58_s27 = ssub.s32 %s2276_s24, %s2789_s26  ;;  %252 = sbr.rel (%p1723_p5) target bundleno = 39 (0x27), region = 32 }
   0x8   : > { %p59_p4 = scmp.eq.s32.totalorder %s58_s27, 0 }
   0xa   : > { %s2352_s29 = scalar_select %p59_p4, %s2268_s22, %s61_s28  }
   0xe   : > { %264 = sbr.rel (!%p70_p3) target bundleno = 39 (0x27), region = 40  ;;  %s266_s30 = sand.u32 (%p70_p3), 1, %s2268_s22  }
   0xf   : > { %s1849_s7 = sshll.u32 (%p70_p3), %s2276_s24, 8  ;;  %s1724_s8 = sshll.u32 (%p70_p3), %s266_s30, 7 }
  0x10   : > { %s2360_s11 = scalar_lea.vmem (%p70_p3), %s2778_s1, %s1849_s7  ;;  %s2364_s12 = scalar_lea.vmem (%p70_p3), [#allocation2], %s1724_s8 }
  0x11   : > { %v1727_v0 = vld [vmem:[%s2360_s11 + $0x4] sm:$0xf] (%p70_p3)  ;;  %v1728_v1 = vld [vmem:[%s2360_s11 + $0xc] sm:$0xf] (%p70_p3)  ;;  %v1729_v2 = vld [vmem:[%s2360_s11 + $0x14] sm:$0xf] (%p70_p3) }
  0x12   : > { %290 = vst [vmem:[%s2364_s12] sm:$0xf] (%p70_p3), %v1727_v0  ;;  %292 = vst [vmem:[%s2364_s12 + $0x4] sm:$0xf] (%p70_p3), %v1728_v1  ;;  %v1730_v3 = vld [vmem:[%s2360_s11 + $0x1c] sm:$0xf] (%p70_p3) }
  0x13   : > { %v1731_v4 = vld [vmem:[%s2360_s11 + $0x24] sm:$0xf] (%p70_p3)  ;;  %294 = vst [vmem:[%s2364_s12 + $0x8] sm:$0xf] (%p70_p3), %v1729_v2  ;;  %296 = vst [vmem:[%s2364_s12 + $0xc] sm:$0xf] (%p70_p3), %v1730_v3 }
  0x14   : > { %298 = vst [vmem:[%s2364_s12 + $0x10] sm:$0xf] (%p70_p3), %v1731_v4  ;;  %v1732_v5 = vld [vmem:[%s2360_s11 + $0x2c] sm:$0xf] (%p70_p3)  ;;  %v1733_v6 = vld [vmem:[%s2360_s11 + $0x34] sm:$0xf] (%p70_p3) }
  0x15   : > { %v1734_v7 = vld [vmem:[%s2360_s11 + $0x3c] sm:$0xf]  ;;  %300 = vst [vmem:[%s2364_s12 + $0x14] sm:$0xf] %v1732_v5  ;;  %302 = vst [vmem:[%s2364_s12 + $0x18] sm:$0xf] %v1733_v6 }
  0x16   : > { %304 = vst [vmem:[%s2364_s12 + $0x1c] sm:$0xf] %v1734_v7  ;;  %v1735_v8 = vld [vmem:[%s2360_s11 + $0x44] sm:$0xf]  ;;  %v1736_v9 = vld [vmem:[%s2360_s11 + $0x4c] sm:$0xf] }
  0x17   : > { %v1737_v10 = vld [vmem:[%s2360_s11 + $0x54] sm:$0xf]  ;;  %306 = vst [vmem:[%s2364_s12 + $0x20] sm:$0xf] %v1735_v8  ;;  %308 = vst [vmem:[%s2364_s12 + $0x24] sm:$0xf] %v1736_v9 }
  0x18   : > { %310 = vst [vmem:[%s2364_s12 + $0x28] sm:$0xf] %v1737_v10  ;;  %v1738_v11 = vld [vmem:[%s2360_s11 + $0x5c] sm:$0xf]  ;;  %v1739_v12 = vld [vmem:[%s2360_s11 + $0x64] sm:$0xf] }
  0x19   : > { %v1740_v13 = vld [vmem:[%s2360_s11 + $0x6c] sm:$0xf]  ;;  %312 = vst [vmem:[%s2364_s12 + $0x2c] sm:$0xf] %v1738_v11  ;;  %314 = vst [vmem:[%s2364_s12 + $0x30] sm:$0xf] %v1739_v12 }
  0x1a   : > { %316 = vst [vmem:[%s2364_s12 + $0x34] sm:$0xf] %v1740_v13  ;;  %v1741_v14 = vld [vmem:[%s2360_s11 + $0x74] sm:$0xf]  ;;  %v1742_v15 = vld [vmem:[%s2360_s11 + $0x7c] sm:$0xf] }
  0x1b   : > { %v1743_v16 = vld [vmem:[%s2360_s11 + $0x84] sm:$0xf]  ;;  %318 = vst [vmem:[%s2364_s12 + $0x38] sm:$0xf] %v1741_v14  ;;  %320 = vst [vmem:[%s2364_s12 + $0x3c] sm:$0xf] %v1742_v15 }
  0x1c   : > { %322 = vst [vmem:[%s2364_s12 + $0x40] sm:$0xf] %v1743_v16  ;;  %v1744_v17 = vld [vmem:[%s2360_s11 + $0x8c] sm:$0xf]  ;;  %v1745_v18 = vld [vmem:[%s2360_s11 + $0x94] sm:$0xf] }
  0x1d   : > { %v1746_v19 = vld [vmem:[%s2360_s11 + $0x9c] sm:$0xf]  ;;  %324 = vst [vmem:[%s2364_s12 + $0x44] sm:$0xf] %v1744_v17  ;;  %326 = vst [vmem:[%s2364_s12 + $0x48] sm:$0xf] %v1745_v18 }
  0x1e   : > { %328 = vst [vmem:[%s2364_s12 + $0x4c] sm:$0xf] %v1746_v19  ;;  %v1747_v20 = vld [vmem:[%s2360_s11 + $0xa4] sm:$0xf]  ;;  %v1748_v21 = vld [vmem:[%s2360_s11 + $0xac] sm:$0xf] }
  0x1f   : > { %v1749_v22 = vld [vmem:[%s2360_s11 + $0xb4] sm:$0xf]  ;;  %330 = vst [vmem:[%s2364_s12 + $0x50] sm:$0xf] %v1747_v20  ;;  %332 = vst [vmem:[%s2364_s12 + $0x54] sm:$0xf] %v1748_v21 }
  0x20   : > { %334 = vst [vmem:[%s2364_s12 + $0x58] sm:$0xf] %v1749_v22  ;;  %v1750_v23 = vld [vmem:[%s2360_s11 + $0xbc] sm:$0xf]  ;;  %v1751_v24 = vld [vmem:[%s2360_s11 + $0xc4] sm:$0xf] }
  0x21   : > { %v1752_v25 = vld [vmem:[%s2360_s11 + $0xcc] sm:$0xf]  ;;  %336 = vst [vmem:[%s2364_s12 + $0x5c] sm:$0xf] %v1750_v23  ;;  %338 = vst [vmem:[%s2364_s12 + $0x60] sm:$0xf] %v1751_v24 }
  0x22   : > { %340 = vst [vmem:[%s2364_s12 + $0x64] sm:$0xf] %v1752_v25  ;;  %v1753_v26 = vld [vmem:[%s2360_s11 + $0xd4] sm:$0xf]  ;;  %v1754_v27 = vld [vmem:[%s2360_s11 + $0xdc] sm:$0xf] }
  0x23   : > { %v1755_v28 = vld [vmem:[%s2360_s11 + $0xe4] sm:$0xf]  ;;  %342 = vst [vmem:[%s2364_s12 + $0x68] sm:$0xf] %v1753_v26  ;;  %344 = vst [vmem:[%s2364_s12 + $0x6c] sm:$0xf] %v1754_v27 }
  0x24   : > { %346 = vst [vmem:[%s2364_s12 + $0x70] sm:$0xf] %v1755_v28  ;;  %v1756_v29 = vld [vmem:[%s2360_s11 + $0xec] sm:$0xf]  ;;  %v1757_v30 = vld [vmem:[%s2360_s11 + $0xf4] sm:$0xf] }
  0x25   : > { %v1758_v31 = vld [vmem:[%s2360_s11 + $0xfc] sm:$0xf]  ;;  %348 = vst [vmem:[%s2364_s12 + $0x74] sm:$0xf] %v1756_v29  ;;  %350 = vst [vmem:[%s2364_s12 + $0x78] sm:$0xf] %v1757_v30 }
  0x26   : > { %352 = vst [vmem:[%s2364_s12 + $0x7c] sm:$0xf] %v1758_v31 }
  0x27 PF: > { %p1759_p6 = scmp.ge.s32.totalorder %s2280_s25, 1  ;;  %p438_p7 = scmp.lt.s32.totalorder %s2280_s25, 3 }
  0x29   : > { %p439_p8 = pnand %p1759_p6, %p438_p7 }
  0x2a   : > { %v2066_v32 = vld [vmem:[%s2780_s3] sm:$0xff] (!%p439_p8)   ;;  %v2068_v34 = vld [vmem:[%s2780_s3 + $0x8] sm:$0xff] (!%p439_p8)   ;;  %s1761_s27 = sshll.u32 (!%p439_p8), %s2272_s23, 5  ;;  %v2070_v36 = vld [vmem:[%s2780_s3 + $0x10] sm:$0xff] (!%p439_p8)   ;;  %s445_s9 = sand.u32 (!%p439_p8), 1, %s2264_s21  }
  0x2b   : > { %442 = sbr.rel (%p439_p8) target bundleno = 387 (0x183), region = 81  ;;  %v2067_v33 = vld [vmem:[%s2779_s2] sm:$0xff] (!%p439_p8)   ;;  %1898 = vmatprep.subr.bf16.mxu1 (!%p439_p8), %v2066_v32  ;;  %v2069_v35 = vld [vmem:[%s2779_s2 + $0x8] sm:$0xff] (!%p439_p8)   ;;  %p497_p9 = scmp.lt.s32.totalorder (!%p439_p8), %s1761_s27, 63  ;;  %v2071_v37 = vld [vmem:[%s2779_s2 + $0x10] sm:$0xff] (!%p439_p8)  }
  0x2c   : > { %1946 = vmatprep.subr.bf16.mxu0 (!%p439_p8), %v2067_v33  ;;  %1899 = vmatpush3.bf16.msra.mxu1 (!%p439_p8), %v2066_v32  ;;  %v2072_v38 = vld [vmem:[%s2780_s3 + $0x18] sm:$0xff] (!%p439_p8)   ;;  %s1760_s13 = sshll.u32 (!%p439_p8), %s445_s9, 7  ;;  %v2074_v40 = vld [vmem:[%s2780_s3 + $0x20] sm:$0xff] (!%p439_p8)   ;;  %v2076_v42 = vld [vmem:[%s2780_s3 + $0x28] sm:$0xff] (!%p439_p8)  }
  0x2d   : > { %1947 = vmatpush3.bf16.msra.mxu0 (!%p439_p8), %v2067_v33  ;;  %1900 = vmatprep.subr.bf16.mxu1 (!%p439_p8), %v2068_v34  ;;  %v2073_v39 = vld [vmem:[%s2779_s2 + $0x18] sm:$0xff] (!%p439_p8)   ;;  %v2075_v41 = vld [vmem:[%s2779_s2 + $0x20] sm:$0xff] (!%p439_p8)   ;;  %v2077_v43 = vld [vmem:[%s2779_s2 + $0x28] sm:$0xff] (!%p439_p8)   ;;  %s2476_s9 = scalar_lea.vmem (!%p439_p8), [#allocation2], %s1760_s13 }
  0x2e   : > { %1948 = vmatprep.subr.bf16.mxu0 (!%p439_p8), %v2069_v35  ;;  %v2082_v44 = vld [vmem:[%s2476_s9] sm:$0xff] (!%p439_p8)   ;;  %v2078_v46 = vld [vmem:[%s2780_s3 + $0x30] sm:$0xff] (!%p439_p8)   ;;  %v2080_v48 = vld [vmem:[%s2780_s3 + $0x38] sm:$0xff] (!%p439_p8)  }
  0x2f   : > { %1914 = vmatprep.mubr.bf16.mxu1 (!%p439_p8), %v2082_v44  ;;  %v2079_v47 = vld [vmem:[%s2779_s2 + $0x30] sm:$0xff] (!%p439_p8)   ;;  %v2081_v49 = vld [vmem:[%s2779_s2 + $0x38] sm:$0xff] (!%p439_p8)   ;;  %v2084_v50 = vld [vmem:[%s2476_s9 + $0x8] sm:$0xff] (!%p439_p8)  }
  0x30   : > { %1901 = vmatpush3.bf16.msra.mxu1 (!%p439_p8), %v2068_v34  ;;  %v2086_v52 = vld [vmem:[%s2476_s9 + $0x10] sm:$0xff] (!%p439_p8)   ;;  %v2088_v54 = vld [vmem:[%s2476_s9 + $0x18] sm:$0xff] (!%p439_p8)   ;;  %v2090_v56 = vld [vmem:[%s2476_s9 + $0x20] sm:$0xff] (!%p439_p8)  }
  0x31   : > { %1949 = vmatpush3.bf16.msra.mxu0 (!%p439_p8), %v2069_v35  ;;  %1902 = vmatprep.subr.bf16.mxu1 (!%p439_p8), %v2070_v36  ;;  %v2092_v58 = vld [vmem:[%s2476_s9 + $0x28] sm:$0xff] (!%p439_p8)   ;;  %v2094_v60 = vld [vmem:[%s2476_s9 + $0x30] sm:$0xff] (!%p439_p8)   ;;  %v2096_v62 = vld [vmem:[%s2476_s9 + $0x38] sm:$0xff] (!%p439_p8)  }
  0x32   : > { %s2791_s27 = smov (!%p497_p9, %s1761_s27), 63  ;;  %1950 = vmatprep.subr.bf16.mxu0 %v2071_v37  ;;  %v2098_v0 = vld [vmem:[%s2476_s9 + $0x40] sm:$0xff]   ;;  %v2100_v2 = vld [vmem:[%s2476_s9 + $0x48] sm:$0xff]   ;;  %v2102_v4 = vld [vmem:[%s2476_s9 + $0x50] sm:$0xff]  }
  0x33   : > { %s1762_s14 = sshll.u32 %s2791_s27, 2  ;;  %v2104_v6 = vld [vmem:[%s2476_s9 + $0x58] sm:$0xff]   ;;  %v2106_v8 = vld [vmem:[%s2476_s9 + $0x60] sm:$0xff]   ;;  %v2108_v10 = vld [vmem:[%s2476_s9 + $0x68] sm:$0xff]   ;;  %s1764_s20 = sshll.u32 %s2791_s27, 3 }
  0x34   : > { %1903 = vmatpush3.bf16.msra.mxu1 %v2070_v36  ;;  %s2471_s30 = scalar_lea.vmem %s2777_s0, %s1762_s14  ;;  %v2110_v12 = vld [vmem:[%s2476_s9 + $0x70] sm:$0xff]   ;;  %v2112_v14 = vld [vmem:[%s2476_s9 + $0x78] sm:$0xff]   ;;  %v2525_v18 = vld [vmem:[%s2781_s4] ss:$0 sm:$0xff] }
  0x35   : > { %1951 = vmatpush3.bf16.msra.mxu0 %v2071_v37  ;;  %1904 = vmatprep.subr.bf16.mxu1 %v2072_v38  ;;  %v2083_v45 = vld [vmem:[%s2471_s30] sm:$0xff]   ;;  %v2085_v51 = vld [vmem:[%s2471_s30 + $0x8] sm:$0xff]   ;;  %v2087_v53 = vld [vmem:[%s2471_s30 + $0x10] sm:$0xff]  }
  0x36   : > { %1952 = vmatprep.subr.bf16.mxu0 %v2073_v39  ;;  %1962 = vmatprep.mubr.bf16.mxu0 %v2083_v45  ;;  %v2089_v55 = vld [vmem:[%s2471_s30 + $0x18] sm:$0xff]   ;;  %v2091_v57 = vld [vmem:[%s2471_s30 + $0x20] sm:$0xff]   ;;  %v2093_v59 = vld [vmem:[%s2471_s30 + $0x28] sm:$0xff]  }
  0x37   : > { %v2095_v61 = vld [vmem:[%s2471_s30 + $0x30] sm:$0xff]   ;;  %v2097_v63 = vld [vmem:[%s2471_s30 + $0x38] sm:$0xff]   ;;  %v2099_v1 = vld [vmem:[%s2471_s30 + $0x40] sm:$0xff]  }
  0x38   : > { %1905 = vmatpush3.bf16.msra.mxu1 %v2072_v38  ;;  %v2101_v3 = vld [vmem:[%s2471_s30 + $0x48] sm:$0xff]   ;;  %v2103_v5 = vld [vmem:[%s2471_s30 + $0x50] sm:$0xff]   ;;  %v2105_v7 = vld [vmem:[%s2471_s30 + $0x58] sm:$0xff]  }
  0x39   : > { %1953 = vmatpush3.bf16.msra.mxu0 %v2073_v39  ;;  %1906 = vmatprep.subr.bf16.mxu1 %v2074_v40  ;;  %v2107_v9 = vld [vmem:[%s2471_s30 + $0x60] sm:$0xff]   ;;  %v2109_v11 = vld [vmem:[%s2471_s30 + $0x68] sm:$0xff]   ;;  %v2111_v13 = vld [vmem:[%s2471_s30 + $0x70] sm:$0xff]  }
  0x3a   : > { %1954 = vmatprep.subr.bf16.mxu0 %v2075_v41  ;;  %v2113_v15 = vld [vmem:[%s2471_s30 + $0x78] sm:$0xff]   ;;  %v2530_v23 = vld [vmem:[%s2782_s5] ss:$0 sm:$0xff]  ;;  %s2610_s30 = scalar_lea.vmem %s2783_s6, %s1764_s20 }
  0x3c   : > { %1907 = vmatpush3.bf16.msra.mxu1 %v2074_v40 }
  0x3d   : > { %1955 = vmatpush3.bf16.msra.mxu0 %v2075_v41  ;;  %1908 = vmatprep.subr.bf16.mxu1 %v2076_v42 }
  0x3e   : > { %1956 = vmatprep.subr.bf16.mxu0 %v2077_v43 }
  0x40   : > { %1909 = vmatpush3.bf16.msra.mxu1 %v2076_v42 }
  0x41   : > { %1957 = vmatpush3.bf16.msra.mxu0 %v2077_v43  ;;  %1910 = vmatprep.subr.bf16.mxu1 %v2078_v46 }
  0x42   : > { %1958 = vmatprep.subr.bf16.mxu0 %v2079_v47 }
  0x44   : > { %1911 = vmatpush3.bf16.msra.mxu1 %v2078_v46 }
  0x45   : > { %1959 = vmatpush3.bf16.msra.mxu0 %v2079_v47  ;;  %1912 = vmatprep.subr.bf16.mxu1 %v2080_v48 }
  0x46   : > { %1960 = vmatprep.subr.bf16.mxu0 %v2081_v49 }
  0x48   : > { %1913 = vmatpush3.bf16.msra.mxu1 %v2080_v48 }
  0x49   : > { %1961 = vmatpush3.bf16.msra.mxu0 %v2081_v49 }
  0x4b   : > { %1915 = vmatmul.mubr.bf16.vlgmr.msra.gmra.mrb[0].mxu1 %v2084_v50 }
  0x4c   : > { %1963 = vmatmul.mubr.bf16.vlgmr.msra.gmra.mrb[0].mxu0 %v2085_v51  ;;  %1918 = vmatprep.mubr.bf16.mxu1 %v2086_v52 }
  0x4d   : > { %1966 = vmatprep.mubr.bf16.mxu0 %v2087_v53 }
  0x53   : > { %1919 = vmatmul.mubr.bf16.gmra.mrb[4].mxu1 %v2088_v54 }
  0x54   : > { %1967 = vmatmul.mubr.bf16.gmra.mrb[4].mxu0 %v2089_v55  ;;  %1922 = vmatprep.mubr.bf16.mxu1 %v2090_v56 }
  0x55   : > { %1970 = vmatprep.mubr.bf16.mxu0 %v2091_v57 }
  0x5b   : > { %1923 = vmatmul.mubr.bf16.gmra.mrb[8].mxu1 %v2092_v58 }
  0x5c   : > { %1971 = vmatmul.mubr.bf16.gmra.mrb[8].mxu0 %v2093_v59  ;;  %1926 = vmatprep.mubr.bf16.mxu1 %v2094_v60 }
  0x5d   : > { %1974 = vmatprep.mubr.bf16.mxu0 %v2095_v61 }
  0x63   : > { %1927 = vmatmul.mubr.bf16.gmra.mrb[12].mxu1 %v2096_v62 }
  0x64   : > { %1975 = vmatmul.mubr.bf16.gmra.mrb[12].mxu0 %v2097_v63  ;;  %1930 = vmatprep.mubr.bf16.mxu1 %v2098_v0 }
  0x65   : > { %1978 = vmatprep.mubr.bf16.mxu0 %v2099_v1 }
  0x6b   : > { %1931 = vmatmul.mubr.bf16.gmra.mrb[16].mxu1 %v2100_v2 }
  0x6c   : > { %1979 = vmatmul.mubr.bf16.gmra.mrb[16].mxu0 %v2101_v3  ;;  %1934 = vmatprep.mubr.bf16.mxu1 %v2102_v4 }
  0x6d   : > { %1982 = vmatprep.mubr.bf16.mxu0 %v2103_v5 }
  0x73   : > { %1935 = vmatmul.mubr.bf16.gmra.mrb[20].mxu1 %v2104_v6 }
  0x74   : > { %1983 = vmatmul.mubr.bf16.gmra.mrb[20].mxu0 %v2105_v7  ;;  %1938 = vmatprep.mubr.bf16.mxu1 %v2106_v8 }
  0x75   : > { %1986 = vmatprep.mubr.bf16.mxu0 %v2107_v9 }
  0x7b   : > { %1939 = vmatmul.mubr.bf16.gmra.mrb[24].mxu1 %v2108_v10 }
  0x7c   : > { %1987 = vmatmul.mubr.bf16.gmra.mrb[24].mxu0 %v2109_v11  ;;  %1942 = vmatprep.mubr.bf16.mxu1 %v2110_v12 }
  0x7d   : > { %1990 = vmatprep.mubr.bf16.mxu0 %v2111_v13 }
  0x83   : > { %1943 = vmatmul.mubr.bf16.gmra.mrb[28].mxu1 %v2112_v14 }
  0x84   : > { %1991 = vmatmul.mubr.bf16.gmra.mrb[28].mxu0 %v2113_v15 }
 0x11e   : > { %v1916_v16 = vpop.f32.mrb[0].mxu1 }
 0x11f   : > { %v1964_v17 = vpop.f32.mrb[0].mxu0  ;;  %v801_v19 = vpop.f32.mrb[1].mxu1 }
 0x120   : > { %v1115_v20 = vadd.f32 %v1964_v17, %v1916_v16  ;;  %v1106_v21 = vpop.f32.mrb[1].mxu0  ;;  %v1917_v22 = vpop.f32.mrb[2].mxu1 }
 0x121   : > { %v1107_v24 = vadd.f32 %v1106_v21, %v801_v19  ;;  %v1965_v25 = vpop.f32.mrb[2].mxu0  ;;  %v804_v26 = vpop.f32.mrb[3].mxu1 }
 0x122   : > { %v1242_v27 = vmul.f32 %v2525_v18, %v1115_v20  ;;  %v1118_v28 = vadd.f32 %v1965_v25, %v1917_v22  ;;  %v1109_v29 = vpop.f32.mrb[3].mxu0 }
 0x123   : > { %v1240_v30 = vmul.f32 %v2525_v18, %v1107_v24  ;;  %v1110_v31 = vadd.f32 %v1109_v29, %v804_v26 }
 0x124   : > { %v2535_v32 = vadd.f32 %v2530_v23, %v1242_v27  ;;  %v1243_v33 = vmul.f32 %v2525_v18, %v1118_v28 }
 0x125   : > { %v2539_v34 = vadd.f32 %v2530_v23, %v1240_v30  ;;  %v1241_v35 = vmul.f32 %v2525_v18, %v1110_v31 }
 0x126   : > { %v1817_v36 = vmul.f32 -1.442695, %v2535_v32  ;;  %v2544_v37 = vadd.f32 %v2530_v23, %v1243_v33  ;;  %v1920_v38 = vpop.f32.mrb[4].mxu1 }
 0x127   : > { %v1815_v39 = vmul.f32 -1.442695, %v2539_v34  ;;  %v2548_v40 = vadd.f32 %v2530_v23, %v1241_v35  ;;  %v1968_v41 = vpop.f32.mrb[4].mxu0  ;;  %v817_v42 = vpop.f32.mrb[5].mxu1 }
 0x128   : > { %2114 = vpow2.f32 %v1817_v36  ;;  %v1818_v43 = vmul.f32 -1.442695, %v2544_v37  ;;  %v1131_v44 = vadd.f32 %v1968_v41, %v1920_v38  ;;  %v1122_v45 = vpop.f32.mrb[5].mxu0  ;;  %v1921_v46 = vpop.f32.mrb[6].mxu1 }
 0x129   : > { %2116 = vpow2.f32 %v1815_v39  ;;  %v1816_v47 = vmul.f32 -1.442695, %v2548_v40  ;;  %v1123_v48 = vadd.f32 %v1122_v45, %v817_v42  ;;  %v1969_v49 = vpop.f32.mrb[6].mxu0  ;;  %v820_v50 = vpop.f32.mrb[7].mxu1 }
 0x12a   : > { %2118 = vpow2.f32 %v1818_v43  ;;  %v1246_v51 = vmul.f32 %v2525_v18, %v1131_v44  ;;  %v1134_v52 = vadd.f32 %v1969_v49, %v1921_v46  ;;  %v1125_v53 = vpop.f32.mrb[7].mxu0 }
 0x12b   : > { %2120 = vpow2.f32 %v1816_v47  ;;  %v1244_v54 = vmul.f32 %v2525_v18, %v1123_v48  ;;  %v1126_v55 = vadd.f32 %v1125_v53, %v820_v50 }
 0x12c   : > { %v2555_v56 = vadd.f32 %v2530_v23, %v1246_v51  ;;  %v1247_v57 = vmul.f32 %v2525_v18, %v1134_v52 }
 0x12d   : > { %v2559_v58 = vadd.f32 %v2530_v23, %v1244_v54  ;;  %v1245_v59 = vmul.f32 %v2525_v18, %v1126_v55 }
 0x12e   : > { %v1821_v60 = vmul.f32 -1.442695, %v2555_v56  ;;  %v2564_v61 = vadd.f32 %v2530_v23, %v1247_v57  ;;  %v1924_v62 = vpop.f32.mrb[8].mxu1 }
 0x12f   : > { %v1819_v63 = vmul.f32 -1.442695, %v2559_v58  ;;  %v2568_v0 = vadd.f32 %v2530_v23, %v1245_v59  ;;  %v1972_v1 = vpop.f32.mrb[8].mxu0  ;;  %v833_v2 = vpop.f32.mrb[9].mxu1 }
 0x130   : > { %2122 = vpow2.f32 %v1821_v60  ;;  %v1822_v3 = vmul.f32 -1.442695, %v2564_v61  ;;  %v1147_v4 = vadd.f32 %v1972_v1, %v1924_v62  ;;  %v1138_v5 = vpop.f32.mrb[9].mxu0  ;;  %v1925_v6 = vpop.f32.mrb[10].mxu1 }
 0x131   : > { %2124 = vpow2.f32 %v1819_v63  ;;  %v1820_v7 = vmul.f32 -1.442695, %v2568_v0  ;;  %v1139_v8 = vadd.f32 %v1138_v5, %v833_v2  ;;  %v1973_v9 = vpop.f32.mrb[10].mxu0  ;;  %v836_v10 = vpop.f32.mrb[11].mxu1 }
 0x132   : > { %v2115_v11 = vpop.eup %2114  ;;  %2126 = vpow2.f32 %v1822_v3  ;;  %v1250_v12 = vmul.f32 %v2525_v18, %v1147_v4  ;;  %v1150_v13 = vadd.f32 %v1973_v9, %v1925_v6  ;;  %v1141_v14 = vpop.f32.mrb[11].mxu0 }
 0x133   : > { %v2117_v15 = vpop.eup %2116  ;;  %v1409_v16 = vadd.f32 1.0, %v2115_v11  ;;  %2128 = vpow2.f32 %v1820_v7  ;;  %v1248_v17 = vmul.f32 %v2525_v18, %v1139_v8  ;;  %v1142_v19 = vadd.f32 %v1141_v14, %v836_v10 }
 0x134   : > { %v2119_v20 = vpop.eup %2118  ;;  %v1407_v21 = vadd.f32 1.0, %v2117_v15  ;;  %v2575_v22 = vadd.f32 %v2530_v23, %v1250_v12  ;;  %v1251_v24 = vmul.f32 %v2525_v18, %v1150_v13 }
 0x135   : > { %v2121_v25 = vpop.eup %2120  ;;  %2130 = vrcp.f32 %v1409_v16  ;;  %v1410_v26 = vadd.f32 1.0, %v2119_v20  ;;  %v2579_v27 = vadd.f32 %v2530_v23, %v1248_v17  ;;  %v1249_v28 = vmul.f32 %v2525_v18, %v1142_v19 }
 0x136   : > { %2132 = vrcp.f32 %v1407_v21  ;;  %v1408_v29 = vadd.f32 1.0, %v2121_v25  ;;  %v1825_v30 = vmul.f32 -1.442695, %v2575_v22  ;;  %v2584_v31 = vadd.f32 %v2530_v23, %v1251_v24  ;;  %v1928_v33 = vpop.f32.mrb[12].mxu1 }
 0x137   : > { %2134 = vrcp.f32 %v1410_v26  ;;  %v1823_v35 = vmul.f32 -1.442695, %v2579_v27  ;;  %v2588_v36 = vadd.f32 %v2530_v23, %v1249_v28  ;;  %v1976_v38 = vpop.f32.mrb[12].mxu0  ;;  %v849_v39 = vpop.f32.mrb[13].mxu1 }
 0x138   : > { %2136 = vrcp.f32 %v1408_v29  ;;  %v1826_v41 = vmul.f32 -1.442695, %v2584_v31  ;;  %v1163_v42 = vadd.f32 %v1976_v38, %v1928_v33  ;;  %v1154_v43 = vpop.f32.mrb[13].mxu0  ;;  %v1929_v44 = vpop.f32.mrb[14].mxu1 }
 0x139   : > { %2138 = vpow2.f32 %v1825_v30  ;;  %v1824_v45 = vmul.f32 -1.442695, %v2588_v36  ;;  %v1155_v46 = vadd.f32 %v1154_v43, %v849_v39  ;;  %v1977_v47 = vpop.f32.mrb[14].mxu0  ;;  %v852_v48 = vpop.f32.mrb[15].mxu1 }
 0x13a   : > { %v2123_v49 = vpop.eup %2122  ;;  %2140 = vpow2.f32 %v1823_v35  ;;  %v1254_v50 = vmul.f32 %v2525_v18, %v1163_v42  ;;  %v1166_v51 = vadd.f32 %v1977_v47, %v1929_v44  ;;  %v1157_v52 = vpop.f32.mrb[15].mxu0 }
 0x13b   : > { %v2125_v53 = vpop.eup %2124  ;;  %v1413_v54 = vadd.f32 1.0, %v2123_v49  ;;  %2142 = vpow2.f32 %v1826_v41  ;;  %v1252_v55 = vmul.f32 %v2525_v18, %v1155_v46  ;;  %v1158_v57 = vadd.f32 %v1157_v52, %v852_v48 }
 0x13c   : > { %v2127_v59 = vpop.eup %2126  ;;  %v1411_v60 = vadd.f32 1.0, %v2125_v53  ;;  %2144 = vpow2.f32 %v1824_v45  ;;  %v2596_v62 = vadd.f32 %v2530_v23, %v1254_v50  ;;  %v1255_v63 = vmul.f32 %v2525_v18, %v1166_v51 }
 0x13d   : > { %v2129_v1 = vpop.eup %2128  ;;  %2146 = vrcp.f32 %v1413_v54  ;;  %v1414_v2 = vadd.f32 1.0, %v2127_v59  ;;  %v2600_v3 = vadd.f32 %v2530_v23, %v1252_v55  ;;  %v1253_v4 = vmul.f32 %v2525_v18, %v1158_v57 }
 0x13e   : > { %2148 = vrcp.f32 %v1411_v60  ;;  %v1412_v5 = vadd.f32 1.0, %v2129_v1  ;;  %v1829_v6 = vmul.f32 -1.442695, %v2596_v62  ;;  %v2605_v7 = vadd.f32 %v2530_v23, %v1255_v63  ;;  %v1932_v8 = vpop.f32.mrb[16].mxu1 }
 0x13f   : > { %v2131_v9 = vpop.eup %2130  ;;  %2150 = vrcp.f32 %v1414_v2  ;;  %v1827_v10 = vmul.f32 -1.442695, %v2600_v3  ;;  %v2614_v11 = vadd.f32 %v2530_v23, %v1253_v4  ;;  %v1980_v12 = vpop.f32.mrb[16].mxu0 }
 0x140   : > { %v865_v13 = vpop.f32.mrb[17].mxu1  ;;  %v2133_v14 = vpop.eup %2132  ;;  %v1505_v15 = vmul.f32 %v2131_v9, %v2535_v32  ;;  %2152 = vrcp.f32 %v1412_v5  ;;  %v1830_v16 = vmul.f32 -1.442695, %v2605_v7  ;;  %v1179_v17 = vadd.f32 %v1980_v12, %v1932_v8 }
 0x141   : > { %v1170_v19 = vpop.f32.mrb[17].mxu0  ;;  %v1933_v20 = vpop.f32.mrb[18].mxu1  ;;  %v1503_v24 = vmul.f32 %v2133_v14, %v2539_v34  ;;  %2154 = vpow2.f32 %v1829_v6  ;;  %v1828_v25 = vmul.f32 -1.442695, %v2614_v11 }
 0x142   : > { %v2135_v21 = vpop.eup %2134  ;;  %v1171_v26 = vadd.f32 %v1170_v19, %v865_v13  ;;  %v1981_v28 = vpop.f32.mrb[18].mxu0  ;;  %1537 = vst [vmem:[%s2610_s30 + $0x10] sm:$0xff] %v1505_v15  ;;  %2156 = vpow2.f32 %v1827_v10  ;;  %v1258_v33 = vmul.f32 %v2525_v18, %v1179_v17 }
 0x143   : > { %v868_v29 = vpop.f32.mrb[19].mxu1  ;;  %v2137_v30 = vpop.eup %2136  ;;  %v1506_v32 = vmul.f32 %v2135_v21, %v2544_v37  ;;  %v1182_v35 = vadd.f32 %v1981_v28, %v1933_v20  ;;  %1535 = vst [vmem:[%s2610_s30] sm:$0xff] %v1503_v24  ;;  %2158 = vpow2.f32 %v1830_v16 }
 0x144   : > { %v1173_v38 = vpop.f32.mrb[19].mxu0  ;;  %v2139_v39 = vpop.eup %2138  ;;  %v1504_v34 = vmul.f32 %v2137_v30, %v2548_v40  ;;  %v1256_v41 = vmul.f32 %v2525_v18, %v1171_v26  ;;  %2160 = vpow2.f32 %v1828_v25  ;;  %v2628_v37 = vadd.f32 %v2530_v23, %v1258_v33 }
 0x145   : > { %v1174_v42 = vadd.f32 %v1173_v38, %v868_v29  ;;  %v2141_v43 = vpop.eup %2140  ;;  %1538 = vst [vmem:[%s2610_s30 + $0x18] sm:$0xff] %v1506_v32  ;;  %v1417_v44 = vadd.f32 1.0, %v2139_v39  ;;  %v1259_v45 = vmul.f32 %v2525_v18, %v1182_v35 }
 0x146   : > { %v2143_v46 = vpop.eup %2142  ;;  %1536 = vst [vmem:[%s2610_s30 + $0x8] sm:$0xff] %v1504_v34  ;;  %v1415_v47 = vadd.f32 1.0, %v2141_v43  ;;  %v2633_v48 = vadd.f32 %v2530_v23, %v1256_v41  ;;  %v1833_v51 = vmul.f32 -1.442695, %v2628_v37  ;;  %v1936_v53 = vpop.f32.mrb[20].mxu1 }
 0x147   : > { %v1257_v40 = vmul.f32 %v2525_v18, %v1174_v42  ;;  %v2145_v49 = vpop.eup %2144  ;;  %2162 = vrcp.f32 %v1417_v44  ;;  %v1418_v50 = vadd.f32 1.0, %v2143_v46  ;;  %v2638_v52 = vadd.f32 %v2530_v23, %v1259_v45  ;;  %v1984_v60 = vpop.f32.mrb[20].mxu0 }
 0x148   : > { %v2147_v54 = vpop.eup %2146  ;;  %2164 = vrcp.f32 %v1415_v47  ;;  %v1416_v55 = vadd.f32 1.0, %v2145_v49  ;;  %v1831_v57 = vmul.f32 -1.442695, %v2633_v48  ;;  %v881_v63 = vpop.f32.mrb[21].mxu1  ;;  %v1195_v5 = vadd.f32 %v1984_v60, %v1936_v53 }
 0x149   : > { %v2642_v59 = vadd.f32 %v2530_v23, %v1257_v40  ;;  %v2149_v1 = vpop.eup %2148  ;;  %v1509_v2 = vmul.f32 %v2147_v54, %v2555_v56  ;;  %2166 = vrcp.f32 %v1418_v50  ;;  %v1834_v4 = vmul.f32 -1.442695, %v2638_v52  ;;  %v1186_v6 = vpop.f32.mrb[21].mxu0 }
 0x14a   : > { %v1937_v8 = vpop.f32.mrb[22].mxu1  ;;  %v2151_v9 = vpop.eup %2150  ;;  %v1507_v10 = vmul.f32 %v2149_v1, %v2559_v58  ;;  %2168 = vrcp.f32 %v1416_v55  ;;  %v1187_v13 = vadd.f32 %v1186_v6, %v881_v63  ;;  %v1262_v17 = vmul.f32 %v2525_v18, %v1195_v5 }
 0x14b   : > { %v1832_v12 = vmul.f32 -1.442695, %v2642_v59  ;;  %v1985_v14 = vpop.f32.mrb[22].mxu0  ;;  %v884_v15 = vpop.f32.mrb[23].mxu1  ;;  %1541 = vst [vmem:[%s2610_s30 + $0x30] sm:$0xff] %v1509_v2  ;;  %v1510_v56 = vmul.f32 %v2151_v9, %v2564_v61  ;;  %2170 = vpow2.f32 %v1833_v51 }
 0x14c   : > { %v2153_v16 = vpop.eup %2152  ;;  %v1198_v19 = vadd.f32 %v1985_v14, %v1937_v8  ;;  %v1189_v20 = vpop.f32.mrb[23].mxu0  ;;  %1539 = vst [vmem:[%s2610_s30 + $0x20] sm:$0xff] %v1507_v10  ;;  %2172 = vpow2.f32 %v1831_v57  ;;  %v1260_v24 = vmul.f32 %v2525_v18, %v1187_v13  ;;  %v2656_v61 = vadd.f32 %v2530_v23, %v1262_v17 }
 0x14d   : > { %v2155_v21 = vpop.eup %2154  ;;  %v1508_v58 = vmul.f32 %v2153_v16, %v2568_v0  ;;  %v1190_v25 = vadd.f32 %v1189_v20, %v884_v15  ;;  %1542 = vst [vmem:[%s2610_s30 + $0x38] sm:$0xff] %v1510_v56  ;;  %2174 = vpow2.f32 %v1834_v4 }
 0x14e   : > { %v2157_v26 = vpop.eup %2156  ;;  %v1421_v28 = vadd.f32 1.0, %v2155_v21  ;;  %v1263_v29 = vmul.f32 %v2525_v18, %v1198_v19  ;;  %2176 = vpow2.f32 %v1832_v12  ;;  %v2661_v33 = vadd.f32 %v2530_v23, %v1260_v24  ;;  %v1940_v41 = vpop.f32.mrb[24].mxu1 }
 0x14f   : > { %v2159_v30 = vpop.eup %2158  ;;  %1540 = vst [vmem:[%s2610_s30 + $0x28] sm:$0xff] %v1508_v58  ;;  %v1419_v32 = vadd.f32 1.0, %v2157_v26  ;;  %v1261_v0 = vmul.f32 %v2525_v18, %v1190_v25  ;;  %v1837_v39 = vmul.f32 -1.442695, %v2656_v61  ;;  %v1988_v45 = vpop.f32.mrb[24].mxu0 }
 0x150   : > { %v2161_v35 = vpop.eup %2160  ;;  %2178 = vrcp.f32 %v1421_v28  ;;  %v1422_v38 = vadd.f32 1.0, %v2159_v30  ;;  %v2666_v34 = vadd.f32 %v2530_v23, %v1263_v29  ;;  %v1835_v43 = vmul.f32 -1.442695, %v2661_v33  ;;  %v897_v46 = vpop.f32.mrb[25].mxu1 }
 0x151   : > { %2180 = vrcp.f32 %v1419_v32  ;;  %v1420_v42 = vadd.f32 1.0, %v2161_v35  ;;  %v2670_v44 = vadd.f32 %v2530_v23, %v1261_v0  ;;  %v2163_v47 = vpop.eup %2162  ;;  %v1211_v49 = vadd.f32 %v1988_v45, %v1940_v41  ;;  %v1202_v50 = vpop.f32.mrb[25].mxu0 }
 0x152   : > { %2182 = vrcp.f32 %v1422_v38  ;;  %v1838_v40 = vmul.f32 -1.442695, %v2666_v34  ;;  %v1941_v51 = vpop.f32.mrb[26].mxu1  ;;  %v2165_v53 = vpop.eup %2164  ;;  %v1513_v54 = vmul.f32 %v2163_v47, %v2575_v22  ;;  %v1203_v57 = vadd.f32 %v1202_v50, %v897_v46 }
 0x153   : > { %2184 = vrcp.f32 %v1420_v42  ;;  %v1836_v55 = vmul.f32 -1.442695, %v2670_v44  ;;  %v1989_v60 = vpop.f32.mrb[26].mxu0  ;;  %v900_v63 = vpop.f32.mrb[27].mxu1  ;;  %v1511_v2 = vmul.f32 %v2165_v53, %v2579_v27  ;;  %v1266_v4 = vmul.f32 %v2525_v18, %v1211_v49 }
 0x154   : > { %v2167_v1 = vpop.eup %2166  ;;  %2186 = vpow2.f32 %v1837_v39  ;;  %v1214_v5 = vadd.f32 %v1989_v60, %v1941_v51  ;;  %v1205_v6 = vpop.f32.mrb[27].mxu0  ;;  %1545 = vst [vmem:[%s2610_s30 + $0x50] sm:$0xff] %v1513_v54  ;;  %v1264_v9 = vmul.f32 %v2525_v18, %v1203_v57 }
 0x155   : > { %v2169_v8 = vpop.eup %2168  ;;  %v1514_v22 = vmul.f32 %v2167_v1, %v2584_v31  ;;  %2188 = vpow2.f32 %v1835_v43  ;;  %v1206_v10 = vadd.f32 %v1205_v6, %v900_v63  ;;  %1543 = vst [vmem:[%s2610_s30 + $0x40] sm:$0xff] %v1511_v2  ;;  %v2683_v27 = vadd.f32 %v2530_v23, %v1266_v4 }
 0x156   : > { %v2171_v12 = vpop.eup %2170  ;;  %v1512_v13 = vmul.f32 %v2169_v8, %v2588_v36  ;;  %2190 = vpow2.f32 %v1838_v40  ;;  %v1267_v14 = vmul.f32 %v2525_v18, %v1214_v5  ;;  %v2688_v31 = vadd.f32 %v2530_v23, %v1264_v9  ;;  %v1944_v21 = vpop.f32.mrb[28].mxu1 }
 0x157   : > { %v2173_v15 = vpop.eup %2172  ;;  %1546 = vst [vmem:[%s2610_s30 + $0x58] sm:$0xff] %v1514_v22  ;;  %v1425_v16 = vadd.f32 1.0, %v2171_v12  ;;  %2192 = vpow2.f32 %v1836_v55  ;;  %v1265_v56 = vmul.f32 %v2525_v18, %v1206_v10  ;;  %v1841_v36 = vmul.f32 -1.442695, %v2683_v27  ;;  %v1992_v28 = vpop.f32.mrb[28].mxu0 }
 0x158   : > { %v2175_v17 = vpop.eup %2174  ;;  %1544 = vst [vmem:[%s2610_s30 + $0x48] sm:$0xff] %v1512_v13  ;;  %v1423_v19 = vadd.f32 1.0, %v2173_v15  ;;  %v2694_v20 = vadd.f32 %v2530_v23, %v1267_v14  ;;  %v1839_v25 = vmul.f32 -1.442695, %v2688_v31  ;;  %v913_v29 = vpop.f32.mrb[29].mxu1  ;;  %v1227_v35 = vadd.f32 %v1992_v28, %v1944_v21 }
 0x159   : > { %v2177_v58 = vpop.eup %2176  ;;  %2194 = vrcp.f32 %v1425_v16  ;;  %v1426_v24 = vadd.f32 1.0, %v2175_v17  ;;  %v2698_v26 = vadd.f32 %v2530_v23, %v1265_v56  ;;  %v1218_v38 = vpop.f32.mrb[29].mxu0 }
 0x15a   : > { %v2179_v30 = vpop.eup %2178  ;;  %2196 = vrcp.f32 %v1423_v19  ;;  %v1424_v32 = vadd.f32 1.0, %v2177_v58  ;;  %v1842_v0 = vmul.f32 -1.442695, %v2694_v20  ;;  %v1945_v39 = vpop.f32.mrb[30].mxu1  ;;  %v1219_v45 = vadd.f32 %v1218_v38, %v913_v29 }
 0x15b   : > { %v2181_v41 = vpop.eup %2180  ;;  %v1517_v42 = vmul.f32 %v2179_v30, %v2596_v62  ;;  %2198 = vrcp.f32 %v1426_v24  ;;  %v1840_v43 = vmul.f32 -1.442695, %v2698_v26  ;;  %v1993_v46 = vpop.f32.mrb[30].mxu0  ;;  %v1270_v50 = vmul.f32 %v2525_v18, %v1227_v35 }
 0x15c   : > { %v916_v47 = vpop.f32.mrb[31].mxu1  ;;  %v2183_v40 = vpop.eup %2182  ;;  %v1515_v49 = vmul.f32 %v2181_v41, %v2600_v3  ;;  %2200 = vrcp.f32 %v1424_v32  ;;  %v1230_v51 = vadd.f32 %v1993_v46, %v1945_v39  ;;  %v1268_v55 = vmul.f32 %v2525_v18, %v1219_v45 }
 0x15d   : > { %v1221_v53 = vpop.f32.mrb[31].mxu0  ;;  %v2185_v54 = vpop.eup %2184  ;;  %1549 = vst [vmem:[%s2610_s30 + $0x70] sm:$0xff] %v1517_v42  ;;  %v1518_v62 = vmul.f32 %v2183_v40, %v2605_v7  ;;  %2202 = vpow2.f32 %v1841_v36  ;;  %v2711_v3 = vadd.f32 %v2530_v23, %v1270_v50 }
 0x15e   : > { %v1222_v57 = vadd.f32 %v1221_v53, %v916_v47  ;;  %v2187_v60 = vpop.eup %2186  ;;  %1547 = vst [vmem:[%s2610_s30 + $0x60] sm:$0xff] %v1515_v49  ;;  %v1516_v63 = vmul.f32 %v2185_v54, %v2614_v11  ;;  %2204 = vpow2.f32 %v1839_v25  ;;  %v1271_v1 = vmul.f32 %v2525_v18, %v1230_v51 }
 0x15f   : > { %v2189_v2 = vpop.eup %2188  ;;  %1550 = vst [vmem:[%s2610_s30 + $0x78] sm:$0xff] %v1518_v62  ;;  %v1429_v4 = vadd.f32 1.0, %v2187_v60  ;;  %2206 = vpow2.f32 %v1842_v0  ;;  %v2716_v7 = vadd.f32 %v2530_v23, %v1268_v55  ;;  %v1845_v10 = vmul.f32 -1.442695, %v2711_v3 }
 0x160   : > { %v1269_v5 = vmul.f32 %v2525_v18, %v1222_v57  ;;  %v2191_v6 = vpop.eup %2190  ;;  %1548 = vst [vmem:[%s2610_s30 + $0x68] sm:$0xff] %v1516_v63  ;;  %v1427_v8 = vadd.f32 1.0, %v2189_v2  ;;  %2208 = vpow2.f32 %v1840_v43  ;;  %v2721_v11 = vadd.f32 %v2530_v23, %v1271_v1 }
 0x161   : > { %v2193_v22 = vpop.eup %2192  ;;  %2210 = vrcp.f32 %v1429_v4  ;;  %v1430_v9 = vadd.f32 1.0, %v2191_v6  ;;  %v1843_v18 = vmul.f32 -1.442695, %v2716_v7 }
 0x162   : > { %v2725_v12 = vadd.f32 %v2530_v23, %v1269_v5  ;;  %2212 = vrcp.f32 %v1427_v8  ;;  %v1428_v13 = vadd.f32 1.0, %v2193_v22  ;;  %v1846_v15 = vmul.f32 -1.442695, %v2721_v11 }
 0x163   : > { %v2195_v14 = vpop.eup %2194  ;;  %2214 = vrcp.f32 %v1430_v9 }
 0x164   : > { %v2197_v16 = vpop.eup %2196  ;;  %v1521_v56 = vmul.f32 %v2195_v14, %v2628_v37  ;;  %2216 = vrcp.f32 %v1428_v13  ;;  %v1844_v17 = vmul.f32 -1.442695, %v2725_v12 }
 0x165   : > { %v2199_v19 = vpop.eup %2198  ;;  %v1519_v23 = vmul.f32 %v2197_v16, %v2633_v48  ;;  %2218 = vpow2.f32 %v1845_v10 }
 0x166   : > { %v2201_v36 = vpop.eup %2200  ;;  %1553 = vst [vmem:[%s2610_s30 + $0x90] sm:$0xff] %v1521_v56  ;;  %v1522_v21 = vmul.f32 %v2199_v19, %v2638_v52  ;;  %2220 = vpow2.f32 %v1843_v18 }
 0x167   : > { %v2203_v58 = vpop.eup %2202  ;;  %1551 = vst [vmem:[%s2610_s30 + $0x80] sm:$0xff] %v1519_v23  ;;  %v1520_v24 = vmul.f32 %v2201_v36, %v2642_v59  ;;  %2222 = vpow2.f32 %v1846_v15 }
 0x168   : > { %v2205_v25 = vpop.eup %2204  ;;  %1554 = vst [vmem:[%s2610_s30 + $0x98] sm:$0xff] %v1522_v21  ;;  %v1433_v37 = vadd.f32 1.0, %v2203_v58  ;;  %2224 = vpow2.f32 %v1844_v17 }
 0x169   : > { %v2207_v28 = vpop.eup %2206  ;;  %1552 = vst [vmem:[%s2610_s30 + $0x88] sm:$0xff] %v1520_v24  ;;  %v1431_v29 = vadd.f32 1.0, %v2205_v25 }
 0x16a   : > { %v2209_v48 = vpop.eup %2208  ;;  %2226 = vrcp.f32 %v1433_v37  ;;  %v1434_v30 = vadd.f32 1.0, %v2207_v28 }
 0x16b   : > { %v2211_v32 = vpop.eup %2210  ;;  %2228 = vrcp.f32 %v1431_v29  ;;  %v1432_v52 = vadd.f32 1.0, %v2209_v48 }
 0x16c   : > { %v2213_v0 = vpop.eup %2212  ;;  %v1525_v59 = vmul.f32 %v2211_v32, %v2656_v61  ;;  %2230 = vrcp.f32 %v1434_v30 }
 0x16d   : > { %v2215_v35 = vpop.eup %2214  ;;  %v1523_v38 = vmul.f32 %v2213_v0, %v2661_v33  ;;  %2232 = vrcp.f32 %v1432_v52 }
 0x16e   : > { %v2217_v39 = vpop.eup %2216  ;;  %1557 = vst [vmem:[%s2610_s30 + $0xb0] sm:$0xff] %v1525_v59  ;;  %v1526_v41 = vmul.f32 %v2215_v35, %v2666_v34 }
 0x16f   : > { %v2219_v42 = vpop.eup %2218  ;;  %1555 = vst [vmem:[%s2610_s30 + $0xa0] sm:$0xff] %v1523_v38  ;;  %v1524_v43 = vmul.f32 %v2217_v39, %v2670_v44 }
 0x170   : > { %v2221_v45 = vpop.eup %2220  ;;  %1558 = vst [vmem:[%s2610_s30 + $0xb8] sm:$0xff] %v1526_v41  ;;  %v1437_v46 = vadd.f32 1.0, %v2219_v42 }
 0x171   : > { %v2223_v47 = vpop.eup %2222  ;;  %1556 = vst [vmem:[%s2610_s30 + $0xa8] sm:$0xff] %v1524_v43  ;;  %v1435_v61 = vadd.f32 1.0, %v2221_v45 }
 0x172   : > { %v2225_v40 = vpop.eup %2224  ;;  %2234 = vrcp.f32 %v1437_v46  ;;  %v1438_v33 = vadd.f32 1.0, %v2223_v47 }
 0x173   : > { %2236 = vrcp.f32 %v1435_v61  ;;  %v1436_v49 = vadd.f32 1.0, %v2225_v40 }
 0x174   : > { %v2227_v34 = vpop.eup %2226  ;;  %2238 = vrcp.f32 %v1438_v33 }
 0x175   : > { %v2229_v50 = vpop.eup %2228  ;;  %v1529_v44 = vmul.f32 %v2227_v34, %v2683_v27  ;;  %2240 = vrcp.f32 %v1436_v49 }
 0x176   : > { %v2231_v51 = vpop.eup %2230  ;;  %v1527_v53 = vmul.f32 %v2229_v50, %v2688_v31 }
 0x177   : > { %v2233_v54 = vpop.eup %2232  ;;  %1561 = vst [vmem:[%s2610_s30 + $0xd0] sm:$0xff] %v1529_v44  ;;  %v1530_v62 = vmul.f32 %v2231_v51, %v2694_v20 }
 0x178   : > { %1559 = vst [vmem:[%s2610_s30 + $0xc0] sm:$0xff] %v1527_v53  ;;  %v1528_v55 = vmul.f32 %v2233_v54, %v2698_v26 }
 0x179   : > { %1562 = vst [vmem:[%s2610_s30 + $0xd8] sm:$0xff] %v1530_v62 }
 0x17a   : > { %1560 = vst [vmem:[%s2610_s30 + $0xc8] sm:$0xff] %v1528_v55 }
 0x17c   : > { %v2235_v57 = vpop.eup %2234 }
 0x17d   : > { %v2237_v60 = vpop.eup %2236  ;;  %v1533_v27 = vmul.f32 %v2235_v57, %v2711_v3 }
 0x17e   : > { %v2239_v63 = vpop.eup %2238  ;;  %v1531_v1 = vmul.f32 %v2237_v60, %v2716_v7 }
 0x17f   : > { %v2241_v31 = vpop.eup %2240  ;;  %1565 = vst [vmem:[%s2610_s30 + $0xf0] sm:$0xff] %v1533_v27  ;;  %v1534_v2 = vmul.f32 %v2239_v63, %v2721_v11 }
 0x180   : > { %1563 = vst [vmem:[%s2610_s30 + $0xe0] sm:$0xff] %v1531_v1  ;;  %v1532_v20 = vmul.f32 %v2241_v31, %v2725_v12 }
 0x181   : > { %1566 = vst [vmem:[%s2610_s30 + $0xf8] sm:$0xff] %v1534_v2 }
 0x182   : > { %1564 = vst [vmem:[%s2610_s30 + $0xe8] sm:$0xff] %v1532_v20 }
 0x183 PF: > { %s16_s25 = sadd.s32 1, %s2280_s25   ;;  %s2784_s21 = smov %s2268_s22 }
 0x184   : > { %p13_p10 = scmp.ge.s32.totalorder %s16_s25, 4   ;;  %s2785_s22 = smov %s2352_s29 }
 0x185   : > { %s2786_s23 = smov %s2276_s24  ;;  %s2787_s24 = smov %s2789_s26 }
 0x186   :  { %15 = sbr.rel (!%p13_p10) target bundleno = 3 (0x3), region = 135 }

// kernel: csp_layer_forward.4
= control target key start
LH: loop header
LB: loop body
LE: loop exit
PB: predicated region body
PF: predicated region fallthrough
CT: control target
= control target key end

     0   :  { %s2590_s15 = smov 0   ;;  %s2592_s16 = smov 0   ;;  %s3270_s0 = inlined_call_operand.vmem [shape: bf16[512,128], index: 0, kind: input, shape index: {}]   ;;  %s3271_s1 = inlined_call_operand.vmem [shape: bf16[128,256], index: 1, kind: input, shape index: {}]   ;;  %s3272_s2 = inlined_call_operand.vmem [shape: f32[1,256], index: 2, kind: input, shape index: {}]   ;;  %s3273_s3 = inlined_call_operand.vmem [shape: f32[1,256], index: 3, kind: input, shape index: {}]   ;;  %s3274_s4 = inlined_call_operand.vmem [shape: bf16[512,256], index: 4, kind: output, shape index: {}]  }
   0x1   :  { %s2594_s17 = smov 0  }
   0x2 LB: > { %s33_s18 = sadd.s32 1, %s2558_s16  ;;  %p2034_p0 = scmp.ge.s32.totalorder %s2562_s17, 1  ;;  %s2562_s17 = sphi %s2594_s17, %s14_s17   ;;  %s2558_s16 = sphi %s2592_s16, %s3294_s16   ;;  %s2554_s15 = sphi %s2590_s15, %s3293_s15  }
   0x3   : > { %p35_p1 = scmp.ge.s32.totalorder %s33_s18, 2  ;;  %p228_p2 = scmp.lt.s32.totalorder %s2562_s17, 3 }
   0x5   : > { %s3296_s18 = smov (%p35_p1, %s33_s18), 0  ;;  %p229_p3 = pnand %p2034_p0, %p228_p2 }
   0x7   : > { %232 = sbr.rel (%p229_p3) target bundleno = 413 (0x19d), region = 36 }
   0xe   : > { %v2244_v0 = vld [vmem:[%s3271_s1 + $0x4] ss:$8 sps:$4 sm:$0xff]   ;;  %s2035_s21 = sshll.u32 %s2554_s15, 5  ;;  %v2246_v1 = vld [vmem:[%s3271_s1] ss:$8 sps:$4 sm:$0xff]   ;;  %v2564_v2 = vmov 0   ;;  %v1070_v33 = vlaneseq }
   0xf   : > { %712 = vmatprep.mubr.bf16.mxu0 %v2564_v2  ;;  %792 = vmatprep.mubr.bf16.mxu1 %v2564_v2  ;;  %p281_p4 = scmp.lt.s32.totalorder %s2035_s21, 63  ;;  %v2247_v3 = vld [vmem:[%s3271_s1 + $0x14] ss:$8 sps:$4 sm:$0xff]   ;;  %v2249_v4 = vld [vmem:[%s3271_s1 + $0x10] ss:$8 sps:$4 sm:$0xff]  }
  0x10   : > { %680 = vmatprep.subr.bf16.mxu0 %v2244_v0  ;;  %2203 = vmatprep.subr.bf16.mxu1 %v2244_v0  ;;  %v2250_v5 = vld [vmem:[%s3271_s1 + $0x24] ss:$8 sps:$4 sm:$0xff]   ;;  %v2252_v6 = vld [vmem:[%s3271_s1 + $0x20] ss:$8 sps:$4 sm:$0xff]   ;;  %v2253_v7 = vld [vmem:[%s3271_s1 + $0x34] ss:$8 sps:$4 sm:$0xff]  }
  0x11   : > { %681 = vmatpush1.bf16.msra.mxu0 %v2246_v1  ;;  %2211 = vmatpush1.bf16.msra.mxu1 %v2246_v1  ;;  %s3298_s21 = smov (!%p281_p4, %s2035_s21), 63  ;;  %v2255_v8 = vld [vmem:[%s3271_s1 + $0x30] ss:$8 sps:$4 sm:$0xff]   ;;  %v2256_v9 = vld [vmem:[%s3271_s1 + $0x44] ss:$8 sps:$4 sm:$0xff]   ;;  %v1071_v34 = vshrl.u32 %v1070_v33, 7 }
  0x12   : > { %682 = vmatprep.subr.bf16.mxu0 %v2247_v3  ;;  %2204 = vmatprep.subr.bf16.mxu1 %v2247_v3  ;;  %s2036_s30 = sshll.u32 %s3298_s21, 2  ;;  %v2258_v10 = vld [vmem:[%s3271_s1 + $0x40] ss:$8 sps:$4 sm:$0xff]   ;;  %v2259_v11 = vld [vmem:[%s3271_s1 + $0x54] ss:$8 sps:$4 sm:$0xff]  }
  0x13   : > { %s2637_s11 = scalar_lea.vmem %s3270_s0, %s2036_s30  ;;  %v2261_v12 = vld [vmem:[%s3271_s1 + $0x50] ss:$8 sps:$4 sm:$0xff]   ;;  %v2262_v13 = vld [vmem:[%s3271_s1 + $0x64] ss:$8 sps:$4 sm:$0xff]   ;;  %v2264_v14 = vld [vmem:[%s3271_s1 + $0x60] ss:$8 sps:$4 sm:$0xff]  }
  0x14   : > { %v2265_v15 = vld [vmem:[%s3271_s1 + $0x74] ss:$8 sps:$4 sm:$0xff]   ;;  %v2267_v16 = vld [vmem:[%s3271_s1 + $0x70] ss:$8 sps:$4 sm:$0xff]   ;;  %v2268_v17 = vld [vmem:[%s2637_s11] sm:$0xff]   ;;  %v1072_v35 = vsub.s32 0, %v1071_v34 }
  0x15   : > { %683 = vmatpush1.bf16.msra.mxu0 %v2249_v4  ;;  %2212 = vmatpush1.bf16.msra.mxu1 %v2249_v4  ;;  %v2269_v18 = vld [vmem:[%s2637_s11 + $0x40] sm:$0xff]   ;;  %v2270_v19 = vld [vmem:[%s2637_s11 + $0x8] sm:$0xff]   ;;  %v2272_v21 = vld [vmem:[%s2637_s11 + $0x10] sm:$0xff]   ;;  %v1076_v37 = vsub.s32 1, %v1071_v34 }
  0x16   : > { %684 = vmatprep.subr.bf16.mxu0 %v2250_v5  ;;  %2205 = vmatprep.subr.bf16.mxu1 %v2250_v5  ;;  %v2271_v20 = vld [vmem:[%s2637_s11 + $0x48] sm:$0xff]   ;;  %v2273_v22 = vld [vmem:[%s2637_s11 + $0x50] sm:$0xff]   ;;  %v2274_v23 = vld [vmem:[%s2637_s11 + $0x18] sm:$0xff]  }
  0x17   : > { %v2275_v24 = vld [vmem:[%s2637_s11 + $0x58] sm:$0xff]   ;;  %v2276_v25 = vld [vmem:[%s2637_s11 + $0x20] sm:$0xff]   ;;  %v2278_v27 = vld [vmem:[%s2637_s11 + $0x28] sm:$0xff]  }
  0x18   : > { %v2277_v26 = vld [vmem:[%s2637_s11 + $0x60] sm:$0xff]   ;;  %v2279_v28 = vld [vmem:[%s2637_s11 + $0x68] sm:$0xff]   ;;  %v2280_v29 = vld [vmem:[%s2637_s11 + $0x30] sm:$0xff]  }
  0x19   : > { %685 = vmatpush1.bf16.msra.mxu0 %v2252_v6  ;;  %2213 = vmatpush1.bf16.msra.mxu1 %v2252_v6  ;;  %v2281_v30 = vld [vmem:[%s2637_s11 + $0x70] sm:$0xff]   ;;  %v2282_v31 = vld [vmem:[%s2637_s11 + $0x38] sm:$0xff]   ;;  %v1068_v36 = vld [vmem:[%s3272_s2] sm:$0x3] }
  0x1a   : > { %686 = vmatprep.subr.bf16.mxu0 %v2253_v7  ;;  %2206 = vmatprep.subr.bf16.mxu1 %v2253_v7  ;;  %v2283_v32 = vld [vmem:[%s2637_s11 + $0x78] sm:$0xff]   ;;  %v1144_v38 = vld [vmem:[%s3273_s3] sm:$0x3]  ;;  %v2702_v39 = vrot.slane %v1068_v36, %v1072_v35  ;;  %v2704_v40 = vrot.slane %v1068_v36, %v1076_v37  ;;  %s2170_s11 = sshll.u32 %s3298_s21, 3 }
  0x1b   : > { %v2706_v41 = vrot.slane %v1144_v38, %v1072_v35  ;;  %v2708_v44 = vrot.slane %v1144_v38, %v1076_v37  ;;  %s2852_s14 = scalar_lea.vmem %s3274_s4, %s2170_s11 }
  0x1d   : > { %687 = vmatpush1.bf16.msra.mxu0 %v2255_v8  ;;  %2214 = vmatpush1.bf16.msra.mxu1 %v2255_v8 }
  0x1e   : > { %688 = vmatprep.subr.bf16.mxu0 %v2256_v9  ;;  %2207 = vmatprep.subr.bf16.mxu1 %v2256_v9 }
  0x21   : > { %689 = vmatpush1.bf16.msra.mxu0 %v2258_v10  ;;  %2215 = vmatpush1.bf16.msra.mxu1 %v2258_v10 }
  0x22   : > { %690 = vmatprep.subr.bf16.mxu0 %v2259_v11  ;;  %2208 = vmatprep.subr.bf16.mxu1 %v2259_v11 }
  0x25   : > { %691 = vmatpush1.bf16.msra.mxu0 %v2261_v12  ;;  %2216 = vmatpush1.bf16.msra.mxu1 %v2261_v12 }
  0x26   : > { %692 = vmatprep.subr.bf16.mxu0 %v2262_v13  ;;  %2209 = vmatprep.subr.bf16.mxu1 %v2262_v13 }
  0x29   : > { %693 = vmatpush1.bf16.msra.mxu0 %v2264_v14  ;;  %2217 = vmatpush1.bf16.msra.mxu1 %v2264_v14 }
  0x2a   : > { %694 = vmatprep.subr.bf16.mxu0 %v2265_v15  ;;  %2210 = vmatprep.subr.bf16.mxu1 %v2265_v15 }
  0x2d   : > { %695 = vmatpush1.bf16.msra.mxu0 %v2267_v16  ;;  %2218 = vmatpush1.bf16.msra.mxu1 %v2267_v16 }
  0x30   : > { %713 = vmatmul.mubr.bf16.vlgmr.msra.gmra.mrb[0].mxu0 %v2268_v17  ;;  %793 = vmatmul.mubr.bf16.vlgmr.msra.gmra.mrb[0].mxu1 %v2269_v18 }
  0x31   : > { %722 = vmatprep.mubr.bf16.mxu0 %v2564_v2  ;;  %802 = vmatprep.mubr.bf16.mxu1 %v2564_v2 }
  0x38   : > { %723 = vmatmul.mubr.bf16.gmra.mrb[4].mxu0 %v2270_v19  ;;  %803 = vmatmul.mubr.bf16.gmra.mrb[4].mxu1 %v2271_v20 }
  0x39   : > { %732 = vmatprep.mubr.bf16.mxu0 %v2564_v2  ;;  %812 = vmatprep.mubr.bf16.mxu1 %v2564_v2 }
  0x40   : > { %733 = vmatmul.mubr.bf16.gmra.mrb[8].mxu0 %v2272_v21  ;;  %813 = vmatmul.mubr.bf16.gmra.mrb[8].mxu1 %v2273_v22 }
  0x41   : > { %742 = vmatprep.mubr.bf16.mxu0 %v2564_v2  ;;  %822 = vmatprep.mubr.bf16.mxu1 %v2564_v2 }
  0x48   : > { %743 = vmatmul.mubr.bf16.gmra.mrb[12].mxu0 %v2274_v23  ;;  %823 = vmatmul.mubr.bf16.gmra.mrb[12].mxu1 %v2275_v24 }
  0x49   : > { %752 = vmatprep.mubr.bf16.mxu0 %v2564_v2  ;;  %832 = vmatprep.mubr.bf16.mxu1 %v2564_v2 }
  0x50   : > { %753 = vmatmul.mubr.bf16.gmra.mrb[16].mxu0 %v2276_v25  ;;  %833 = vmatmul.mubr.bf16.gmra.mrb[16].mxu1 %v2277_v26 }
  0x51   : > { %762 = vmatprep.mubr.bf16.mxu0 %v2564_v2  ;;  %842 = vmatprep.mubr.bf16.mxu1 %v2564_v2 }
  0x58   : > { %763 = vmatmul.mubr.bf16.gmra.mrb[20].mxu0 %v2278_v27  ;;  %843 = vmatmul.mubr.bf16.gmra.mrb[20].mxu1 %v2279_v28 }
  0x59   : > { %772 = vmatprep.mubr.bf16.mxu0 %v2564_v2  ;;  %852 = vmatprep.mubr.bf16.mxu1 %v2564_v2 }
  0x60   : > { %773 = vmatmul.mubr.bf16.gmra.mrb[24].mxu0 %v2280_v29  ;;  %853 = vmatmul.mubr.bf16.gmra.mrb[24].mxu1 %v2281_v30 }
  0x61   : > { %782 = vmatprep.mubr.bf16.mxu0 %v2564_v2  ;;  %862 = vmatprep.mubr.bf16.mxu1 %v2564_v2 }
  0x68   : > { %783 = vmatmul.mubr.bf16.gmra.mrb[28].mxu0 %v2282_v31  ;;  %863 = vmatmul.mubr.bf16.gmra.mrb[28].mxu1 %v2283_v32 }
 0x103   : > { %v714_v42 = vpop.f32.mrb[0].mxu0  ;;  %v794_v43 = vpop.f32.mrb[0].mxu1 }
 0x104   : > { %v1080_v45 = vmul.f32 %v2702_v39, %v714_v42  ;;  %v1112_v46 = vmul.f32 %v2702_v39, %v794_v43  ;;  %v716_v47 = vpop.f32.mrb[1].mxu0  ;;  %v796_v48 = vpop.f32.mrb[1].mxu1 }
 0x105   : > { %v1081_v49 = vmul.f32 %v2704_v40, %v716_v47  ;;  %v1113_v50 = vmul.f32 %v2704_v40, %v796_v48  ;;  %v718_v51 = vpop.f32.mrb[2].mxu0  ;;  %v798_v52 = vpop.f32.mrb[2].mxu1 }
 0x106   : > { %v2715_v53 = vadd.f32 %v2706_v41, %v1080_v45  ;;  %v2718_v54 = vadd.f32 %v2706_v41, %v1112_v46  ;;  %v1082_v55 = vmul.f32 %v2702_v39, %v718_v51  ;;  %v1114_v56 = vmul.f32 %v2702_v39, %v798_v52  ;;  %v720_v57 = vpop.f32.mrb[3].mxu0  ;;  %v800_v58 = vpop.f32.mrb[3].mxu1 }
 0x107   : > { %v2723_v59 = vadd.f32 %v2708_v44, %v1081_v49  ;;  %v2726_v60 = vadd.f32 %v2708_v44, %v1113_v50  ;;  %v1083_v61 = vmul.f32 %v2704_v40, %v720_v57  ;;  %v1115_v62 = vmul.f32 %v2704_v40, %v800_v58 }
 0x108   : > { %v2072_v63 = vmul.f32 -1.442695, %v2715_v53  ;;  %v2104_v0 = vmul.f32 -1.442695, %v2718_v54  ;;  %v2733_v1 = vadd.f32 %v2706_v41, %v1082_v55  ;;  %v2736_v2 = vadd.f32 %v2706_v41, %v1114_v56 }
 0x109   : > { %v2073_v3 = vmul.f32 -1.442695, %v2723_v59  ;;  %v2105_v4 = vmul.f32 -1.442695, %v2726_v60  ;;  %v2741_v5 = vadd.f32 %v2708_v44, %v1083_v61  ;;  %v2744_v6 = vadd.f32 %v2708_v44, %v1115_v62 }
 0x10a   : > { %2284 = vpow2.f32 %v2072_v63  ;;  %v2074_v7 = vmul.f32 -1.442695, %v2733_v1  ;;  %v2106_v8 = vmul.f32 -1.442695, %v2736_v2 }
 0x10b   : > { %2286 = vpow2.f32 %v2104_v0  ;;  %v724_v9 = vpop.f32.mrb[4].mxu0  ;;  %v804_v10 = vpop.f32.mrb[4].mxu1  ;;  %v2075_v11 = vmul.f32 -1.442695, %v2741_v5  ;;  %v2107_v16 = vmul.f32 -1.442695, %v2744_v6 }
 0x10c   : > { %2288 = vpow2.f32 %v2073_v3  ;;  %v1084_v12 = vmul.f32 %v2702_v39, %v724_v9  ;;  %v1116_v13 = vmul.f32 %v2702_v39, %v804_v10  ;;  %v726_v14 = vpop.f32.mrb[5].mxu0  ;;  %v806_v15 = vpop.f32.mrb[5].mxu1 }
 0x10d   : > { %2290 = vpow2.f32 %v2105_v4  ;;  %v1085_v17 = vmul.f32 %v2704_v40, %v726_v14  ;;  %v1117_v18 = vmul.f32 %v2704_v40, %v806_v15  ;;  %v728_v19 = vpop.f32.mrb[6].mxu0  ;;  %v808_v20 = vpop.f32.mrb[6].mxu1 }
 0x10e   : > { %2292 = vpow2.f32 %v2074_v7  ;;  %v2755_v21 = vadd.f32 %v2706_v41, %v1084_v12  ;;  %v2758_v22 = vadd.f32 %v2706_v41, %v1116_v13  ;;  %v1086_v23 = vmul.f32 %v2702_v39, %v728_v19  ;;  %v730_v24 = vpop.f32.mrb[7].mxu0  ;;  %v810_v25 = vpop.f32.mrb[7].mxu1 }
 0x10f   : > { %2294 = vpow2.f32 %v2106_v8  ;;  %v2762_v26 = vadd.f32 %v2708_v44, %v1085_v17  ;;  %v2765_v27 = vadd.f32 %v2708_v44, %v1117_v18  ;;  %v1118_v37 = vmul.f32 %v2702_v39, %v808_v20 }
 0x110   : > { %2296 = vpow2.f32 %v2075_v11  ;;  %v2076_v28 = vmul.f32 -1.442695, %v2755_v21  ;;  %v2108_v29 = vmul.f32 -1.442695, %v2758_v22  ;;  %v2770_v30 = vadd.f32 %v2706_v41, %v1086_v23 }
 0x111   : > { %2298 = vpow2.f32 %v2107_v16  ;;  %v2077_v31 = vmul.f32 -1.442695, %v2762_v26  ;;  %v2109_v32 = vmul.f32 -1.442695, %v2765_v27  ;;  %v1087_v46 = vmul.f32 %v2704_v40, %v730_v24 }
 0x112   : > { %2300 = vpow2.f32 %v2076_v28  ;;  %v2078_v33 = vmul.f32 -1.442695, %v2770_v30  ;;  %v1119_v51 = vmul.f32 %v2704_v40, %v810_v25  ;;  %v2782_v63 = vadd.f32 %v2706_v41, %v1118_v37 }
 0x113   : > { %2302 = vpow2.f32 %v2108_v29  ;;  %v734_v34 = vpop.f32.mrb[8].mxu0  ;;  %v814_v35 = vpop.f32.mrb[8].mxu1  ;;  %v2786_v7 = vadd.f32 %v2708_v44, %v1087_v46 }
 0x114   : > { %v2285_v36 = vpop.eup %2284  ;;  %2304 = vpow2.f32 %v2077_v31  ;;  %v736_v38 = vpop.f32.mrb[9].mxu0  ;;  %v1088_v57 = vmul.f32 %v2702_v39, %v734_v34  ;;  %v1120_v0 = vmul.f32 %v2702_v39, %v814_v35  ;;  %v2789_v10 = vadd.f32 %v2708_v44, %v1119_v51 }
 0x115   : > { %v816_v42 = vpop.f32.mrb[9].mxu1  ;;  %v2287_v43 = vpop.eup %2286  ;;  %v1412_v45 = vadd.f32 1.0, %v2285_v36  ;;  %2306 = vpow2.f32 %v2109_v32  ;;  %v1089_v11 = vmul.f32 %v2704_v40, %v736_v38  ;;  %v2110_v20 = vmul.f32 -1.442695, %v2782_v63 }
 0x116   : > { %v738_v47 = vpop.f32.mrb[10].mxu0  ;;  %v818_v48 = vpop.f32.mrb[10].mxu1  ;;  %v1444_v50 = vadd.f32 1.0, %v2287_v43  ;;  %2308 = vpow2.f32 %v2078_v33  ;;  %v2793_v14 = vadd.f32 %v2706_v41, %v1088_v57  ;;  %v1121_v15 = vmul.f32 %v2704_v40, %v816_v42 }
 0x117   : > { %v2289_v49 = vpop.eup %2288  ;;  %v740_v52 = vpop.f32.mrb[11].mxu0  ;;  %2310 = vrcp.f32 %v1412_v45  ;;  %v2798_v23 = vadd.f32 %v2706_v41, %v1120_v0  ;;  %v2079_v31 = vmul.f32 -1.442695, %v2786_v7  ;;  %v1090_v32 = vmul.f32 %v2702_v39, %v738_v47 }
 0x118   : > { %v2291_v55 = vpop.eup %2290  ;;  %v1413_v56 = vadd.f32 1.0, %v2289_v49  ;;  %v2779_v58 = vpop.f32.mrb[11].mxu1  ;;  %2312 = vrcp.f32 %v1444_v50  ;;  %v2111_v37 = vmul.f32 -1.442695, %v2789_v10  ;;  %v2812_v38 = vadd.f32 %v2708_v44, %v1089_v11 }
 0x119   : > { %v2293_v61 = vpop.eup %2292  ;;  %v1445_v62 = vadd.f32 1.0, %v2291_v55  ;;  %v2080_v47 = vmul.f32 -1.442695, %v2793_v14  ;;  %v2820_v49 = vadd.f32 %v2708_v44, %v1121_v15  ;;  %v2112_v55 = vmul.f32 -1.442695, %v2798_v23 }
 0x11a   : > { %v2295_v3 = vpop.eup %2294  ;;  %2314 = vrcp.f32 %v1413_v56  ;;  %v1414_v4 = vadd.f32 1.0, %v2293_v61  ;;  %v1122_v56 = vmul.f32 %v2702_v39, %v818_v48  ;;  %v1091_v0 = vmul.f32 %v2704_v40, %v740_v52 }
 0x11b   : > { %v2297_v8 = vpop.eup %2296  ;;  %2316 = vrcp.f32 %v1445_v62  ;;  %v1446_v9 = vadd.f32 1.0, %v2295_v3  ;;  %v744_v16 = vpop.f32.mrb[12].mxu0  ;;  %v2825_v62 = vadd.f32 %v2706_v41, %v1090_v32 }
 0x11c   : > { %v2299_v12 = vpop.eup %2298  ;;  %2318 = vrcp.f32 %v1414_v4  ;;  %v1415_v13 = vadd.f32 1.0, %v2297_v8  ;;  %v824_v17 = vpop.f32.mrb[12].mxu1  ;;  %v2081_v8 = vmul.f32 -1.442695, %v2812_v38 }
 0x11d   : > { %v2301_v18 = vpop.eup %2300  ;;  %2320 = vrcp.f32 %v1446_v9  ;;  %v1447_v19 = vadd.f32 1.0, %v2299_v12  ;;  %v2800_v24 = vpop.f32.mrb[13].mxu0  ;;  %v1123_v9 = vmul.f32 %v2704_v40, %v2779_v58  ;;  %v2113_v12 = vmul.f32 -1.442695, %v2820_v49 }
 0x11e   : > { %v2802_v25 = vpop.f32.mrb[13].mxu1  ;;  %v2303_v28 = vpop.eup %2302  ;;  %2322 = vrcp.f32 %v1415_v13  ;;  %v1416_v29 = vadd.f32 1.0, %v2301_v18  ;;  %v1092_v13 = vmul.f32 %v2702_v39, %v744_v16  ;;  %v1124_v58 = vmul.f32 %v2702_v39, %v824_v17 }
 0x11f   : > { %v2806_v33 = vpop.f32.mrb[14].mxu0  ;;  %v2808_v34 = vpop.f32.mrb[14].mxu1  ;;  %2324 = vrcp.f32 %v1447_v19  ;;  %v1448_v36 = vadd.f32 1.0, %v2303_v28  ;;  %v2842_v19 = vadd.f32 %v2706_v41, %v1122_v56 }
 0x120   : > { %v2305_v35 = vpop.eup %2304  ;;  %v2814_v42 = vpop.f32.mrb[15].mxu0  ;;  %2326 = vrcp.f32 %v1416_v29 }
 0x121   : > { %v2816_v43 = vpop.f32.mrb[15].mxu1  ;;  %v2307_v45 = vpop.eup %2306  ;;  %v1417_v46 = vadd.f32 1.0, %v2305_v35  ;;  %2328 = vrcp.f32 %v1448_v36 }
 0x122   : > { %v2309_v50 = vpop.eup %2308  ;;  %v1449_v51 = vadd.f32 1.0, %v2307_v45 }
 0x123   : > { %v2311_v57 = vpop.eup %2310  ;;  %2330 = vrcp.f32 %v1417_v46  ;;  %v1418_v61 = vadd.f32 1.0, %v2309_v50  ;;  %v2836_v15 = vpop.f32.mrb[16].mxu0  ;;  %v2865_v46 = vadd.f32 %v2708_v44, %v1123_v9 }
 0x124   : > { %v2313_v3 = vpop.eup %2312  ;;  %v1604_v4 = vmul.f32 %v2311_v57, %v2715_v53  ;;  %2332 = vrcp.f32 %v1449_v51  ;;  %v2838_v52 = vpop.f32.mrb[16].mxu1  ;;  %v2873_v57 = vadd.f32 %v2706_v41, %v1092_v13 }
 0x125   : > { %v2315_v11 = vpop.eup %2314  ;;  %v1636_v48 = vmul.f32 %v2313_v3, %v2718_v54  ;;  %2334 = vrcp.f32 %v1418_v61  ;;  %v2845_v28 = vpop.f32.mrb[17].mxu0 }
 0x126   : > { %v2317_v53 = vpop.eup %2316  ;;  %v1605_v18 = vmul.f32 %v2315_v11, %v2723_v59  ;;  %2336 = vpow2.f32 %v2110_v20  ;;  %v2847_v54 = vpop.f32.mrb[17].mxu1  ;;  %v2082_v59 = vmul.f32 -1.442695, %v2825_v62  ;;  %v2857_v20 = vadd.f32 %v2708_v44, %v1091_v0 }
 0x127   : > { %v2319_v29 = vpop.eup %2318  ;;  %v1637_v16 = vmul.f32 %v2317_v53, %v2726_v60  ;;  %2338 = vpow2.f32 %v2079_v31  ;;  %v2859_v17 = vpop.f32.mrb[18].mxu0  ;;  %v2879_v0 = vadd.f32 %v2706_v41, %v1124_v58  ;;  %v2084_v53 = vmul.f32 -1.442695, %v2873_v57 }
 0x128   : > { %v2861_v32 = vpop.f32.mrb[18].mxu1  ;;  %v2321_v35 = vpop.eup %2320  ;;  %v2171_v36 = vpack.c.bf16 %v1605_v18, %v1604_v4  ;;  %v1606_v45 = vmul.f32 %v2319_v29, %v2733_v1  ;;  %2340 = vpow2.f32 %v2111_v37  ;;  %v2114_v37 = vmul.f32 -1.442695, %v2842_v19 }
 0x129   : > { %v2867_v60 = vpop.f32.mrb[19].mxu0  ;;  %v2869_v31 = vpop.f32.mrb[19].mxu1  ;;  %v2187_v51 = vpack.c.bf16 %v1637_v16, %v1636_v48  ;;  %v1638_v56 = vmul.f32 %v2321_v35, %v2736_v2  ;;  %2342 = vpow2.f32 %v2080_v47  ;;  %v2083_v2 = vmul.f32 -1.442695, %v2857_v20 }
 0x12a   : > { %v2323_v50 = vpop.eup %2322  ;;  %1860 = vst [vmem:[%s2852_s14] sm:$0xff] %v2171_v36  ;;  %2344 = vpow2.f32 %v2112_v55 }
 0x12b   : > { %v2325_v61 = vpop.eup %2324  ;;  %v1607_v1 = vmul.f32 %v2323_v50, %v2741_v5  ;;  %1876 = vst [vmem:[%s2852_s14 + $0x80] sm:$0xff] %v2187_v51  ;;  %2346 = vpow2.f32 %v2081_v8  ;;  %v2115_v5 = vmul.f32 -1.442695, %v2865_v46  ;;  %v2890_v8 = vpop.f32.mrb[20].mxu1 }
 0x12c   : > { %v2327_v3 = vpop.eup %2326  ;;  %v1639_v4 = vmul.f32 %v2325_v61, %v2744_v6  ;;  %2348 = vpow2.f32 %v2113_v12  ;;  %v2888_v6 = vpop.f32.mrb[20].mxu0  ;;  %v1093_v12 = vmul.f32 %v2704_v40, %v2800_v24 }
 0x12d   : > { %v2329_v47 = vpop.eup %2328  ;;  %v2172_v9 = vpack.c.bf16 %v1607_v1, %v1606_v45  ;;  %v1608_v11 = vmul.f32 %v2327_v3, %v2755_v21  ;;  %2350 = vpow2.f32 %v2082_v59  ;;  %v2116_v21 = vmul.f32 -1.442695, %v2879_v0  ;;  %v2897_v29 = vpop.f32.mrb[21].mxu0 }
 0x12e   : > { %v2331_v55 = vpop.eup %2330  ;;  %v2188_v48 = vpack.c.bf16 %v1639_v4, %v1638_v56  ;;  %v1640_v13 = vmul.f32 %v2329_v47, %v2758_v22  ;;  %2352 = vpow2.f32 %v2114_v37  ;;  %v2899_v22 = vpop.f32.mrb[21].mxu1  ;;  %v1094_v1 = vmul.f32 %v2702_v39, %v2806_v33 }
 0x12f   : > { %v2333_v18 = vpop.eup %2332  ;;  %1861 = vst [vmem:[%s2852_s14 + $0x8] sm:$0xff] %v2172_v9  ;;  %v1609_v58 = vmul.f32 %v2331_v55, %v2762_v26  ;;  %2354 = vpow2.f32 %v2083_v2  ;;  %v1125_v26 = vmul.f32 %v2704_v40, %v2802_v25  ;;  %v2907_v35 = vpop.f32.mrb[22].mxu0  ;;  %v2919_v3 = vadd.f32 %v2708_v44, %v1093_v12 }
 0x130   : > { %v2901_v16 = vpop.eup %2334  ;;  %1877 = vst [vmem:[%s2852_s14 + $0x88] sm:$0xff] %v2188_v48  ;;  %v1641_v59 = vmul.f32 %v2333_v18, %v2765_v27  ;;  %v2909_v36 = vpop.f32.mrb[22].mxu1  ;;  %2356 = vpow2.f32 %v2115_v5  ;;  %v1126_v4 = vmul.f32 %v2702_v39, %v2808_v34  ;;  %v1095_v5 = vmul.f32 %v2704_v40, %v2814_v42 }
 0x131   : > { %v2337_v45 = vpop.eup %2336  ;;  %v2173_v24 = vpack.c.bf16 %v1609_v58, %v1608_v11  ;;  %v2911_v50 = vpop.f32.mrb[23].mxu0  ;;  %2358 = vpow2.f32 %v2084_v53  ;;  %v2925_v9 = vadd.f32 %v2708_v44, %v1125_v26  ;;  %v1127_v34 = vmul.f32 %v2704_v40, %v2816_v43 }
 0x132   : > { %v2913_v51 = vpop.f32.mrb[23].mxu1  ;;  %v2339_v56 = vpop.eup %2338  ;;  %v2189_v61 = vpack.c.bf16 %v1641_v59, %v1640_v13  ;;  %v1450_v27 = vadd.f32 1.0, %v2337_v45  ;;  %2360 = vpow2.f32 %v2116_v21  ;;  %v2930_v13 = vadd.f32 %v2706_v41, %v1094_v1 }
 0x133   : > { %v2341_v25 = vpop.eup %2340  ;;  %1862 = vst [vmem:[%s2852_s14 + $0x10] sm:$0xff] %v2173_v24  ;;  %v1419_v37 = vadd.f32 1.0, %v2339_v56  ;;  %v2934_v53 = vpop.f32.mrb[24].mxu0  ;;  %v2085_v12 = vmul.f32 -1.442695, %v2919_v3  ;;  %v2940_v42 = vadd.f32 %v2706_v41, %v1126_v4  ;;  %v2950_v1 = vadd.f32 %v2708_v44, %v1095_v5 }
 0x134   : > { %v2343_v2 = vpop.eup %2342  ;;  %1878 = vst [vmem:[%s2852_s14 + $0x90] sm:$0xff] %v2189_v61  ;;  %2362 = vrcp.f32 %v1450_v27  ;;  %v1451_v47 = vadd.f32 1.0, %v2341_v25  ;;  %v2936_v18 = vpop.f32.mrb[24].mxu1  ;;  %v2117_v24 = vmul.f32 -1.442695, %v2925_v9  ;;  %v1096_v25 = vmul.f32 %v2702_v39, %v2836_v15 }
 0x135   : > { %v2345_v11 = vpop.eup %2344  ;;  %2364 = vrcp.f32 %v1419_v37  ;;  %v1420_v33 = vadd.f32 1.0, %v2343_v2  ;;  %v2942_v59 = vpop.f32.mrb[25].mxu0  ;;  %v1128_v15 = vmul.f32 %v2702_v39, %v2838_v52 }
 0x136   : > { %v2347_v55 = vpop.eup %2346  ;;  %2366 = vrcp.f32 %v1451_v47  ;;  %v1452_v48 = vadd.f32 1.0, %v2345_v11  ;;  %v2945_v43 = vpop.f32.mrb[25].mxu1  ;;  %v2086_v11 = vmul.f32 -1.442695, %v2930_v13 }
 0x137   : > { %v2349_v58 = vpop.eup %2348  ;;  %2368 = vrcp.f32 %v1420_v33  ;;  %v1421_v21 = vadd.f32 1.0, %v2347_v55  ;;  %v2947_v56 = vpop.f32.mrb[26].mxu0  ;;  %v2960_v33 = vadd.f32 %v2708_v44, %v1127_v34  ;;  %v1097_v34 = vmul.f32 %v2704_v40, %v2845_v28 }
 0x138   : > { %v2351_v26 = vpop.eup %2350  ;;  %2370 = vrcp.f32 %v1452_v48  ;;  %v1453_v45 = vadd.f32 1.0, %v2349_v58  ;;  %v2954_v37 = vpop.f32.mrb[26].mxu1  ;;  %v2118_v58 = vmul.f32 -1.442695, %v2940_v42 }
 0x139   : > { %v2353_v61 = vpop.eup %2352  ;;  %2372 = vrcp.f32 %v1421_v21  ;;  %v1422_v27 = vadd.f32 1.0, %v2351_v26  ;;  %3275 = vst [vmem:[#allocation3_spill] sm:$0xff] %v2954_v37  ;;  %v2956_v4 = vpop.f32.mrb[27].mxu0  ;;  %v1610_v26 = vmul.f32 %v2901_v16, %v2770_v30  ;;  %v2119_v37 = vmul.f32 -1.442695, %v2960_v33 }
 0x13a   : > { %3276 = vst [vmem:[#allocation4_spill] sm:$0xff] %v2956_v4  ;;  %v2355_v2 = vpop.eup %2354  ;;  %2374 = vrcp.f32 %v1453_v45  ;;  %v1454_v47 = vadd.f32 1.0, %v2353_v61  ;;  %v2962_v55 = vpop.f32.mrb[27].mxu1  ;;  %v1129_v30 = vmul.f32 %v2704_v40, %v2847_v54 }
 0x13b   : > { %3277 = vst [vmem:[#allocation5_spill] sm:$0xff] %v2962_v55  ;;  %v2357_v48 = vpop.eup %2356  ;;  %2376 = vrcp.f32 %v1422_v27  ;;  %v1423_v5 = vadd.f32 1.0, %v2355_v2  ;;  %v2087_v27 = vmul.f32 -1.442695, %v2950_v1  ;;  %v2973_v2 = vadd.f32 %v2706_v41, %v1096_v25  ;;  %v2978_v16 = vpop.f32.mrb[28].mxu0 }
 0x13c   : > { %v2359_v21 = vpop.eup %2358  ;;  %2378 = vrcp.f32 %v1454_v47  ;;  %v1455_v45 = vadd.f32 1.0, %v2357_v48  ;;  %v2980_v47 = vpop.f32.mrb[28].mxu1  ;;  %v1098_v25 = vmul.f32 %v2702_v39, %v2859_v17 }
 0x13d   : > { %v2361_v61 = vpop.eup %2360  ;;  %2380 = vrcp.f32 %v1423_v5  ;;  %v1424_v55 = vadd.f32 1.0, %v2359_v21  ;;  %3278 = vst [vmem:[#allocation6_spill] sm:$0xff] %v2980_v47  ;;  %v2984_v5 = vadd.f32 %v2706_v41, %v1128_v15  ;;  %v2988_v21 = vpop.f32.mrb[29].mxu0  ;;  %v2994_v47 = vadd.f32 %v2708_v44, %v1097_v34 }
 0x13e   : > { %v2363_v4 = vpop.eup %2362  ;;  %2382 = vrcp.f32 %v1455_v45  ;;  %v1456_v52 = vadd.f32 1.0, %v2361_v61  ;;  %v2990_v45 = vpop.f32.mrb[29].mxu1 }
 0x13f   : > { %v2365_v28 = vpop.eup %2364  ;;  %v1642_v48 = vmul.f32 %v2363_v4, %v2782_v63  ;;  %2384 = vrcp.f32 %v1424_v55  ;;  %3279 = vst [vmem:[#allocation7_spill] sm:$0xff] %v2990_v45  ;;  %v1130_v63 = vmul.f32 %v2702_v39, %v2861_v32  ;;  %v2998_v4 = vpop.f32.mrb[30].mxu0  ;;  %v2088_v45 = vmul.f32 -1.442695, %v2973_v2 }
 0x140   : > { %v2367_v61 = vpop.eup %2366  ;;  %v1611_v54 = vmul.f32 %v2365_v28, %v2786_v7  ;;  %2386 = vrcp.f32 %v1456_v52  ;;  %3280 = vst [vmem:[#allocation8_spill] sm:$0xff] %v2998_v4  ;;  %v3000_v55 = vpop.f32.mrb[30].mxu1  ;;  %v1099_v7 = vmul.f32 %v2704_v40, %v2867_v60  ;;  %v3016_v60 = vadd.f32 %v2706_v41, %v1098_v25 }
 0x141   : > { %3281 = vst [vmem:[#allocation9_spill] sm:$0xff] %v3000_v55  ;;  %v2369_v15 = vpop.eup %2368  ;;  %v1643_v17 = vmul.f32 %v2367_v61, %v2789_v10  ;;  %2388 = vpow2.f32 %v2085_v12  ;;  %v3006_v52 = vpop.f32.mrb[31].mxu0  ;;  %v3012_v55 = vadd.f32 %v2708_v44, %v1129_v30 }
 0x142   : > { %3282 = vst [vmem:[#allocation10_spill] sm:$0xff] %v3006_v52  ;;  %v3008_v34 = vpop.f32.mrb[31].mxu1  ;;  %v2371_v28 = vpop.eup %2370  ;;  %v2174_v32 = vpack.c.bf16 %v1611_v54, %v1610_v26  ;;  %v1612_v4 = vmul.f32 %v2369_v15, %v2793_v14  ;;  %2390 = vpow2.f32 %v2117_v24  ;;  %v2120_v26 = vmul.f32 -1.442695, %v2984_v5 }
 0x143   : > { %3283 = vst [vmem:[#allocation11_spill] sm:$0xff] %v3008_v34  ;;  %v2373_v10 = vpop.eup %2372  ;;  %v2190_v12 = vpack.c.bf16 %v1643_v17, %v1642_v48  ;;  %v1644_v61 = vmul.f32 %v2371_v28, %v2798_v23  ;;  %2392 = vpow2.f32 %v2086_v11  ;;  %v3022_v14 = vadd.f32 %v2706_v41, %v1130_v63 }
 0x144   : > { %v2375_v52 = vpop.eup %2374  ;;  %1863 = vst [vmem:[%s2852_s14 + $0x18] sm:$0xff] %v2174_v32  ;;  %v1613_v34 = vmul.f32 %v2373_v10, %v2812_v38  ;;  %2394 = vpow2.f32 %v2118_v58  ;;  %v2089_v23 = vmul.f32 -1.442695, %v2994_v47  ;;  %v3028_v11 = vadd.f32 %v2708_v44, %v1099_v7 }
 0x145   : > { %v2377_v24 = vpop.eup %2376  ;;  %1879 = vst [vmem:[%s2852_s14 + $0x98] sm:$0xff] %v2190_v12  ;;  %v1645_v30 = vmul.f32 %v2375_v52, %v2820_v49  ;;  %2396 = vpow2.f32 %v2087_v27  ;;  %v2121_v25 = vmul.f32 -1.442695, %v3012_v55  ;;  %v2090_v49 = vmul.f32 -1.442695, %v3016_v60 }
 0x146   : > { %v2379_v48 = vpop.eup %2378  ;;  %v2175_v38 = vpack.c.bf16 %v1613_v34, %v1612_v4  ;;  %v1614_v58 = vmul.f32 %v2377_v24, %v2825_v62  ;;  %2398 = vpow2.f32 %v2119_v37  ;;  %v2122_v7 = vmul.f32 -1.442695, %v3022_v14 }
 0x147   : > { %v2381_v54 = vpop.eup %2380  ;;  %v2191_v63 = vpack.c.bf16 %v1645_v30, %v1644_v61  ;;  %v1646_v15 = vmul.f32 %v2379_v48, %v2842_v19  ;;  %2400 = vpow2.f32 %v2088_v45  ;;  %v2091_v37 = vmul.f32 -1.442695, %v3028_v11 }
 0x148   : > { %v2383_v27 = vpop.eup %2382  ;;  %1864 = vst [vmem:[%s2852_s14 + $0x20] sm:$0xff] %v2175_v38  ;;  %v1615_v17 = vmul.f32 %v2381_v54, %v2857_v20  ;;  %2402 = vpow2.f32 %v2120_v26  ;;  %v1131_v20 = vmul.f32 %v2704_v40, %v2869_v31  ;;  %v1100_v52 = vmul.f32 %v2702_v39, %v2888_v6 }
 0x149   : > { %v3037_v4 = vpop.eup %2384  ;;  %1880 = vst [vmem:[%s2852_s14 + $0xa0] sm:$0xff] %v2191_v63  ;;  %v1647_v62 = vmul.f32 %v2383_v27, %v2865_v46  ;;  %2404 = vpow2.f32 %v2089_v23  ;;  %v1132_v46 = vmul.f32 %v2702_v39, %v2890_v8  ;;  %v1101_v12 = vmul.f32 %v2704_v40, %v2897_v29 }
 0x14a   : > { %v3042_v19 = vpop.eup %2386  ;;  %v2176_v45 = vpack.c.bf16 %v1615_v17, %v1614_v58  ;;  %2406 = vpow2.f32 %v2121_v25  ;;  %v1133_v31 = vmul.f32 %v2704_v40, %v2899_v22  ;;  %v3057_v30 = vadd.f32 %v2708_v44, %v1131_v20 }
 0x14b   : > { %v2389_v34 = vpop.eup %2388  ;;  %v2192_v28 = vpack.c.bf16 %v1647_v62, %v1646_v15  ;;  %2408 = vpow2.f32 %v2090_v49  ;;  %v3060_v8 = vadd.f32 %v2706_v41, %v1100_v52  ;;  %v3063_v29 = vadd.f32 %v2706_v41, %v1132_v46 }
 0x14c   : > { %v2391_v32 = vpop.eup %2390  ;;  %1865 = vst [vmem:[%s2852_s14 + $0x28] sm:$0xff] %v2176_v45  ;;  %v1425_v10 = vadd.f32 1.0, %v2389_v34  ;;  %2410 = vpow2.f32 %v2122_v7  ;;  %v1102_v38 = vmul.f32 %v2702_v39, %v2907_v35  ;;  %v3068_v25 = vadd.f32 %v2708_v44, %v1101_v12 }
 0x14d   : > { %v2393_v61 = vpop.eup %2392  ;;  %1881 = vst [vmem:[%s2852_s14 + $0xa8] sm:$0xff] %v2192_v28  ;;  %v1457_v26 = vadd.f32 1.0, %v2391_v32  ;;  %2412 = vpow2.f32 %v2091_v37  ;;  %v1134_v54 = vmul.f32 %v2702_v39, %v2909_v36  ;;  %v3073_v49 = vadd.f32 %v2708_v44, %v1133_v31 }
 0x14e   : > { %v2395_v6 = vpop.eup %2394  ;;  %2414 = vrcp.f32 %v1425_v10  ;;  %v1426_v24 = vadd.f32 1.0, %v2393_v61  ;;  %v2123_v35 = vmul.f32 -1.442695, %v3057_v30  ;;  %v2092_v7 = vmul.f32 -1.442695, %v3060_v8 }
 0x14f   : > { %v2397_v23 = vpop.eup %2396  ;;  %2416 = vrcp.f32 %v1457_v26  ;;  %v1458_v48 = vadd.f32 1.0, %v2395_v6  ;;  %v2124_v45 = vmul.f32 -1.442695, %v3063_v29  ;;  %v3079_v36 = vadd.f32 %v2706_v41, %v1102_v38 }
 0x150   : > { %v2399_v58 = vpop.eup %2398  ;;  %2418 = vrcp.f32 %v1426_v24  ;;  %v1427_v22 = vadd.f32 1.0, %v2397_v23  ;;  %v2093_v34 = vmul.f32 -1.442695, %v3068_v25  ;;  %v3083_v28 = vadd.f32 %v2706_v41, %v1134_v54 }
 0x151   : > { %v2401_v63 = vpop.eup %2400  ;;  %2420 = vrcp.f32 %v1458_v48  ;;  %v1459_v15 = vadd.f32 1.0, %v2399_v58  ;;  %v2125_v10 = vmul.f32 -1.442695, %v3073_v49  ;;  %v1103_v12 = vmul.f32 %v2704_v40, %v2911_v50 }
 0x152   : > { %v2403_v27 = vpop.eup %2402  ;;  %2422 = vrcp.f32 %v1427_v22  ;;  %v1428_v17 = vadd.f32 1.0, %v2401_v63  ;;  %v1616_v26 = vmul.f32 %v3037_v4, %v2873_v57  ;;  %v1135_v6 = vmul.f32 %v2704_v40, %v2913_v51 }
 0x153   : > { %v2405_v62 = vpop.eup %2404  ;;  %2424 = vrcp.f32 %v1459_v15  ;;  %v1460_v37 = vadd.f32 1.0, %v2403_v27  ;;  %v1648_v23 = vmul.f32 %v3042_v19, %v2879_v0  ;;  %v2094_v38 = vmul.f32 -1.442695, %v3079_v36 }
 0x154   : > { %v2407_v20 = vpop.eup %2406  ;;  %2426 = vrcp.f32 %v1428_v17  ;;  %v1429_v52 = vadd.f32 1.0, %v2405_v62  ;;  %v2126_v22 = vmul.f32 -1.442695, %v3083_v28  ;;  %v1104_v57 = vmul.f32 %v2702_v39, %v2934_v53 }
 0x155   : > { %v2409_v46 = vpop.eup %2408  ;;  %2428 = vrcp.f32 %v1460_v37  ;;  %v1461_v32 = vadd.f32 1.0, %v2407_v20  ;;  %v3100_v51 = vadd.f32 %v2708_v44, %v1103_v12  ;;  %v1136_v0 = vmul.f32 %v2702_v39, %v2936_v18 }
 0x156   : > { %v2411_v61 = vpop.eup %2410  ;;  %2430 = vrcp.f32 %v1429_v52  ;;  %v1430_v31 = vadd.f32 1.0, %v2409_v46  ;;  %v3106_v15 = vadd.f32 %v2708_v44, %v1135_v6  ;;  %v1105_v53 = vmul.f32 %v2704_v40, %v2942_v59 }
 0x157   : > { %v2413_v24 = vpop.eup %2412  ;;  %2432 = vrcp.f32 %v1461_v32  ;;  %v1462_v48 = vadd.f32 1.0, %v2411_v61  ;;  %v1137_v18 = vmul.f32 %v2704_v40, %v2945_v43  ;;  %v3115_v20 = vadd.f32 %v2706_v41, %v1104_v57 }
 0x158   : > { %v2415_v58 = vpop.eup %2414  ;;  %2434 = vrcp.f32 %v1430_v31  ;;  %v1431_v50 = vadd.f32 1.0, %v2413_v24  ;;  %v2095_v46 = vmul.f32 -1.442695, %v3100_v51 }
 0x159   : > { %v2417_v4 = vpop.eup %2416  ;;  %v1617_v54 = vmul.f32 %v2415_v58, %v2919_v3  ;;  %2436 = vrcp.f32 %v1462_v48  ;;  %v3131_v12 = vadd.f32 %v2708_v44, %v1137_v18 }
 0x15a   : > { %v2419_v19 = vpop.eup %2418  ;;  %v1649_v63 = vmul.f32 %v2417_v4, %v2925_v9  ;;  %2438 = vrcp.f32 %v1431_v50  ;;  %v3284_v4 = vld [vmem:[#allocation3_spill] sm:$0xff] }
 0x15b   : > { %v2421_v27 = vpop.eup %2420  ;;  %v2177_v3 = vpack.c.bf16 %v1617_v54, %v1616_v26  ;;  %v1618_v17 = vmul.f32 %v2419_v19, %v2930_v13  ;;  %2440 = vpow2.f32 %v2123_v35  ;;  %v3121_v13 = vadd.f32 %v2706_v41, %v1136_v0  ;;  %v3285_v19 = vld [vmem:[#allocation4_spill] sm:$0xff] }
 0x15c   : > { %v2423_v62 = vpop.eup %2422  ;;  %v2193_v37 = vpack.c.bf16 %v1649_v63, %v1648_v23  ;;  %v1650_v9 = vmul.f32 %v2421_v27, %v2940_v42  ;;  %2442 = vpow2.f32 %v2092_v7  ;;  %v2127_v42 = vmul.f32 -1.442695, %v3106_v15 }
 0x15d   : > { %v2425_v52 = vpop.eup %2424  ;;  %1866 = vst [vmem:[%s2852_s14 + $0x30] sm:$0xff] %v2177_v3  ;;  %v1619_v59 = vmul.f32 %v2423_v62, %v2950_v1  ;;  %2444 = vpow2.f32 %v2124_v45  ;;  %v3127_v7 = vadd.f32 %v2708_v44, %v1105_v53  ;;  %v2128_v24 = vmul.f32 -1.442695, %v3121_v13 }
 0x15e   : > { %v2427_v35 = vpop.eup %2426  ;;  %1882 = vst [vmem:[%s2852_s14 + $0xb0] sm:$0xff] %v2193_v37  ;;  %v1651_v43 = vmul.f32 %v2425_v52, %v2960_v33  ;;  %2446 = vpow2.f32 %v2093_v34  ;;  %v2096_v33 = vmul.f32 -1.442695, %v3115_v20  ;;  %v1138_v54 = vmul.f32 %v2702_v39, %v3284_v4 }
 0x15f   : > { %v2429_v32 = vpop.eup %2428  ;;  %v2178_v1 = vpack.c.bf16 %v1619_v59, %v1618_v17  ;;  %v1620_v45 = vmul.f32 %v2427_v35, %v2973_v2  ;;  %2448 = vpow2.f32 %v2125_v10  ;;  %v2097_v23 = vmul.f32 -1.442695, %v3127_v7 }
 0x160   : > { %v2431_v61 = vpop.eup %2430  ;;  %v2194_v26 = vpack.c.bf16 %v1651_v43, %v1650_v9  ;;  %v1652_v31 = vmul.f32 %v2429_v32, %v2984_v5  ;;  %2450 = vpow2.f32 %v2094_v38  ;;  %v1107_v63 = vmul.f32 %v2704_v40, %v3285_v19  ;;  %v3289_v19 = vld [vmem:[#allocation8_spill] sm:$0xff] }
 0x161   : > { %v2433_v34 = vpop.eup %2432  ;;  %1867 = vst [vmem:[%s2852_s14 + $0x38] sm:$0xff] %v2178_v1  ;;  %v1621_v6 = vmul.f32 %v2431_v61, %v2994_v47  ;;  %2452 = vpow2.f32 %v2126_v22  ;;  %v2129_v47 = vmul.f32 -1.442695, %v3131_v12  ;;  %v1108_v62 = vmul.f32 %v2702_v39, %v2978_v16 }
 0x162   : > { %v2435_v2 = vpop.eup %2434  ;;  %1883 = vst [vmem:[%s2852_s14 + $0xb8] sm:$0xff] %v2194_v26  ;;  %v1653_v10 = vmul.f32 %v2433_v34, %v3012_v55  ;;  %2454 = vpow2.f32 %v2095_v46  ;;  %v1106_v55 = vmul.f32 %v2702_v39, %v2947_v56  ;;  %v3163_v59 = vadd.f32 %v2706_v41, %v1138_v54  ;;  %v3287_v26 = vld [vmem:[#allocation6_spill] sm:$0xff] }
 0x163   : > { %v3141_v5 = vpop.eup %2436  ;;  %v2179_v48 = vpack.c.bf16 %v1621_v6, %v1620_v45  ;;  %v1622_v38 = vmul.f32 %v2435_v2, %v3016_v60  ;;  %2456 = vpow2.f32 %v2127_v42  ;;  %v3166_v43 = vadd.f32 %v2708_v44, %v1107_v63 }
 0x164   : > { %v2439_v58 = vpop.eup %2438  ;;  %v2195_v50 = vpack.c.bf16 %v1653_v10, %v1652_v31  ;;  %2458 = vpow2.f32 %v2096_v33  ;;  %v3160_v52 = vadd.f32 %v2706_v41, %v1106_v55  ;;  %v3172_v61 = vadd.f32 %v2706_v41, %v1108_v62 }
 0x165   : > { %v2441_v22 = vpop.eup %2440  ;;  %1868 = vst [vmem:[%s2852_s14 + $0x40] sm:$0xff] %v2179_v48  ;;  %v1623_v57 = vmul.f32 %v2439_v58, %v3028_v11  ;;  %2460 = vpow2.f32 %v2128_v24  ;;  %v3286_v11 = vld [vmem:[#allocation5_spill] sm:$0xff]  ;;  %v1140_v31 = vmul.f32 %v2702_v39, %v3287_v26  ;;  %v2130_v24 = vmul.f32 -1.442695, %v3163_v59 }
 0x166   : > { %v2443_v0 = vpop.eup %2442  ;;  %1884 = vst [vmem:[%s2852_s14 + $0xc0] sm:$0xff] %v2195_v50  ;;  %v1463_v60 = vadd.f32 1.0, %v2441_v22  ;;  %2462 = vpow2.f32 %v2097_v23  ;;  %v1139_v17 = vmul.f32 %v2704_v40, %v3286_v11  ;;  %v2098_v6 = vmul.f32 -1.442695, %v3160_v52  ;;  %v3288_v50 = vld [vmem:[#allocation7_spill] sm:$0xff]  ;;  %v3290_v11 = vld [vmem:[#allocation9_spill] sm:$0xff] }
 0x167   : > { %v2445_v53 = vpop.eup %2444  ;;  %v2180_v27 = vpack.c.bf16 %v1623_v57, %v1622_v38  ;;  %v1432_v3 = vadd.f32 1.0, %v2443_v0  ;;  %2464 = vpow2.f32 %v2129_v47  ;;  %v2099_v23 = vmul.f32 -1.442695, %v3166_v43 }
 0x168   : > { %v2447_v18 = vpop.eup %2446  ;;  %2466 = vrcp.f32 %v1463_v60  ;;  %v1464_v56 = vadd.f32 1.0, %v2445_v53  ;;  %v3169_v16 = vadd.f32 %v2708_v44, %v1139_v17  ;;  %v1109_v48 = vmul.f32 %v2704_v40, %v2988_v21 }
 0x169   : > { %v2449_v37 = vpop.eup %2448  ;;  %1869 = vst [vmem:[%s2852_s14 + $0x48] sm:$0xff] %v2180_v27  ;;  %2468 = vrcp.f32 %v1432_v3  ;;  %v1433_v9 = vadd.f32 1.0, %v2447_v18  ;;  %v1141_v22 = vmul.f32 %v2704_v40, %v3288_v50  ;;  %v2100_v4 = vmul.f32 -1.442695, %v3172_v61 }
 0x16a   : > { %v2451_v46 = vpop.eup %2450  ;;  %2470 = vrcp.f32 %v1464_v56  ;;  %v1465_v35 = vadd.f32 1.0, %v2449_v37  ;;  %v2131_v58 = vmul.f32 -1.442695, %v3169_v16  ;;  %v3186_v54 = vadd.f32 %v2706_v41, %v1140_v31 }
 0x16b   : > { %v2453_v42 = vpop.eup %2452  ;;  %2472 = vrcp.f32 %v1433_v9  ;;  %v1434_v32 = vadd.f32 1.0, %v2451_v46  ;;  %v1654_v21 = vmul.f32 %v3141_v5, %v3022_v14  ;;  %v1110_v63 = vmul.f32 %v2702_v39, %v3289_v19  ;;  %v3291_v5 = vld [vmem:[#allocation10_spill] sm:$0xff] }
 0x16c   : > { %v2455_v1 = vpop.eup %2454  ;;  %2474 = vrcp.f32 %v1465_v35  ;;  %v1466_v45 = vadd.f32 1.0, %v2453_v42  ;;  %v3193_v3 = vadd.f32 %v2708_v44, %v1109_v48  ;;  %v1142_v17 = vmul.f32 %v2702_v39, %v3290_v11  ;;  %v3292_v35 = vld [vmem:[#allocation11_spill] sm:$0xff] }
 0x16d   : > { %v2457_v33 = vpop.eup %2456  ;;  %2476 = vrcp.f32 %v1434_v32  ;;  %v1435_v34 = vadd.f32 1.0, %v2455_v1  ;;  %v3199_v14 = vadd.f32 %v2708_v44, %v1141_v22  ;;  %v1111_v62 = vmul.f32 %v2704_v40, %v3291_v5 }
 0x16e   : > { %v2459_v2 = vpop.eup %2458  ;;  %2478 = vrcp.f32 %v1466_v45  ;;  %v1467_v10 = vadd.f32 1.0, %v2457_v33  ;;  %v2132_v46 = vmul.f32 -1.442695, %v3186_v54  ;;  %v1143_v39 = vmul.f32 %v2704_v40, %v3292_v35 }
 0x16f   : > { %v2461_v38 = vpop.eup %2460  ;;  %2480 = vrcp.f32 %v1435_v34  ;;  %v1436_v47 = vadd.f32 1.0, %v2459_v2  ;;  %v3209_v1 = vadd.f32 %v2706_v41, %v1110_v63  ;;  %v3214_v31 = vadd.f32 %v2706_v41, %v1142_v17 }
 0x170   : > { %v2463_v57 = vpop.eup %2462  ;;  %2482 = vrcp.f32 %v1467_v10  ;;  %v1468_v55 = vadd.f32 1.0, %v2461_v38  ;;  %v3220_v34 = vadd.f32 %v2708_v44, %v1111_v62  ;;  %v3224_v41 = vadd.f32 %v2708_v44, %v1143_v39 }
 0x171   : > { %v2465_v0 = vpop.eup %2464  ;;  %2484 = vrcp.f32 %v1436_v47  ;;  %v1437_v60 = vadd.f32 1.0, %v2463_v57  ;;  %v2134_v47 = vmul.f32 -1.442695, %v3214_v31 }
 0x172   : > { %v2467_v53 = vpop.eup %2466  ;;  %2486 = vrcp.f32 %v1468_v55  ;;  %v1469_v27 = vadd.f32 1.0, %v2465_v0  ;;  %v2135_v57 = vmul.f32 -1.442695, %v3224_v41 }
 0x173   : > { %v2469_v18 = vpop.eup %2468  ;;  %v1655_v56 = vmul.f32 %v2467_v53, %v3057_v30  ;;  %2488 = vrcp.f32 %v1437_v60 }
 0x174   : > { %v2471_v37 = vpop.eup %2470  ;;  %v1624_v9 = vmul.f32 %v2469_v18, %v3060_v8  ;;  %2490 = vrcp.f32 %v1469_v27  ;;  %v2101_v8 = vmul.f32 -1.442695, %v3193_v3 }
 0x175   : > { %v2473_v42 = vpop.eup %2472  ;;  %v2196_v32 = vpack.c.bf16 %v1655_v56, %v1654_v21  ;;  %v1656_v30 = vmul.f32 %v2471_v37, %v3063_v29  ;;  %2492 = vpow2.f32 %v2098_v6  ;;  %v2133_v29 = vmul.f32 -1.442695, %v3199_v14 }
 0x176   : > { %v2475_v45 = vpop.eup %2474  ;;  %v1625_v26 = vmul.f32 %v2473_v42, %v3068_v25  ;;  %2494 = vpow2.f32 %v2130_v24 }
 0x177   : > { %v2477_v33 = vpop.eup %2476  ;;  %1885 = vst [vmem:[%s2852_s14 + $0xc8] sm:$0xff] %v2196_v32  ;;  %v1657_v40 = vmul.f32 %v2475_v45, %v3073_v49  ;;  %2496 = vpow2.f32 %v2099_v23  ;;  %v2102_v49 = vmul.f32 -1.442695, %v3209_v1 }
 0x178   : > { %v2479_v6 = vpop.eup %2478  ;;  %v2181_v25 = vpack.c.bf16 %v1625_v26, %v1624_v9  ;;  %v1626_v24 = vmul.f32 %v2477_v33, %v3079_v36  ;;  %2498 = vpow2.f32 %v2131_v58  ;;  %v2103_v58 = vmul.f32 -1.442695, %v3220_v34 }
 0x179   : > { %v2481_v2 = vpop.eup %2480  ;;  %v2197_v10 = vpack.c.bf16 %v1657_v40, %v1656_v30  ;;  %v1658_v48 = vmul.f32 %v2479_v6, %v3083_v28  ;;  %2500 = vpow2.f32 %v2100_v4 }
 0x17a   : > { %v2483_v23 = vpop.eup %2482  ;;  %1870 = vst [vmem:[%s2852_s14 + $0x50] sm:$0xff] %v2181_v25  ;;  %v1627_v38 = vmul.f32 %v2481_v2, %v3100_v51  ;;  %2502 = vpow2.f32 %v2132_v46 }
 0x17b   : > { %v2485_v36 = vpop.eup %2484  ;;  %1886 = vst [vmem:[%s2852_s14 + $0xd0] sm:$0xff] %v2197_v10  ;;  %v1659_v44 = vmul.f32 %v2483_v23, %v3106_v15  ;;  %2504 = vpow2.f32 %v2101_v8 }
 0x17c   : > { %v2487_v28 = vpop.eup %2486  ;;  %v2182_v50 = vpack.c.bf16 %v1627_v38, %v1626_v24  ;;  %v1628_v22 = vmul.f32 %v2485_v36, %v3115_v20  ;;  %2506 = vpow2.f32 %v2133_v29 }
 0x17d   : > { %v2489_v51 = vpop.eup %2488  ;;  %v2198_v55 = vpack.c.bf16 %v1659_v44, %v1658_v48  ;;  %v1660_v4 = vmul.f32 %v2487_v28, %v3121_v13  ;;  %2508 = vpow2.f32 %v2102_v49 }
 0x17e   : > { %v2491_v0 = vpop.eup %2490  ;;  %1871 = vst [vmem:[%s2852_s14 + $0x58] sm:$0xff] %v2182_v50  ;;  %v1629_v15 = vmul.f32 %v2489_v51, %v3127_v7  ;;  %2510 = vpow2.f32 %v2134_v47 }
 0x17f   : > { %v2493_v21 = vpop.eup %2492  ;;  %1887 = vst [vmem:[%s2852_s14 + $0xd8] sm:$0xff] %v2198_v55  ;;  %v1661_v60 = vmul.f32 %v2491_v0, %v3131_v12  ;;  %2512 = vpow2.f32 %v2103_v58 }
 0x180   : > { %v2495_v20 = vpop.eup %2494  ;;  %v2183_v19 = vpack.c.bf16 %v1629_v15, %v1628_v22  ;;  %v1438_v63 = vadd.f32 1.0, %v2493_v21  ;;  %2514 = vpow2.f32 %v2135_v57 }
 0x181   : > { %v2497_v53 = vpop.eup %2496  ;;  %v2199_v27 = vpack.c.bf16 %v1661_v60, %v1660_v4  ;;  %v1470_v13 = vadd.f32 1.0, %v2495_v20 }
 0x182   : > { %v2499_v11 = vpop.eup %2498  ;;  %1872 = vst [vmem:[%s2852_s14 + $0x60] sm:$0xff] %v2183_v19  ;;  %2516 = vrcp.f32 %v1438_v63  ;;  %v1439_v17 = vadd.f32 1.0, %v2497_v53 }
 0x183   : > { %v2501_v18 = vpop.eup %2500  ;;  %1888 = vst [vmem:[%s2852_s14 + $0xe0] sm:$0xff] %v2199_v27  ;;  %2518 = vrcp.f32 %v1470_v13  ;;  %v1471_v7 = vadd.f32 1.0, %v2499_v11 }
 0x184   : > { %v2503_v56 = vpop.eup %2502  ;;  %2520 = vrcp.f32 %v1439_v17  ;;  %v1440_v5 = vadd.f32 1.0, %v2501_v18 }
 0x185   : > { %v2505_v12 = vpop.eup %2504  ;;  %2522 = vrcp.f32 %v1471_v7  ;;  %v1472_v62 = vadd.f32 1.0, %v2503_v56 }
 0x186   : > { %v2507_v37 = vpop.eup %2506  ;;  %2524 = vrcp.f32 %v1440_v5  ;;  %v1441_v9 = vadd.f32 1.0, %v2505_v12 }
 0x187   : > { %v2509_v46 = vpop.eup %2508  ;;  %2526 = vrcp.f32 %v1472_v62  ;;  %v1473_v35 = vadd.f32 1.0, %v2507_v37 }
 0x188   : > { %v2511_v39 = vpop.eup %2510  ;;  %2528 = vrcp.f32 %v1441_v9  ;;  %v1442_v42 = vadd.f32 1.0, %v2509_v46 }
 0x189   : > { %v2513_v32 = vpop.eup %2512  ;;  %2530 = vrcp.f32 %v1473_v35  ;;  %v1474_v30 = vadd.f32 1.0, %v2511_v39 }
 0x18a   : > { %v2515_v45 = vpop.eup %2514  ;;  %2532 = vrcp.f32 %v1442_v42  ;;  %v1443_v26 = vadd.f32 1.0, %v2513_v32 }
 0x18b   : > { %2534 = vrcp.f32 %v1474_v30  ;;  %v1475_v8 = vadd.f32 1.0, %v2515_v45 }
 0x18c   : > { %v2517_v33 = vpop.eup %2516  ;;  %2536 = vrcp.f32 %v1443_v26 }
 0x18d   : > { %v2519_v40 = vpop.eup %2518  ;;  %v1630_v29 = vmul.f32 %v2517_v33, %v3160_v52  ;;  %2538 = vrcp.f32 %v1475_v8 }
 0x18e   : > { %v2521_v6 = vpop.eup %2520  ;;  %v1662_v25 = vmul.f32 %v2519_v40, %v3163_v59 }
 0x18f   : > { %v2523_v24 = vpop.eup %2522  ;;  %v1631_v2 = vmul.f32 %v2521_v6, %v3166_v43 }
 0x190   : > { %v2525_v10 = vpop.eup %2524  ;;  %v1663_v48 = vmul.f32 %v2523_v24, %v3169_v16 }
 0x191   : > { %v2527_v49 = vpop.eup %2526  ;;  %v2184_v23 = vpack.c.bf16 %v1631_v2, %v1630_v29  ;;  %v1632_v38 = vmul.f32 %v2525_v10, %v3172_v61 }
 0x192   : > { %v2529_v47 = vpop.eup %2528  ;;  %v2200_v36 = vpack.c.bf16 %v1663_v48, %v1662_v25  ;;  %v1664_v52 = vmul.f32 %v2527_v49, %v3186_v54 }
 0x193   : > { %v2531_v44 = vpop.eup %2530  ;;  %1873 = vst [vmem:[%s2852_s14 + $0x68] sm:$0xff] %v2184_v23  ;;  %v1633_v59 = vmul.f32 %v2529_v47, %v3193_v3 }
 0x194   : > { %v2533_v58 = vpop.eup %2532  ;;  %1889 = vst [vmem:[%s2852_s14 + $0xe8] sm:$0xff] %v2200_v36  ;;  %v1665_v43 = vmul.f32 %v2531_v44, %v3199_v14 }
 0x195   : > { %v2535_v16 = vpop.eup %2534  ;;  %v2185_v28 = vpack.c.bf16 %v1633_v59, %v1632_v38  ;;  %v1634_v61 = vmul.f32 %v2533_v58, %v3209_v1 }
 0x196   : > { %v2537_v50 = vpop.eup %2536  ;;  %v2201_v22 = vpack.c.bf16 %v1665_v43, %v1664_v52  ;;  %v1666_v57 = vmul.f32 %v2535_v16, %v3214_v31 }
 0x197   : > { %v2539_v54 = vpop.eup %2538  ;;  %1874 = vst [vmem:[%s2852_s14 + $0x70] sm:$0xff] %v2185_v28  ;;  %v1635_v51 = vmul.f32 %v2537_v50, %v3220_v34 }
 0x198   : > { %1890 = vst [vmem:[%s2852_s14 + $0xf0] sm:$0xff] %v2201_v22  ;;  %v1667_v3 = vmul.f32 %v2539_v54, %v3224_v41 }
 0x199   : > { %v2186_v55 = vpack.c.bf16 %v1635_v51, %v1634_v61 }
 0x19a   : > { %v2202_v4 = vpack.c.bf16 %v1667_v3, %v1666_v57 }
 0x19b   : > { %1875 = vst [vmem:[%s2852_s14 + $0x78] sm:$0xff] %v2186_v55 }
 0x19c   : > { %1891 = vst [vmem:[%s2852_s14 + $0xf8] sm:$0xff] %v2202_v4 }
 0x19d PF: > { %s14_s17 = sadd.s32 1, %s2562_s17   ;;  %s3293_s15 = smov %s2558_s16 }
 0x19e   : > { %p11_p5 = scmp.ge.s32.totalorder %s14_s17, 4   ;;  %s3294_s16 = smov %s3296_s18 }
 0x1a0   :  { %13 = sbr.rel (!%p11_p5) target bundleno = 2 (0x2), region = 83 }

// kernel: csp_layer_forward.6
= control target key start
LH: loop header
LB: loop body
LE: loop exit
PB: predicated region body
PF: predicated region fallthrough
CT: control target
= control target key end

     0   :  { %s8896_s18 = smov 0   ;;  %s8898_s19 = smov 0   ;;  %s10457_s0 = inlined_call_operand.vmem [shape: bf16[2,18,18,128], index: 0, kind: input, shape index: {}]   ;;  %s10458_s1 = inlined_call_operand.vmem [shape: bf16[9,128,128], index: 1, kind: input, shape index: {}]   ;;  %s10459_s2 = inlined_call_operand.vmem [shape: f32[1,128], index: 2, kind: input, shape index: {}]   ;;  %s10460_s3 = inlined_call_operand.vmem [shape: f32[1,128], index: 3, kind: input, shape index: {}]   ;;  %s10461_s4 = inlined_call_operand.vmem [shape: bf16[512,256], index: 4, kind: input, shape index: {}]   ;;  %s10462_s5 = inlined_call_operand.vmem [shape: bf16[512,128], index: 5, kind: output, shape index: {}]  }
   0x1   :  { %s8900_s20 = smov 0  }
   0x2 LB: > { %s8912_s21 = sadd.s32 4294967295, %s8864_s20   ;;  %s8915_s22 = sadd.s32 1, %s8864_s20   ;;  %s8864_s20 = sphi %s8900_s20, %s10471_s20   ;;  %s8860_s19 = sphi %s8898_s19, %s10470_s19   ;;  %s8856_s18 = sphi %s8896_s18, %s10469_s18  }
   0x3   : > { %s108_s23 = ssub.s32 %s8864_s20, %s8915_s22  ;;  %s111_s24 = sadd.s32 1, %s8860_s19 }
   0x4   : > { %p109_p0 = scmp.eq.s32.totalorder %s108_s23, 0  ;;  %p118_p1 = scmp.ne.s32.totalorder %s8860_s19, %s8856_s18 }
   0x5   : > { %p119_p2 = scmp.eq.s32.totalorder %s8864_s20, 0  ;;  %p6707_p4 = scmp.ge.s32.totalorder %s8864_s20, 2 }
   0x6   : > { %s8924_s25 = scalar_select %p109_p0, %s8860_s19, %s111_s24  }
   0x7   : > { %p120_p3 = por %p119_p2, %p118_p1  ;;  %179 = sbr.rel (%p6707_p4) target bundleno = 39 (0x27), region = 28 }
   0xe   : > { %190 = sbr.rel (!%p120_p3) target bundleno = 39 (0x27), region = 36  ;;  %s192_s26 = sand.u32 (%p120_p3), 1, %s8860_s19  }
   0xf   : > { %s7434_s27 = sshll.u32 (%p120_p3), %s8864_s20, 8  ;;  %s6708_s28 = sshll.u32 (%p120_p3), %s192_s26, 7 }
  0x10   : > { %s8932_s6 = scalar_lea.vmem (%p120_p3), %s10461_s4, %s7434_s27  ;;  %s8936_s7 = scalar_lea.vmem (%p120_p3), [#allocation3], %s6708_s28 }
  0x11   : > { %v214_v0 = vld [vmem:[%s8932_s6] sm:$0xf] (%p120_p3)  ;;  %v216_v1 = vld [vmem:[%s8932_s6 + $0x8] sm:$0xf] (%p120_p3)  ;;  %v218_v2 = vld [vmem:[%s8932_s6 + $0x10] sm:$0xf] (%p120_p3) }
  0x12   : > { %215 = vst [vmem:[%s8936_s7] sm:$0xf] (%p120_p3), %v214_v0  ;;  %217 = vst [vmem:[%s8936_s7 + $0x4] sm:$0xf] (%p120_p3), %v216_v1  ;;  %v220_v3 = vld [vmem:[%s8932_s6 + $0x18] sm:$0xf] (%p120_p3) }
  0x13   : > { %v222_v4 = vld [vmem:[%s8932_s6 + $0x20] sm:$0xf] (%p120_p3)  ;;  %219 = vst [vmem:[%s8936_s7 + $0x8] sm:$0xf] (%p120_p3), %v218_v2  ;;  %221 = vst [vmem:[%s8936_s7 + $0xc] sm:$0xf] (%p120_p3), %v220_v3 }
  0x14   : > { %223 = vst [vmem:[%s8936_s7 + $0x10] sm:$0xf] (%p120_p3), %v222_v4  ;;  %v224_v5 = vld [vmem:[%s8932_s6 + $0x28] sm:$0xf] (%p120_p3)  ;;  %v226_v6 = vld [vmem:[%s8932_s6 + $0x30] sm:$0xf] (%p120_p3) }
  0x15   : > { %v228_v7 = vld [vmem:[%s8932_s6 + $0x38] sm:$0xf]  ;;  %225 = vst [vmem:[%s8936_s7 + $0x14] sm:$0xf] %v224_v5  ;;  %227 = vst [vmem:[%s8936_s7 + $0x18] sm:$0xf] %v226_v6 }
  0x16   : > { %229 = vst [vmem:[%s8936_s7 + $0x1c] sm:$0xf] %v228_v7  ;;  %v230_v8 = vld [vmem:[%s8932_s6 + $0x40] sm:$0xf]  ;;  %v232_v9 = vld [vmem:[%s8932_s6 + $0x48] sm:$0xf] }
  0x17   : > { %v234_v10 = vld [vmem:[%s8932_s6 + $0x50] sm:$0xf]  ;;  %231 = vst [vmem:[%s8936_s7 + $0x20] sm:$0xf] %v230_v8  ;;  %233 = vst [vmem:[%s8936_s7 + $0x24] sm:$0xf] %v232_v9 }
  0x18   : > { %235 = vst [vmem:[%s8936_s7 + $0x28] sm:$0xf] %v234_v10  ;;  %v236_v11 = vld [vmem:[%s8932_s6 + $0x58] sm:$0xf]  ;;  %v238_v12 = vld [vmem:[%s8932_s6 + $0x60] sm:$0xf] }
  0x19   : > { %v240_v13 = vld [vmem:[%s8932_s6 + $0x68] sm:$0xf]  ;;  %237 = vst [vmem:[%s8936_s7 + $0x2c] sm:$0xf] %v236_v11  ;;  %239 = vst [vmem:[%s8936_s7 + $0x30] sm:$0xf] %v238_v12 }
  0x1a   : > { %241 = vst [vmem:[%s8936_s7 + $0x34] sm:$0xf] %v240_v13  ;;  %v242_v14 = vld [vmem:[%s8932_s6 + $0x70] sm:$0xf]  ;;  %v244_v15 = vld [vmem:[%s8932_s6 + $0x78] sm:$0xf] }
  0x1b   : > { %v246_v16 = vld [vmem:[%s8932_s6 + $0x80] sm:$0xf]  ;;  %243 = vst [vmem:[%s8936_s7 + $0x38] sm:$0xf] %v242_v14  ;;  %245 = vst [vmem:[%s8936_s7 + $0x3c] sm:$0xf] %v244_v15 }
  0x1c   : > { %247 = vst [vmem:[%s8936_s7 + $0x40] sm:$0xf] %v246_v16  ;;  %v248_v17 = vld [vmem:[%s8932_s6 + $0x88] sm:$0xf]  ;;  %v250_v18 = vld [vmem:[%s8932_s6 + $0x90] sm:$0xf] }
  0x1d   : > { %v252_v19 = vld [vmem:[%s8932_s6 + $0x98] sm:$0xf]  ;;  %249 = vst [vmem:[%s8936_s7 + $0x44] sm:$0xf] %v248_v17  ;;  %251 = vst [vmem:[%s8936_s7 + $0x48] sm:$0xf] %v250_v18 }
  0x1e   : > { %253 = vst [vmem:[%s8936_s7 + $0x4c] sm:$0xf] %v252_v19  ;;  %v254_v20 = vld [vmem:[%s8932_s6 + $0xa0] sm:$0xf]  ;;  %v256_v21 = vld [vmem:[%s8932_s6 + $0xa8] sm:$0xf] }
  0x1f   : > { %v258_v22 = vld [vmem:[%s8932_s6 + $0xb0] sm:$0xf]  ;;  %255 = vst [vmem:[%s8936_s7 + $0x50] sm:$0xf] %v254_v20  ;;  %257 = vst [vmem:[%s8936_s7 + $0x54] sm:$0xf] %v256_v21 }
  0x20   : > { %259 = vst [vmem:[%s8936_s7 + $0x58] sm:$0xf] %v258_v22  ;;  %v260_v23 = vld [vmem:[%s8932_s6 + $0xb8] sm:$0xf]  ;;  %v262_v24 = vld [vmem:[%s8932_s6 + $0xc0] sm:$0xf] }
  0x21   : > { %v264_v25 = vld [vmem:[%s8932_s6 + $0xc8] sm:$0xf]  ;;  %261 = vst [vmem:[%s8936_s7 + $0x5c] sm:$0xf] %v260_v23  ;;  %263 = vst [vmem:[%s8936_s7 + $0x60] sm:$0xf] %v262_v24 }
  0x22   : > { %265 = vst [vmem:[%s8936_s7 + $0x64] sm:$0xf] %v264_v25  ;;  %v266_v26 = vld [vmem:[%s8932_s6 + $0xd0] sm:$0xf]  ;;  %v268_v27 = vld [vmem:[%s8932_s6 + $0xd8] sm:$0xf] }
  0x23   : > { %v270_v28 = vld [vmem:[%s8932_s6 + $0xe0] sm:$0xf]  ;;  %267 = vst [vmem:[%s8936_s7 + $0x68] sm:$0xf] %v266_v26  ;;  %269 = vst [vmem:[%s8936_s7 + $0x6c] sm:$0xf] %v268_v27 }
  0x24   : > { %271 = vst [vmem:[%s8936_s7 + $0x70] sm:$0xf] %v270_v28  ;;  %v272_v29 = vld [vmem:[%s8932_s6 + $0xe8] sm:$0xf]  ;;  %v274_v30 = vld [vmem:[%s8932_s6 + $0xf0] sm:$0xf] }
  0x25   : > { %v276_v31 = vld [vmem:[%s8932_s6 + $0xf8] sm:$0xf]  ;;  %273 = vst [vmem:[%s8936_s7 + $0x74] sm:$0xf] %v272_v29  ;;  %275 = vst [vmem:[%s8936_s7 + $0x78] sm:$0xf] %v274_v30 }
  0x26   : > { %277 = vst [vmem:[%s8936_s7 + $0x7c] sm:$0xf] %v276_v31 }
  0x27 PF: > { %p6712_p5 = scmp.ge.s32.totalorder %s8864_s20, 1  ;;  %p363_p6 = scmp.lt.s32.totalorder %s8864_s20, 3 }
  0x29   : > { %p364_p7 = pnand %p6712_p5, %p363_p6 }
  0x2a   : > { %v8586_v32 = vld [vmem:[%s10458_s1] sm:$0xff] (!%p364_p7)   ;;  %v8588_v34 = vld [vmem:[%s10458_s1 + $0x8] sm:$0xff] (!%p364_p7)   ;;  %p402_p8 = scmp.lt.s32.totalorder (!%p364_p7), %s8912_s21, 1  ;;  %v8590_v36 = vld [vmem:[%s10458_s1 + $0x10] sm:$0xff] (!%p364_p7)   ;;  %vm944_vm0 = vsmask.f32 (!%p364_p7), 3328 }
  0x2b   : > { %367 = sbr.rel (%p364_p7) target bundleno = 634 (0x27a), region = 77  ;;  %v8587_v33 = vld [vmem:[%s10458_s1 + $0x100] sm:$0xff] (!%p364_p7)   ;;  %7857 = vmatprep.subr.bf16.mxu1 (!%p364_p7), %v8586_v32  ;;  %v8589_v35 = vld [vmem:[%s10458_s1 + $0x108] sm:$0xff] (!%p364_p7)   ;;  %v8591_v37 = vld [vmem:[%s10458_s1 + $0x110] sm:$0xff] (!%p364_p7)   ;;  %vm945_vm1 = vsmask.f32 (!%p364_p7), 7440 }
  0x2c   : > { %8049 = vmatprep.subr.bf16.mxu0 (!%p364_p7), %v8587_v33  ;;  %7858 = vmatpush3.bf16.msra.mxu1 (!%p364_p7), %v8586_v32  ;;  %v8592_v38 = vld [vmem:[%s10458_s1 + $0x18] sm:$0xff] (!%p364_p7)   ;;  %v8594_v40 = vld [vmem:[%s10458_s1 + $0x20] sm:$0xff] (!%p364_p7)   ;;  %v8596_v42 = vld [vmem:[%s10458_s1 + $0x28] sm:$0xff] (!%p364_p7)   ;;  %vm1813_vm3 = vcmask (!%p364_p7), 1042432   ;;  %vm1814_vm4 = vcmask (!%p364_p7), 1046532   ;;  %s370_s26 = sand.u32 (!%p364_p7), 1, %s8856_s18  }
  0x2d   : > { %8050 = vmatpush3.bf16.msra.mxu0 (!%p364_p7), %v8587_v33  ;;  %7859 = vmatprep.subr.bf16.mxu1 (!%p364_p7), %v8588_v34  ;;  %v8593_v39 = vld [vmem:[%s10458_s1 + $0x118] sm:$0xff] (!%p364_p7)   ;;  %v8595_v41 = vld [vmem:[%s10458_s1 + $0x120] sm:$0xff] (!%p364_p7)   ;;  %v8597_v43 = vld [vmem:[%s10458_s1 + $0x128] sm:$0xff] (!%p364_p7)   ;;  %s6713_s29 = sshll.u32 (!%p364_p7), %s370_s26, 7 }
  0x2e   : > { %8051 = vmatprep.subr.bf16.mxu0 (!%p364_p7), %v8589_v35  ;;  %v8598_v50 = vld [vmem:[%s10458_s1 + $0x30] sm:$0xff] (!%p364_p7)   ;;  %v8600_v0 = vld [vmem:[%s10458_s1 + $0x38] sm:$0xff] (!%p364_p7)   ;;  %vm9063_vm2 = vmor (!%p364_p7), %vm944_vm0, %vm945_vm1  ;;  %s10128_s18 = scalar_lea.vmem (!%p364_p7), [#allocation3], %s6713_s29 }
  0x2f   : > { %v8599_v56 = vld [vmem:[%s10458_s1 + $0x130] sm:$0xff] (!%p364_p7)   ;;  %v8601_v6 = vld [vmem:[%s10458_s1 + $0x138] sm:$0xff] (!%p364_p7)   ;;  %v8604_v15 = vld [vmem:[%s10458_s1 + $0x40] sm:$0xff] (!%p364_p7)  }
  0x30   : > { %7860 = vmatpush3.bf16.msra.mxu1 (!%p364_p7), %v8588_v34  ;;  %v8605_v20 = vld [vmem:[%s10458_s1 + $0x140] sm:$0xff] (!%p364_p7)   ;;  %vm9163_vm5 = vmor (!%p364_p7), %vm1813_vm3, %vm1814_vm4 }
  0x31   : > { %8052 = vmatpush3.bf16.msra.mxu0 (!%p364_p7), %v8589_v35  ;;  %7861 = vmatprep.subr.bf16.mxu1 (!%p364_p7), %v8590_v36 }
  0x32   : > { %s403_s24 = scalar_select %p402_p8, %s8912_s21, 1  ;;  %8053 = vmatprep.subr.bf16.mxu0 %v8591_v37 }
  0x34   : > { %s8561_s30 = smul.u32 216, %s403_s24  ;;  %7862 = vmatpush3.bf16.msra.mxu1 %v8590_v36 }
  0x35   : > { %8054 = vmatpush3.bf16.msra.mxu0 %v8591_v37  ;;  %7863 = vmatprep.subr.bf16.mxu1 %v8592_v38 }
  0x36   : > { %8055 = vmatprep.subr.bf16.mxu0 %v8593_v39  ;;  %s9040_s14 = scalar_lea.vmem %s10457_s0, %s8561_s30  ;;  %s6715_s30 = sshll.u32 %s8912_s21, 5 }
  0x37   : > { %v8602_v44 = vld [vmem:[%s9040_s14] sm:$0xff]   ;;  %v6909_v45 = vld [vmem:[%s9040_s14 + $0xc] sm:$0xf]  ;;  %v6910_v46 = vld [vmem:[%s9040_s14 + $0x10] sm:$0xf]  ;;  %p10226_p9 = scmp.lt.s32.totalorder %s6715_s30, 63 }
  0x38   : > { %7864 = vmatpush3.bf16.msra.mxu1 %v8592_v38  ;;  %7873 = vmatprep.mubr.bf16.mxu1 %v8602_v44  ;;  %v6911_v47 = vld [vmem:[%s9040_s14 + $0x14] sm:$0x1]  ;;  %v2814_v48 = vshrl.u32 %v6909_v45, 16  ;;  %v2817_v49 = vshll.u32 %v6909_v45, 16  ;;  %v2823_v51 = vshll.u32 %v6910_v46, 16  ;;  %v2827_v52 = vshrl.u32 %v6910_v46, 16 }
  0x39   : > { %8056 = vmatpush3.bf16.msra.mxu0 %v8593_v39  ;;  %7865 = vmatprep.subr.bf16.mxu1 %v8594_v40  ;;  %v2833_v53 = vshll.u32 %v6911_v47, 16  ;;  %v6912_v61 = vld [vmem:[%s9040_s14 + $0x18] sm:$0xf]  ;;  %v6913_v62 = vld [vmem:[%s9040_s14 + $0x1c] sm:$0xf]  ;;  %v8603_v23 = vld [vmem:[%s9040_s14 + $0xc] sm:$0xff]  }
  0x3a   : > { %8057 = vmatprep.subr.bf16.mxu0 %v8595_v41  ;;  %v2816_v54 = vrot.slane %v2814_v48, 4  ;;  %v2819_v55 = vrot.slane %v2817_v49, 5  ;;  %v2825_v57 = vrot.slane %v2823_v51, 5  ;;  %v2829_v58 = vrot.slane %v2827_v52, 4  ;;  %v6914_v63 = vld [vmem:[%s9040_s14 + $0x20] sm:$0x1] }
  0x3b   : > { %v2835_v59 = vrot.slane %v2833_v53, 5  ;;  %v2838_v3 = vshrl.u32 %v6912_v61, 16  ;;  %v2841_v4 = vshll.u32 %v6912_v61, 16  ;;  %v2847_v5 = vshll.u32 %v6913_v62, 16  ;;  %v6915_v21 = vld [vmem:[%s9040_s14 + $0x24] sm:$0xf] }
  0x3c   : > { %7866 = vmatpush3.bf16.msra.mxu1 %v8594_v40  ;;  %v2820_v60 = vor.u32 %v2819_v55, %v2816_v54  ;;  %v2830_v2 = vor.u32 %v2829_v58, %v2825_v57  ;;  %v2851_v8 = vshrl.u32 %v6913_v62, 16  ;;  %v2857_v9 = vshll.u32 %v6914_v63, 16  ;;  %v6916_v25 = vld [vmem:[%s9040_s14 + $0x28] sm:$0xf]  ;;  %v6917_v26 = vld [vmem:[%s9040_s14 + $0x2c] sm:$0x1] }
  0x3d   : > { %8058 = vmatpush3.bf16.msra.mxu0 %v8595_v41  ;;  %7867 = vmatprep.subr.bf16.mxu1 %v8596_v42  ;;  %v2840_v11 = vrot.slane %v2838_v3, 4  ;;  %v2843_v12 = vrot.slane %v2841_v4, 5  ;;  %v2849_v13 = vrot.slane %v2847_v5, 5  ;;  %v2862_v27 = vshrl.u32 %v6915_v21, 16  ;;  %v8607_v34 = vld [vmem:[%s9040_s14 + $0x18] sm:$0xff]   ;;  %v8606_v38 = vld [vmem:[%s10458_s1 + $0x148] sm:$0xff]  }
  0x3e   : > { %8059 = vmatprep.subr.bf16.mxu0 %v8597_v43  ;;  %v2821_v7 = vrot.slane %v2820_v60, 4  ;;  %v2831_v10 = vrot.slane %v2830_v2, 4  ;;  %v2853_v16 = vrot.slane %v2851_v8, 4  ;;  %v2859_v19 = vrot.slane %v2857_v9, 5  ;;  %v6918_v45 = vld [vmem:[%s9040_s14 + $0x30] sm:$0xf] }
  0x3f   : > { %v2844_v18 = vor.u32 %v2843_v12, %v2840_v11  ;;  %v2865_v28 = vshll.u32 %v6915_v21, 16  ;;  %v2871_v30 = vshll.u32 %v6916_v25, 16  ;;  %v2875_v31 = vshrl.u32 %v6916_v25, 16  ;;  %v6919_v46 = vld [vmem:[%s9040_s14 + $0x34] sm:$0xf]  ;;  %v8608_v60 = vld [vmem:[%s9040_s14 + $0x24] sm:$0xff]  }
  0x40   : > { %7868 = vmatpush3.bf16.msra.mxu1 %v8596_v42  ;;  %v2826_v14 = vsel %vm9063_vm2, %v2821_v7, %v2825_v57  ;;  %v2836_v17 = vsel %vm9063_vm2, %v2831_v10, %v2835_v59  ;;  %v2854_v24 = vor.u32 %v2853_v16, %v2849_v13  ;;  %v2881_v32 = vshll.u32 %v6917_v26, 16  ;;  %v8609_v42 = vld [vmem:[%s10458_s1 + $0x48] sm:$0xff]   ;;  %v6920_v49 = vld [vmem:[%s9040_s14 + $0x38] sm:$0x1]  ;;  %v8610_v63 = vld [vmem:[%s10458_s1 + $0x150] sm:$0xff]   ;;  %s10473_s30 = smov (!%p10226_p9, %s6715_s30), 63 }
  0x41   : > { %8060 = vmatpush3.bf16.msra.mxu0 %v8597_v43  ;;  %7869 = vmatprep.subr.bf16.mxu1 %v8598_v50  ;;  %v6973_v22 = vcombine.low %v2826_v14, %v2836_v17  ;;  %v2845_v29 = vrot.slane %v2844_v18, 4  ;;  %v2864_v35 = vrot.slane %v2862_v27, 4  ;;  %v2867_v36 = vrot.slane %v2865_v28, 5  ;;  %v8612_v4 = vld [vmem:[%s9040_s14 + $0x30] sm:$0xff]   ;;  %v6921_v7 = vld [vmem:[%s9040_s14 + $0x3c] sm:$0xf] }
  0x42   : > { %8061 = vmatprep.subr.bf16.mxu0 %v8599_v56  ;;  %v2855_v33 = vrot.slane %v2854_v24, 4  ;;  %v2873_v39 = vrot.slane %v2871_v30, 5  ;;  %v2877_v40 = vrot.slane %v2875_v31, 4  ;;  %v2883_v41 = vrot.slane %v2881_v32, 5  ;;  %v6922_v8 = vld [vmem:[%s9040_s14 + $0x40] sm:$0xf] }
  0x43   : > { %8065 = vmatprep.mubr.bf16.mxu0 %v6973_v22  ;;  %v2850_v37 = vsel %vm9063_vm2, %v2845_v29, %v2849_v13  ;;  %v2868_v44 = vor.u32 %v2867_v36, %v2864_v35  ;;  %v2889_v51 = vshll.u32 %v6918_v45, 16  ;;  %v2895_v53 = vshll.u32 %v6919_v46, 16  ;;  %v6923_v9 = vld [vmem:[%s9040_s14 + $0x44] sm:$0x1]  ;;  %v8614_v22 = vld [vmem:[%s10458_s1 + $0x50] sm:$0xff]   ;;  %s6716_s21 = sshll.u32 %s10473_s30, 2 }
  0x44   : > { %7870 = vmatpush3.bf16.msra.mxu1 %v8598_v50  ;;  %v2860_v43 = vsel %vm9063_vm2, %v2855_v33, %v2859_v19  ;;  %v2878_v48 = vor.u32 %v2877_v40, %v2873_v39  ;;  %v2886_v50 = vshrl.u32 %v6918_v45, 16  ;;  %v2899_v54 = vshrl.u32 %v6919_v46, 16  ;;  %v6924_v26 = vld [vmem:[%s9040_s14 + $0x48] sm:$0xf]  ;;  %v6925_v29 = vld [vmem:[%s9040_s14 + $0x4c] sm:$0xf]  ;;  %s10285_s9 = scalar_lea.vmem %s10462_s5, %s6716_s21 }
  0x45   : > { %8062 = vmatpush3.bf16.msra.mxu0 %v8599_v56  ;;  %7871 = vmatprep.subr.bf16.mxu1 %v8600_v0  ;;  %v6974_v47 = vcombine.low %v2850_v37, %v2860_v43  ;;  %v2869_v52 = vrot.slane %v2868_v44, 4  ;;  %v2905_v55 = vshll.u32 %v6920_v49, 16  ;;  %v2891_v58 = vrot.slane %v2889_v51, 5  ;;  %v6926_v30 = vld [vmem:[%s9040_s14 + $0x50] sm:$0x1]  ;;  %v8615_v40 = vld [vmem:[%s10458_s1 + $0x160] sm:$0xff]  }
  0x46   : > { %8063 = vmatprep.subr.bf16.mxu0 %v8601_v6  ;;  %v2879_v56 = vrot.slane %v2878_v48, 4  ;;  %v2888_v57 = vrot.slane %v2886_v50, 4  ;;  %v2897_v61 = vrot.slane %v2895_v53, 5  ;;  %v2901_v62 = vrot.slane %v2899_v54, 4  ;;  %v8617_v50 = vld [vmem:[%s9040_s14 + $0x48] sm:$0xff]  }
  0x47   : > { %v2874_v59 = vsel %vm9063_vm2, %v2869_v52, %v2873_v39  ;;  %v2907_v3 = vrot.slane %v2905_v55, 5  ;;  %v2910_v11 = vshrl.u32 %v6921_v7, 16  ;;  %v2913_v12 = vshll.u32 %v6921_v7, 16  ;;  %v6927_v51 = vld [vmem:[%s9040_s14 + $0x54] sm:$0xf]  ;;  %v8616_v55 = vld [vmem:[%s10458_s1 + $0x168] sm:$0xff]  }
  0x48   : > { %7872 = vmatpush3.bf16.msra.mxu1 %v8600_v0  ;;  %v2884_v0 = vsel %vm9063_vm2, %v2879_v56, %v2883_v41  ;;  %v2892_v2 = vor.u32 %v2891_v58, %v2888_v57  ;;  %v2919_v13 = vshll.u32 %v6922_v8, 16  ;;  %v2923_v16 = vshrl.u32 %v6922_v8, 16  ;;  %v6928_v52 = vld [vmem:[%s9040_s14 + $0x58] sm:$0xf]  ;;  %v6929_v56 = vld [vmem:[%s9040_s14 + $0x5c] sm:$0x1] }
  0x49   : > { %8064 = vmatpush3.bf16.msra.mxu0 %v8601_v6  ;;  %7905 = vmatprep.subr.bf16.mxu1 %v8604_v15  ;;  %v6975_v5 = vcombine.low %v2874_v59, %v2884_v0  ;;  %v2902_v6 = vor.u32 %v2901_v62, %v2897_v61  ;;  %v2929_v17 = vshll.u32 %v6923_v9, 16  ;;  %v2912_v19 = vrot.slane %v2910_v11, 4  ;;  %v8618_v7 = vld [vmem:[%s9040_s14 + $0x54] sm:$0xff]   ;;  %v6930_v11 = vld [vmem:[%s9040_s14 + $0x60] sm:$0xf] }
  0x4a   : > { %8097 = vmatprep.subr.bf16.mxu0 %v8605_v20  ;;  %v2893_v10 = vrot.slane %v2892_v2, 4  ;;  %v2921_v21 = vrot.slane %v2919_v13, 5  ;;  %v2925_v24 = vrot.slane %v2923_v16, 4  ;;  %v2934_v31 = vshrl.u32 %v6924_v26, 16  ;;  %v8619_v8 = vld [vmem:[%s10458_s1 + $0x58] sm:$0xff]  }
  0x4b   : > { %7874 = vmatmul.mubr.bf16.vlgmr.msra.gmra.mrb[0].mxu1 %v8603_v23  ;;  %v2903_v14 = vrot.slane %v2902_v6, 4  ;;  %v2931_v25 = vrot.slane %v2929_v17, 5  ;;  %v2937_v32 = vshll.u32 %v6924_v26, 16  ;;  %v2947_v35 = vshrl.u32 %v6925_v29, 16  ;;  %v6932_v13 = vld [vmem:[%s9040_s14 + $0x68] sm:$0x1] }
  0x4c   : > { %8066 = vmatmul.mubr.bf16.vlgmr.msra.gmra.mrb[0].mxu0 %v6974_v47  ;;  %7906 = vmatpush3.bf16.msra.mxu1 %v8604_v15  ;;  %v8611_v15 = vld [vmem:[%s10458_s1 + $0x158] sm:$0xff]   ;;  %v2898_v18 = vsel %vm9063_vm2, %v2893_v10, %v2897_v61  ;;  %v2926_v33 = vor.u32 %v2925_v24, %v2921_v21  ;;  %v2953_v36 = vshll.u32 %v6926_v30, 16  ;;  %v2958_v57 = vshrl.u32 %v6927_v51, 16 }
  0x4d   : > { %8098 = vmatpush3.bf16.msra.mxu0 %v8605_v20  ;;  %7877 = vmatprep.mubr.bf16.mxu1 %v8607_v34  ;;  %v2915_v20 = vrot.slane %v2913_v12, 5  ;;  %v2908_v23 = vsel %vm9063_vm2, %v2903_v14, %v2907_v3  ;;  %v2943_v34 = vshll.u32 %v6925_v29, 16  ;;  %v2939_v39 = vrot.slane %v2937_v32, 5  ;;  %v6931_v12 = vld [vmem:[%s9040_s14 + $0x64] sm:$0xf] }
  0x4e   : > { %8099 = vmatprep.subr.bf16.mxu0 %v8606_v38  ;;  %7907 = vmatprep.subr.bf16.mxu1 %v8609_v42  ;;  %v6976_v27 = vcombine.low %v2898_v18, %v2908_v23  ;;  %v2927_v41 = vrot.slane %v2926_v33, 4  ;;  %v2949_v44 = vrot.slane %v2947_v35, 4  ;;  %v2955_v49 = vrot.slane %v2953_v36, 5  ;;  %v8620_v18 = vld [vmem:[%s10458_s1 + $0x170] sm:$0xff]   ;;  %v6997_v32 = vld [vmem:[%s9040_s14 + $0xc] sm:$0xe] }
  0x4f   : > { %8069 = vmatprep.mubr.bf16.mxu0 %v6975_v5  ;;  %v2916_v28 = vor.u32 %v2915_v20, %v2912_v19  ;;  %v2945_v43 = vrot.slane %v2943_v34, 5  ;;  %v2961_v58 = vshll.u32 %v6927_v51, 16  ;;  %v2971_v61 = vshrl.u32 %v6928_v52, 16 }
  0x50   : > { %7908 = vmatpush3.bf16.msra.mxu1 %v8609_v42  ;;  %v8613_v42 = vld [vmem:[%s9040_s14 + $0x3c] sm:$0xff]   ;;  %v2932_v47 = vsel %vm9063_vm2, %v2927_v41, %v2931_v25  ;;  %v2977_v62 = vshll.u32 %v6929_v56, 16  ;;  %v2960_v0 = vrot.slane %v2958_v57, 4  ;;  %v2985_v16 = vshll.u32 %v6930_v11, 16 }
  0x51   : > { %8100 = vmatpush3.bf16.msra.mxu0 %v8606_v38  ;;  %7909 = vmatprep.subr.bf16.mxu1 %v8614_v22  ;;  %v2917_v37 = vrot.slane %v2916_v28, 4  ;;  %v2936_v38 = vrot.slane %v2934_v31, 4  ;;  %v2950_v48 = vor.u32 %v2949_v44, %v2945_v43  ;;  %v2963_v2 = vrot.slane %v2961_v58, 5  ;;  %v8621_v28 = vld [vmem:[%s10458_s1 + $0x178] sm:$0xff]   ;;  %v8622_v31 = vld [vmem:[%s9040_s14 + $0x60] sm:$0xff]  }
  0x52   : > { %8101 = vmatprep.subr.bf16.mxu0 %v8610_v63  ;;  %v2973_v5 = vrot.slane %v2971_v61, 4  ;;  %v2979_v6 = vrot.slane %v2977_v62, 5  ;;  %v2991_v17 = vshll.u32 %v6931_v12, 16  ;;  %v2995_v20 = vshrl.u32 %v6931_v12, 16  ;;  %v7003_v61 = vld [vmem:[%s9040_s14 + $0x24] sm:$0xe] }
  0x53   : > { %7878 = vmatmul.mubr.bf16.gmra.mrb[4].mxu1 %v8608_v60  ;;  %v2922_v45 = vsel %vm9063_vm2, %v2917_v37, %v2921_v21  ;;  %v2940_v46 = vor.u32 %v2939_v39, %v2936_v38  ;;  %v2951_v59 = vrot.slane %v2950_v48, 4  ;;  %v2967_v60 = vshll.u32 %v6928_v52, 16  ;;  %v6998_v37 = vld [vmem:[%s9040_s14 + $0x10] sm:$0xf]  ;;  %v6999_v38 = vld [vmem:[%s9040_s14 + $0x14] sm:$0x1] }
  0x54   : > { %7881 = vmatprep.mubr.bf16.mxu1 %v8612_v4  ;;  %7910 = vmatpush3.bf16.msra.mxu1 %v8614_v22  ;;  %v6977_v53 = vcombine.low %v2922_v45, %v2932_v47  ;;  %v2964_v10 = vor.u32 %v2963_v2, %v2960_v0  ;;  %v3001_v21 = vshll.u32 %v6932_v13, 16  ;;  %v2987_v24 = vrot.slane %v2985_v16, 5  ;;  %v8625_v45 = vld [vmem:[%s10458_s1 + $0x180] sm:$0xff]   ;;  %v7001_v52 = vld [vmem:[%s9040_s14 + $0x1c] sm:$0xf]  ;;  %v8629_v16 = vld [vmem:[%s10458_s1 + $0x188] sm:$0xff]  }
  0x55   : > { %8102 = vmatpush3.bf16.msra.mxu0 %v8610_v63  ;;  %v2941_v54 = vrot.slane %v2940_v46, 4  ;;  %v2956_v3 = vsel %vm9063_vm2, %v2951_v59, %v2955_v49  ;;  %v2969_v4 = vrot.slane %v2967_v60, 5  ;;  %7911 = vmatprep.subr.bf16.mxu1 %v8619_v8  ;;  %v2993_v25 = vrot.slane %v2991_v17, 5  ;;  %v8623_v49 = vld [vmem:[%s9040_s14 + $0x6c] sm:$0xff]   ;;  %v7007_v12 = vld [vmem:[%s9040_s14 + $0x34] sm:$0xf] }
  0x56   : > { %8070 = vmatmul.mubr.bf16.gmra.mrb[4].mxu0 %v6976_v27  ;;  %8103 = vmatprep.subr.bf16.mxu0 %v8611_v15  ;;  %v2965_v19 = vrot.slane %v2964_v10, 4  ;;  %v2997_v27 = vrot.slane %v2995_v20, 4  ;;  %v3003_v35 = vrot.slane %v3001_v21, 5  ;;  %v7045_v39 = vrot.slane %v6997_v32, 9  ;;  %v7005_v0 = vld [vmem:[%s9040_s14 + $0x2c] sm:$0x1] }
  0x57   : > { %8073 = vmatprep.mubr.bf16.mxu0 %v6977_v53  ;;  %v2946_v63 = vsel %vm9063_vm2, %v2941_v54, %v2945_v43  ;;  %v2974_v14 = vor.u32 %v2973_v5, %v2969_v4  ;;  %v3681_v41 = vrot.slane %v6998_v37, 5  ;;  %v8624_v43 = vld [vmem:[%s10458_s1 + $0x60] sm:$0xff]   ;;  %v3688_v58 = vrot.slane %v7001_v52, 5  ;;  %v7012_v32 = vld [vmem:[%s9040_s14 + $0x48] sm:$0xe] }
  0x58   : > { %v6978_v9 = vcombine.low %v2946_v63, %v2956_v3  ;;  %7912 = vmatpush3.bf16.msra.mxu1 %v8619_v8  ;;  %v2970_v26 = vsel %vm9063_vm2, %v2965_v19, %v2969_v4  ;;  %v2998_v34 = vor.u32 %v2997_v27, %v2993_v25  ;;  %v7002_v53 = vld [vmem:[%s9040_s14 + $0x20] sm:$0x1]  ;;  %v7004_v63 = vld [vmem:[%s9040_s14 + $0x28] sm:$0xf]  ;;  %v7047_v2 = vrot.slane %v7003_v61, 9  ;;  %v8632_v27 = vld [vmem:[%s10458_s1 + $0x70] sm:$0xff]  }
  0x59   : > { %8104 = vmatpush3.bf16.msra.mxu0 %v8611_v15  ;;  %v2982_v15 = vshrl.u32 %v6930_v11, 16  ;;  %v2975_v22 = vrot.slane %v2974_v14, 4  ;;  %v3682_v47 = vsel %vm9163_vm5, %v7045_v39, %v3681_v41  ;;  %v3683_v48 = vrot.slane %v3681_v41, 4  ;;  %7913 = vmatprep.subr.bf16.mxu1 %v8624_v43  ;;  %v8627_v10 = vld [vmem:[%s9040_s14 + $0x84] sm:$0xff]   ;;  %v7006_v11 = vld [vmem:[%s9040_s14 + $0x30] sm:$0xe] }
  0x5a   : > { %8105 = vmatprep.subr.bf16.mxu0 %v8615_v40  ;;  %v2999_v44 = vrot.slane %v2998_v34, 4  ;;  %v3691_v59 = vrot.slane %v7002_v53, 5  ;;  %v3690_v62 = vrot.slane %v3688_v58, 4  ;;  %v3695_v4 = vrot.slane %v7004_v63, 5  ;;  %v7008_v14 = vld [vmem:[%s9040_s14 + $0x38] sm:$0x1] }
  0x5b   : > { %7882 = vmatmul.mubr.bf16.gmra.mrb[8].mxu1 %v8613_v42  ;;  %v2984_v23 = vrot.slane %v2982_v15, 4  ;;  %v2980_v29 = vsel %vm9063_vm2, %v2975_v22, %v2979_v6  ;;  %v3684_v42 = vrot.slane %v6999_v38, 5  ;;  %v3698_v5 = vrot.slane %v7005_v0, 5  ;;  %v8630_v22 = vld [vmem:[%s9040_s14 + $0x90] sm:$0xff]   ;;  %v7013_v37 = vld [vmem:[%s9040_s14 + $0x4c] sm:$0xf] }
  0x5c   : > { %7885 = vmatprep.mubr.bf16.mxu1 %v8617_v50  ;;  %v6979_v33 = vcombine.low %v2970_v26, %v2980_v29  ;;  %v7000_v50 = vld [vmem:[%s9040_s14 + $0x18] sm:$0xe]  ;;  %v3004_v51 = vsel %vm9063_vm2, %v2999_v44, %v3003_v35  ;;  %7914 = vmatpush3.bf16.msra.mxu1 %v8624_v43  ;;  %v3692_v6 = vsel %vm9163_vm5, %v3690_v62, %v3691_v59  ;;  %v3702_v15 = vrot.slane %v7007_v12, 5  ;;  %v8631_v35 = vld [vmem:[%s9040_s14 + $0x9c] sm:$0xff]   ;;  %v7014_v38 = vld [vmem:[%s9040_s14 + $0x50] sm:$0x1] }
  0x5d   : > { %8106 = vmatpush3.bf16.msra.mxu0 %v8615_v40  ;;  %v2988_v30 = vor.u32 %v2987_v24, %v2984_v23  ;;  %v7046_v54 = vrot.slane %v7000_v50, 9  ;;  %v3685_v57 = vsel %vm9163_vm5, %v3683_v48, %v3684_v42  ;;  %v3696_v8 = vsel %vm9163_vm5, %v7047_v2, %v3695_v4  ;;  %v7009_v23 = vld [vmem:[%s9040_s14 + $0x3c] sm:$0xe]  ;;  %v7010_v24 = vld [vmem:[%s9040_s14 + $0x40] sm:$0xf]  ;;  %v8633_v44 = vld [vmem:[%s10458_s1 + $0x190] sm:$0xff]  }
  0x5e   : > { %8107 = vmatprep.subr.bf16.mxu0 %v8616_v55  ;;  %8074 = vmatmul.mubr.bf16.gmra.mrb[8].mxu0 %v6978_v9  ;;  %v7077_v60 = vcombine.low %v3682_v47, %v3685_v57  ;;  %v3697_v9 = vrot.slane %v3695_v4, 4  ;;  %v3705_v19 = vrot.slane %v7008_v14, 5  ;;  %v3704_v21 = vrot.slane %v3702_v15, 4  ;;  %v8634_v47 = vld [vmem:[%s9040_s14 + $0xa8] sm:$0xff]   ;;  %v7015_v48 = vld [vmem:[%s9040_s14 + $0x54] sm:$0xe] }
  0x5f   : > { %v2989_v40 = vrot.slane %v2988_v30, 4  ;;  %8077 = vmatprep.mubr.bf16.mxu0 %v6979_v33  ;;  %v3689_v3 = vsel %vm9163_vm5, %v7046_v54, %v3688_v58  ;;  %v7049_v26 = vrot.slane %v7009_v23, 9  ;;  %v7050_v39 = vrot.slane %v7012_v32, 9  ;;  %v7017_v50 = vld [vmem:[%s9040_s14 + $0x5c] sm:$0x1]  ;;  %v8635_v2 = vld [vmem:[%s9040_s14 + $0xb4] sm:$0xff]  }
  0x60   : > { %v7078_v13 = vcombine.low %v3689_v3, %v3692_v6  ;;  %v3699_v17 = vsel %vm9163_vm5, %v3697_v9, %v3698_v5  ;;  %v3719_v43 = vrot.slane %v7014_v38, 5  ;;  %v3726_v53 = vrot.slane %v7017_v50, 5  ;;  %v8636_v58 = vld [vmem:[%s10458_s1 + $0x78] sm:$0xff]   ;;  %v7018_v59 = vld [vmem:[%s9040_s14 + $0x60] sm:$0xe] }
  0x61   : > { %8108 = vmatpush3.bf16.msra.mxu0 %v8616_v55  ;;  %v2994_v46 = vsel %vm9063_vm2, %v2989_v40, %v2993_v25  ;;  %v8626_v55 = vld [vmem:[%s9040_s14 + $0x78] sm:$0xff]   ;;  %v7079_v20 = vcombine.low %v3696_v8, %v3699_v17  ;;  %v7011_v25 = vld [vmem:[%s9040_s14 + $0x44] sm:$0x1]  ;;  %v3716_v40 = vrot.slane %v7013_v37, 5  ;;  %v7020_v61 = vld [vmem:[%s9040_s14 + $0x68] sm:$0x1] }
  0x62   : > { %8109 = vmatprep.subr.bf16.mxu0 %v8620_v18  ;;  %v6980_v56 = vcombine.low %v2994_v46, %v3004_v51  ;;  %v3712_v29 = vrot.slane %v7011_v25, 5  ;;  %v7051_v51 = vrot.slane %v7015_v48, 9  ;;  %v7052_v62 = vrot.slane %v7018_v59, 9  ;;  %v8637_v63 = vld [vmem:[%s10458_s1 + $0x198] sm:$0xff]   ;;  %v897_v8 = vld [vmem:[%s9040_s14 + $0x4] sm:$0xf] }
  0x63   : > { %7886 = vmatmul.mubr.bf16.gmra.mrb[12].mxu1 %v8618_v7  ;;  %v8628_v7 = vld [vmem:[%s10458_s1 + $0x68] sm:$0xff]   ;;  %v3718_v46 = vrot.slane %v3716_v40, 4  ;;  %v3717_v54 = vsel %vm9163_vm5, %v7050_v39, %v3716_v40  ;;  %v3733_v4 = vrot.slane %v7020_v61, 5  ;;  %v961_v17 = vshrl.u32 %v897_v8, 16  ;;  %v900_v37 = vld [vmem:[%s9040_s14 + $0x10] sm:$0xf] }
  0x64   : > { %7889 = vmatprep.mubr.bf16.mxu1 %v8622_v31  ;;  %7915 = vmatprep.subr.bf16.mxu1 %v8628_v7  ;;  %v3706_v31 = vsel %vm9163_vm5, %v3704_v21, %v3705_v19  ;;  %v898_v9 = vld [vmem:[%s9040_s14 + $0x8] sm:$0x1]  ;;  %v7021_v14 = vld [vmem:[%s9040_s14 + $0x6c] sm:$0xe]  ;;  %v7022_v19 = vld [vmem:[%s9040_s14 + $0x70] sm:$0xf] }
  0x65   : > { %8110 = vmatpush3.bf16.msra.mxu0 %v8620_v18  ;;  %v7048_v18 = vrot.slane %v7006_v11, 9  ;;  %7916 = vmatpush3.bf16.msra.mxu1 %v8628_v7  ;;  %v896_v7 = vld [vmem:[%s9040_s14] sm:$0xf]  ;;  %v3737_v25 = vrot.slane %v7022_v19, 5  ;;  %v901_v38 = vld [vmem:[%s9040_s14 + $0x14] sm:$0x1] }
  0x66   : > { %8111 = vmatprep.subr.bf16.mxu0 %v8621_v28  ;;  %8078 = vmatmul.mubr.bf16.gmra.mrb[12].mxu0 %v6980_v56  ;;  %v948_v12 = vshrl.u32 %v896_v7, 16  ;;  %v7026_v61 = vld [vmem:[%s9040_s14 + $0x80] sm:$0x1] }
  0x67   : > { %8113 = vmatprep.mubr.bf16.mxu0 %v7077_v60  ;;  %v3703_v30 = vsel %vm9163_vm5, %v7048_v18, %v3702_v15  ;;  %7917 = vmatprep.subr.bf16.mxu1 %v8632_v27  ;;  %v7019_v60 = vld [vmem:[%s9040_s14 + $0x64] sm:$0xf]  ;;  %v967_v18 = vshll.u32 %v898_v9, 16  ;;  %v903_v9 = vld [vmem:[%s9040_s14 + $0x1c] sm:$0xf] }
  0x68   : > { %v7080_v41 = vcombine.low %v3703_v30, %v3706_v31  ;;  %v3730_v3 = vrot.slane %v7019_v60, 5  ;;  %v9264_v15 = vld [vmem:[%s10458_s1 + $0x80] sm:$0xff]   ;;  %v899_v31 = vld [vmem:[%s9040_s14 + $0xc] sm:$0xf]  ;;  %v1009_v19 = vshrl.u32 %v903_v9, 16 }
  0x69   : > { %8112 = vmatpush3.bf16.msra.mxu0 %v8621_v28  ;;  %v3709_v28 = vrot.slane %v7010_v24, 5  ;;  %7918 = vmatpush3.bf16.msra.mxu1 %v8632_v27  ;;  %v7023_v24 = vld [vmem:[%s9040_s14 + $0x74] sm:$0x1]  ;;  %v969_v30 = vrot.slane %v967_v18, 5  ;;  %v972_v40 = vshrl.u32 %v899_v31, 16 }
  0x6a   : > { %8145 = vmatprep.subr.bf16.mxu0 %v8625_v45  ;;  %7919 = vmatprep.subr.bf16.mxu1 %v8636_v58  ;;  %v3732_v11 = vrot.slane %v3730_v3, 4 }
  0x6b   : > { %7890 = vmatmul.mubr.bf16.gmra.mrb[16].mxu1 %v8623_v49  ;;  %v3710_v33 = vsel %vm9163_vm5, %v7049_v26, %v3709_v28  ;;  %v3711_v34 = vrot.slane %v3709_v28, 4  ;;  %v7016_v49 = vld [vmem:[%s9040_s14 + $0x58] sm:$0xf]  ;;  %v8639_v26 = vld [vmem:[%s10458_s1 + $0x1a0] sm:$0xff]   ;;  %v974_v50 = vrot.slane %v972_v40, 4 }
  0x6c   : > { %7893 = vmatprep.mubr.bf16.mxu1 %v8626_v55  ;;  %v3723_v52 = vrot.slane %v7016_v49, 5  ;;  %v3720_v55 = vsel %vm9163_vm5, %v3718_v46, %v3719_v43  ;;  %v3734_v21 = vsel %vm9163_vm5, %v3732_v11, %v3733_v4  ;;  %v8641_v43 = vld [vmem:[%s10458_s1 + $0x1a8] sm:$0xff]   ;;  %v985_v46 = vshrl.u32 %v900_v37, 16  ;;  %v902_v4 = vld [vmem:[%s9040_s14 + $0x18] sm:$0xf] }
  0x6d   : > { %v3713_v42 = vsel %vm9163_vm5, %v3711_v34, %v3712_v29  ;;  %v7082_v5 = vcombine.low %v3717_v54, %v3720_v55  ;;  %7920 = vmatpush3.bf16.msra.mxu1 %v8636_v58  ;;  %v963_v29 = vrot.slane %v961_v17, 4  ;;  %v3739_v34 = vrot.slane %v3737_v25, 4  ;;  %v7025_v58 = vld [vmem:[%s9040_s14 + $0x7c] sm:$0xf] }
  0x6e   : > { %8114 = vmatmul.mubr.bf16.vlgmr.msra.gmra.mrb[0].mxu0 %v7078_v13  ;;  %v3724_v56 = vsel %vm9163_vm5, %v7051_v51, %v3723_v52  ;;  %v3725_v57 = vrot.slane %v3723_v52, 4  ;;  %v951_v13 = vshll.u32 %v896_v7, 16  ;;  %7953 = vmatprep.subr.bf16.mxu1 %v9264_v15  ;;  %v7024_v52 = vld [vmem:[%s9040_s14 + $0x78] sm:$0xe] }
  0x6f   : > { %8146 = vmatpush3.bf16.msra.mxu0 %v8625_v45  ;;  %8117 = vmatprep.mubr.bf16.mxu0 %v7079_v20  ;;  %v7081_v45 = vcombine.low %v3710_v33, %v3713_v42  ;;  %v7053_v20 = vrot.slane %v7021_v14, 9  ;;  %v981_v42 = vshll.u32 %v900_v37, 16  ;;  %v1005_v14 = vshll.u32 %v903_v9, 16 }
  0x70   : > { %8147 = vmatprep.subr.bf16.mxu0 %v8629_v16  ;;  %v3727_v0 = vsel %vm9163_vm5, %v3725_v57, %v3726_v53  ;;  %v953_v23 = vrot.slane %v951_v13, 5  ;;  %v8643_v53 = vld [vmem:[%s10458_s1 + $0x1b0] sm:$0xff]   ;;  %v999_v13 = vshll.u32 %v902_v4, 16 }
  0x71   : > { %v7083_v6 = vcombine.low %v3724_v56, %v3727_v0  ;;  %v3738_v33 = vsel %vm9163_vm5, %v7053_v20, %v3737_v25  ;;  %v983_v55 = vrot.slane %v981_v42, 5  ;;  %v987_v56 = vrot.slane %v985_v46, 4 }
  0x73   : > { %7894 = vmatmul.mubr.bf16.gmra.mrb[20].mxu1 %v8627_v10  ;;  %8148 = vmatpush3.bf16.msra.mxu0 %v8629_v16  ;;  %v9258_v10 = vsel %vm9163_vm5, %v7052_v62, %v3730_v3  ;;  %v957_v16 = vshll.u32 %v897_v8, 16  ;;  %v7054_v62 = vrot.slane %v7024_v52, 9  ;;  %v3747_v3 = vrot.slane %v7026_v61, 5 }
  0x74   : > { %7897 = vmatprep.mubr.bf16.mxu1 %v8630_v22  ;;  %8149 = vmatprep.subr.bf16.mxu0 %v8633_v44  ;;  %v950_v22 = vrot.slane %v948_v12, 4  ;;  %v7084_v27 = vcombine.low %v9258_v10, %v3734_v21  ;;  %v904_v10 = vld [vmem:[%s9040_s14 + $0x20] sm:$0x1]  ;;  %v996_v12 = vshrl.u32 %v902_v4, 16  ;;  %v7028_v21 = vld [vmem:[%s9040_s14 + $0x88] sm:$0xf] }
  0x75   : > { %v959_v28 = vrot.slane %v957_v16, 5  ;;  %v7027_v16 = vld [vmem:[%s9040_s14 + $0x84] sm:$0xe]  ;;  %v1015_v20 = vshll.u32 %v904_v10, 16 }
  0x76   : > { %8118 = vmatmul.mubr.bf16.gmra.mrb[4].mxu0 %v7080_v41  ;;  %v954_v32 = vor.u32 %v953_v23, %v950_v22  ;;  %v975_v41 = vshll.u32 %v899_v31, 16  ;;  %v7029_v22 = vld [vmem:[%s9040_s14 + $0x8c] sm:$0x1]  ;;  %v998_v25 = vrot.slane %v996_v12, 4  ;;  %v1011_v31 = vrot.slane %v1009_v19, 4 }
  0x77   : > { %8121 = vmatprep.mubr.bf16.mxu0 %v7081_v45  ;;  %8150 = vmatpush3.bf16.msra.mxu0 %v8633_v44  ;;  %v964_v39 = vor.u32 %v963_v29, %v959_v28  ;;  %v7055_v37 = vrot.slane %v7027_v16, 9  ;;  %v7034_v19 = vld [vmem:[%s9040_s14 + $0xa0] sm:$0xf] }
  0x78   : > { %8151 = vmatprep.subr.bf16.mxu0 %v8637_v63  ;;  %v955_v44 = vrot.slane %v954_v32, 4  ;;  %v977_v51 = vrot.slane %v975_v41, 5  ;;  %v1017_v32 = vrot.slane %v1015_v20, 5 }
  0x79   : > { %v965_v48 = vrot.slane %v964_v39, 4  ;;  %v3754_v39 = vrot.slane %v7029_v22, 5 }
  0x7a   : > { %v960_v54 = vsel %vm9063_vm2, %v955_v44, %v959_v28  ;;  %v978_v60 = vor.u32 %v977_v51, %v974_v50  ;;  %v906_v28 = vld [vmem:[%s9040_s14 + $0x28] sm:$0xf]  ;;  %v8642_v44 = vld [vmem:[%s10458_s1 + $0x90] sm:$0xff]   ;;  %v9328_v50 = vld [vmem:[%s10458_s1 + $0x1c0] sm:$0xff]  }
  0x7b   : > { %7898 = vmatmul.mubr.bf16.gmra.mrb[24].mxu1 %v8631_v35  ;;  %8152 = vmatpush3.bf16.msra.mxu0 %v8637_v63  ;;  %v3740_v35 = vrot.slane %v7023_v24, 5  ;;  %v970_v59 = vsel %vm9063_vm2, %v965_v48, %v969_v30  ;;  %v3744_v63 = vrot.slane %v7025_v58, 5  ;;  %v1007_v30 = vrot.slane %v1005_v14, 5 }
  0x7c   : > { %7901 = vmatprep.mubr.bf16.mxu1 %v8634_v47  ;;  %8153 = vmatprep.subr.bf16.mxu0 %v8639_v26  ;;  %v991_v47 = vshll.u32 %v901_v38, 16  ;;  %v6757_v0 = vcombine.low %v960_v54, %v970_v59  ;;  %v3751_v38 = vrot.slane %v7028_v21, 5  ;;  %v1033_v48 = vshrl.u32 %v906_v28, 16  ;;  %v7032_v59 = vld [vmem:[%s9040_s14 + $0x98] sm:$0x1] }
  0x7d   : > { %v3741_v45 = vsel %vm9163_vm5, %v3739_v34, %v3740_v35  ;;  %v3745_v7 = vsel %vm9163_vm5, %v7054_v62, %v3744_v63  ;;  %v3746_v8 = vrot.slane %v3744_v63, 4  ;;  %v8640_v34 = vld [vmem:[%s10458_s1 + $0x88] sm:$0xff]   ;;  %v1012_v40 = vor.u32 %v1011_v31, %v1007_v30 }
  0x7e   : > { %8122 = vmatmul.mubr.bf16.gmra.mrb[8].mxu0 %v7082_v5  ;;  %v7085_v49 = vcombine.low %v3738_v33, %v3741_v45  ;;  %v993_v57 = vrot.slane %v991_v47, 5  ;;  %v8645_v5 = vld [vmem:[%s10458_s1 + $0x1b8] sm:$0xff]   ;;  %v907_v33 = vld [vmem:[%s9040_s14 + $0x2c] sm:$0x1]  ;;  %v3752_v46 = vsel %vm9163_vm5, %v7055_v37, %v3751_v38  ;;  %v3753_v47 = vrot.slane %v3751_v38, 4  ;;  %v8647_v37 = vld [vmem:[%s10458_s1 + $0xa0] sm:$0xff]  }
  0x7f   : > { %8125 = vmatprep.mubr.bf16.mxu0 %v7083_v6  ;;  %8154 = vmatpush3.bf16.msra.mxu0 %v8639_v26  ;;  %v979_v6 = vrot.slane %v978_v60, 4  ;;  %v3748_v18 = vsel %vm9163_vm5, %v3746_v8, %v3747_v3  ;;  %v1001_v26 = vrot.slane %v999_v13, 5  ;;  %v1013_v51 = vrot.slane %v1012_v40, 4  ;;  %v910_v8 = vld [vmem:[%s9040_s14 + $0x38] sm:$0x1] }
  0x80   : > { %8155 = vmatprep.subr.bf16.mxu0 %v8641_v43  ;;  %v7086_v24 = vcombine.low %v3745_v7, %v3748_v18  ;;  %v1039_v58 = vshll.u32 %v907_v33, 16  ;;  %v909_v7 = vld [vmem:[%s9040_s14 + $0x34] sm:$0xf]  ;;  %v3761_v10 = vrot.slane %v7032_v59, 5  ;;  %v7033_v13 = vld [vmem:[%s9040_s14 + $0x9c] sm:$0xe] }
  0x81   : > { %v984_v17 = vsel %vm9063_vm2, %v979_v6, %v983_v55  ;;  %v1002_v35 = vor.u32 %v1001_v26, %v998_v25  ;;  %v1018_v60 = vsel %vm9063_vm2, %v1013_v51, %v1017_v32  ;;  %v1053_v18 = vshll.u32 %v909_v7, 16 }
  0x82   : > { %v3765_v40 = vrot.slane %v7034_v19, 5 }
  0x83   : > { %7902 = vmatmul.mubr.bf16.gmra.mrb[28].mxu1 %v8635_v2  ;;  %v988_v2 = vor.u32 %v987_v56, %v983_v55  ;;  %8156 = vmatpush3.bf16.msra.mxu0 %v8641_v43  ;;  %v1029_v43 = vshll.u32 %v906_v28, 16  ;;  %v1003_v45 = vrot.slane %v1002_v35, 4  ;;  %v3755_v56 = vsel %vm9163_vm5, %v3753_v47, %v3754_v39  ;;  %v913_v35 = vld [vmem:[%s9040_s14 + $0x44] sm:$0x1] }
  0x84   : > { %8157 = vmatprep.subr.bf16.mxu0 %v8643_v53  ;;  %7921 = vmatprep.mubr.bf16.mxu1 %v6757_v0  ;;  %v7087_v61 = vcombine.low %v3752_v46, %v3755_v56  ;;  %v908_v0 = vld [vmem:[%s9040_s14 + $0x30] sm:$0xf]  ;;  %v1063_v28 = vshll.u32 %v910_v8, 16  ;;  %v7057_v39 = vrot.slane %v7033_v13, 9  ;;  %v7036_v46 = vld [vmem:[%s9040_s14 + $0xa8] sm:$0xe] }
  0x85   : > { %v989_v11 = vrot.slane %v988_v2, 4  ;;  %v1031_v54 = vrot.slane %v1029_v43, 5  ;;  %v1008_v55 = vsel %vm9063_vm2, %v1003_v45, %v1007_v30  ;;  %v8644_v2 = vld [vmem:[%s10458_s1 + $0x98] sm:$0xff]   ;;  %v1047_v12 = vshll.u32 %v908_v0, 16  ;;  %v912_v30 = vld [vmem:[%s9040_s14 + $0x40] sm:$0xf] }
  0x86   : > { %8126 = vmatmul.mubr.bf16.gmra.mrb[12].mxu0 %v7084_v27  ;;  %v905_v27 = vld [vmem:[%s9040_s14 + $0x24] sm:$0xf]  ;;  %v6759_v3 = vcombine.low %v1008_v55, %v1018_v60  ;;  %v1065_v38 = vrot.slane %v1063_v28, 5  ;;  %v3766_v47 = vsel %vm9163_vm5, %v7057_v39, %v3765_v40  ;;  %v1081_v51 = vshrl.u32 %v912_v30, 16  ;;  %v7038_v56 = vld [vmem:[%s9040_s14 + $0xb0] sm:$0x1] }
  0x87   : > { %8129 = vmatprep.mubr.bf16.mxu0 %v7085_v49  ;;  %v994_v23 = vsel %vm9063_vm2, %v989_v11, %v993_v57  ;;  %8158 = vmatpush3.bf16.msra.mxu0 %v8643_v53  ;;  %v1020_v41 = vshrl.u32 %v905_v27, 16  ;;  %v1023_v42 = vshll.u32 %v905_v27, 16  ;;  %v7030_v49 = vld [vmem:[%s9040_s14 + $0x90] sm:$0xe]  ;;  %v1035_v57 = vrot.slane %v1033_v48, 4  ;;  %v8659_v39 = vld [vmem:[%s10458_s1 + $0xb8] sm:$0xff]  }
  0x88   : > { %v6758_v29 = vcombine.low %v984_v17, %v994_v23  ;;  %8159 = vmatprep.subr.bf16.mxu0 %v8645_v5  ;;  %v7056_v63 = vrot.slane %v7030_v49, 9  ;;  %v1044_v11 = vshrl.u32 %v908_v0, 16  ;;  %v1049_v22 = vrot.slane %v1047_v12, 5 }
  0x89   : > { %v1022_v52 = vrot.slane %v1020_v41, 4  ;;  %v1025_v53 = vrot.slane %v1023_v42, 5  ;;  %v1036_v4 = vor.u32 %v1035_v57, %v1031_v54  ;;  %v1057_v23 = vshrl.u32 %v909_v7, 16  ;;  %v8651_v57 = vld [vmem:[%s10458_s1 + $0xa8] sm:$0xff]  }
  0x8a   : > { %v1046_v21 = vrot.slane %v1044_v11, 4  ;;  %v1055_v27 = vrot.slane %v1053_v18, 5  ;;  %v3767_v48 = vrot.slane %v3765_v40, 4  ;;  %v1077_v49 = vshll.u32 %v912_v30, 16 }
  0x8b   : > { %7922 = vmatmul.mubr.bf16.vlgmr.msra.gmra.mrb[0].mxu1 %v6758_v29  ;;  %8160 = vmatpush3.bf16.msra.mxu0 %v8645_v5  ;;  %v1026_v62 = vor.u32 %v1025_v53, %v1022_v52  ;;  %v1041_v5 = vrot.slane %v1039_v58, 5  ;;  %v1037_v14 = vrot.slane %v1036_v4, 4  ;;  %v911_v29 = vld [vmem:[%s9040_s14 + $0x3c] sm:$0xf]  ;;  %v7037_v52 = vld [vmem:[%s9040_s14 + $0xac] sm:$0xf] }
  0x8c   : > { %7954 = vmatpush3.bf16.msra.mxu1 %v9264_v15  ;;  %v7031_v15 = vld [vmem:[%s9040_s14 + $0x94] sm:$0xf]  ;;  %8193 = vmatprep.subr.bf16.mxu0 %v9328_v50  ;;  %v1050_v33 = vor.u32 %v1049_v22, %v1046_v21  ;;  %v1071_v45 = vshll.u32 %v911_v29, 16  ;;  %v1079_v59 = vrot.slane %v1077_v49, 5  ;;  %v1083_v60 = vrot.slane %v1081_v51, 4 }
  0x8d   : > { %7955 = vmatprep.subr.bf16.mxu1 %v8640_v34  ;;  %v3758_v6 = vrot.slane %v7031_v15, 5  ;;  %v1027_v9 = vrot.slane %v1026_v62, 4  ;;  %7925 = vmatprep.mubr.bf16.mxu1 %v6759_v3  ;;  %v1042_v25 = vsel %vm9063_vm2, %v1037_v14, %v1041_v5  ;;  %v914_v3 = vld [vmem:[%s9040_s14 + $0x48] sm:$0xf]  ;;  %v8655_v4 = vld [vmem:[%s10458_s1 + $0xb0] sm:$0xff]   ;;  %v3772_v8 = vrot.slane %v7037_v52, 5 }
  0x8e   : > { %8130 = vmatmul.mubr.bf16.gmra.mrb[16].mxu0 %v7086_v24  ;;  %v7035_v24 = vld [vmem:[%s9040_s14 + $0xa4] sm:$0x1]  ;;  %v1051_v42 = vrot.slane %v1050_v33, 4  ;;  %v1073_v55 = vrot.slane %v1071_v45, 5  ;;  %v3775_v12 = vrot.slane %v7038_v56, 5  ;;  %v1092_v13 = vshrl.u32 %v914_v3, 16 }
  0x8f   : > { %8133 = vmatprep.mubr.bf16.mxu0 %v7087_v61  ;;  %v3759_v16 = vsel %vm9163_vm5, %v7056_v63, %v3758_v6  ;;  %v3760_v17 = vrot.slane %v3758_v6, 4  ;;  %v1032_v20 = vsel %vm9063_vm2, %v1027_v9, %v1031_v54  ;;  %v3768_v41 = vrot.slane %v7035_v24, 5  ;;  %v915_v9 = vld [vmem:[%s9040_s14 + $0x4c] sm:$0xf]  ;;  %v7040_v21 = vld [vmem:[%s9040_s14 + $0xb8] sm:$0xf] }
  0x90   : > { %7956 = vmatpush3.bf16.msra.mxu1 %v8640_v34  ;;  %v6760_v31 = vcombine.low %v1032_v20, %v1042_v25  ;;  %v1059_v34 = vrot.slane %v1057_v23, 4  ;;  %v1056_v53 = vsel %vm9063_vm2, %v1051_v42, %v1055_v27  ;;  %v1087_v61 = vshll.u32 %v913_v35, 16 }
  0x91   : > { %7957 = vmatprep.subr.bf16.mxu1 %v8642_v44  ;;  %v3762_v26 = vsel %vm9163_vm5, %v3760_v17, %v3761_v10  ;;  %v3769_v58 = vsel %vm9163_vm5, %v3767_v48, %v3768_v41  ;;  %v1084_v6 = vor.u32 %v1083_v60, %v1079_v59  ;;  %v916_v10 = vld [vmem:[%s9040_s14 + $0x50] sm:$0x1]  ;;  %v1095_v14 = vshll.u32 %v914_v3, 16  ;;  %v7042_v48 = vld [vmem:[%s9040_s14 + $0xc0] sm:$0xe] }
  0x92   : > { %v7088_v32 = vcombine.low %v3759_v16, %v3762_v26  ;;  %v1060_v43 = vor.u32 %v1059_v34, %v1055_v27  ;;  %v7089_v63 = vcombine.low %v3766_v47, %v3769_v58  ;;  %v1089_v7 = vrot.slane %v1087_v61, 5  ;;  %v7039_v16 = vld [vmem:[%s9040_s14 + $0xb4] sm:$0xe]  ;;  %v7041_v26 = vld [vmem:[%s9040_s14 + $0xbc] sm:$0x1] }
  0x93   : > { %7926 = vmatmul.mubr.bf16.gmra.mrb[4].mxu1 %v6760_v31  ;;  %v1085_v17 = vrot.slane %v1084_v6, 4  ;;  %v3774_v19 = vrot.slane %v3772_v8, 4  ;;  %v1101_v20 = vshll.u32 %v915_v9, 16  ;;  %v1094_v23 = vrot.slane %v1092_v13, 4  ;;  %v917_v31 = vld [vmem:[%s9040_s14 + $0x54] sm:$0xf] }
  0x94   : > { %7958 = vmatpush3.bf16.msra.mxu1 %v8642_v44  ;;  %v1068_v44 = vshrl.u32 %v911_v29, 16  ;;  %v1061_v54 = vrot.slane %v1060_v43, 4  ;;  %v1097_v24 = vrot.slane %v1095_v14, 5  ;;  %v1105_v25 = vshrl.u32 %v915_v9, 16  ;;  %v7044_v58 = vld [vmem:[%s9040_s14 + $0xc8] sm:$0x1] }
  0x95   : > { %7959 = vmatprep.subr.bf16.mxu1 %v8644_v2  ;;  %v1090_v27 = vsel %vm9063_vm2, %v1085_v17, %v1089_v7  ;;  %v3776_v28 = vsel %vm9163_vm5, %v3774_v19, %v3775_v12  ;;  %v1103_v29 = vrot.slane %v1101_v20, 5  ;;  %v1111_v30 = vshll.u32 %v916_v10, 16  ;;  %v921_v10 = vld [vmem:[%s9040_s14 + $0x64] sm:$0xf] }
  0x96   : > { %8134 = vmatmul.mubr.bf16.gmra.mrb[20].mxu0 %v7088_v32  ;;  %v1070_v15 = vrot.slane %v1068_v44, 4  ;;  %v1066_v62 = vsel %vm9063_vm2, %v1061_v54, %v1065_v38  ;;  %v918_v32 = vld [vmem:[%s9040_s14 + $0x58] sm:$0xf]  ;;  %v1098_v35 = vor.u32 %v1097_v24, %v1094_v23  ;;  %v919_v38 = vld [vmem:[%s9040_s14 + $0x5c] sm:$0x1]  ;;  %v7059_v41 = vrot.slane %v7039_v16, 9 }
  0x97   : > { %v6761_v5 = vcombine.low %v1056_v53, %v1066_v62  ;;  %8137 = vmatprep.mubr.bf16.mxu0 %v7089_v63  ;;  %v1113_v40 = vrot.slane %v1111_v30, 5  ;;  %v3779_v42 = vrot.slane %v7040_v21, 5  ;;  %v3782_v43 = vrot.slane %v7041_v26, 5  ;;  %v7043_v54 = vld [vmem:[%s9040_s14 + $0xc4] sm:$0xf] }
  0x98   : > { %7960 = vmatpush3.bf16.msra.mxu1 %v8644_v2  ;;  %v1074_v0 = vor.u32 %v1073_v55, %v1070_v15  ;;  %v7058_v2 = vrot.slane %v7036_v46, 9  ;;  %v1099_v44 = vrot.slane %v1098_v35, 4  ;;  %v1116_v46 = vshrl.u32 %v917_v31, 16  ;;  %v923_v26 = vld [vmem:[%s9040_s14 + $0x6c] sm:$0xf] }
  0x99   : > { %7961 = vmatprep.subr.bf16.mxu1 %v8647_v37  ;;  %7929 = vmatprep.mubr.bf16.mxu1 %v6761_v5  ;;  %v1119_v47 = vshll.u32 %v917_v31, 16  ;;  %v3780_v49 = vsel %vm9163_vm5, %v7059_v41, %v3779_v42  ;;  %v3781_v51 = vrot.slane %v3779_v42, 4  ;;  %v1125_v52 = vshll.u32 %v918_v32, 16  ;;  %v920_v5 = vld [vmem:[%s9040_s14 + $0x60] sm:$0xf] }
  0x9a   : > { %v1075_v11 = vrot.slane %v1074_v0, 4  ;;  %v3773_v18 = vsel %vm9163_vm5, %v7058_v2, %v3772_v8  ;;  %v1129_v53 = vshrl.u32 %v918_v32, 16  ;;  %v1104_v15 = vsel %vm9063_vm2, %v1099_v44, %v1103_v29  ;;  %v924_v31 = vld [vmem:[%s9040_s14 + $0x70] sm:$0xf]  ;;  %v925_v32 = vld [vmem:[%s9040_s14 + $0x74] sm:$0x1] }
  0x9b   : > { %v7090_v34 = vcombine.low %v3773_v18, %v3776_v28  ;;  %v1118_v56 = vrot.slane %v1116_v46, 4  ;;  %v3783_v60 = vsel %vm9163_vm5, %v3781_v51, %v3782_v43  ;;  %v1127_v61 = vrot.slane %v1125_v52, 5 }
  0x9c   : > { %7962 = vmatpush3.bf16.msra.mxu1 %v8647_v37  ;;  %v1080_v22 = vsel %vm9063_vm2, %v1075_v11, %v1079_v59  ;;  %v1107_v37 = vrot.slane %v1105_v25, 4  ;;  %v9409_v59 = vld [vmem:[%s10458_s1 + $0xc0] sm:$0xff]   ;;  %v1131_v62 = vrot.slane %v1129_v53, 4  ;;  %v1135_v63 = vshll.u32 %v919_v38, 16  ;;  %v922_v11 = vld [vmem:[%s9040_s14 + $0x68] sm:$0x1] }
  0x9d   : > { %7963 = vmatprep.subr.bf16.mxu1 %v8651_v57  ;;  %v6762_v33 = vcombine.low %v1080_v22, %v1090_v27  ;;  %v7091_v2 = vcombine.low %v3780_v49, %v3783_v60  ;;  %v3786_v9 = vrot.slane %v7043_v54, 5  ;;  %v3789_v13 = vrot.slane %v7044_v58, 5  ;;  %v8646_v25 = vld [vmem:[%s9040_s14 + $0x18] sm:$0xff]   ;;  %v8648_v54 = vld [vmem:[%s9040_s14 + $0x24] sm:$0xff]   ;;  %v8650_v58 = vld [vmem:[%s9040_s14 + $0x30] sm:$0xff]  }
  0x9e   : > { %8138 = vmatmul.mubr.bf16.gmra.mrb[24].mxu0 %v7090_v34  ;;  %v1108_v45 = vor.u32 %v1107_v37, %v1103_v29  ;;  %v1132_v7 = vor.u32 %v1131_v62, %v1127_v61  ;;  %v1137_v8 = vrot.slane %v1135_v63, 5  ;;  %v1140_v14 = vshrl.u32 %v920_v5, 16 }
  0x9f   : > { %7930 = vmatmul.mubr.bf16.gmra.mrb[8].mxu1 %v6762_v33  ;;  %8141 = vmatprep.mubr.bf16.mxu0 %v7091_v2  ;;  %v1143_v16 = vshll.u32 %v920_v5, 16  ;;  %v3788_v19 = vrot.slane %v3786_v9, 4  ;;  %v1149_v20 = vshll.u32 %v921_v10, 16  ;;  %v1153_v24 = vshrl.u32 %v921_v10, 16  ;;  %v929_v5 = vld [vmem:[%s9040_s14 + $0x84] sm:$0xf] }
  0xa0   : > { %7964 = vmatpush3.bf16.msra.mxu1 %v8651_v57  ;;  %v1109_v55 = vrot.slane %v1108_v45, 4  ;;  %v1121_v57 = vrot.slane %v1119_v47, 5  ;;  %v1133_v17 = vrot.slane %v1132_v7, 4  ;;  %v1142_v22 = vrot.slane %v1140_v14, 4 }
  0xa1   : > { %7965 = vmatprep.subr.bf16.mxu1 %v8655_v4  ;;  %v1145_v23 = vrot.slane %v1143_v16, 5  ;;  %v3790_v28 = vsel %vm9163_vm5, %v3788_v19, %v3789_v13  ;;  %v1151_v29 = vrot.slane %v1149_v20, 5  ;;  %v1159_v30 = vshll.u32 %v922_v11, 16  ;;  %v930_v11 = vld [vmem:[%s9040_s14 + $0x88] sm:$0xf] }
  0xa2   : > { %v1114_v0 = vsel %vm9063_vm2, %v1109_v55, %v1113_v40  ;;  %v1122_v3 = vor.u32 %v1121_v57, %v1118_v56  ;;  %v1138_v27 = vsel %vm9063_vm2, %v1133_v17, %v1137_v8  ;;  %v1155_v37 = vrot.slane %v1153_v24, 4  ;;  %v926_v55 = vld [vmem:[%s9040_s14 + $0x78] sm:$0xf]  ;;  %v927_v56 = vld [vmem:[%s9040_s14 + $0x7c] sm:$0xf] }
  0xa3   : > { %v6763_v6 = vcombine.low %v1104_v15, %v1114_v0  ;;  %v1146_v35 = vor.u32 %v1145_v23, %v1142_v22  ;;  %v1161_v38 = vrot.slane %v1159_v30, 5  ;;  %v1167_v40 = vshll.u32 %v923_v26, 16  ;;  %v928_v57 = vld [vmem:[%s9040_s14 + $0x80] sm:$0x1]  ;;  %v931_v16 = vld [vmem:[%s9040_s14 + $0x8c] sm:$0x1] }
  0xa4   : > { %7966 = vmatpush3.bf16.msra.mxu1 %v8655_v4  ;;  %v7060_v4 = vrot.slane %v7042_v48, 9  ;;  %v1123_v12 = vrot.slane %v1122_v3, 4  ;;  %v1173_v41 = vshll.u32 %v924_v31, 16  ;;  %v1156_v43 = vor.u32 %v1155_v37, %v1151_v29  ;;  %v8657_v22 = vld [vmem:[%s10458_s1 + $0x1d0] sm:$0xff]  }
  0xa5   : > { %7967 = vmatprep.subr.bf16.mxu1 %v8659_v39  ;;  %7933 = vmatprep.mubr.bf16.mxu1 %v6763_v6  ;;  %v1147_v42 = vrot.slane %v1146_v35, 4  ;;  %v1177_v44 = vshrl.u32 %v924_v31, 16  ;;  %v1183_v45 = vshll.u32 %v925_v32, 16  ;;  %v1169_v47 = vrot.slane %v1167_v40, 5  ;;  %v8653_v6 = vld [vmem:[%s10458_s1 + $0x1c8] sm:$0xff]   ;;  %v8652_v31 = vld [vmem:[%s9040_s14 + $0x3c] sm:$0xff]  }
  0xa6   : > { %v3787_v18 = vsel %vm9163_vm5, %v7060_v4, %v3786_v9  ;;  %v1128_v21 = vsel %vm9063_vm2, %v1123_v12, %v1127_v61  ;;  %v1175_v48 = vrot.slane %v1173_v41, 5  ;;  %v1157_v51 = vrot.slane %v1156_v43, 4  ;;  %v8654_v35 = vld [vmem:[%s9040_s14 + $0x48] sm:$0xff]   ;;  %v933_v40 = vld [vmem:[%s9040_s14 + $0x94] sm:$0xf] }
  0xa7   : > { %v6764_v33 = vcombine.low %v1128_v21, %v1138_v27  ;;  %v7092_v34 = vcombine.low %v3787_v18, %v3790_v28  ;;  %v1152_v49 = vsel %vm9063_vm2, %v1147_v42, %v1151_v29  ;;  %v1179_v52 = vrot.slane %v1177_v44, 4  ;;  %v934_v41 = vld [vmem:[%s9040_s14 + $0x98] sm:$0x1] }
  0xa8   : > { %7968 = vmatpush3.bf16.msra.mxu1 %v8659_v39  ;;  %v1164_v39 = vshrl.u32 %v923_v26, 16  ;;  %v1185_v53 = vrot.slane %v1183_v45, 5  ;;  %v1162_v60 = vsel %vm9063_vm2, %v1157_v51, %v1161_v38  ;;  %v1188_v62 = vshrl.u32 %v926_v55, 16 }
  0xa9   : > { %8001 = vmatprep.subr.bf16.mxu1 %v9409_v59  ;;  %7934 = vmatmul.mubr.bf16.gmra.mrb[12].mxu1 %v6764_v33  ;;  %v1180_v61 = vor.u32 %v1179_v52, %v1175_v48  ;;  %v1191_v63 = vshll.u32 %v926_v55, 16  ;;  %v6765_v0 = vcombine.low %v1152_v49, %v1162_v60  ;;  %v1197_v3 = vshll.u32 %v927_v56, 16  ;;  %v935_v52 = vld [vmem:[%s9040_s14 + $0x9c] sm:$0xf] }
  0xaa   : > { %8142 = vmatmul.mubr.bf16.gmra.mrb[28].mxu0 %v7092_v34  ;;  %v1166_v46 = vrot.slane %v1164_v39, 4  ;;  %v1201_v4 = vshrl.u32 %v927_v56, 16  ;;  %v1190_v8 = vrot.slane %v1188_v62, 4  ;;  %v1207_v10 = vshll.u32 %v928_v57, 16  ;;  %v932_v34 = vld [vmem:[%s9040_s14 + $0x90] sm:$0xf] }
  0xab   : > { %8161 = vmatprep.mubr.bf16.mxu0 %v8646_v25  ;;  %v1181_v7 = vrot.slane %v1180_v61, 4  ;;  %v1193_v9 = vrot.slane %v1191_v63, 5  ;;  %7937 = vmatprep.mubr.bf16.mxu1 %v6765_v0  ;;  %v1199_v13 = vrot.slane %v1197_v3, 5  ;;  %v1212_v17 = vshrl.u32 %v929_v5, 16  ;;  %v936_v56 = vld [vmem:[%s9040_s14 + $0xa0] sm:$0xf] }
  0xac   : > { %v1170_v15 = vor.u32 %v1169_v47, %v1166_v46  ;;  %v1203_v14 = vrot.slane %v1201_v4, 4  ;;  %v1209_v20 = vrot.slane %v1207_v10, 5  ;;  %v1215_v21 = vshll.u32 %v929_v5, 16  ;;  %v8661_v46 = vld [vmem:[%s10458_s1 + $0x1d8] sm:$0xff]   ;;  %v937_v61 = vld [vmem:[%s9040_s14 + $0xa4] sm:$0x1] }
  0xad   : > { %v1186_v18 = vsel %vm9063_vm2, %v1181_v7, %v1185_v53  ;;  %v1194_v19 = vor.u32 %v1193_v9, %v1190_v8  ;;  %v1214_v25 = vrot.slane %v1212_v17, 4  ;;  %v1221_v26 = vshll.u32 %v930_v11, 16  ;;  %v8665_v4 = vld [vmem:[%s10458_s1 + $0x1e0] sm:$0xff]  }
  0xae   : > { %v1171_v2 = vrot.slane %v1170_v15, 4  ;;  %v1204_v24 = vor.u32 %v1203_v14, %v1199_v13  ;;  %v1217_v28 = vrot.slane %v1215_v21, 5  ;;  %v1225_v29 = vshrl.u32 %v930_v11, 16  ;;  %v938_v21 = vld [vmem:[%s9040_s14 + $0xa8] sm:$0xf] }
  0xaf   : > { %v1195_v27 = vrot.slane %v1194_v19, 4  ;;  %v1231_v30 = vshll.u32 %v931_v16, 16  ;;  %v1223_v33 = vrot.slane %v1221_v26, 5  ;;  %v1236_v43 = vshrl.u32 %v932_v34, 16  ;;  %v940_v26 = vld [vmem:[%s9040_s14 + $0xb0] sm:$0x1] }
  0xb0   : > { %v1176_v12 = vsel %vm9063_vm2, %v1171_v2, %v1175_v48  ;;  %v1205_v32 = vrot.slane %v1204_v24, 4  ;;  %v1218_v37 = vor.u32 %v1217_v28, %v1214_v25  ;;  %v1227_v38 = vrot.slane %v1225_v29, 4 }
  0xb1   : > { %v6766_v23 = vcombine.low %v1176_v12, %v1186_v18  ;;  %v1233_v39 = vrot.slane %v1231_v30, 5  ;;  %v1239_v44 = vshll.u32 %v932_v34, 16  ;;  %v1245_v45 = vshll.u32 %v933_v40, 16  ;;  %v8658_v18 = vld [vmem:[%s9040_s14 + $0x60] sm:$0xff]  }
  0xb2   : > { %8162 = vmatmul.mubr.bf16.vlgmr.msra.gmra.mrb[0].mxu0 %v8648_v54  ;;  %v1210_v42 = vsel %vm9063_vm2, %v1205_v32, %v1209_v20  ;;  %v1219_v48 = vrot.slane %v1218_v37, 4  ;;  %v1228_v49 = vor.u32 %v1227_v38, %v1223_v33  ;;  %v1249_v51 = vshrl.u32 %v933_v40, 16  ;;  %v8669_v32 = vld [vmem:[%s10458_s1 + $0x1e8] sm:$0xff]   ;;  %v941_v37 = vld [vmem:[%s9040_s14 + $0xb4] sm:$0xf] }
  0xb3   : > { %8194 = vmatpush3.bf16.msra.mxu0 %v9328_v50  ;;  %8165 = vmatprep.mubr.bf16.mxu0 %v8650_v58  ;;  %v1200_v50 = vsel %vm9063_vm2, %v1195_v27, %v1199_v13  ;;  %v1238_v53 = vrot.slane %v1236_v43, 4  ;;  %v1241_v54 = vrot.slane %v1239_v44, 5  ;;  %v1247_v15 = vrot.slane %v1245_v45, 5  ;;  %v8656_v13 = vld [vmem:[%s9040_s14 + $0x54] sm:$0xff]  }
  0xb4   : > { %8195 = vmatprep.subr.bf16.mxu0 %v8653_v6  ;;  %7938 = vmatmul.mubr.bf16.gmra.mrb[16].mxu1 %v6766_v23  ;;  %v6767_v47 = vcombine.low %v1200_v50, %v1210_v42  ;;  %v1255_v55 = vshll.u32 %v934_v41, 16  ;;  %v1224_v57 = vsel %vm9063_vm2, %v1219_v48, %v1223_v33  ;;  %v1229_v58 = vrot.slane %v1228_v49, 4  ;;  %v942_v41 = vld [vmem:[%s9040_s14 + $0xb8] sm:$0xf]  ;;  %v943_v42 = vld [vmem:[%s9040_s14 + $0xbc] sm:$0x1] }
  0xb5   : > { %v1251_v60 = vrot.slane %v1249_v51, 4  ;;  %v1260_v62 = vshrl.u32 %v935_v52, 16  ;;  %v1242_v63 = vor.u32 %v1241_v54, %v1238_v53  ;;  %v1263_v2 = vshll.u32 %v935_v52, 16 }
  0xb6   : > { %7941 = vmatprep.mubr.bf16.mxu1 %v6767_v47  ;;  %v1257_v0 = vrot.slane %v1255_v55, 5  ;;  %v1269_v3 = vshll.u32 %v936_v56, 16  ;;  %v1234_v5 = vsel %vm9063_vm2, %v1229_v58, %v1233_v39  ;;  %v1273_v8 = vshrl.u32 %v936_v56, 16  ;;  %v8673_v47 = vld [vmem:[%s10458_s1 + $0x1f0] sm:$0xff]  }
  0xb7   : > { %8196 = vmatpush3.bf16.msra.mxu0 %v8653_v6  ;;  %v1252_v6 = vor.u32 %v1251_v60, %v1247_v15  ;;  %v1262_v7 = vrot.slane %v1260_v62, 4  ;;  %v6768_v9 = vcombine.low %v1224_v57, %v1234_v5  ;;  %v1243_v10 = vrot.slane %v1242_v63, 4  ;;  %v8660_v56 = vld [vmem:[%s9040_s14 + $0x6c] sm:$0xff]   ;;  %v1717_v5 = vld [vmem:[%s9040_s14] sm:$0xe] }
  0xb8   : > { %8197 = vmatprep.subr.bf16.mxu0 %v8657_v22  ;;  %v1265_v11 = vrot.slane %v1263_v2, 5  ;;  %v1271_v12 = vrot.slane %v1269_v3, 5  ;;  %v1275_v16 = vrot.slane %v1273_v8, 4  ;;  %v1279_v17 = vshll.u32 %v937_v61, 16  ;;  %v8662_v61 = vld [vmem:[%s9040_s14 + $0x78] sm:$0xff]  }
  0xb9   : > { %v1253_v14 = vrot.slane %v1252_v6, 4  ;;  %v1248_v19 = vsel %vm9063_vm2, %v1243_v10, %v1247_v15  ;;  %v1284_v27 = vshrl.u32 %v938_v21, 16  ;;  %v1287_v30 = vshll.u32 %v938_v21, 16  ;;  %v8677_v2 = vld [vmem:[%s10458_s1 + $0x1f8] sm:$0xff]   ;;  %v1718_v6 = vld [vmem:[%s9040_s14 + $0x4] sm:$0xf] }
  0xba   : > { %8166 = vmatmul.mubr.bf16.gmra.mrb[4].mxu0 %v8652_v31  ;;  %v1266_v20 = vor.u32 %v1265_v11, %v1262_v7  ;;  %v1276_v24 = vor.u32 %v1275_v16, %v1271_v12  ;;  %v1281_v25 = vrot.slane %v1279_v17, 5  ;;  %v1303_v50 = vshll.u32 %v940_v26, 16  ;;  %v1719_v7 = vld [vmem:[%s9040_s14 + $0x8] sm:$0x1]  ;;  %v1720_v16 = vld [vmem:[%s9040_s14 + $0xc] sm:$0xe] }
  0xbb   : > { %8169 = vmatprep.mubr.bf16.mxu0 %v8654_v35  ;;  %8198 = vmatpush3.bf16.msra.mxu0 %v8657_v22  ;;  %v939_v22 = vld [vmem:[%s9040_s14 + $0xac] sm:$0xf]  ;;  %v1258_v23 = vsel %vm9063_vm2, %v1253_v14, %v1257_v0  ;;  %v1286_v34 = vrot.slane %v1284_v27, 4  ;;  %v1289_v39 = vrot.slane %v1287_v30, 5  ;;  %v1311_v51 = vshll.u32 %v941_v37, 16 }
  0xbc   : > { %8199 = vmatprep.subr.bf16.mxu0 %v8661_v46  ;;  %7942 = vmatmul.mubr.bf16.gmra.mrb[20].mxu1 %v6768_v9  ;;  %v6769_v28 = vcombine.low %v1248_v19, %v1258_v23  ;;  %v1267_v29 = vrot.slane %v1266_v20, 4  ;;  %v1293_v31 = vshll.u32 %v939_v22, 16  ;;  %v1277_v33 = vrot.slane %v1276_v24, 4  ;;  %v1721_v17 = vld [vmem:[%s9040_s14 + $0x10] sm:$0xf]  ;;  %v8664_v23 = vld [vmem:[%s9040_s14 + $0x84] sm:$0xff]  }
  0xbd   : > { %v1297_v35 = vshrl.u32 %v939_v22, 16  ;;  %v1305_v45 = vrot.slane %v1303_v50, 5  ;;  %v1290_v49 = vor.u32 %v1289_v39, %v1286_v34  ;;  %v1317_v52 = vshll.u32 %v942_v41, 16  ;;  %v1722_v21 = vld [vmem:[%s9040_s14 + $0x14] sm:$0x1]  ;;  %v9519_v24 = vld [vmem:[%s10458_s1 + $0x200] sm:$0xff]  }
  0xbe   : > { %7945 = vmatprep.mubr.bf16.mxu1 %v6769_v28  ;;  %v1272_v38 = vsel %vm9063_vm2, %v1267_v29, %v1271_v12  ;;  %v1295_v40 = vrot.slane %v1293_v31, 5  ;;  %v1282_v43 = vsel %vm9063_vm2, %v1277_v33, %v1281_v25  ;;  %v1321_v15 = vshrl.u32 %v942_v41, 16  ;;  %v1723_v33 = vld [vmem:[%s9040_s14 + $0x18] sm:$0xe]  ;;  %v8666_v34 = vld [vmem:[%s9040_s14 + $0x90] sm:$0xff]  }
  0xbf   : > { %8200 = vmatpush3.bf16.msra.mxu0 %v8661_v46  ;;  %v1299_v44 = vrot.slane %v1297_v35, 4  ;;  %v1308_v46 = vshrl.u32 %v941_v37, 16  ;;  %v6770_v48 = vcombine.low %v1272_v38, %v1282_v43  ;;  %v1327_v55 = vshll.u32 %v943_v42, 16  ;;  %v1724_v35 = vld [vmem:[%s9040_s14 + $0x1c] sm:$0xf] }
  0xc0   : > { %8201 = vmatprep.subr.bf16.mxu0 %v8665_v4  ;;  %v1291_v57 = vrot.slane %v1290_v49, 4  ;;  %v1313_v58 = vrot.slane %v1311_v51, 5  ;;  %v1319_v60 = vrot.slane %v1317_v52, 5  ;;  %v1323_v63 = vrot.slane %v1321_v15, 4  ;;  %v1725_v50 = vld [vmem:[%s9040_s14 + $0x20] sm:$0x1] }
  0xc1   : > { %v1300_v53 = vor.u32 %v1299_v44, %v1295_v40  ;;  %v1310_v54 = vrot.slane %v1308_v46, 4  ;;  %v1329_v0 = vrot.slane %v1327_v55, 5  ;;  %v6781_v10 = vrot.slane %v1717_v5, 9  ;;  %v1726_v42 = vld [vmem:[%s9040_s14 + $0x24] sm:$0xe]  ;;  %v8668_v15 = vld [vmem:[%s9040_s14 + $0x9c] sm:$0xff]  }
  0xc2   : > { %8170 = vmatmul.mubr.bf16.gmra.mrb[8].mxu0 %v8656_v13  ;;  %v1296_v3 = vsel %vm9063_vm2, %v1291_v57, %v1295_v40  ;;  %v1324_v9 = vor.u32 %v1323_v63, %v1319_v60  ;;  %v1818_v11 = vrot.slane %v1718_v6, 5  ;;  %v1821_v14 = vrot.slane %v1719_v7, 5  ;;  %v1727_v43 = vld [vmem:[%s9040_s14 + $0x28] sm:$0xf]  ;;  %v1728_v44 = vld [vmem:[%s9040_s14 + $0x2c] sm:$0x1] }
  0xc3   : > { %8173 = vmatprep.mubr.bf16.mxu0 %v8658_v18  ;;  %8202 = vmatpush3.bf16.msra.mxu0 %v8665_v4  ;;  %v1301_v62 = vrot.slane %v1300_v53, 4  ;;  %v1314_v4 = vor.u32 %v1313_v58, %v1310_v54  ;;  %v6782_v22 = vrot.slane %v1720_v16, 9  ;;  %v1825_v26 = vrot.slane %v1721_v17, 5  ;;  %v8667_v54 = vld [vmem:[%s10458_s1 + $0xc8] sm:$0xff]   ;;  %v1730_v57 = vld [vmem:[%s9040_s14 + $0x34] sm:$0xf] }
  0xc4   : > { %8203 = vmatprep.subr.bf16.mxu0 %v8669_v32  ;;  %7946 = vmatmul.mubr.bf16.gmra.mrb[24].mxu1 %v6770_v48  ;;  %v1325_v18 = vrot.slane %v1324_v9, 4  ;;  %v1819_v19 = vsel %vm9163_vm5, %v6781_v10, %v1818_v11  ;;  %v1820_v20 = vrot.slane %v1818_v11, 4  ;;  %v1828_v27 = vrot.slane %v1722_v21, 5  ;;  %v1731_v58 = vld [vmem:[%s9040_s14 + $0x38] sm:$0x1]  ;;  %v8670_v63 = vld [vmem:[%s9040_s14 + $0xa8] sm:$0xff]  }
  0xc5   : > { %v1306_v8 = vsel %vm9063_vm2, %v1301_v62, %v1305_v45  ;;  %v1315_v13 = vrot.slane %v1314_v4, 4  ;;  %v6783_v37 = vrot.slane %v1723_v33, 9  ;;  %v1832_v38 = vrot.slane %v1724_v35, 5  ;;  %v1734_v4 = vld [vmem:[%s9040_s14 + $0x44] sm:$0x1]  ;;  %v8672_v16 = vld [vmem:[%s9040_s14 + $0xb4] sm:$0xff]  }
  0xc6   : > { %v6771_v12 = vcombine.low %v1296_v3, %v1306_v8  ;;  %v1330_v28 = vsel %vm9063_vm2, %v1325_v18, %v1329_v0  ;;  %v1822_v29 = vsel %vm9163_vm5, %v1820_v20, %v1821_v14  ;;  %v1835_v39 = vrot.slane %v1725_v50, 5  ;;  %v1732_v0 = vld [vmem:[%s9040_s14 + $0x3c] sm:$0xe]  ;;  %v1733_v3 = vld [vmem:[%s9040_s14 + $0x40] sm:$0xf]  ;;  %v8671_v8 = vld [vmem:[%s10458_s1 + $0xd0] sm:$0xff]  }
  0xc7   : > { %8204 = vmatpush3.bf16.msra.mxu0 %v8669_v32  ;;  %v1320_v25 = vsel %vm9063_vm2, %v1315_v13, %v1319_v60  ;;  %v6813_v31 = vcombine.low %v1819_v19, %v1822_v29  ;;  %v1827_v32 = vrot.slane %v1825_v26, 4  ;;  %v1826_v40 = vsel %vm9163_vm5, %v6782_v22, %v1825_v26  ;;  %v1736_v17 = vld [vmem:[%s9040_s14 + $0x4c] sm:$0xf]  ;;  %v1737_v18 = vld [vmem:[%s9040_s14 + $0x50] sm:$0x1]  ;;  %v8675_v20 = vld [vmem:[%s10458_s1 + $0xd8] sm:$0xff]  }
  0xc8   : > { %8205 = vmatprep.subr.bf16.mxu0 %v8673_v47  ;;  %7949 = vmatprep.mubr.bf16.mxu1 %v6771_v12  ;;  %v6772_v30 = vcombine.low %v1320_v25, %v1330_v28  ;;  %v1833_v45 = vsel %vm9163_vm5, %v6783_v37, %v1832_v38  ;;  %v1834_v46 = vrot.slane %v1832_v38, 4  ;;  %v6784_v48 = vrot.slane %v1726_v42, 9  ;;  %v1735_v12 = vld [vmem:[%s9040_s14 + $0x48] sm:$0xe]  ;;  %v1738_v25 = vld [vmem:[%s9040_s14 + $0x54] sm:$0xe] }
  0xc9   : > { %v1829_v41 = vsel %vm9163_vm5, %v1827_v32, %v1828_v27  ;;  %v1842_v53 = vrot.slane %v1728_v44, 5  ;;  %v1849_v62 = vrot.slane %v1731_v58, 5  ;;  %v1853_v7 = vrot.slane %v1733_v3, 5  ;;  %v1739_v26 = vld [vmem:[%s9040_s14 + $0x58] sm:$0xf]  ;;  %v8674_v29 = vld [vmem:[%s9040_s14 + $0xc0] sm:$0xff]  }
  0xca   : > { %8174 = vmatmul.mubr.bf16.gmra.mrb[12].mxu0 %v8660_v56  ;;  %v6814_v49 = vcombine.low %v1826_v40, %v1829_v41  ;;  %v1836_v51 = vsel %vm9163_vm5, %v1834_v46, %v1835_v39  ;;  %v1729_v56 = vld [vmem:[%s9040_s14 + $0x30] sm:$0xe]  ;;  %v6786_v10 = vrot.slane %v1732_v0, 9  ;;  %v1856_v11 = vrot.slane %v1734_v4, 5  ;;  %v1740_v27 = vld [vmem:[%s9040_s14 + $0x5c] sm:$0x1] }
  0xcb   : > { %8177 = vmatprep.mubr.bf16.mxu0 %v8662_v61  ;;  %8206 = vmatpush3.bf16.msra.mxu0 %v8673_v47  ;;  %v1839_v47 = vrot.slane %v1727_v43, 5  ;;  %v6815_v55 = vcombine.low %v1833_v45, %v1836_v51  ;;  %v6785_v60 = vrot.slane %v1729_v56, 9  ;;  %v1846_v61 = vrot.slane %v1730_v57, 5  ;;  %v8678_v38 = vld [vmem:[%s10458_s1 + $0xe0] sm:$0xff]   ;;  %v1743_v43 = vld [vmem:[%s9040_s14 + $0x68] sm:$0x1] }
  0xcc   : > { %8207 = vmatprep.subr.bf16.mxu0 %v8677_v2  ;;  %7950 = vmatmul.mubr.bf16.gmra.mrb[28].mxu1 %v6772_v30  ;;  %v1855_v14 = vrot.slane %v1853_v7, 4  ;;  %v6787_v19 = vrot.slane %v1735_v12, 9  ;;  %v1860_v22 = vrot.slane %v1736_v17, 5  ;;  %v6788_v30 = vrot.slane %v1738_v25, 9  ;;  %v1741_v39 = vld [vmem:[%s9040_s14 + $0x60] sm:$0xe] }
  0xcd   : > { %7969 = vmatprep.mubr.bf16.mxu1 %v6813_v31  ;;  %v1841_v52 = vrot.slane %v1839_v47, 4  ;;  %v1840_v5 = vsel %vm9163_vm5, %v6784_v48, %v1839_v47  ;;  %v1867_v31 = vrot.slane %v1739_v26, 5  ;;  %v1854_v32 = vsel %vm9163_vm5, %v6786_v10, %v1853_v7  ;;  %v1742_v40 = vld [vmem:[%s9040_s14 + $0x64] sm:$0xf]  ;;  %v7173_v45 = vld [vmem:[%s9040_s14 + $0x18] sm:$0xf] }
  0xce   : > { %v1862_v28 = vrot.slane %v1860_v22, 4  ;;  %v1857_v33 = vsel %vm9163_vm5, %v1855_v14, %v1856_v11  ;;  %v1861_v35 = vsel %vm9163_vm5, %v6787_v19, %v1860_v22  ;;  %v1874_v44 = vrot.slane %v1742_v40, 5  ;;  %v8676_v48 = vld [vmem:[%s9040_s14 + $0xcc] sm:$0xff]   ;;  %v7174_v51 = vld [vmem:[%s9040_s14 + $0x1c] sm:$0xf] }
  0xcf   : > { %8208 = vmatpush3.bf16.msra.mxu0 %v8677_v2  ;;  %v1848_v2 = vrot.slane %v1846_v61, 4  ;;  %v1843_v6 = vsel %vm9163_vm5, %v1841_v52, %v1842_v53  ;;  %v1869_v37 = vrot.slane %v1867_v31, 4  ;;  %v6818_v41 = vcombine.low %v1854_v32, %v1857_v33  ;;  %v7175_v52 = vld [vmem:[%s9040_s14 + $0x20] sm:$0x1]  ;;  %v1744_v58 = vld [vmem:[%s9040_s14 + $0x6c] sm:$0xe] }
  0xd0   : > { %8241 = vmatprep.subr.bf16.mxu0 %v9519_v24  ;;  %v6816_v13 = vcombine.low %v1840_v5, %v1843_v6  ;;  %v9592_v42 = vsel %vm9163_vm5, %v6788_v30, %v1867_v31  ;;  %v4677_v53 = vshrl.u32 %v7173_v45, 16  ;;  %v4680_v56 = vshll.u32 %v7173_v45, 16  ;;  %v1746_v4 = vld [vmem:[%s9040_s14 + $0x74] sm:$0x1]  ;;  %v7176_v14 = vld [vmem:[%s9040_s14 + $0x24] sm:$0xf] }
  0xd1   : > { %v1850_v9 = vsel %vm9163_vm5, %v1848_v2, %v1849_v62  ;;  %v4686_v57 = vshll.u32 %v7174_v51, 16  ;;  %v4696_v62 = vshll.u32 %v7175_v52, 16  ;;  %v6790_v0 = vrot.slane %v1744_v58, 9  ;;  %v7178_v19 = vld [vmem:[%s9040_s14 + $0x2c] sm:$0x1] }
  0xd2   : > { %8178 = vmatmul.mubr.bf16.gmra.mrb[16].mxu0 %v8664_v23  ;;  %v1863_v23 = vrot.slane %v1737_v18, 5  ;;  %v4682_v2 = vrot.slane %v4680_v56, 5  ;;  %v7177_v18 = vld [vmem:[%s9040_s14 + $0x28] sm:$0xf]  ;;  %v1749_v40 = vld [vmem:[%s9040_s14 + $0x80] sm:$0x1] }
  0xd3   : > { %8181 = vmatprep.mubr.bf16.mxu0 %v8666_v34  ;;  %v1870_v34 = vrot.slane %v1740_v27, 5  ;;  %v4688_v3 = vrot.slane %v4686_v57, 5  ;;  %v4698_v12 = vrot.slane %v4696_v62, 5  ;;  %v4710_v25 = vshll.u32 %v7177_v18, 16  ;;  %v7181_v52 = vld [vmem:[%s9040_s14 + $0x38] sm:$0x1] }
  0xd4   : > { %7970 = vmatmul.mubr.bf16.vlgmr.msra.gmra.mrb[0].mxu1 %v6814_v49  ;;  %v1864_v50 = vsel %vm9163_vm5, %v1862_v28, %v1863_v23  ;;  %v6789_v49 = vrot.slane %v1741_v39, 9  ;;  %v4714_v26 = vshrl.u32 %v7177_v18, 16  ;;  %v1748_v39 = vld [vmem:[%s9040_s14 + $0x7c] sm:$0xf]  ;;  %v1750_v58 = vld [vmem:[%s9040_s14 + $0x84] sm:$0xe] }
  0xd5   : > { %8002 = vmatpush3.bf16.msra.mxu1 %v9409_v59  ;;  %7973 = vmatprep.mubr.bf16.mxu1 %v6815_v55  ;;  %v1847_v59 = vsel %vm9163_vm5, %v6785_v60, %v1846_v61  ;;  %v6819_v46 = vcombine.low %v1861_v35, %v1864_v50  ;;  %v9598_v47 = vsel %vm9163_vm5, %v1869_v37, %v1870_v34  ;;  %v1877_v55 = vrot.slane %v1743_v43, 5  ;;  %v1747_v35 = vld [vmem:[%s9040_s14 + $0x78] sm:$0xe] }
  0xd6   : > { %8003 = vmatprep.subr.bf16.mxu1 %v8667_v54  ;;  %v6817_v21 = vcombine.low %v1847_v59, %v1850_v9  ;;  %v4679_v60 = vrot.slane %v4677_v53, 4  ;;  %v4690_v61 = vshrl.u32 %v7174_v51, 16  ;;  %v6820_v6 = vcombine.low %v9592_v42, %v9598_v47  ;;  %v8682_v9 = vld [vmem:[%s10458_s1 + $0xf0] sm:$0xff]   ;;  %v8684_v42 = vld [vmem:[%s10458_s1 + $0xf8] sm:$0xff]  }
  0xd7   : > { %v1875_v7 = vsel %vm9163_vm5, %v6789_v49, %v1874_v44  ;;  %v1884_v59 = vrot.slane %v1746_v4, 5  ;;  %v4712_v32 = vrot.slane %v4710_v25, 5  ;;  %v4716_v33 = vrot.slane %v4714_v26, 4  ;;  %v7179_v47 = vld [vmem:[%s9040_s14 + $0x30] sm:$0xf] }
  0xd8   : > { %v4683_v11 = vor.u32 %v4682_v2, %v4679_v60  ;;  %v4720_v34 = vshll.u32 %v7178_v19, 16  ;;  %v1891_v51 = vrot.slane %v1749_v40, 5  ;;  %v4725_v53 = vshrl.u32 %v7179_v47, 16 }
  0xd9   : > { %8004 = vmatpush3.bf16.msra.mxu1 %v8667_v54  ;;  %v8680_v54 = vld [vmem:[%s10458_s1 + $0xe8] sm:$0xff]  }
  0xda   : > { %8182 = vmatmul.mubr.bf16.gmra.mrb[20].mxu0 %v8668_v15  ;;  %8005 = vmatprep.subr.bf16.mxu1 %v8671_v8  ;;  %v1876_v15 = vrot.slane %v1874_v44, 4  ;;  %v4684_v22 = vrot.slane %v4683_v11, 4  ;;  %v4717_v44 = vor.u32 %v4716_v33, %v4712_v32  ;;  %v4722_v45 = vrot.slane %v4720_v34, 5  ;;  %v7182_v11 = vld [vmem:[%s9040_s14 + $0x3c] sm:$0xf] }
  0xdb   : > { %8185 = vmatprep.mubr.bf16.mxu0 %v8670_v63  ;;  %v1745_v63 = vld [vmem:[%s9040_s14 + $0x70] sm:$0xf] }
  0xdc   : > { %7974 = vmatmul.mubr.bf16.gmra.mrb[4].mxu1 %v6816_v13  ;;  %v1881_v5 = vrot.slane %v1745_v63, 5  ;;  %v1878_v10 = vsel %vm9163_vm5, %v1876_v15, %v1877_v55  ;;  %v4689_v31 = vsel %vm9063_vm2, %v4684_v22, %v4688_v3  ;;  %v4718_v15 = vrot.slane %v4717_v44, 4  ;;  %v8685_v44 = vld [vmem:[%s10458_s1 + $0x218] sm:$0xff]  }
  0xdd   : > { %7977 = vmatprep.mubr.bf16.mxu1 %v6817_v21  ;;  %8006 = vmatpush3.bf16.msra.mxu1 %v8671_v8  ;;  %v4692_v8 = vrot.slane %v4690_v61, 4  ;;  %v4704_v21 = vshll.u32 %v7176_v14, 16  ;;  %v6821_v27 = vcombine.low %v1875_v7, %v1878_v10  ;;  %v4727_v61 = vrot.slane %v4725_v53, 4 }
  0xde   : > { %8007 = vmatprep.subr.bf16.mxu1 %v8675_v20  ;;  %v1883_v13 = vrot.slane %v1881_v5, 4  ;;  %v9621_v17 = vsel %vm9163_vm5, %v6790_v0, %v1881_v5  ;;  %v1751_v0 = vld [vmem:[%s9040_s14 + $0x88] sm:$0xf]  ;;  %v4723_v2 = vsel %vm9063_vm2, %v4718_v15, %v4722_v45  ;;  %v4744_v5 = vshll.u32 %v7181_v52, 16 }
  0xdf   : > { %v4706_v30 = vrot.slane %v4704_v21, 5  ;;  %v4749_v21 = vshrl.u32 %v7182_v11, 16  ;;  %v4752_v22 = vshll.u32 %v7182_v11, 16 }
  0xe0   : > { %v9627_v23 = vsel %vm9163_vm5, %v1883_v13, %v1884_v59  ;;  %v6792_v13 = vrot.slane %v1750_v58, 9 }
  0xe1   : > { %8008 = vmatpush3.bf16.msra.mxu1 %v8675_v20  ;;  %v4701_v20 = vshrl.u32 %v7176_v14, 16  ;;  %v6822_v37 = vcombine.low %v9621_v17, %v9627_v23  ;;  %v1895_v14 = vrot.slane %v1751_v0, 5  ;;  %v7183_v17 = vld [vmem:[%s9040_s14 + $0x40] sm:$0xf] }
  0xe2   : > { %8186 = vmatmul.mubr.bf16.gmra.mrb[24].mxu0 %v8672_v16  ;;  %8009 = vmatprep.subr.bf16.mxu1 %v8678_v38  ;;  %v4693_v16 = vor.u32 %v4692_v8, %v4688_v3  ;;  %v4758_v26 = vshll.u32 %v7183_v17, 16 }
  0xe3   : > { %8189 = vmatprep.mubr.bf16.mxu0 %v8674_v29  ;;  %v4703_v29 = vrot.slane %v4701_v20, 4  ;;  %v7184_v20 = vld [vmem:[%s9040_s14 + $0x44] sm:$0x1]  ;;  %v1896_v23 = vsel %vm9163_vm5, %v6792_v13, %v1895_v14  ;;  %v1897_v25 = vrot.slane %v1895_v14, 4 }
  0xe4   : > { %7978 = vmatmul.mubr.bf16.gmra.mrb[8].mxu1 %v6818_v41  ;;  %v4694_v28 = vrot.slane %v4693_v16, 4  ;;  %v6791_v41 = vrot.slane %v1747_v35, 9  ;;  %v4760_v34 = vrot.slane %v4758_v26, 5  ;;  %v8688_v13 = vld [vmem:[%s10458_s1 + $0x220] sm:$0xff]  }
  0xe5   : > { %7981 = vmatprep.mubr.bf16.mxu1 %v6819_v46  ;;  %8010 = vmatpush3.bf16.msra.mxu1 %v8678_v38  ;;  %v4707_v38 = vor.u32 %v4706_v30, %v4703_v29  ;;  %v1888_v46 = vrot.slane %v1748_v39, 5  ;;  %v4751_v30 = vrot.slane %v4749_v21, 4 }
  0xe6   : > { %8011 = vmatprep.subr.bf16.mxu1 %v8680_v54  ;;  %v4699_v50 = vsel %vm9063_vm2, %v4694_v28, %v4698_v12  ;;  %v4746_v12 = vrot.slane %v4744_v5, 5  ;;  %v9667_v28 = vld [vmem:[%s10458_s1 + $0x100] sm:$0xff]  }
  0xe7   : > { %v7237_v43 = vcombine.low %v4689_v31, %v4699_v50  ;;  %v4708_v49 = vrot.slane %v4707_v38, 4  ;;  %v1889_v55 = vsel %vm9163_vm5, %v6791_v41, %v1888_v46  ;;  %v1890_v56 = vrot.slane %v1888_v46, 4  ;;  %v1754_v41 = vld [vmem:[%s9040_s14 + $0x94] sm:$0xf] }
  0xe8   : > { %v4754_v31 = vrot.slane %v4752_v22, 5  ;;  %v4768_v50 = vshll.u32 %v7184_v20, 16  ;;  %v7190_v22 = vld [vmem:[%s9040_s14 + $0x5c] sm:$0x1] }
  0xe9   : > { %8012 = vmatpush3.bf16.msra.mxu1 %v8680_v54  ;;  %v4728_v54 = vshll.u32 %v7179_v47, 16  ;;  %v4713_v60 = vsel %vm9063_vm2, %v4708_v49, %v4712_v32  ;;  %v1892_v3 = vsel %vm9163_vm5, %v1890_v56, %v1891_v51  ;;  %v8683_v32 = vld [vmem:[%s10458_s1 + $0x210] sm:$0xff]   ;;  %v7185_v49 = vld [vmem:[%s9040_s14 + $0x48] sm:$0xf]  ;;  %v7186_v51 = vld [vmem:[%s9040_s14 + $0x4c] sm:$0xf] }
  0xea   : > { %8190 = vmatmul.mubr.bf16.gmra.mrb[28].mxu0 %v8676_v48  ;;  %8013 = vmatprep.subr.bf16.mxu1 %v8682_v9  ;;  %v7180_v48 = vld [vmem:[%s9040_s14 + $0x34] sm:$0xf]  ;;  %v7238_v7 = vcombine.low %v4713_v60, %v4723_v2  ;;  %v6823_v8 = vcombine.low %v1889_v55, %v1892_v3  ;;  %v4755_v40 = vor.u32 %v4754_v31, %v4751_v30  ;;  %v4770_v47 = vrot.slane %v4768_v50, 5  ;;  %v1757_v3 = vld [vmem:[%s9040_s14 + $0xa0] sm:$0xf] }
  0xeb   : > { %8209 = vmatprep.mubr.bf16.mxu0 %v7237_v43  ;;  %v4734_v57 = vshll.u32 %v7180_v48, 16  ;;  %v4730_v62 = vrot.slane %v4728_v54, 5  ;;  %v4738_v63 = vshrl.u32 %v7180_v48, 16  ;;  %v1902_v48 = vrot.slane %v1754_v41, 5  ;;  %v7187_v54 = vld [vmem:[%s9040_s14 + $0x50] sm:$0x1] }
  0xec   : > { %7982 = vmatmul.mubr.bf16.gmra.mrb[12].mxu1 %v6820_v6  ;;  %v1752_v6 = vld [vmem:[%s9040_s14 + $0x8c] sm:$0x1]  ;;  %v4756_v52 = vrot.slane %v4755_v40, 4  ;;  %v4773_v15 = vshrl.u32 %v7185_v49, 16  ;;  %v4776_v55 = vshll.u32 %v7185_v49, 16  ;;  %v4782_v60 = vshll.u32 %v7186_v51, 16 }
  0xed   : > { %7985 = vmatprep.mubr.bf16.mxu1 %v6821_v27  ;;  %8014 = vmatpush3.bf16.msra.mxu1 %v8682_v9  ;;  %v4736_v4 = vrot.slane %v4734_v57, 5  ;;  %v4731_v59 = vor.u32 %v4730_v62, %v4727_v61  ;;  %v4740_v10 = vrot.slane %v4738_v63, 4  ;;  %v8681_v9 = vld [vmem:[%s10458_s1 + $0x208] sm:$0xff]   ;;  %v1898_v16 = vrot.slane %v1752_v6, 5  ;;  %v1756_v61 = vld [vmem:[%s9040_s14 + $0x9c] sm:$0xe] }
  0xee   : > { %8015 = vmatprep.subr.bf16.mxu1 %v8684_v42  ;;  %v4762_v27 = vshrl.u32 %v7183_v17, 16  ;;  %v1904_v58 = vrot.slane %v1902_v48, 4  ;;  %v4761_v62 = vsel %vm9063_vm2, %v4756_v52, %v4760_v34  ;;  %v4775_v63 = vrot.slane %v4773_v15, 4  ;;  %v7191_v52 = vld [vmem:[%s9040_s14 + $0x60] sm:$0xf] }
  0xef   : > { %v4732_v18 = vrot.slane %v4731_v59, 4  ;;  %v4741_v19 = vor.u32 %v4740_v10, %v4736_v4  ;;  %v1899_v33 = vsel %vm9163_vm5, %v1897_v25, %v1898_v16  ;;  %v4778_v0 = vrot.slane %v4776_v55, 5  ;;  %v7193_v55 = vld [vmem:[%s9040_s14 + $0x68] sm:$0x1] }
  0xf0   : > { %v4764_v35 = vrot.slane %v4762_v27, 4  ;;  %v6824_v39 = vcombine.low %v1896_v23, %v1899_v33  ;;  %v4786_v2 = vshrl.u32 %v7186_v51, 16  ;;  %v4784_v6 = vrot.slane %v4782_v60, 5 }
  0xf1   : > { %8016 = vmatpush3.bf16.msra.mxu1 %v8684_v42  ;;  %v4737_v29 = vsel %vm9063_vm2, %v4732_v18, %v4736_v4  ;;  %v1755_v42 = vld [vmem:[%s9040_s14 + $0x98] sm:$0x1]  ;;  %v4779_v11 = vor.u32 %v4778_v0, %v4775_v63  ;;  %v6794_v16 = vrot.slane %v1756_v61, 9  ;;  %v1909_v17 = vrot.slane %v1757_v3, 5  ;;  %v1762_v63 = vld [vmem:[%s9040_s14 + $0xb4] sm:$0xe] }
  0xf2   : > { %8210 = vmatmul.mubr.bf16.vlgmr.msra.gmra.mrb[0].mxu0 %v7238_v7  ;;  %8289 = vmatprep.subr.bf16.mxu1 %v9667_v28  ;;  %v4765_v46 = vor.u32 %v4764_v35, %v4760_v34  ;;  %v1905_v53 = vrot.slane %v1755_v42, 5  ;;  %v4792_v7 = vshll.u32 %v7187_v54, 16  ;;  %v8691_v34 = vld [vmem:[%s10458_s1 + $0x228] sm:$0xff]  }
  0xf3   : > { %8242 = vmatpush3.bf16.msra.mxu0 %v9519_v24  ;;  %v4742_v24 = vrot.slane %v4741_v19, 4  ;;  %v7189_v19 = vld [vmem:[%s9040_s14 + $0x58] sm:$0xf]  ;;  %v4780_v20 = vrot.slane %v4779_v11, 4  ;;  %v1910_v26 = vsel %vm9163_vm5, %v6794_v16, %v1909_v17  ;;  %v1911_v27 = vrot.slane %v1909_v17, 4 }
  0xf4   : > { %7986 = vmatmul.mubr.bf16.gmra.mrb[16].mxu1 %v6822_v37  ;;  %8243 = vmatprep.subr.bf16.mxu0 %v8681_v9  ;;  %v1753_v37 = vld [vmem:[%s9040_s14 + $0x90] sm:$0xe]  ;;  %v4766_v56 = vrot.slane %v4765_v46, 4  ;;  %v1906_v5 = vsel %vm9163_vm5, %v1904_v58, %v1905_v53  ;;  %v4794_v14 = vrot.slane %v4792_v7, 5  ;;  %v7192_v53 = vld [vmem:[%s9040_s14 + $0x64] sm:$0xf] }
  0xf5   : > { %7989 = vmatprep.mubr.bf16.mxu1 %v6823_v8  ;;  %v4747_v38 = vsel %vm9063_vm2, %v4742_v24, %v4746_v12  ;;  %v6793_v43 = vrot.slane %v1753_v37, 9  ;;  %v1758_v8 = vld [vmem:[%s9040_s14 + $0xa4] sm:$0x1]  ;;  %v7188_v12 = vld [vmem:[%s9040_s14 + $0x54] sm:$0xf]  ;;  %v4810_v24 = vshrl.u32 %v7189_v19, 16  ;;  %v4785_v30 = vsel %vm9063_vm2, %v4780_v20, %v4784_v6 }
  0xf6   : > { %v7239_v45 = vcombine.low %v4737_v29, %v4747_v38  ;;  %v4771_v4 = vsel %vm9063_vm2, %v4766_v56, %v4770_v47  ;;  %v1912_v18 = vrot.slane %v1758_v8, 5  ;;  %v4797_v23 = vshrl.u32 %v7188_v12, 16  ;;  %v8694_v46 = vld [vmem:[%s10458_s1 + $0x230] sm:$0xff]   ;;  %v8697_v16 = vld [vmem:[%s10458_s1 + $0x238] sm:$0xff]  }
  0xf7   : > { %8244 = vmatpush3.bf16.msra.mxu0 %v8681_v9  ;;  %v1903_v57 = vsel %vm9163_vm5, %v6793_v43, %v1902_v48  ;;  %v7240_v59 = vcombine.low %v4761_v62, %v4771_v4  ;;  %v4788_v9 = vrot.slane %v4786_v2, 4  ;;  %v4800_v25 = vshll.u32 %v7188_v12, 16  ;;  %v1760_v43 = vld [vmem:[%s9040_s14 + $0xac] sm:$0xf] }
  0xf8   : > { %8245 = vmatprep.subr.bf16.mxu0 %v8683_v32  ;;  %8213 = vmatprep.mubr.bf16.mxu0 %v7239_v45  ;;  %v6825_v10 = vcombine.low %v1903_v57, %v1906_v5  ;;  %v4806_v29 = vshll.u32 %v7189_v19, 16  ;;  %v1913_v35 = vsel %vm9163_vm5, %v1911_v27, %v1912_v18  ;;  %v4812_v37 = vrot.slane %v4810_v24, 4  ;;  %v1763_v5 = vld [vmem:[%s9040_s14 + $0xb8] sm:$0xf] }
  0xf9   : > { %v4789_v21 = vor.u32 %v4788_v9, %v4784_v6  ;;  %v4802_v33 = vrot.slane %v4800_v25, 5  ;;  %v4816_v38 = vshll.u32 %v7190_v22, 16  ;;  %v6826_v41 = vcombine.low %v1910_v26, %v1913_v35  ;;  %v7196_v25 = vld [vmem:[%s9040_s14 + $0x74] sm:$0x1] }
  0xfa   : > { %8214 = vmatmul.mubr.bf16.gmra.mrb[4].mxu0 %v7240_v59  ;;  %v4808_v50 = vrot.slane %v4806_v29, 5  ;;  %v1916_v51 = vrot.slane %v1760_v43, 5  ;;  %v4821_v56 = vshrl.u32 %v7191_v52, 16  ;;  %v4824_v57 = vshll.u32 %v7191_v52, 16 }
  0xfb   : > { %8246 = vmatpush3.bf16.msra.mxu0 %v8683_v32  ;;  %v4790_v31 = vrot.slane %v4789_v21, 4  ;;  %v4799_v32 = vrot.slane %v4797_v23, 4  ;;  %v4818_v49 = vrot.slane %v4816_v38, 5  ;;  %v4830_v62 = vshll.u32 %v7192_v53, 16  ;;  %v7195_v21 = vld [vmem:[%s9040_s14 + $0x70] sm:$0xf] }
  0xfc   : > { %7990 = vmatmul.mubr.bf16.gmra.mrb[20].mxu1 %v6824_v39  ;;  %8247 = vmatprep.subr.bf16.mxu0 %v8685_v44  ;;  %v1759_v39 = vld [vmem:[%s9040_s14 + $0xa8] sm:$0xe]  ;;  %v4813_v48 = vor.u32 %v4812_v37, %v4808_v50  ;;  %v1918_v61 = vrot.slane %v1916_v51, 4  ;;  %v4823_v2 = vrot.slane %v4821_v56, 4  ;;  %v4826_v3 = vrot.slane %v4824_v57, 5 }
  0xfd   : > { %7993 = vmatprep.mubr.bf16.mxu1 %v6825_v10  ;;  %v4795_v40 = vsel %vm9063_vm2, %v4790_v31, %v4794_v14  ;;  %v4803_v42 = vor.u32 %v4802_v33, %v4799_v32  ;;  %v6795_v45 = vrot.slane %v1759_v39, 9  ;;  %v4834_v4 = vshrl.u32 %v7192_v53, 16  ;;  %v1764_v10 = vld [vmem:[%s9040_s14 + $0xbc] sm:$0x1]  ;;  %v7194_v14 = vld [vmem:[%s9040_s14 + $0x6c] sm:$0xf] }
  0xfe   : > { %v7241_v47 = vcombine.low %v4785_v30, %v4795_v40  ;;  %v4814_v58 = vrot.slane %v4813_v48, 4  ;;  %v4832_v8 = vrot.slane %v4830_v62, 5  ;;  %v4840_v59 = vshll.u32 %v7193_v55, 16  ;;  %v8686_v40 = vld [vmem:[%s9040_s14 + $0xc] sm:$0xff]  }
  0xff   : > { %8248 = vmatpush3.bf16.msra.mxu0 %v8685_v44  ;;  %v1761_v44 = vld [vmem:[%s9040_s14 + $0xb0] sm:$0x1]  ;;  %v4804_v54 = vrot.slane %v4803_v42, 4  ;;  %v1917_v60 = vsel %vm9163_vm5, %v6795_v45, %v1916_v51  ;;  %v4827_v12 = vor.u32 %v4826_v3, %v4823_v2  ;;  %v6796_v18 = vrot.slane %v1762_v63, 9  ;;  %v7198_v45 = vld [vmem:[%s9040_s14 + $0x7c] sm:$0xf] }
 0x100   : > { %8249 = vmatprep.subr.bf16.mxu0 %v8688_v13  ;;  %v1919_v15 = vrot.slane %v1761_v44, 5  ;;  %8217 = vmatprep.mubr.bf16.mxu0 %v7241_v47  ;;  %v4819_v6 = vsel %vm9063_vm2, %v4814_v58, %v4818_v49  ;;  %v4842_v17 = vrot.slane %v4840_v59, 5  ;;  %v1923_v19 = vrot.slane %v1763_v5, 5  ;;  %v7197_v44 = vld [vmem:[%s9040_s14 + $0x78] sm:$0xf] }
 0x101   : > { %v4809_v0 = vsel %vm9063_vm2, %v4804_v54, %v4808_v50  ;;  %v1926_v20 = vrot.slane %v1764_v10, 5  ;;  %v4828_v22 = vrot.slane %v4827_v12, 4  ;;  %v4845_v26 = vshrl.u32 %v7194_v14, 16  ;;  %v7199_v49 = vld [vmem:[%s9040_s14 + $0x80] sm:$0x1] }
 0x102   : > { %v1920_v7 = vsel %vm9163_vm5, %v1918_v61, %v1919_v15  ;;  %v7242_v11 = vcombine.low %v4809_v0, %v4819_v6  ;;  %v4848_v27 = vshll.u32 %v7194_v14, 16  ;;  %v1924_v29 = vsel %vm9163_vm5, %v6796_v18, %v1923_v19  ;;  %v7200_v58 = vld [vmem:[%s9040_s14 + $0x84] sm:$0xf]  ;;  %v7201_v0 = vld [vmem:[%s9040_s14 + $0x88] sm:$0xf] }
 0x103   : > { %8250 = vmatpush3.bf16.msra.mxu0 %v8688_v13  ;;  %v6827_v9 = vcombine.low %v1917_v60, %v1920_v7  ;;  %v4836_v13 = vrot.slane %v4834_v4, 4  ;;  %v1925_v24 = vrot.slane %v1923_v19, 4  ;;  %v4854_v30 = vshll.u32 %v7195_v21, 16  ;;  %v8687_v4 = vld [vmem:[%s9040_s14 + $0x18] sm:$0xff]   ;;  %v7202_v5 = vld [vmem:[%s9040_s14 + $0x8c] sm:$0x1] }
 0x104   : > { %7994 = vmatmul.mubr.bf16.gmra.mrb[24].mxu1 %v6826_v41  ;;  %8251 = vmatprep.subr.bf16.mxu0 %v8691_v34  ;;  %v4858_v31 = vshrl.u32 %v7195_v21, 16  ;;  %v4833_v32 = vsel %vm9063_vm2, %v4828_v22, %v4832_v8  ;;  %v4850_v35 = vrot.slane %v4848_v27, 5  ;;  %v4864_v39 = vshll.u32 %v7196_v25, 16  ;;  %v7204_v25 = vld [vmem:[%s9040_s14 + $0x94] sm:$0xf] }
 0x105   : > { %8218 = vmatmul.mubr.bf16.gmra.mrb[8].mxu0 %v7242_v11  ;;  %7997 = vmatprep.mubr.bf16.mxu1 %v6827_v9  ;;  %v4837_v23 = vor.u32 %v4836_v13, %v4832_v8  ;;  %v1927_v50 = vsel %vm9163_vm5, %v1925_v24, %v1926_v20  ;;  %v4856_v37 = vrot.slane %v4854_v30, 5  ;;  %v4869_v51 = vshrl.u32 %v7197_v44, 16  ;;  %v8689_v9 = vld [vmem:[%s9040_s14 + $0x24] sm:$0xff]  }
 0x106   : > { %v4860_v38 = vrot.slane %v4858_v31, 4  ;;  %v6828_v42 = vcombine.low %v1924_v29, %v1927_v50  ;;  %v4866_v48 = vrot.slane %v4864_v39, 5  ;;  %v4872_v53 = vshll.u32 %v7197_v44, 16  ;;  %v7205_v29 = vld [vmem:[%s9040_s14 + $0x98] sm:$0x1] }
 0x107   : > { %8252 = vmatpush3.bf16.msra.mxu0 %v8691_v34  ;;  %v4838_v33 = vrot.slane %v4837_v23, 4  ;;  %v4847_v34 = vrot.slane %v4845_v26, 4  ;;  %v4878_v54 = vshll.u32 %v7198_v45, 16  ;;  %v4882_v15 = vshrl.u32 %v7198_v45, 16  ;;  %v7203_v23 = vld [vmem:[%s9040_s14 + $0x90] sm:$0xf] }
 0x108   : > { %8253 = vmatprep.subr.bf16.mxu0 %v8694_v46  ;;  %v4861_v47 = vor.u32 %v4860_v38, %v4856_v37  ;;  %v4871_v56 = vrot.slane %v4869_v51, 4  ;;  %v4888_v57 = vshll.u32 %v7199_v49, 16  ;;  %v4874_v61 = vrot.slane %v4872_v53, 5  ;;  %v7208_v44 = vld [vmem:[%s9040_s14 + $0xa4] sm:$0x1]  ;;  %v8690_v49 = vld [vmem:[%s9040_s14 + $0x30] sm:$0xff]  }
 0x109   : > { %v4843_v41 = vsel %vm9063_vm2, %v4838_v33, %v4842_v17  ;;  %v4851_v43 = vor.u32 %v4850_v35, %v4847_v34  ;;  %v4880_v62 = vrot.slane %v4878_v54, 5  ;;  %v4884_v63 = vrot.slane %v4882_v15, 4  ;;  %v7206_v35 = vld [vmem:[%s9040_s14 + $0x9c] sm:$0xf] }
 0x10a   : > { %v4862_v55 = vrot.slane %v4861_v47, 4  ;;  %v4890_v3 = vrot.slane %v4888_v57, 5  ;;  %v4893_v6 = vshrl.u32 %v7200_v58, 16  ;;  %v4896_v7 = vshll.u32 %v7200_v58, 16 }
 0x10b   : > { %8254 = vmatpush3.bf16.msra.mxu0 %v8694_v46  ;;  %v7243_v46 = vcombine.low %v4833_v32, %v4843_v41  ;;  %v4852_v52 = vrot.slane %v4851_v43, 4  ;;  %v4875_v59 = vor.u32 %v4874_v61, %v4871_v56  ;;  %v4885_v10 = vor.u32 %v4884_v63, %v4880_v62  ;;  %v7207_v41 = vld [vmem:[%s9040_s14 + $0xa0] sm:$0xf]  ;;  %v8836_v61 = vld [vmem:[%s10458_s1 + $0x110] sm:$0xff]  }
 0x10c   : > { %8255 = vmatprep.subr.bf16.mxu0 %v8697_v16  ;;  %7998 = vmatmul.mubr.bf16.gmra.mrb[28].mxu1 %v6828_v42  ;;  %v4867_v2 = vsel %vm9063_vm2, %v4862_v55, %v4866_v48  ;;  %v4902_v11 = vshll.u32 %v7201_v0, 16  ;;  %v4895_v12 = vrot.slane %v4893_v6, 4  ;;  %v4898_v13 = vrot.slane %v4896_v7, 5  ;;  %v8692_v55 = vld [vmem:[%s9040_s14 + $0x3c] sm:$0xff]   ;;  %v7210_v6 = vld [vmem:[%s9040_s14 + $0xac] sm:$0xf] }
 0x10d   : > { %8221 = vmatprep.mubr.bf16.mxu0 %v7243_v46  ;;  %8017 = vmatprep.mubr.bf16.mxu1 %v8686_v40  ;;  %v4857_v60 = vsel %vm9063_vm2, %v4852_v52, %v4856_v37  ;;  %v4906_v14 = vshrl.u32 %v7201_v0, 16  ;;  %v4876_v17 = vrot.slane %v4875_v59, 4  ;;  %v4886_v18 = vrot.slane %v4885_v10, 4  ;;  %v8835_v40 = vld [vmem:[%s10458_s1 + $0x108] sm:$0xff]   ;;  %v7211_v7 = vld [vmem:[%s9040_s14 + $0xb0] sm:$0x1] }
 0x10e   : > { %v7244_v8 = vcombine.low %v4857_v60, %v4867_v2  ;;  %v4904_v19 = vrot.slane %v4902_v11, 5  ;;  %v4899_v20 = vor.u32 %v4898_v13, %v4895_v12  ;;  %v4917_v24 = vshrl.u32 %v7203_v23, 16  ;;  %v7209_v2 = vld [vmem:[%s9040_s14 + $0xa8] sm:$0xf] }
 0x10f   : > { %8256 = vmatpush3.bf16.msra.mxu0 %v8697_v16  ;;  %v4912_v16 = vshll.u32 %v7202_v5, 16  ;;  %v4908_v21 = vrot.slane %v4906_v14, 4  ;;  %v4881_v26 = vsel %vm9063_vm2, %v4876_v17, %v4880_v62  ;;  %v4891_v27 = vsel %vm9063_vm2, %v4886_v18, %v4890_v3  ;;  %v8693_v17 = vld [vmem:[%s9040_s14 + $0x48] sm:$0xff]   ;;  %v8837_v18 = vld [vmem:[%s10458_s1 + $0x118] sm:$0xff]  }
 0x110   : > { %8222 = vmatmul.mubr.bf16.gmra.mrb[12].mxu0 %v7244_v8  ;;  %v4920_v30 = vshll.u32 %v7203_v23, 16  ;;  %v7245_v31 = vcombine.low %v4881_v26, %v4891_v27  ;;  %v4900_v32 = vrot.slane %v4899_v20, 4  ;;  %v4926_v34 = vshll.u32 %v7204_v25, 16  ;;  %v7212_v23 = vld [vmem:[%s9040_s14 + $0xb4] sm:$0xf] }
 0x111   : > { %v4914_v22 = vrot.slane %v4912_v16, 5  ;;  %v4909_v33 = vor.u32 %v4908_v21, %v4904_v19  ;;  %v4919_v50 = vrot.slane %v4917_v24, 4  ;;  %v4930_v38 = vshrl.u32 %v7204_v25, 16  ;;  %v8695_v25 = vld [vmem:[%s9040_s14 + $0x54] sm:$0xff]  }
 0x112   : > { %v4922_v37 = vrot.slane %v4920_v30, 5  ;;  %v4936_v39 = vshll.u32 %v7205_v29, 16  ;;  %8225 = vmatprep.mubr.bf16.mxu0 %v7245_v31  ;;  %v4905_v42 = vsel %vm9063_vm2, %v4900_v32, %v4904_v19  ;;  %v4928_v43 = vrot.slane %v4926_v34, 5  ;;  %v7213_v24 = vld [vmem:[%s9040_s14 + $0xb8] sm:$0xf] }
 0x113   : > { %v4941_v45 = vshrl.u32 %v7206_v35, 16  ;;  %v4932_v47 = vrot.slane %v4930_v38, 4  ;;  %v4944_v51 = vshll.u32 %v7206_v35, 16  ;;  %v4950_v54 = vshll.u32 %v7207_v41, 16  ;;  %v7214_v30 = vld [vmem:[%s9040_s14 + $0xbc] sm:$0x1] }
 0x114   : > { %8018 = vmatmul.mubr.bf16.vlgmr.msra.gmra.mrb[0].mxu1 %v8687_v4  ;;  %v4923_v46 = vor.u32 %v4922_v37, %v4919_v50  ;;  %v4938_v48 = vrot.slane %v4936_v39, 5  ;;  %v4954_v15 = vshrl.u32 %v7207_v41, 16  ;;  %v4960_v0 = vshll.u32 %v7208_v44, 16  ;;  %v8838_v39 = vld [vmem:[%s10458_s1 + $0x120] sm:$0xff]  }
 0x115   : > { %8297 = vmatpush3.bf16.msra.mxu1 %v9667_v28  ;;  %8021 = vmatprep.mubr.bf16.mxu1 %v8689_v9  ;;  %v4910_v28 = vrot.slane %v4909_v33, 4  ;;  %v4943_v53 = vrot.slane %v4941_v45, 4  ;;  %v4933_v58 = vor.u32 %v4932_v47, %v4928_v43  ;;  %v4946_v60 = vrot.slane %v4944_v51, 5  ;;  %v7216_v47 = vld [vmem:[%s9040_s14 + $0xc4] sm:$0xf] }
 0x116   : > { %8290 = vmatprep.subr.bf16.mxu1 %v8835_v40  ;;  %v4924_v57 = vrot.slane %v4923_v46, 4  ;;  %v4952_v62 = vrot.slane %v4950_v54, 5  ;;  %v4956_v63 = vrot.slane %v4954_v15, 4  ;;  %v4965_v8 = vshrl.u32 %v7209_v2, 16 }
 0x117   : > { %v4915_v52 = vsel %vm9063_vm2, %v4910_v28, %v4914_v22  ;;  %v4934_v4 = vrot.slane %v4933_v58, 4  ;;  %v4947_v5 = vor.u32 %v4946_v60, %v4943_v53  ;;  %v4962_v10 = vrot.slane %v4960_v0, 5  ;;  %v7217_v53 = vld [vmem:[%s9040_s14 + $0xc8] sm:$0x1]  ;;  %v8696_v58 = vld [vmem:[%s9040_s14 + $0x60] sm:$0xff]  }
 0x118   : > { %v7246_v56 = vcombine.low %v4905_v42, %v4915_v52  ;;  %v4929_v3 = vsel %vm9063_vm2, %v4924_v57, %v4928_v43  ;;  %v4957_v59 = vor.u32 %v4956_v63, %v4952_v62  ;;  %v4968_v11 = vshll.u32 %v7209_v2, 16  ;;  %v7215_v43 = vld [vmem:[%s9040_s14 + $0xc0] sm:$0xf]  ;;  %v8839_v60 = vld [vmem:[%s10458_s1 + $0x128] sm:$0xff]  }
 0x119   : > { %8298 = vmatpush3.bf16.msra.mxu1 %v8835_v40  ;;  %v4974_v9 = vshll.u32 %v7210_v6, 16  ;;  %v4939_v12 = vsel %vm9063_vm2, %v4934_v4, %v4938_v48  ;;  %v4948_v13 = vrot.slane %v4947_v5, 4  ;;  %v4967_v14 = vrot.slane %v4965_v8, 4  ;;  %v7218_v2 = vld [vmem:[%s9040_s14 + $0xcc] sm:$0xf] }
 0x11a   : > { %8291 = vmatprep.subr.bf16.mxu1 %v8836_v61  ;;  %8226 = vmatmul.mubr.bf16.gmra.mrb[16].mxu0 %v7246_v56  ;;  %v4978_v16 = vshrl.u32 %v7210_v6, 16  ;;  %v7247_v19 = vcombine.low %v4929_v3, %v4939_v12  ;;  %v4958_v20 = vrot.slane %v4957_v59, 4  ;;  %v4970_v21 = vrot.slane %v4968_v11, 5  ;;  %v7219_v3 = vld [vmem:[%s9040_s14 + $0xd0] sm:$0xf] }
 0x11b   : > { %v4976_v22 = vrot.slane %v4974_v9, 5  ;;  %v4953_v26 = vsel %vm9063_vm2, %v4948_v13, %v4952_v62  ;;  %v4984_v29 = vshll.u32 %v7211_v7, 16  ;;  %v4989_v33 = vshrl.u32 %v7212_v23, 16  ;;  %v8698_v4 = vld [vmem:[%s9040_s14 + $0x6c] sm:$0xff]   ;;  %v7220_v8 = vld [vmem:[%s9040_s14 + $0xd4] sm:$0x1] }
 0x11c   : > { %8022 = vmatmul.mubr.bf16.gmra.mrb[4].mxu1 %v8690_v49  ;;  %v4980_v27 = vrot.slane %v4978_v16, 4  ;;  %8229 = vmatprep.mubr.bf16.mxu0 %v7247_v19  ;;  %v4963_v31 = vsel %vm9063_vm2, %v4958_v20, %v4962_v10  ;;  %v4971_v32 = vor.u32 %v4970_v21, %v4967_v14  ;;  %v4992_v34 = vshll.u32 %v7212_v23, 16 }
 0x11d   : > { %8025 = vmatprep.mubr.bf16.mxu1 %v8692_v55  ;;  %8299 = vmatpush3.bf16.msra.mxu1 %v8836_v61  ;;  %v7248_v35 = vcombine.low %v4953_v26, %v4963_v31  ;;  %v4986_v37 = vrot.slane %v4984_v29, 5  ;;  %v4998_v38 = vshll.u32 %v7213_v24, 16  ;;  %v4991_v41 = vrot.slane %v4989_v33, 4  ;;  %v7261_v29 = vld [vmem:[%s9040_s14 + $0x18] sm:$0xe] }
 0x11e   : > { %8292 = vmatprep.subr.bf16.mxu1 %v8837_v18  ;;  %v4981_v50 = vor.u32 %v4980_v27, %v4976_v22  ;;  %v4972_v40 = vrot.slane %v4971_v32, 4  ;;  %v4994_v42 = vrot.slane %v4992_v34, 5  ;;  %v5002_v28 = vshrl.u32 %v7213_v24, 16  ;;  %v7262_v24 = vld [vmem:[%s9040_s14 + $0x1c] sm:$0xf] }
 0x11f   : > { %v5000_v45 = vrot.slane %v4998_v38, 5  ;;  %v5008_v46 = vshll.u32 %v7214_v30, 16  ;;  %v5013_v48 = vshrl.u32 %v7215_v43, 16  ;;  %v5016_v54 = vshll.u32 %v7215_v43, 16  ;;  %v7263_v32 = vld [vmem:[%s9040_s14 + $0x20] sm:$0x1] }
 0x120   : > { %v4982_v44 = vrot.slane %v4981_v50, 4  ;;  %v4977_v49 = vsel %vm9063_vm2, %v4972_v40, %v4976_v22  ;;  %v4995_v51 = vor.u32 %v4994_v42, %v4991_v41  ;;  %v5004_v52 = vrot.slane %v5002_v28, 4  ;;  %v8699_v38 = vld [vmem:[%s9040_s14 + $0x78] sm:$0xff]   ;;  %v7264_v28 = vld [vmem:[%s9040_s14 + $0x24] sm:$0xe] }
 0x121   : > { %8300 = vmatpush3.bf16.msra.mxu1 %v8837_v18  ;;  %v5010_v55 = vrot.slane %v5008_v46, 5  ;;  %v5015_v56 = vrot.slane %v5013_v48, 4  ;;  %v5022_v57 = vshll.u32 %v7216_v47, 16  ;;  %v5018_v0 = vrot.slane %v5016_v54, 5  ;;  %v8840_v18 = vld [vmem:[%s10458_s1 + $0x130] sm:$0xff]   ;;  %v8700_v48 = vld [vmem:[%s9040_s14 + $0x84] sm:$0xff]  }
 0x122   : > { %8293 = vmatprep.subr.bf16.mxu1 %v8838_v39  ;;  %8230 = vmatmul.mubr.bf16.gmra.mrb[20].mxu0 %v7248_v35  ;;  %v4987_v15 = vsel %vm9063_vm2, %v4982_v44, %v4986_v37  ;;  %v4996_v62 = vrot.slane %v4995_v51, 4  ;;  %v5005_v63 = vor.u32 %v5004_v52, %v5000_v45  ;;  %v5026_v6 = vshrl.u32 %v7216_v47, 16  ;;  %v7265_v43 = vld [vmem:[%s9040_s14 + $0x28] sm:$0xf]  ;;  %v7266_v47 = vld [vmem:[%s9040_s14 + $0x2c] sm:$0x1] }
 0x123   : > { %v7249_v61 = vcombine.low %v4977_v49, %v4987_v15  ;;  %v5024_v5 = vrot.slane %v5022_v57, 5  ;;  %v5032_v7 = vshll.u32 %v7217_v53, 16  ;;  %v5037_v59 = vshrl.u32 %v7218_v2, 16  ;;  %v7267_v54 = vld [vmem:[%s9040_s14 + $0x30] sm:$0xe] }
 0x124   : > { %8026 = vmatmul.mubr.bf16.gmra.mrb[8].mxu1 %v8693_v17  ;;  %v5001_v10 = vsel %vm9063_vm2, %v4996_v62, %v5000_v45  ;;  %v5006_v11 = vrot.slane %v5005_v63, 4  ;;  %v5019_v9 = vor.u32 %v5018_v0, %v5015_v56  ;;  %v5040_v12 = vshll.u32 %v7218_v2, 16  ;;  %v7268_v57 = vld [vmem:[%s9040_s14 + $0x34] sm:$0xf] }
 0x125   : > { %8029 = vmatprep.mubr.bf16.mxu1 %v8695_v25  ;;  %8301 = vmatpush3.bf16.msra.mxu1 %v8838_v39  ;;  %v5028_v13 = vrot.slane %v5026_v6, 4  ;;  %v5034_v14 = vrot.slane %v5032_v7, 5  ;;  %v5039_v16 = vrot.slane %v5037_v59, 4  ;;  %v5046_v17 = vshll.u32 %v7219_v3, 16  ;;  %v8841_v39 = vld [vmem:[%s10458_s1 + $0x138] sm:$0xff]  }
 0x126   : > { %8294 = vmatprep.subr.bf16.mxu1 %v8839_v60  ;;  %8233 = vmatprep.mubr.bf16.mxu0 %v7249_v61  ;;  %v5011_v19 = vsel %vm9063_vm2, %v5006_v11, %v5010_v55  ;;  %v5020_v20 = vrot.slane %v5019_v9, 4  ;;  %v5042_v21 = vrot.slane %v5040_v12, 5  ;;  %v5050_v22 = vshrl.u32 %v7219_v3, 16  ;;  %v7272_v6 = vld [vmem:[%s9040_s14 + $0x44] sm:$0x1] }
 0x127   : > { %v7250_v23 = vcombine.low %v5001_v10, %v5011_v19  ;;  %v5029_v25 = vor.u32 %v5028_v13, %v5024_v5  ;;  %v5048_v26 = vrot.slane %v5046_v17, 5  ;;  %v5056_v27 = vshll.u32 %v7220_v8, 16  ;;  %v8701_v10 = vld [vmem:[%s9040_s14 + $0x90] sm:$0xff]   ;;  %v7273_v9 = vld [vmem:[%s9040_s14 + $0x48] sm:$0xe] }
 0x128   : > { %v5043_v30 = vor.u32 %v5042_v21, %v5039_v16  ;;  %v5052_v31 = vrot.slane %v5050_v22, 4  ;;  %v7309_v33 = vrot.slane %v7261_v29, 9  ;;  %v5025_v34 = vsel %vm9063_vm2, %v5020_v20, %v5024_v5  ;;  %v7271_v5 = vld [vmem:[%s9040_s14 + $0x40] sm:$0xf]  ;;  %v7274_v17 = vld [vmem:[%s9040_s14 + $0x4c] sm:$0xf] }
 0x129   : > { %8302 = vmatpush3.bf16.msra.mxu1 %v8839_v60  ;;  %v5030_v35 = vrot.slane %v5029_v25, 4  ;;  %v5544_v50 = vrot.slane %v7262_v24, 5  ;;  %v5547_v37 = vrot.slane %v7263_v32, 5  ;;  %v5058_v42 = vrot.slane %v5056_v27, 5  ;;  %v8702_v16 = vld [vmem:[%s9040_s14 + $0x9c] sm:$0xff]  }
 0x12a   : > { %8295 = vmatprep.subr.bf16.mxu1 %v8840_v18  ;;  %8234 = vmatmul.mubr.bf16.gmra.mrb[24].mxu0 %v7250_v23  ;;  %v5044_v40 = vrot.slane %v5043_v30, 4  ;;  %v5053_v41 = vor.u32 %v5052_v31, %v5048_v26  ;;  %v5551_v53 = vrot.slane %v7265_v43, 5  ;;  %v7310_v55 = vrot.slane %v7264_v28, 9  ;;  %v7276_v25 = vld [vmem:[%s9040_s14 + $0x54] sm:$0xe] }
 0x12b   : > { %v5035_v44 = vsel %vm9063_vm2, %v5030_v35, %v5034_v14  ;;  %v5545_v45 = vsel %vm9163_vm5, %v7309_v33, %v5544_v50  ;;  %v5546_v46 = vrot.slane %v5544_v50, 4  ;;  %v5554_v56 = vrot.slane %v7266_v47, 5  ;;  %v7278_v27 = vld [vmem:[%s9040_s14 + $0x5c] sm:$0x1]  ;;  %v7279_v50 = vld [vmem:[%s9040_s14 + $0x60] sm:$0xe] }
 0x12c   : > { %8030 = vmatmul.mubr.bf16.gmra.mrb[12].mxu1 %v8696_v58  ;;  %v7251_v49 = vcombine.low %v5025_v34, %v5035_v44  ;;  %v5049_v51 = vsel %vm9063_vm2, %v5044_v40, %v5048_v26  ;;  %v5054_v52 = vrot.slane %v5053_v41, 4  ;;  %v7269_v58 = vld [vmem:[%s9040_s14 + $0x38] sm:$0x1]  ;;  %v5553_v62 = vrot.slane %v5551_v53, 4  ;;  %v7281_v40 = vld [vmem:[%s9040_s14 + $0x68] sm:$0x1] }
 0x12d   : > { %8033 = vmatprep.mubr.bf16.mxu1 %v8698_v4  ;;  %8303 = vmatpush3.bf16.msra.mxu1 %v8840_v18  ;;  %v5548_v15 = vsel %vm9163_vm5, %v5546_v46, %v5547_v37  ;;  %v7311_v63 = vrot.slane %v7267_v54, 9  ;;  %v5558_v2 = vrot.slane %v7268_v57, 5  ;;  %v5561_v3 = vrot.slane %v7269_v58, 5  ;;  %v7270_v4 = vld [vmem:[%s9040_s14 + $0x3c] sm:$0xe]  ;;  %v8703_v47 = vld [vmem:[%s9040_s14 + $0xa8] sm:$0xff]  }
 0x12e   : > { %8296 = vmatprep.subr.bf16.mxu1 %v8841_v39  ;;  %8237 = vmatprep.mubr.bf16.mxu0 %v7251_v49  ;;  %v5059_v60 = vsel %vm9063_vm2, %v5054_v52, %v5058_v42  ;;  %v7341_v61 = vcombine.low %v5545_v45, %v5548_v15  ;;  %v7312_v7 = vrot.slane %v7270_v4, 9  ;;  %v5565_v8 = vrot.slane %v7271_v5, 5  ;;  %v7275_v18 = vld [vmem:[%s9040_s14 + $0x50] sm:$0x1]  ;;  %v7277_v26 = vld [vmem:[%s9040_s14 + $0x58] sm:$0xf] }
 0x12f   : > { %v7252_v0 = vcombine.low %v5049_v51, %v5059_v60  ;;  %v5560_v59 = vrot.slane %v5558_v2, 4  ;;  %v5568_v11 = vrot.slane %v7272_v6, 5  ;;  %v5552_v12 = vsel %vm9163_vm5, %v7310_v55, %v5551_v53  ;;  %v7280_v37 = vld [vmem:[%s9040_s14 + $0x64] sm:$0xf]  ;;  %v7282_v45 = vld [vmem:[%s9040_s14 + $0x6c] sm:$0xe] }
 0x130   : > { %v5555_v13 = vsel %vm9163_vm5, %v5553_v62, %v5554_v56  ;;  %v5567_v14 = vrot.slane %v5565_v8, 4  ;;  %v7313_v19 = vrot.slane %v7273_v9, 9  ;;  %v5559_v20 = vsel %vm9163_vm5, %v7311_v63, %v5558_v2  ;;  %v7283_v51 = vld [vmem:[%s9040_s14 + $0x70] sm:$0xf]  ;;  %v7284_v52 = vld [vmem:[%s9040_s14 + $0x74] sm:$0x1] }
 0x131   : > { %8304 = vmatpush3.bf16.msra.mxu1 %v8841_v39  ;;  %v5562_v21 = vsel %vm9163_vm5, %v5560_v59, %v5561_v3  ;;  %v5572_v22 = vrot.slane %v7274_v17, 5  ;;  %v5575_v23 = vrot.slane %v7275_v18, 5  ;;  %v7342_v29 = vcombine.low %v5552_v12, %v5555_v13  ;;  %v8704_v55 = vld [vmem:[%s9040_s14 + $0xb4] sm:$0xff]   ;;  %v6933_v58 = vld [vmem:[%s9040_s14 + $0x6c] sm:$0xf] }
 0x132   : > { %8238 = vmatmul.mubr.bf16.gmra.mrb[28].mxu0 %v7252_v0  ;;  %v9877_v24 = vsel %vm9163_vm5, %v7312_v7, %v5565_v8  ;;  %v7314_v31 = vrot.slane %v7276_v25, 9  ;;  %v7343_v32 = vcombine.low %v5559_v20, %v5562_v21  ;;  %v9881_v33 = vsel %vm9163_vm5, %v5567_v14, %v5568_v11  ;;  %v6934_v60 = vld [vmem:[%s9040_s14 + $0x70] sm:$0xf]  ;;  %v6935_v63 = vld [vmem:[%s9040_s14 + $0x74] sm:$0x1] }
 0x133   : > { %8257 = vmatprep.mubr.bf16.mxu0 %v7341_v61  ;;  %v5574_v30 = vrot.slane %v5572_v22, 4  ;;  %v5579_v34 = vrot.slane %v7277_v26, 5  ;;  %v5582_v35 = vrot.slane %v7278_v27, 5  ;;  %v7315_v41 = vrot.slane %v7279_v50, 9  ;;  %v7285_v3 = vld [vmem:[%s9040_s14 + $0x78] sm:$0xe] }
 0x134   : > { %8034 = vmatmul.mubr.bf16.gmra.mrb[16].mxu1 %v8699_v38  ;;  %v9887_v38 = vsel %vm9163_vm5, %v7313_v19, %v5572_v22  ;;  %v5586_v42 = vrot.slane %v7280_v37, 5  ;;  %v5589_v44 = vrot.slane %v7281_v40, 5  ;;  %v7344_v46 = vcombine.low %v9877_v24, %v9881_v33  ;;  %v7286_v8 = vld [vmem:[%s9040_s14 + $0x7c] sm:$0xf]  ;;  %v7287_v59 = vld [vmem:[%s9040_s14 + $0x80] sm:$0x1] }
 0x135   : > { %8037 = vmatprep.mubr.bf16.mxu1 %v8700_v48  ;;  %v9891_v39 = vsel %vm9163_vm5, %v5574_v30, %v5575_v23  ;;  %v9896_v28 = vsel %vm9163_vm5, %v7314_v31, %v5579_v34  ;;  %v5581_v43 = vrot.slane %v5579_v34, 4  ;;  %v7316_v53 = vrot.slane %v7282_v45, 9  ;;  %v6936_v13 = vld [vmem:[%s9040_s14 + $0x78] sm:$0xf]  ;;  %v6937_v19 = vld [vmem:[%s9040_s14 + $0x7c] sm:$0xf] }
 0x136   : > { %v9904_v48 = vsel %vm9163_vm5, %v7315_v41, %v5586_v42  ;;  %v5588_v49 = vrot.slane %v5586_v42, 4  ;;  %v7345_v54 = vcombine.low %v9887_v38, %v9891_v39  ;;  %v5593_v56 = vrot.slane %v7283_v51, 5  ;;  %v6938_v25 = vld [vmem:[%s9040_s14 + $0x80] sm:$0x1]  ;;  %v7288_v30 = vld [vmem:[%s9040_s14 + $0x84] sm:$0xe] }
 0x137   : > { %v9912_v15 = vsel %vm9163_vm5, %v5581_v43, %v5582_v35  ;;  %v5596_v57 = vrot.slane %v7284_v52, 5  ;;  %v3006_v0 = vshrl.u32 %v6933_v58, 16  ;;  %v3009_v2 = vshll.u32 %v6933_v58, 16  ;;  %v7289_v35 = vld [vmem:[%s9040_s14 + $0x88] sm:$0xf]  ;;  %v8705_v41 = vld [vmem:[%s9040_s14 + $0xc0] sm:$0xff]  }
 0x138   : > { %v7346_v61 = vcombine.low %v9896_v28, %v9912_v15  ;;  %v9921_v62 = vsel %vm9163_vm5, %v5588_v49, %v5589_v44  ;;  %v9929_v5 = vsel %vm9163_vm5, %v7316_v53, %v5593_v56  ;;  %v5595_v6 = vrot.slane %v5593_v56, 4  ;;  %v7290_v40 = vld [vmem:[%s9040_s14 + $0x8c] sm:$0x1]  ;;  %v6940_v53 = vld [vmem:[%s9040_s14 + $0x88] sm:$0xf] }
 0x139   : > { %v7347_v4 = vcombine.low %v9904_v48, %v9921_v62  ;;  %v3015_v7 = vshll.u32 %v6934_v60, 16  ;;  %v3011_v11 = vrot.slane %v3009_v2, 5  ;;  %v3019_v9 = vshrl.u32 %v6934_v60, 16 }
 0x13a   : > { %8258 = vmatmul.mubr.bf16.vlgmr.msra.gmra.mrb[0].mxu0 %v7342_v29  ;;  %v3025_v12 = vshll.u32 %v6935_v63, 16  ;;  %v9936_v14 = vsel %vm9163_vm5, %v5595_v6, %v5596_v57  ;;  %v7317_v17 = vrot.slane %v7285_v3, 9  ;;  %v5600_v18 = vrot.slane %v7286_v8, 5  ;;  %v6941_v63 = vld [vmem:[%s9040_s14 + $0x8c] sm:$0x1] }
 0x13b   : > { %8261 = vmatprep.mubr.bf16.mxu0 %v7343_v32  ;;  %v7348_v20 = vcombine.low %v9929_v5, %v9936_v14  ;;  %v3021_v22 = vrot.slane %v3019_v9, 4  ;;  %v5603_v29 = vrot.slane %v7287_v59, 5  ;;  %v3030_v24 = vshrl.u32 %v6936_v13, 16  ;;  %v7291_v59 = vld [vmem:[%s9040_s14 + $0x90] sm:$0xe] }
 0x13c   : > { %8038 = vmatmul.mubr.bf16.gmra.mrb[20].mxu1 %v8701_v10  ;;  %v3008_v10 = vrot.slane %v3006_v0, 4  ;;  %v3027_v23 = vrot.slane %v3025_v12, 5  ;;  %v9944_v26 = vsel %vm9163_vm5, %v7317_v17, %v5600_v18  ;;  %v5602_v27 = vrot.slane %v5600_v18, 4 }
 0x13d   : > { %8041 = vmatprep.mubr.bf16.mxu1 %v8702_v16  ;;  %v3017_v16 = vrot.slane %v3015_v7, 5  ;;  %v3033_v33 = vshll.u32 %v6936_v13, 16  ;;  %v3039_v34 = vshll.u32 %v6937_v19, 16  ;;  %v3032_v37 = vrot.slane %v3030_v24, 4  ;;  %v7292_v13 = vld [vmem:[%s9040_s14 + $0x94] sm:$0xf] }
 0x13e   : > { %v3012_v21 = vor.u32 %v3011_v11, %v3008_v10  ;;  %v9950_v50 = vsel %vm9163_vm5, %v5602_v27, %v5603_v29  ;;  %v3043_v38 = vshrl.u32 %v6937_v19, 16  ;;  %v3049_v39 = vshll.u32 %v6938_v25, 16  ;;  %v6943_v25 = vld [vmem:[%s9040_s14 + $0x94] sm:$0xf] }
 0x13f   : > { %v3022_v32 = vor.u32 %v3021_v22, %v3017_v16  ;;  %v7349_v44 = vcombine.low %v9944_v26, %v9950_v50  ;;  %v3035_v45 = vrot.slane %v3033_v33, 5  ;;  %v7318_v52 = vrot.slane %v7288_v30, 9  ;;  %v6942_v22 = vld [vmem:[%s9040_s14 + $0x90] sm:$0xf]  ;;  %v7294_v33 = vld [vmem:[%s9040_s14 + $0x9c] sm:$0xe] }
 0x140   : > { %v3013_v31 = vrot.slane %v3012_v21, 4  ;;  %v3045_v49 = vrot.slane %v3043_v38, 4  ;;  %v3051_v51 = vrot.slane %v3049_v39, 5  ;;  %v5607_v56 = vrot.slane %v7289_v35, 5  ;;  %v7293_v21 = vld [vmem:[%s9040_s14 + $0x98] sm:$0x1] }
 0x141   : > { %v3023_v43 = vrot.slane %v3022_v32, 4  ;;  %v5610_v57 = vrot.slane %v7290_v40, 5  ;;  %v3063_v8 = vshll.u32 %v6940_v53, 16  ;;  %v3067_v12 = vshrl.u32 %v6940_v53, 16  ;;  %v7295_v39 = vld [vmem:[%s9040_s14 + $0xa0] sm:$0xf] }
 0x142   : > { %8262 = vmatmul.mubr.bf16.gmra.mrb[4].mxu0 %v7344_v46  ;;  %v3018_v42 = vsel %vm9063_vm2, %v3013_v31, %v3017_v16  ;;  %v6939_v46 = vld [vmem:[%s9040_s14 + $0x84] sm:$0xf]  ;;  %v9965_v6 = vsel %vm9163_vm5, %v7318_v52, %v5607_v56  ;;  %v5609_v7 = vrot.slane %v5607_v56, 4  ;;  %v3073_v19 = vshll.u32 %v6941_v63, 16  ;;  %v6944_v31 = vld [vmem:[%s9040_s14 + $0x98] sm:$0x1] }
 0x143   : > { %8265 = vmatprep.mubr.bf16.mxu0 %v7345_v54  ;;  %v3028_v54 = vsel %vm9063_vm2, %v3023_v43, %v3027_v23  ;;  %v3054_v0 = vshrl.u32 %v6939_v46, 16  ;;  %v3057_v2 = vshll.u32 %v6939_v46, 16  ;;  %v3065_v18 = vrot.slane %v3063_v8, 5  ;;  %v6945_v52 = vld [vmem:[%s9040_s14 + $0x9c] sm:$0xf] }
 0x144   : > { %8042 = vmatmul.mubr.bf16.gmra.mrb[24].mxu1 %v8703_v47  ;;  %v3041_v47 = vrot.slane %v3039_v34, 5  ;;  %v6981_v58 = vcombine.low %v3018_v42, %v3028_v54  ;;  %v9976_v17 = vsel %vm9163_vm5, %v5609_v7, %v5610_v57  ;;  %v3069_v23 = vrot.slane %v3067_v12, 4  ;;  %v6946_v57 = vld [vmem:[%s9040_s14 + $0xa0] sm:$0xf]  ;;  %v6947_v7 = vld [vmem:[%s9040_s14 + $0xa4] sm:$0x1] }
 0x145   : > { %8045 = vmatprep.mubr.bf16.mxu1 %v8704_v55  ;;  %v3036_v55 = vor.u32 %v3035_v45, %v3032_v37  ;;  %v3056_v11 = vrot.slane %v3054_v0, 4  ;;  %v3059_v9 = vrot.slane %v3057_v2, 5  ;;  %v7350_v15 = vcombine.low %v9965_v6, %v9976_v17  ;;  %v7296_v45 = vld [vmem:[%s9040_s14 + $0xa4] sm:$0x1]  ;;  %v7298_v12 = vld [vmem:[%s9040_s14 + $0xac] sm:$0xf] }
 0x146   : > { %v3046_v60 = vor.u32 %v3045_v49, %v3041_v47  ;;  %v3075_v29 = vrot.slane %v3073_v19, 5  ;;  %v7319_v24 = vrot.slane %v7291_v59, 9  ;;  %v5614_v30 = vrot.slane %v7292_v13, 5 }
 0x147   : > { %v3037_v3 = vrot.slane %v3036_v55, 4  ;;  %v3070_v48 = vor.u32 %v3069_v23, %v3065_v18  ;;  %v5617_v62 = vrot.slane %v7293_v21, 5  ;;  %v3081_v37 = vshll.u32 %v6942_v22, 16  ;;  %v7299_v21 = vld [vmem:[%s9040_s14 + $0xb0] sm:$0x1] }
 0x148   : > { %v3047_v10 = vrot.slane %v3046_v60, 4  ;;  %v9992_v34 = vsel %vm9163_vm5, %v7319_v24, %v5614_v30  ;;  %v5616_v35 = vrot.slane %v5614_v30, 4  ;;  %v3087_v38 = vshll.u32 %v6943_v25, 16 }
 0x149   : > { %v3042_v16 = vsel %vm9063_vm2, %v3037_v3, %v3041_v47  ;;  %v3091_v43 = vshrl.u32 %v6943_v25, 16  ;;  %v3083_v47 = vrot.slane %v3081_v37, 5  ;;  %v7320_v56 = vrot.slane %v7294_v33, 9 }
 0x14a   : > { %8266 = vmatmul.mubr.bf16.gmra.mrb[8].mxu0 %v7346_v61  ;;  %v3052_v28 = vsel %vm9063_vm2, %v3047_v10, %v3051_v51  ;;  %v3060_v61 = vor.u32 %v3059_v9, %v3056_v11  ;;  %v5618_v46 = vsel %vm9163_vm5, %v5616_v35, %v5617_v62  ;;  %v3089_v49 = vrot.slane %v3087_v38, 5  ;;  %v7297_v11 = vld [vmem:[%s9040_s14 + $0xa8] sm:$0xe] }
 0x14b   : > { %8269 = vmatprep.mubr.bf16.mxu0 %v7347_v4  ;;  %v6982_v27 = vcombine.low %v3042_v16, %v3052_v28  ;;  %v3078_v4 = vshrl.u32 %v6942_v22, 16  ;;  %v3097_v51 = vshll.u32 %v6944_v31, 16  ;;  %v7351_v54 = vcombine.low %v9992_v34, %v5618_v46  ;;  %v6948_v22 = vld [vmem:[%s9040_s14 + $0xa8] sm:$0xf]  ;;  %v7300_v34 = vld [vmem:[%s9040_s14 + $0xb4] sm:$0xe] }
 0x14c   : > { %8046 = vmatmul.mubr.bf16.gmra.mrb[28].mxu1 %v8705_v41  ;;  %v3061_v32 = vrot.slane %v3060_v61, 4  ;;  %v3071_v41 = vrot.slane %v3070_v48, 4  ;;  %v3093_v55 = vrot.slane %v3091_v43, 4  ;;  %v5621_v0 = vrot.slane %v7295_v39, 5  ;;  %v7302_v46 = vld [vmem:[%s9040_s14 + $0xbc] sm:$0x1] }
 0x14d   : > { %8081 = vmatprep.mubr.bf16.mxu1 %v6981_v58  ;;  %v3080_v42 = vrot.slane %v3078_v4, 4  ;;  %v3099_v63 = vrot.slane %v3097_v51, 5  ;;  %v5624_v3 = vrot.slane %v7296_v45, 5  ;;  %v3102_v8 = vshrl.u32 %v6945_v52, 16 }
 0x14e   : > { %v3066_v40 = vsel %vm9063_vm2, %v3061_v32, %v3065_v18  ;;  %v3076_v53 = vsel %vm9063_vm2, %v3071_v41, %v3075_v29  ;;  %v3094_v2 = vor.u32 %v3093_v55, %v3089_v49  ;;  %v3105_v59 = vshll.u32 %v6945_v52, 16  ;;  %v6950_v32 = vld [vmem:[%s9040_s14 + $0xb0] sm:$0x1]  ;;  %v6952_v55 = vld [vmem:[%s9040_s14 + $0xb8] sm:$0xf] }
 0x14f   : > { %v6983_v58 = vcombine.low %v3066_v40, %v3076_v53  ;;  %v3084_v60 = vor.u32 %v3083_v47, %v3080_v42  ;;  %v10014_v14 = vsel %vm9163_vm5, %v7320_v56, %v5621_v0  ;;  %v3111_v10 = vshll.u32 %v6946_v57, 16  ;;  %v7301_v40 = vld [vmem:[%s9040_s14 + $0xb8] sm:$0xf] }
 0x150   : > { %v3095_v26 = vrot.slane %v3094_v2, 4  ;;  %v3104_v50 = vrot.slane %v3102_v8, 4  ;;  %v3115_v9 = vshrl.u32 %v6946_v57, 16  ;;  %v3121_v19 = vshll.u32 %v6947_v7, 16  ;;  %v6953_v2 = vld [vmem:[%s9040_s14 + $0xbc] sm:$0x1] }
 0x151   : > { %v3085_v5 = vrot.slane %v3084_v60, 4  ;;  %v3113_v18 = vrot.slane %v3111_v10, 5  ;;  %v7321_v30 = vrot.slane %v7297_v11, 9  ;;  %v5628_v31 = vrot.slane %v7298_v12, 5 }
 0x152   : > { %8270 = vmatmul.mubr.bf16.gmra.mrb[12].mxu0 %v7348_v20  ;;  %v5623_v20 = vrot.slane %v5621_v0, 4  ;;  %v3100_v28 = vsel %vm9063_vm2, %v3095_v26, %v3099_v63  ;;  %v3117_v25 = vrot.slane %v3115_v9, 4  ;;  %v3123_v24 = vrot.slane %v3121_v19, 5  ;;  %v6954_v19 = vld [vmem:[%s9040_s14 + $0xc0] sm:$0xf] }
 0x153   : > { %8273 = vmatprep.mubr.bf16.mxu0 %v7349_v44  ;;  %v3107_v44 = vrot.slane %v3105_v59, 5  ;;  %v3090_v13 = vsel %vm9063_vm2, %v3085_v5, %v3089_v49  ;;  %v5631_v4 = vrot.slane %v7299_v21, 5  ;;  %v3126_v33 = vshrl.u32 %v6948_v22, 16  ;;  %v6951_v49 = vld [vmem:[%s9040_s14 + $0xb4] sm:$0xf] }
 0x154   : > { %8082 = vmatmul.mubr.bf16.vlgmr.msra.gmra.mrb[16].mxu1 %v6982_v27  ;;  %v10022_v16 = vsel %vm9163_vm5, %v5623_v20, %v5624_v3  ;;  %v6949_v27 = vld [vmem:[%s9040_s14 + $0xac] sm:$0xf]  ;;  %v6984_v29 = vcombine.low %v3090_v13, %v3100_v28  ;;  %v3118_v62 = vor.u32 %v3117_v25, %v3113_v18  ;;  %v5629_v35 = vsel %vm9163_vm5, %v7321_v30, %v5628_v31  ;;  %v7303_v20 = vld [vmem:[%s9040_s14 + $0xc0] sm:$0xe] }
 0x155   : > { %8085 = vmatprep.mubr.bf16.mxu1 %v6983_v58  ;;  %v7352_v61 = vcombine.low %v10014_v14, %v10022_v16  ;;  %v3108_v23 = vor.u32 %v3107_v44, %v3104_v50  ;;  %v5630_v37 = vrot.slane %v5628_v31, 4  ;;  %v3129_v38 = vshll.u32 %v6948_v22, 16  ;;  %v7304_v44 = vld [vmem:[%s9040_s14 + $0xc4] sm:$0xf] }
 0x156   : > { %v3135_v39 = vshll.u32 %v6949_v27, 16  ;;  %v3119_v42 = vrot.slane %v3118_v62, 4  ;;  %v3128_v43 = vrot.slane %v3126_v33, 4  ;;  %v3139_v45 = vshrl.u32 %v6949_v27, 16 }
 0x157   : > { %v3109_v48 = vrot.slane %v3108_v23, 4  ;;  %v5632_v6 = vsel %vm9163_vm5, %v5630_v37, %v5631_v4  ;;  %v3131_v17 = vrot.slane %v3129_v38, 5  ;;  %v3145_v47 = vshll.u32 %v6950_v32, 16  ;;  %v7306_v37 = vld [vmem:[%s9040_s14 + $0xcc] sm:$0xe] }
 0x158   : > { %v3124_v51 = vsel %vm9063_vm2, %v3119_v42, %v3123_v24  ;;  %v7353_v52 = vcombine.low %v5629_v35, %v5632_v6  ;;  %v3141_v53 = vrot.slane %v3139_v45, 4  ;;  %v5635_v60 = vrot.slane %v7301_v40, 5  ;;  %v7307_v42 = vld [vmem:[%s9040_s14 + $0xd0] sm:$0xf] }
 0x159   : > { %v3114_v41 = vsel %vm9063_vm2, %v3109_v48, %v3113_v18  ;;  %v3132_v57 = vor.u32 %v3131_v17, %v3128_v43  ;;  %v3147_v58 = vrot.slane %v3145_v47, 5  ;;  %v5638_v0 = vrot.slane %v7302_v46, 5  ;;  %v7305_v18 = vld [vmem:[%s9040_s14 + $0xc8] sm:$0x1]  ;;  %v7308_v17 = vld [vmem:[%s9040_s14 + $0xd4] sm:$0x1] }
 0x15a   : > { %8274 = vmatmul.mubr.bf16.gmra.mrb[16].mxu0 %v7350_v15  ;;  %v3137_v15 = vrot.slane %v3135_v39, 5  ;;  %v6985_v56 = vcombine.low %v3114_v41, %v3124_v51  ;;  %v3150_v3 = vshrl.u32 %v6951_v49, 16  ;;  %v3153_v7 = vshll.u32 %v6951_v49, 16  ;;  %v6956_v48 = vld [vmem:[%s9040_s14 + $0xc8] sm:$0x1] }
 0x15b   : > { %8277 = vmatprep.mubr.bf16.mxu0 %v7351_v54  ;;  %v7322_v54 = vrot.slane %v7300_v34, 9  ;;  %v3133_v8 = vrot.slane %v3132_v57, 4  ;;  %v5637_v5 = vrot.slane %v5635_v60, 4  ;;  %v3159_v14 = vshll.u32 %v6952_v55, 16 }
 0x15c   : > { %8086 = vmatmul.mubr.bf16.gmra.mrb[20].mxu1 %v6984_v29  ;;  %v3142_v63 = vor.u32 %v3141_v53, %v3137_v15  ;;  %v3152_v11 = vrot.slane %v3150_v3, 4  ;;  %v3155_v26 = vrot.slane %v3153_v7, 5  ;;  %v3163_v50 = vshrl.u32 %v6952_v55, 16 }
 0x15d   : > { %8089 = vmatprep.mubr.bf16.mxu1 %v6985_v56  ;;  %v5636_v59 = vsel %vm9163_vm5, %v7322_v54, %v5635_v60  ;;  %v3138_v9 = vsel %vm9063_vm2, %v3133_v8, %v3137_v15  ;;  %v5639_v12 = vsel %vm9163_vm5, %v5637_v5, %v5638_v0  ;;  %v3161_v13 = vrot.slane %v3159_v14, 5 }
 0x15e   : > { %v3143_v10 = vrot.slane %v3142_v63, 4  ;;  %v3169_v16 = vshll.u32 %v6953_v2, 16  ;;  %v7354_v22 = vcombine.low %v5636_v59, %v5639_v12  ;;  %v3156_v28 = vor.u32 %v3155_v26, %v3152_v11 }
 0x15f   : > { %v3165_v23 = vrot.slane %v3163_v50, 4  ;;  %v7323_v29 = vrot.slane %v7303_v20, 9  ;;  %v5642_v24 = vrot.slane %v7304_v44, 5  ;;  %v5645_v32 = vrot.slane %v7305_v18, 5 }
 0x160   : > { %v3148_v21 = vsel %vm9063_vm2, %v3143_v10, %v3147_v58  ;;  %v3171_v27 = vrot.slane %v3169_v16, 5  ;;  %v3157_v30 = vrot.slane %v3156_v28, 4  ;;  %v3174_v62 = vshrl.u32 %v6954_v19, 16 }
 0x161   : > { %v6986_v25 = vcombine.low %v3138_v9, %v3148_v21  ;;  %v3166_v31 = vor.u32 %v3165_v23, %v3161_v13  ;;  %v5643_v4 = vsel %vm9163_vm5, %v7323_v29, %v5642_v24  ;;  %v5644_v33 = vrot.slane %v5642_v24, 4 }
 0x162   : > { %8278 = vmatmul.mubr.bf16.gmra.mrb[20].mxu0 %v7352_v61  ;;  %v6955_v61 = vld [vmem:[%s9040_s14 + $0xc4] sm:$0xf]  ;;  %v3177_v34 = vshll.u32 %v6954_v19, 16  ;;  %v3162_v38 = vsel %vm9063_vm2, %v3157_v30, %v3161_v13  ;;  %v3176_v40 = vrot.slane %v3174_v62, 4  ;;  %v3193_v6 = vshll.u32 %v6956_v48, 16 }
 0x163   : > { %8281 = vmatprep.mubr.bf16.mxu0 %v7353_v52  ;;  %v3183_v35 = vshll.u32 %v6955_v61, 16  ;;  %v3167_v39 = vrot.slane %v3166_v31, 4  ;;  %v3187_v41 = vshrl.u32 %v6955_v61, 16  ;;  %v5646_v43 = vsel %vm9163_vm5, %v5644_v33, %v5645_v32  ;;  %v10107_v61 = vld [vmem:[%s10460_s3] ss:$0 sm:$0xff] }
 0x164   : > { %8090 = vmatmul.mubr.bf16.gmra.mrb[24].mxu1 %v6986_v25  ;;  %v3179_v45 = vrot.slane %v3177_v34, 5  ;;  %v7355_v47 = vcombine.low %v5643_v4, %v5646_v43  ;;  %v7324_v51 = vrot.slane %v7306_v37, 9  ;;  %v5649_v54 = vrot.slane %v7307_v42, 5  ;;  %v10131_v43 = vld [vmem:[%s10128_s18 + $0x8] sm:$0xff]  }
 0x165   : > { %v3185_v46 = vrot.slane %v3183_v35, 5  ;;  %v3172_v15 = vsel %vm9063_vm2, %v3167_v39, %v3171_v27  ;;  %v3189_v49 = vrot.slane %v3187_v41, 4  ;;  %v3195_v56 = vrot.slane %v3193_v6, 5 }
 0x166   : > { %v6987_v52 = vcombine.low %v3162_v38, %v3172_v15  ;;  %v3180_v53 = vor.u32 %v3179_v45, %v3176_v40  ;;  %v5652_v57 = vrot.slane %v7308_v17, 5  ;;  %v5650_v60 = vsel %vm9163_vm5, %v7324_v51, %v5649_v54  ;;  %v10135_v17 = vld [vmem:[%s10128_s18] sm:$0xff]   ;;  %v10139_v51 = vld [vmem:[%s10128_s18 + $0x18] sm:$0xff]  }
 0x167   : > { %v3190_v55 = vor.u32 %v3189_v49, %v3185_v46  ;;  %v5651_v63 = vrot.slane %v5649_v54, 4  ;;  %v7473_v54 = vunpack.c.l.bf16 %v10131_v43 }
 0x168   : > { %8093 = vmatprep.mubr.bf16.mxu1 %v6987_v52  ;;  %v3181_v58 = vrot.slane %v3180_v53, 4 }
 0x169   : > { %v3191_v0 = vrot.slane %v3190_v55, 4  ;;  %v5653_v3 = vsel %vm9163_vm5, %v5651_v63, %v5652_v57 }
 0x16a   : > { %8282 = vmatmul.mubr.bf16.gmra.mrb[24].mxu0 %v7354_v22  ;;  %v3186_v2 = vsel %vm9063_vm2, %v3181_v58, %v3185_v46  ;;  %v7356_v8 = vcombine.low %v5650_v60, %v5653_v3  ;;  %v10101_v22 = vld [vmem:[%s10459_s2] ss:$0 sm:$0xff]  ;;  %v7469_v58 = vunpack.c.l.bf16 %v10135_v17  ;;  %v7474_v60 = vunpack.c.h.bf16 %v10131_v43 }
 0x16b   : > { %8285 = vmatprep.mubr.bf16.mxu0 %v7355_v47  ;;  %v3196_v7 = vsel %vm9063_vm2, %v3191_v0, %v3195_v56  ;;  %v10147_v56 = vld [vmem:[%s10128_s18 + $0x10] sm:$0xff]  }
 0x16c   : > { %v6988_v59 = vcombine.low %v3186_v2, %v3196_v7  ;;  %v7470_v2 = vunpack.c.h.bf16 %v10135_v17  ;;  %v7481_v7 = vunpack.c.l.bf16 %v10139_v51 }
 0x16e   : > { %8094 = vmatmul.mubr.bf16.gmra.mrb[28].mxu1 %v6988_v59  ;;  %v10163_v59 = vld [vmem:[%s10128_s18 + $0x28] sm:$0xff]  }
 0x172   : > { %8286 = vmatmul.mubr.bf16.gmra.mrb[28].mxu0 %v7356_v8 }
 0x1e7   : > { %v8019_v5 = vpop.f32.mrb[0].mxu1 }
 0x1e8   : > { %v2574_v14 = vpop.f32.mrb[1].mxu1 }
 0x1e9   : > { %v8020_v20 = vpop.f32.mrb[2].mxu1 }
 0x1ea   : > { %v2577_v10 = vpop.f32.mrb[3].mxu1 }
 0x1ef   : > { %v8023_v11 = vpop.f32.mrb[4].mxu1 }
 0x1f0   : > { %v2590_v26 = vpop.f32.mrb[5].mxu1 }
 0x1f1   : > { %v8024_v50 = vpop.f32.mrb[6].mxu1 }
 0x1f2   : > { %v2593_v44 = vpop.f32.mrb[7].mxu1 }
 0x1f7   : > { %v10082_v9 = vpop.f32.mrb[8].mxu1 }
 0x1f8   : > { %v10084_v36 = vpop.f32.mrb[9].mxu1 }
 0x1f9   : > { %v10086_v12 = vpop.f32.mrb[10].mxu1 }
 0x1fa   : > { %v10088_v1 = vpop.f32.mrb[11].mxu1 }
 0x1ff   : > { %v10090_v13 = vpop.f32.mrb[12].mxu1 }
 0x200   : > { %v10092_v16 = vpop.f32.mrb[13].mxu1 }
 0x201   : > { %v10094_v18 = vpop.f32.mrb[14].mxu1 }
 0x202   : > { %v10096_v19 = vpop.f32.mrb[15].mxu1 }
 0x20d   : > { %v8259_v21 = vpop.f32.mrb[0].mxu0 }
 0x20e   : > { %v8305_v28 = vadd.f32 %v8259_v21, %v8019_v5  ;;  %v5849_v23 = vpop.f32.mrb[1].mxu0 }
 0x20f   : > { %v8306_v25 = vadd.f32 %v5849_v23, %v2574_v14  ;;  %v8260_v27 = vpop.f32.mrb[2].mxu0  ;;  %v7477_v14 = vunpack.c.l.bf16 %v10147_v56 }
 0x210   : > { %v6081_v29 = vmul.f32 %v8305_v28, %v10101_v22  ;;  %v8307_v24 = vadd.f32 %v8260_v27, %v8020_v20  ;;  %v5852_v30 = vpop.f32.mrb[3].mxu0  ;;  %v7482_v20 = vunpack.c.h.bf16 %v10139_v51 }
 0x211   : > { %v6079_v31 = vmul.f32 %v8306_v25, %v10101_v22  ;;  %v8308_v32 = vadd.f32 %v5852_v30, %v2577_v10  ;;  %v7489_v25 = vunpack.c.l.bf16 %v10163_v59 }
 0x212   : > { %v10112_v48 = vadd.f32 %v10107_v61, %v6081_v29  ;;  %v6082_v62 = vmul.f32 %v8307_v24, %v10101_v22 }
 0x213   : > { %v10116_v4 = vadd.f32 %v10107_v61, %v6079_v31  ;;  %v6080_v33 = vmul.f32 %v8308_v32, %v10101_v22 }
 0x214   : > { %v7369_v34 = vmul.f32 -1.442695, %v10112_v48  ;;  %v10121_v35 = vadd.f32 %v10107_v61, %v6082_v62 }
 0x215   : > { %v7367_v37 = vmul.f32 -1.442695, %v10116_v4  ;;  %v10125_v38 = vadd.f32 %v10107_v61, %v6080_v33  ;;  %v8263_v39 = vpop.f32.mrb[4].mxu0 }
 0x216   : > { %8706 = vpow2.f32 %v7369_v34  ;;  %v7370_v40 = vmul.f32 -1.442695, %v10121_v35  ;;  %v8309_v41 = vadd.f32 %v8263_v39, %v8023_v11  ;;  %v5865_v42 = vpop.f32.mrb[5].mxu0 }
 0x217   : > { %8708 = vpow2.f32 %v7367_v37  ;;  %v7368_v45 = vmul.f32 -1.442695, %v10125_v38  ;;  %v8310_v46 = vadd.f32 %v5865_v42, %v2590_v26  ;;  %v8264_v6 = vpop.f32.mrb[6].mxu0  ;;  %v10172_v26 = vld [vmem:[%s10128_s18 + $0x20] sm:$0xff]  }
 0x218   : > { %8710 = vpow2.f32 %v7370_v40  ;;  %v6085_v15 = vmul.f32 %v8309_v41, %v10101_v22  ;;  %v8311_v47 = vadd.f32 %v8264_v6, %v8024_v50  ;;  %v5868_v49 = vpop.f32.mrb[7].mxu0  ;;  %v7485_v31 = vunpack.c.l.bf16 %v10172_v26 }
 0x219   : > { %8712 = vpow2.f32 %v7368_v45  ;;  %v6083_v52 = vmul.f32 %v8310_v46, %v10101_v22  ;;  %v8312_v53 = vadd.f32 %v5868_v49, %v2593_v44  ;;  %v7478_v44 = vunpack.c.h.bf16 %v10147_v56 }
 0x21a   : > { %v10144_v55 = vadd.f32 %v10107_v61, %v6085_v15  ;;  %v6086_v57 = vmul.f32 %v8311_v47, %v10101_v22 }
 0x21b   : > { %v10153_v63 = vadd.f32 %v10107_v61, %v6083_v52  ;;  %v6084_v0 = vmul.f32 %v8312_v53, %v10101_v22  ;;  %v10204_v53 = vld [vmem:[%s10128_s18 + $0x30] sm:$0xff]  }
 0x21c   : > { %v7373_v3 = vmul.f32 -1.442695, %v10144_v55  ;;  %v10160_v8 = vadd.f32 %v10107_v61, %v6086_v57 }
 0x21d   : > { %v7371_v5 = vmul.f32 -1.442695, %v10153_v63  ;;  %v10169_v10 = vadd.f32 %v10107_v61, %v6084_v0  ;;  %v8267_v11 = vpop.f32.mrb[8].mxu0 }
 0x21e   : > { %8714 = vpow2.f32 %v7373_v3  ;;  %v7374_v50 = vmul.f32 -1.442695, %v10160_v8  ;;  %v8313_v21 = vadd.f32 %v8267_v11, %v10082_v9  ;;  %v5881_v28 = vpop.f32.mrb[9].mxu0 }
 0x21f   : > { %8716 = vpow2.f32 %v7371_v5  ;;  %v7372_v23 = vmul.f32 -1.442695, %v10169_v10  ;;  %v8314_v27 = vadd.f32 %v5881_v28, %v10084_v36  ;;  %v8268_v29 = vpop.f32.mrb[10].mxu0  ;;  %v7486_v5 = vunpack.c.h.bf16 %v10172_v26 }
 0x220   : > { %v8707_v24 = vpop.eup %8706  ;;  %8718 = vpow2.f32 %v7374_v50  ;;  %v6089_v30 = vmul.f32 %v8313_v21, %v10101_v22  ;;  %v8315_v32 = vadd.f32 %v8268_v29, %v10086_v12  ;;  %v5884_v62 = vpop.f32.mrb[11].mxu0  ;;  %v7490_v12 = vunpack.c.h.bf16 %v10163_v59 }
 0x221   : > { %v8709_v9 = vpop.eup %8708  ;;  %v6248_v33 = vadd.f32 1.0, %v8707_v24  ;;  %8720 = vpow2.f32 %v7372_v23  ;;  %v6087_v34 = vmul.f32 %v8314_v27, %v10101_v22  ;;  %v8316_v37 = vadd.f32 %v5884_v62, %v10088_v1  ;;  %v10195_v1 = vld [vmem:[%s10128_s18 + $0x38] sm:$0xff]  }
 0x222   : > { %v8711_v39 = vpop.eup %8710  ;;  %v6246_v36 = vadd.f32 1.0, %v8709_v9  ;;  %v10186_v40 = vadd.f32 %v10107_v61, %v6089_v30  ;;  %v6090_v41 = vmul.f32 %v8315_v32, %v10101_v22  ;;  %v7497_v23 = vunpack.c.l.bf16 %v10195_v1 }
 0x223   : > { %v8713_v42 = vpop.eup %8712  ;;  %8722 = vrcp.f32 %v6248_v33  ;;  %v6249_v45 = vadd.f32 1.0, %v8711_v39  ;;  %v10191_v46 = vadd.f32 %v10107_v61, %v6087_v34  ;;  %v6088_v6 = vmul.f32 %v8316_v37, %v10101_v22 }
 0x224   : > { %8724 = vrcp.f32 %v6246_v36  ;;  %v6247_v47 = vadd.f32 1.0, %v8713_v42  ;;  %v7377_v49 = vmul.f32 -1.442695, %v10186_v40  ;;  %v10201_v52 = vadd.f32 %v10107_v61, %v6090_v41 }
 0x225   : > { %8726 = vrcp.f32 %v6249_v45  ;;  %v7375_v0 = vmul.f32 -1.442695, %v10191_v46  ;;  %v10211_v3 = vadd.f32 %v10107_v61, %v6088_v6  ;;  %v8271_v11 = vpop.f32.mrb[12].mxu0  ;;  %v7493_v32 = vunpack.c.l.bf16 %v10204_v53 }
 0x226   : > { %8728 = vrcp.f32 %v6247_v47  ;;  %v7378_v21 = vmul.f32 -1.442695, %v10201_v52  ;;  %v8317_v28 = vadd.f32 %v8271_v11, %v10090_v13  ;;  %v5897_v27 = vpop.f32.mrb[13].mxu0  ;;  %v7498_v34 = vunpack.c.h.bf16 %v10195_v1 }
 0x227   : > { %v10197_v15 = vpop.f32.mrb[16].mxu1  ;;  %8730 = vpow2.f32 %v7377_v49  ;;  %v7376_v24 = vmul.f32 -1.442695, %v10211_v3  ;;  %v8318_v30 = vadd.f32 %v5897_v27, %v10092_v16  ;;  %v8272_v62 = vpop.f32.mrb[14].mxu0 }
 0x228   : > { %v10206_v57 = vpop.f32.mrb[17].mxu1  ;;  %v8715_v9 = vpop.eup %8714  ;;  %8732 = vpow2.f32 %v7375_v0  ;;  %v6093_v13 = vmul.f32 %v8317_v28, %v10101_v22  ;;  %v8319_v33 = vadd.f32 %v8272_v62, %v10094_v18 }
 0x229   : > { %v10214_v50 = vpop.f32.mrb[18].mxu1  ;;  %v5900_v37 = vpop.f32.mrb[15].mxu0  ;;  %v6252_v39 = vadd.f32 1.0, %v8715_v9  ;;  %8734 = vpow2.f32 %v7378_v21  ;;  %v6091_v36 = vmul.f32 %v8318_v30, %v10101_v22 }
 0x22a   : > { %v10219_v29 = vpop.f32.mrb[19].mxu1  ;;  %v8717_v16 = vpop.eup %8716  ;;  %v8320_v41 = vadd.f32 %v5900_v37, %v10096_v19  ;;  %8736 = vpow2.f32 %v7376_v24  ;;  %v10236_v6 = vadd.f32 %v10107_v61, %v6093_v13  ;;  %v6094_v18 = vmul.f32 %v8319_v33, %v10101_v22 }
 0x22b   : > { %v8719_v42 = vpop.eup %8718  ;;  %v6250_v45 = vadd.f32 1.0, %v8717_v16  ;;  %8738 = vrcp.f32 %v6252_v39  ;;  %v10240_v0 = vadd.f32 %v10107_v61, %v6091_v36 }
 0x22c   : > { %v8721_v47 = vpop.eup %8720  ;;  %v6253_v49 = vadd.f32 1.0, %v8719_v42  ;;  %v6092_v11 = vmul.f32 %v8320_v41, %v10101_v22  ;;  %v7381_v21 = vmul.f32 -1.442695, %v10236_v6  ;;  %v10251_v28 = vadd.f32 %v10107_v61, %v6094_v18 }
 0x22d   : > { %8740 = vrcp.f32 %v6250_v45  ;;  %v6251_v19 = vadd.f32 1.0, %v8721_v47  ;;  %v8723_v27 = vpop.eup %8722  ;;  %v7379_v24 = vmul.f32 -1.442695, %v10240_v0  ;;  %v8275_v9 = vpop.f32.mrb[16].mxu0 }
 0x22e   : > { %8742 = vrcp.f32 %v6253_v49  ;;  %v10255_v30 = vadd.f32 %v10107_v61, %v6092_v11  ;;  %v8725_v33 = vpop.eup %8724  ;;  %v6344_v37 = vmul.f32 %v8723_v27, %v10112_v48  ;;  %v7382_v16 = vmul.f32 -1.442695, %v10251_v28  ;;  %v5913_v36 = vpop.f32.mrb[17].mxu0 }
 0x22f   : > { %v8087_v13 = vpop.f32.mrb[20].mxu1  ;;  %8744 = vrcp.f32 %v6251_v19  ;;  %v8321_v39 = vadd.f32 %v8275_v9, %v10197_v15  ;;  %v8727_v42 = vpop.eup %8726  ;;  %v6342_v45 = vmul.f32 %v8725_v33, %v10116_v4  ;;  %v8322_v47 = vadd.f32 %v5913_v36, %v10206_v57 }
 0x230   : > { %v3472_v41 = vpop.f32.mrb[21].mxu1  ;;  %8746 = vpow2.f32 %v7381_v21  ;;  %v7380_v18 = vmul.f32 -1.442695, %v10255_v30  ;;  %v8276_v49 = vpop.f32.mrb[18].mxu0  ;;  %v6440_v48 = vadd.f32 %v7473_v54, %v6344_v37  ;;  %v6345_v15 = vmul.f32 %v8727_v42, %v10121_v35 }
 0x231   : > { %v10264_v11 = vpop.f32.mrb[22].mxu1  ;;  %v8729_v62 = vpop.eup %8728  ;;  %8748 = vpow2.f32 %v7379_v24  ;;  %v6097_v19 = vmul.f32 %v8321_v39, %v10101_v22  ;;  %v6438_v57 = vadd.f32 %v7469_v58, %v6342_v45  ;;  %v6095_v33 = vmul.f32 %v8322_v47, %v10101_v22 }
 0x232   : > { %v5916_v27 = vpop.f32.mrb[19].mxu0  ;;  %v10271_v4 = vpop.f32.mrb[23].mxu1  ;;  %v6343_v9 = vmul.f32 %v8729_v62, %v10125_v38  ;;  %8750 = vpow2.f32 %v7382_v16  ;;  %v6441_v54 = vadd.f32 %v7474_v60, %v6345_v15  ;;  %v8323_v43 = vadd.f32 %v8276_v49, %v10214_v50 }
 0x233   : > { %v8731_v21 = vpop.eup %8730  ;;  %8752 = vpow2.f32 %v7380_v18  ;;  %v10280_v24 = vadd.f32 %v10107_v61, %v6097_v19  ;;  %v10290_v62 = vadd.f32 %v10107_v61, %v6095_v33  ;;  %v8324_v49 = vadd.f32 %v5916_v27, %v10219_v29 }
 0x234   : > { %v8733_v36 = vpop.eup %8732  ;;  %v6256_v35 = vadd.f32 1.0, %v8731_v21  ;;  %v6439_v38 = vadd.f32 %v7470_v2, %v6343_v9  ;;  %v7539_v16 = vpack.c.bf16 %v6441_v54, %v6440_v48  ;;  %v6098_v50 = vmul.f32 %v8323_v43, %v10101_v22 }
 0x235   : > { %v8735_v37 = vpop.eup %8734  ;;  %v6254_v58 = vadd.f32 1.0, %v8733_v36  ;;  %v7385_v42 = vmul.f32 -1.442695, %v10280_v24  ;;  %v7383_v17 = vmul.f32 -1.442695, %v10290_v62  ;;  %v8279_v2 = vpop.f32.mrb[20].mxu0 }
 0x236   : > { %v8737_v60 = vpop.eup %8736  ;;  %8754 = vrcp.f32 %v6256_v35  ;;  %v6257_v39 = vadd.f32 1.0, %v8735_v37  ;;  %v7534_v18 = vpack.c.bf16 %v6439_v38, %v6438_v57  ;;  %7626 = vst [vmem:[%s10285_s9 + $0x8] sm:$0xff] %v7539_v16   ;;  %v5929_v48 = vpop.f32.mrb[21].mxu0  ;;  %v8325_v57 = vadd.f32 %v8279_v2, %v8087_v13 }
 0x237   : > { %v8739_v45 = vpop.eup %8738  ;;  %8756 = vrcp.f32 %v6254_v58  ;;  %v6255_v47 = vadd.f32 1.0, %v8737_v60  ;;  %v8326_v33 = vadd.f32 %v5929_v48, %v3472_v41  ;;  %v8280_v36 = vpop.f32.mrb[22].mxu0  ;;  %v10305_v37 = vadd.f32 %v10107_v61, %v6098_v50 }
 0x238   : > { %v8741_v15 = vpop.eup %8740  ;;  %v6348_v19 = vmul.f32 %v8739_v45, %v10144_v55  ;;  %8758 = vrcp.f32 %v6257_v39  ;;  %7535 = vst [vmem:[%s10285_s9] sm:$0xff] %v7534_v18   ;;  %v5932_v29 = vpop.f32.mrb[23].mxu0  ;;  %v6096_v13 = vmul.f32 %v8324_v49, %v10101_v22  ;;  %v6101_v60 = vmul.f32 %v8325_v57, %v10101_v22 }
 0x239   : > { %v8743_v21 = vpop.eup %8742  ;;  %v6346_v9 = vmul.f32 %v8741_v15, %v10153_v63  ;;  %8760 = vrcp.f32 %v6255_v47  ;;  %v8091_v41 = vpop.f32.mrb[24].mxu1  ;;  %v7386_v43 = vmul.f32 -1.442695, %v10305_v37  ;;  %v6099_v45 = vmul.f32 %v8326_v33, %v10101_v22 }
 0x23a   : > { %v8745_v54 = vpop.eup %8744  ;;  %v6444_v35 = vadd.f32 %v7481_v7, %v6348_v19  ;;  %v6349_v55 = vmul.f32 %v8743_v21, %v10160_v8  ;;  %8762 = vpow2.f32 %v7385_v42  ;;  %v3488_v16 = vpop.f32.mrb[25].mxu1  ;;  %v8327_v21 = vadd.f32 %v8280_v36, %v10264_v11 }
 0x23b   : > { %v8747_v27 = vpop.eup %8746  ;;  %v6442_v38 = vadd.f32 %v7477_v14, %v6346_v9  ;;  %v6347_v63 = vmul.f32 %v8745_v54, %v10169_v10  ;;  %8764 = vpow2.f32 %v7383_v17  ;;  %v10318_v10 = vadd.f32 %v10107_v61, %v6096_v13  ;;  %v8092_v18 = vpop.f32.mrb[26].mxu1 }
 0x23c   : > { %v8749_v58 = vpop.eup %8748  ;;  %v6445_v7 = vadd.f32 %v7482_v20, %v6349_v55  ;;  %v6260_v8 = vadd.f32 1.0, %v8747_v27  ;;  %v10322_v17 = vadd.f32 %v10107_v61, %v6101_v60  ;;  %v10324_v2 = vpop.f32.mrb[27].mxu1  ;;  %v10330_v48 = vadd.f32 %v10107_v61, %v6099_v45 }
 0x23d   : > { %v8751_v39 = vpop.eup %8750  ;;  %v6443_v14 = vadd.f32 %v7478_v44, %v6347_v63  ;;  %v6258_v42 = vadd.f32 1.0, %v8749_v58  ;;  %v7384_v15 = vmul.f32 -1.442695, %v10318_v10  ;;  %v8283_v19 = vpop.f32.mrb[24].mxu0  ;;  %v8328_v54 = vadd.f32 %v5932_v29, %v10271_v4 }
 0x23e   : > { %v8753_v51 = vpop.eup %8752  ;;  %v7549_v20 = vpack.c.bf16 %v6445_v7, %v6444_v35  ;;  %8766 = vrcp.f32 %v6260_v8  ;;  %v6261_v47 = vadd.f32 1.0, %v8751_v39  ;;  %v7389_v49 = vmul.f32 -1.442695, %v10322_v17  ;;  %v5945_v9 = vpop.f32.mrb[25].mxu0 }
 0x23f   : > { %v7544_v56 = vpack.c.bf16 %v6443_v14, %v6442_v38  ;;  %8768 = vrcp.f32 %v6258_v42  ;;  %v6259_v44 = vadd.f32 1.0, %v8753_v51  ;;  %v8329_v35 = vadd.f32 %v8283_v19, %v8091_v41  ;;  %v8284_v55 = vpop.f32.mrb[26].mxu0 }
 0x240   : > { %v8755_v50 = vpop.eup %8754  ;;  %7628 = vst [vmem:[%s10285_s9 + $0x18] sm:$0xff] %v7549_v20   ;;  %8770 = vrcp.f32 %v6261_v47  ;;  %v7387_v63 = vmul.f32 -1.442695, %v10330_v48  ;;  %v6102_v13 = vmul.f32 %v8327_v21, %v10101_v22  ;;  %v5948_v58 = vpop.f32.mrb[27].mxu0  ;;  %v6100_v4 = vmul.f32 %v8328_v54, %v10101_v22 }
 0x241   : > { %v8757_v57 = vpop.eup %8756  ;;  %7627 = vst [vmem:[%s10285_s9 + $0x10] sm:$0xff] %v7544_v56   ;;  %v6352_v33 = vmul.f32 %v8755_v50, %v10186_v40  ;;  %8772 = vrcp.f32 %v6259_v44  ;;  %v8330_v59 = vadd.f32 %v5945_v9, %v3488_v16  ;;  %v8332_v16 = vadd.f32 %v5948_v58, %v10324_v2 }
 0x242   : > { %v8759_v27 = vpop.eup %8758  ;;  %v6350_v38 = vmul.f32 %v8757_v57, %v10191_v46  ;;  %8774 = vpow2.f32 %v7386_v43  ;;  %v10347_v7 = vadd.f32 %v10107_v61, %v6102_v13 }
 0x243   : > { %v8761_v11 = vpop.eup %8760  ;;  %v6448_v36 = vadd.f32 %v7489_v25, %v6352_v33  ;;  %v6353_v40 = vmul.f32 %v8759_v27, %v10201_v52  ;;  %8776 = vpow2.f32 %v7384_v15  ;;  %v10352_v52 = vadd.f32 %v10107_v61, %v6100_v4 }
 0x244   : > { %v8763_v29 = vpop.eup %8762  ;;  %v6446_v41 = vadd.f32 %v7485_v31, %v6350_v38  ;;  %v6351_v46 = vmul.f32 %v8761_v11, %v10211_v3  ;;  %8778 = vpow2.f32 %v7389_v49  ;;  %v7390_v31 = vmul.f32 -1.442695, %v10347_v7 }
 0x245   : > { %v8765_v8 = vpop.eup %8764  ;;  %v6449_v43 = vadd.f32 %v7490_v12, %v6353_v40  ;;  %v6264_v25 = vadd.f32 1.0, %v8763_v29  ;;  %8780 = vpow2.f32 %v7387_v63  ;;  %v6105_v3 = vmul.f32 %v8329_v35, %v10101_v22  ;;  %v8095_v12 = vpop.f32.mrb[28].mxu1 }
 0x246   : > { %v6447_v60 = vadd.f32 %v7486_v5, %v6351_v46  ;;  %v6262_v39 = vadd.f32 1.0, %v8765_v8  ;;  %v7388_v42 = vmul.f32 -1.442695, %v10352_v52  ;;  %v8287_v45 = vpop.f32.mrb[28].mxu0  ;;  %v8331_v5 = vadd.f32 %v8284_v55, %v8092_v18  ;;  %v3504_v47 = vpop.f32.mrb[29].mxu1 }
 0x247   : > { %v7559_v14 = vpack.c.bf16 %v6449_v43, %v6448_v36  ;;  %8782 = vrcp.f32 %v6264_v25  ;;  %v10360_v26 = vadd.f32 %v10107_v61, %v6105_v3  ;;  %v5961_v56 = vpop.f32.mrb[29].mxu0  ;;  %v6103_v19 = vmul.f32 %v8330_v59, %v10101_v22  ;;  %v8096_v50 = vpop.f32.mrb[30].mxu1 }
 0x248   : > { %v8767_v51 = vpop.eup %8766  ;;  %v7554_v20 = vpack.c.bf16 %v6447_v60, %v6446_v41  ;;  %8784 = vrcp.f32 %v6262_v39  ;;  %v8288_v49 = vpop.f32.mrb[30].mxu0  ;;  %v6106_v57 = vmul.f32 %v8331_v5, %v10101_v22  ;;  %v6104_v27 = vmul.f32 %v8332_v16, %v10101_v22 }
 0x249   : > { %v8769_v44 = vpop.eup %8768  ;;  %7630 = vst [vmem:[%s10285_s9 + $0x28] sm:$0xff] %v7559_v14   ;;  %v6356_v15 = vmul.f32 %v8767_v51, %v10236_v6  ;;  %8786 = vpow2.f32 %v7390_v31  ;;  %v7393_v18 = vmul.f32 -1.442695, %v10360_v26  ;;  %v3507_v33 = vpop.f32.mrb[31].mxu1  ;;  %v10374_v2 = vadd.f32 %v10107_v61, %v6103_v19  ;;  %v7618_v19 = vld [vmem:[%s10128_s18 + $0x40] sm:$0xff]  }
 0x24a   : > { %v8771_v21 = vpop.eup %8770  ;;  %7629 = vst [vmem:[%s10285_s9 + $0x20] sm:$0xff] %v7554_v20   ;;  %v6354_v9 = vmul.f32 %v8769_v44, %v10240_v0  ;;  %8788 = vpow2.f32 %v7388_v42  ;;  %v5964_v54 = vpop.f32.mrb[31].mxu0  ;;  %v10381_v13 = vadd.f32 %v10107_v61, %v6106_v57  ;;  %v10387_v36 = vadd.f32 %v10107_v61, %v6104_v27  ;;  %v7619_v20 = vld [vmem:[%s10128_s18 + $0x48] sm:$0xff]  }
 0x24b   : > { %v8773_v35 = vpop.eup %8772  ;;  %v6452_v6 = vadd.f32 %v7497_v23, %v6356_v15  ;;  %v6357_v55 = vmul.f32 %v8771_v21, %v10251_v28  ;;  %8790 = vpow2.f32 %v7393_v18  ;;  %v7391_v11 = vmul.f32 -1.442695, %v10374_v2 }
 0x24c   : > { %v8775_v38 = vpop.eup %8774  ;;  %v6450_v0 = vadd.f32 %v7493_v32, %v6354_v9  ;;  %v6355_v63 = vmul.f32 %v8773_v35, %v10255_v30  ;;  %v10468_v32 = vunpack.c.h.bf16 %v10204_v53  ;;  %v7394_v29 = vmul.f32 -1.442695, %v10381_v13 }
 0x24d   : > { %v8777_v58 = vpop.eup %8776  ;;  %v6453_v23 = vadd.f32 %v7498_v34, %v6357_v55  ;;  %v6265_v28 = vadd.f32 1.0, %v8775_v38  ;;  %v8333_v41 = vadd.f32 %v8287_v45, %v8095_v12  ;;  %v7392_v34 = vmul.f32 -1.442695, %v10387_v36 }
 0x24e   : > { %v8779_v40 = vpop.eup %8778  ;;  %v6451_v4 = vadd.f32 %v10468_v32, %v6355_v63  ;;  %v6263_v30 = vadd.f32 1.0, %v8777_v58  ;;  %v8334_v53 = vadd.f32 %v5961_v56, %v3504_v47  ;;  %v8335_v31 = vadd.f32 %v8288_v49, %v8096_v50  ;;  %v7621_v58 = vld [vmem:[%s10128_s18 + $0x58] sm:$0xff]  }
 0x24f   : > { %v8781_v46 = vpop.eup %8780  ;;  %v7569_v8 = vpack.c.bf16 %v6453_v23, %v6452_v6  ;;  %8792 = vrcp.f32 %v6265_v28  ;;  %v6268_v1 = vadd.f32 1.0, %v8779_v40  ;;  %v6109_v60 = vmul.f32 %v8333_v41, %v10101_v22  ;;  %v7620_v23 = vld [vmem:[%s10128_s18 + $0x50] sm:$0xff]  }
 0x250   : > { %v7564_v43 = vpack.c.bf16 %v6451_v4, %v6450_v0  ;;  %8794 = vrcp.f32 %v6263_v30  ;;  %v6266_v25 = vadd.f32 1.0, %v8781_v46  ;;  %v8336_v3 = vadd.f32 %v5964_v54, %v3507_v33 }
 0x251   : > { %v8783_v39 = vpop.eup %8782  ;;  %7632 = vst [vmem:[%s10285_s9 + $0x38] sm:$0xff] %v7569_v8   ;;  %8796 = vrcp.f32 %v6268_v1  ;;  %v10397_v42 = vadd.f32 %v10107_v61, %v6109_v60  ;;  %v6107_v12 = vmul.f32 %v8334_v53, %v10101_v22  ;;  %v6110_v45 = vmul.f32 %v8335_v31, %v10101_v22 }
 0x252   : > { %v8785_v14 = vpop.eup %8784  ;;  %7631 = vst [vmem:[%s10285_s9 + $0x30] sm:$0xff] %v7564_v43   ;;  %8798 = vrcp.f32 %v6266_v25  ;;  %v6108_v50 = vmul.f32 %v8336_v3, %v10101_v22  ;;  %v7505_v49 = vunpack.c.l.bf16 %v7619_v20  ;;  %v7506_v21 = vunpack.c.h.bf16 %v7619_v20 }
 0x253   : > { %v8787_v59 = vpop.eup %8786  ;;  %8800 = vpow2.f32 %v7391_v11  ;;  %v7397_v47 = vmul.f32 -1.442695, %v10397_v42  ;;  %v10404_v44 = vadd.f32 %v10107_v61, %v6107_v12  ;;  %v10408_v16 = vadd.f32 %v10107_v61, %v6110_v45 }
 0x254   : > { %v8789_v51 = vpop.eup %8788  ;;  %v6269_v5 = vadd.f32 1.0, %v8787_v59  ;;  %8802 = vpow2.f32 %v7394_v29  ;;  %v6360_v18 = vmul.f32 %v8783_v39, %v10280_v24  ;;  %v10415_v33 = vadd.f32 %v10107_v61, %v6108_v50 }
 0x255   : > { %v6267_v56 = vadd.f32 1.0, %v8789_v51  ;;  %8804 = vpow2.f32 %v7392_v34  ;;  %v8791_v15 = vpop.eup %8790  ;;  %v7395_v9 = vmul.f32 -1.442695, %v10404_v44  ;;  %v7398_v57 = vmul.f32 -1.442695, %v10408_v16 }
 0x256   : > { %8806 = vrcp.f32 %v6269_v5  ;;  %v6358_v35 = vmul.f32 %v8785_v14, %v10290_v62  ;;  %v7501_v6 = vunpack.c.l.bf16 %v7618_v19  ;;  %v7502_v22 = vunpack.c.h.bf16 %v7618_v19 }
 0x257   : > { %8808 = vrcp.f32 %v6267_v56  ;;  %v6272_v55 = vadd.f32 1.0, %v8791_v15  ;;  %v7396_v0 = vmul.f32 -1.442695, %v10415_v33  ;;  %v6456_v28 = vadd.f32 %v7505_v49, %v6360_v18  ;;  %v7622_v49 = vld [vmem:[%s10128_s18 + $0x60] sm:$0xff]  }
 0x258   : > { %8810 = vpow2.f32 %v7397_v47  ;;  %v6454_v40 = vadd.f32 %v7501_v6, %v6358_v35  ;;  %v7513_v30 = vunpack.c.l.bf16 %v7621_v58  ;;  %v7509_v29 = vunpack.c.l.bf16 %v7620_v23 }
 0x259   : > { %v8793_v54 = vpop.eup %8792  ;;  %8812 = vpow2.f32 %v7395_v9  ;;  %v7514_v1 = vunpack.c.h.bf16 %v7621_v58  ;;  %v7510_v60 = vunpack.c.h.bf16 %v7620_v23  ;;  %v7517_v6 = vunpack.c.l.bf16 %v7622_v49 }
 0x25a   : > { %v8795_v27 = vpop.eup %8794  ;;  %v6361_v38 = vmul.f32 %v8793_v54, %v10305_v37  ;;  %8814 = vpow2.f32 %v7398_v57 }
 0x25b   : > { %v8797_v24 = vpop.eup %8796  ;;  %v6359_v63 = vmul.f32 %v8795_v27, %v10318_v10  ;;  %8816 = vpow2.f32 %v7396_v0 }
 0x25c   : > { %v8799_v61 = vpop.eup %8798  ;;  %v6457_v11 = vadd.f32 %v7506_v21, %v6361_v38  ;;  %8818 = vrcp.f32 %v6272_v55  ;;  %v6364_v8 = vmul.f32 %v8797_v24, %v10322_v17 }
 0x25d   : > { %v8801_v62 = vpop.eup %8800  ;;  %v6455_v32 = vadd.f32 %v7502_v22, %v6359_v63  ;;  %v6362_v25 = vmul.f32 %v8799_v61, %v10330_v48  ;;  %v7518_v22 = vunpack.c.h.bf16 %v7622_v49  ;;  %v7625_v63 = vld [vmem:[%s10128_s18 + $0x78] sm:$0xff]   ;;  %v7624_v61 = vld [vmem:[%s10128_s18 + $0x70] sm:$0xff]  }
 0x25e   : > { %v8803_v4 = vpop.eup %8802  ;;  %v7579_v37 = vpack.c.bf16 %v6457_v11, %v6456_v28  ;;  %v6270_v41 = vadd.f32 1.0, %v8801_v62  ;;  %v6460_v17 = vadd.f32 %v7513_v30, %v6364_v8 }
 0x25f   : > { %v8805_v46 = vpop.eup %8804  ;;  %v7574_v10 = vpack.c.bf16 %v6455_v32, %v6454_v40  ;;  %v6273_v34 = vadd.f32 1.0, %v8803_v4  ;;  %v6458_v48 = vadd.f32 %v7509_v29, %v6362_v25  ;;  %v7529_v40 = vunpack.c.l.bf16 %v7625_v63 }
 0x260   : > { %v8807_v43 = vpop.eup %8806  ;;  %7634 = vst [vmem:[%s10285_s9 + $0x48] sm:$0xff] %v7579_v37   ;;  %8820 = vrcp.f32 %v6270_v41  ;;  %v6271_v39 = vadd.f32 1.0, %v8805_v46  ;;  %v7530_v32 = vunpack.c.h.bf16 %v7625_v63  ;;  %v7525_v4 = vunpack.c.l.bf16 %v7624_v61 }
 0x261   : > { %v8809_v53 = vpop.eup %8808  ;;  %7633 = vst [vmem:[%s10285_s9 + $0x40] sm:$0xff] %v7574_v10   ;;  %v6365_v31 = vmul.f32 %v8807_v43, %v10347_v7  ;;  %8822 = vrcp.f32 %v6273_v34  ;;  %v7526_v37 = vunpack.c.h.bf16 %v7624_v61 }
 0x262   : > { %v8811_v3 = vpop.eup %8810  ;;  %v6363_v14 = vmul.f32 %v8809_v53, %v10352_v52  ;;  %8824 = vrcp.f32 %v6271_v39  ;;  %v7623_v52 = vld [vmem:[%s10128_s18 + $0x68] sm:$0xff]  }
 0x263   : > { %v6461_v59 = vadd.f32 %v7514_v1, %v6365_v31  ;;  %v6276_v12 = vadd.f32 1.0, %v8811_v3  ;;  %v8813_v45 = vpop.eup %8812  ;;  %v7521_v18 = vunpack.c.l.bf16 %v7623_v52  ;;  %v7522_v57 = vunpack.c.h.bf16 %v7623_v52 }
 0x264   : > { %v6459_v51 = vadd.f32 %v7510_v60, %v6363_v14  ;;  %v8815_v20 = vpop.eup %8814  ;;  %v6274_v47 = vadd.f32 1.0, %v8813_v45 }
 0x265   : > { %v7589_v5 = vpack.c.bf16 %v6461_v59, %v6460_v17  ;;  %8826 = vrcp.f32 %v6276_v12  ;;  %v8817_v7 = vpop.eup %8816  ;;  %v6277_v15 = vadd.f32 1.0, %v8815_v20 }
 0x266   : > { %v7584_v56 = vpack.c.bf16 %v6459_v51, %v6458_v48  ;;  %v8819_v19 = vpop.eup %8818  ;;  %8828 = vrcp.f32 %v6274_v47  ;;  %v6275_v50 = vadd.f32 1.0, %v8817_v7 }
 0x267   : > { %7636 = vst [vmem:[%s10285_s9 + $0x58] sm:$0xff] %v7589_v5   ;;  %8830 = vrcp.f32 %v6277_v15  ;;  %v6368_v9 = vmul.f32 %v8819_v19, %v10360_v26 }
 0x268   : > { %7635 = vst [vmem:[%s10285_s9 + $0x50] sm:$0xff] %v7584_v56   ;;  %8832 = vrcp.f32 %v6275_v50 }
 0x269   : > { %v6464_v0 = vadd.f32 %v7521_v18, %v6368_v9 }
 0x26a   : > { %v8821_v21 = vpop.eup %8820 }
 0x26b   : > { %v8823_v54 = vpop.eup %8822  ;;  %v6366_v35 = vmul.f32 %v8821_v21, %v10374_v2 }
 0x26c   : > { %v8825_v55 = vpop.eup %8824  ;;  %v6369_v27 = vmul.f32 %v8823_v54, %v10381_v13 }
 0x26d   : > { %v6367_v38 = vmul.f32 %v8825_v55, %v10387_v36  ;;  %v6462_v26 = vadd.f32 %v7517_v6, %v6366_v35 }
 0x26e   : > { %v6465_v24 = vadd.f32 %v7522_v57, %v6369_v27 }
 0x26f   : > { %v8827_v58 = vpop.eup %8826  ;;  %v6463_v23 = vadd.f32 %v7518_v22, %v6367_v38 }
 0x270   : > { %v7599_v28 = vpack.c.bf16 %v6465_v24, %v6464_v0  ;;  %v8829_v11 = vpop.eup %8828  ;;  %v6372_v2 = vmul.f32 %v8827_v58, %v10397_v42 }
 0x271   : > { %v7594_v62 = vpack.c.bf16 %v6463_v23, %v6462_v26  ;;  %v8831_v13 = vpop.eup %8830  ;;  %v6370_v36 = vmul.f32 %v8829_v11, %v10404_v44 }
 0x272   : > { %7638 = vst [vmem:[%s10285_s9 + $0x68] sm:$0xff] %v7599_v28   ;;  %v8833_v30 = vpop.eup %8832  ;;  %v6373_v29 = vmul.f32 %v8831_v13, %v10408_v16  ;;  %v6468_v46 = vadd.f32 %v7529_v40, %v6372_v2 }
 0x273   : > { %7637 = vst [vmem:[%s10285_s9 + $0x60] sm:$0xff] %v7594_v62   ;;  %v6371_v41 = vmul.f32 %v8833_v30, %v10415_v33  ;;  %v6466_v8 = vadd.f32 %v7525_v4, %v6370_v36 }
 0x274   : > { %v6469_v10 = vadd.f32 %v7530_v32, %v6373_v29 }
 0x275   : > { %v6467_v42 = vadd.f32 %v7526_v37, %v6371_v41 }
 0x276   : > { %v7609_v1 = vpack.c.bf16 %v6469_v10, %v6468_v46 }
 0x277   : > { %v7604_v34 = vpack.c.bf16 %v6467_v42, %v6466_v8 }
 0x278   : > { %7640 = vst [vmem:[%s10285_s9 + $0x78] sm:$0xff] %v7609_v1  }
 0x279   : > { %7639 = vst [vmem:[%s10285_s9 + $0x70] sm:$0xff] %v7604_v34  }
 0x27a PF: > { %p12_p10 = scmp.ge.s32.totalorder %s8915_s22, 4   ;;  %s10469_s18 = smov %s8860_s19 }
 0x27b   : > { %s10470_s19 = smov %s8924_s25  ;;  %s10471_s20 = smov %s8915_s22 }
 0x27c   :  { %14 = sbr.rel (!%p12_p10) target bundleno = 2 (0x2), region = 129 }

</bundles_post_ra>
